<compile_context>
chip_gen: v7x
topology: tpu7x:2x2x1
jax: 0.10.0
libtpu: 0.0.40
codegen_flags: <defaults>
</compile_context>

<pallas_src>
import functools

import jax
import jax.numpy as jnp
from jax.experimental import pallas as pl
from jax.experimental.pallas import tpu as pltpu

GCN_LAYERS = 4
GCN_HIDDEN = 144
LINEAR_HIDDEN = 128
LANE = 128
SUBLANE = 8
ROW_TARGET = 256  # MXU-friendly packed-row count


def _round_up(x, m):
    return ((x + m - 1) // m) * m


def neural_predictor_kernel(a_ref, ainv_ref, x_ref, s_ref,
                            w0_ref, w1_ref, w2_ref, w3_ref,
                            fcf_ref, out_ref, *, hidden_pad):
    """One grid step = one packed group of B_g graphs (block-diagonal adjacency)."""
    A = a_ref[0]        # [M, M]  block-diag, row-normalized (adj + I)
    Ainv = ainv_ref[0]  # [M, M]  block-diag, row-normalized transpose
    x = x_ref[0]        # [M, F_in]

    for w_ref in (w0_ref, w1_ref, w2_ref, w3_ref):
        # Concatenated [W1 | W2] -> one x@W matmul per layer.
        xw = jnp.dot(x, w_ref[...], preferred_element_type=jnp.float32)  # [M, 2*HP]
        o1 = jnp.maximum(
            jnp.dot(A, xw[:, :hidden_pad], preferred_element_type=jnp.float32), 0.0)
        o2 = jnp.maximum(
            jnp.dot(Ainv, xw[:, hidden_pad:], preferred_element_type=jnp.float32), 0.0)
        x = 0.5 * (o1 + o2)
        # nn.Dropout(0.1) -> identity in eval mode

    # Graph pooling (sum over nodes / num_vertices) as a matmul with precomputed S.
    pooled = jnp.dot(s_ref[0], x, preferred_element_type=jnp.float32)     # [B_g, HP]
    # Fused fc1@fc2, zero-padded to 128 output lanes (only lane 0 is real).
    out_ref[0] = jnp.dot(pooled, fcf_ref[...],
                         preferred_element_type=jnp.float32)              # [B_g, 128]


@jax.jit
def neural_predictor_forward(numv, adj, ops, params):
    """numv: [B] int32, adj: [B,N,N], ops: [B,N,F_in] -> [B] f32."""
    adj = adj.astype(jnp.float32)
    ops = ops.astype(jnp.float32)
    B, N, _ = adj.shape
    F_in = ops.shape[-1]
    H = params["fc1"].shape[0]            # gcn_hidden (144)
    HP = _round_up(H, LANE)               # padded hidden (144 -> 256)

    # ---- pad node count to a sublane multiple (padded nodes stay zero) ----
    NP = _round_up(N, SUBLANE)
    adj = jnp.pad(adj, ((0, 0), (0, NP - N), (0, NP - N)))
    ops = jnp.pad(ops, ((0, 0), (0, NP - N), (0, 0)))

    # ---- graph batching: B_g graphs per grid step, block-diagonal adjacency ----
    B_g = max(1, ROW_TARGET // NP)
    M = B_g * NP
    G = -(-B // B_g)
    pad_b = G * B_g - B

    adj_p = jnp.pad(adj, ((0, pad_b), (0, 0), (0, 0)))
    ops_p = jnp.pad(ops, ((0, pad_b), (0, 0), (0, 0)))
    numv_p = jnp.pad(numv.astype(jnp.float32), (0, pad_b), constant_values=1.0)

    # Pre-normalize adjacency once (hoisted out of the kernel and the layer loop).
    eye_n = jnp.eye(NP, dtype=jnp.float32)
    a = adj_p + eye_n
    a = a / jnp.sum(a, axis=-1, keepdims=True)            # normalize_adj(adj + I)
    at = jnp.swapaxes(a, 1, 2)
    at = at / jnp.sum(at, axis=-1, keepdims=True)         # normalize_adj(A^T)

    # Block-diagonal packing: packed[g*NP+i, h*NP+j] = a[g,i,j] * (g==h).
    eye_g = jnp.eye(B_g, dtype=jnp.float32)
    a = a.reshape(G, B_g, NP, NP)
    at = at.reshape(G, B_g, NP, NP)
    A_pk = jnp.einsum("Ggij,gh->Ggihj", a, eye_g).reshape(G, M, M)
    Ainv_pk = jnp.einsum("Ggij,gh->Ggihj", at, eye_g).reshape(G, M, M)
    x_pk = ops_p.reshape(G, M, F_in)

    # Pooling (+ 1/num_vertices, guarded) as a matmul: S[g, g*NP+n] = 1/numv[g].
    inv_nv = jnp.where(numv_p > 0, 1.0 / jnp.maximum(numv_p, 1.0), 0.0)
    S = jnp.einsum("Gg,gh,n->Gghn", inv_nv.reshape(G, B_g), eye_g,
                   jnp.ones((NP,), jnp.float32)).reshape(G, B_g, M)

    # Weights: zero-pad hidden 144->HP, concat [W1|W2] per layer, fuse fc1@fc2.
    w12 = []
    for i, (w1, w2) in enumerate(zip(params["w1"], params["w2"])):
        K = w1.shape[0]
        KP = K if i == 0 else HP
        w1p = jnp.zeros((KP, HP), jnp.float32).at[:K, :H].set(w1)
        w2p = jnp.zeros((KP, HP), jnp.float32).at[:K, :H].set(w2)
        w12.append(jnp.concatenate([w1p, w2p], axis=1))    # [KP, 2*HP]
    fc_fused = params["fc1"] @ params["fc2"]               # [H, 1] (no nonlinearity between)
    fcf = jnp.zeros((HP, LANE), jnp.float32).at[:H, 0:1].set(fc_fused)

    grid_spec = pltpu.PrefetchScalarGridSpec(
        num_scalar_prefetch=0,
        grid=(G,),
        in_specs=[
            pl.BlockSpec((1, M, M), lambda g: (g, 0, 0)),        # A (block-diag)
            pl.BlockSpec((1, M, M), lambda g: (g, 0, 0)),        # A^T normalized
            pl.BlockSpec((1, M, F_in), lambda g: (g, 0, 0)),     # node features
            pl.BlockSpec((1, B_g, M), lambda g: (g, 0, 0)),      # pooling matrix
            *[pl.BlockSpec(w.shape, lambda g: (0, 0)) for w in w12],
            pl.BlockSpec(fcf.shape, lambda g: (0, 0)),
        ],
        out_specs=pl.BlockSpec((1, B_g, LANE), lambda g: (g, 0, 0)),
    )

    out = pl.pallas_call(
        functools.partial(neural_predictor_kernel, hidden_pad=HP),
        out_shape=jax.ShapeDtypeStruct((G, B_g, LANE), jnp.float32),
        grid_spec=grid_spec,
        compiler_params=pltpu.CompilerParams(
            dimension_semantics=("parallel",)),
    )(A_pk, Ainv_pk, x_pk, S, *w12, fcf)

    # Only lane 0 carries the prediction; drop padded dummy graphs.
    return out.reshape(G * B_g, LANE)[:B, 0]


def reference_forward(numv, adj, ops, params):
    """Pure-JAX reference mirroring the PyTorch forward (eval mode)."""
    adj = adj.astype(jnp.float32)
    B, N, _ = adj.shape

    def norm(a):
        return a / jnp.sum(a, axis=-1, keepdims=True)

    a = norm(adj + jnp.eye(N, dtype=jnp.float32))
    x = ops.astype(jnp.float32)
    for (w1, w2) in zip(params["w1"], params["w2"]):
        o1 = jax.nn.relu(jnp.einsum("bij,bjh->bih", norm(a), x @ w1))
        o2 = jax.nn.relu(
            jnp.einsum("bij,bjh->bih", norm(jnp.swapaxes(a, 1, 2)), x @ w2))
        x = (o1 + o2) / 2.0
    pooled = x.sum(axis=1) / numv.astype(jnp.float32)[:, None]
    return (pooled @ params["fc1"] @ params["fc2"]).reshape(-1)


def xavier_uniform(key, shape):
    fan_in, fan_out = shape
    bound = (6.0 / (fan_in + fan_out)) ** 0.5
    return jax.random.uniform(key, shape, jnp.float32, -bound, bound)


def init_params(key, initial_hidden, gcn_hidden=144, gcn_layers=4,
                linear_hidden=128):
    keys = jax.random.split(key, 2 * gcn_layers + 2)
    w1, w2 = [], []
    for i in range(gcn_layers):
        f_in = initial_hidden if i == 0 else gcn_hidden
        w1.append(xavier_uniform(keys[2 * i], (f_in, gcn_hidden)))
        w2.append(xavier_uniform(keys[2 * i + 1], (f_in, gcn_hidden)))
    # nn.Linear weights stored already transposed ([in, out]) for x @ W use.
    fc1 = xavier_uniform(keys[-2], (gcn_hidden, linear_hidden))
    fc2 = xavier_uniform(keys[-1], (linear_hidden, 1))
    return {"w1": w1, "w2": w2, "fc1": fc1, "fc2": fc2}


if __name__ == "__main__":
    B, N = 2, 8              # batch of graphs, vertices per graph
    INITIAL_HIDDEN = 8       # operation one-hot / feature dim

    key = jax.random.PRNGKey(0)
    k_adj, k_ops, k_nv, k_params = jax.random.split(key, 4)

    adj = jax.random.bernoulli(k_adj, 0.5, (B, N, N)).astype(jnp.float32)
    ops = jax.random.normal(k_ops, (B, N, INITIAL_HIDDEN), jnp.float32)
    numv = jax.random.randint(k_nv, (B,), 3, N + 1, jnp.int32)

    params = init_params(k_params, INITIAL_HIDDEN, GCN_HIDDEN, GCN_LAYERS,
                         LINEAR_HIDDEN)

    out = jax.block_until_ready(neural_predictor_forward(numv, adj, ops, params))
    ref = jax.block_until_ready(reference_forward(numv, adj, ops, params))

    assert out.shape == (B,)
    assert jnp.allclose(out, ref, rtol=1e-4, atol=1e-4), (out, ref)

    print("KERNEL_OK")
</pallas_src>

<mosaic_0001>
module attributes {stable_mosaic.version = 11 : i64} {
  func.func @neural_predictor_kernel(%arg0: i32, %arg1: memref<1x256x256xf32, #tpu.memory_space<vmem>>, %arg2: memref<1x256x256xf32, #tpu.memory_space<vmem>>, %arg3: memref<1x256x8xf32, #tpu.memory_space<vmem>>, %arg4: memref<1x32x256xf32, #tpu.memory_space<vmem>>, %arg5: memref<8x512xf32, #tpu.memory_space<vmem>>, %arg6: memref<256x512xf32, #tpu.memory_space<vmem>>, %arg7: memref<256x512xf32, #tpu.memory_space<vmem>>, %arg8: memref<256x512xf32, #tpu.memory_space<vmem>>, %arg9: memref<256x128xf32, #tpu.memory_space<vmem>>, %arg10: memref<1x32x128xf32, #tpu.memory_space<vmem>>) attributes {dimension_semantics = [#tpu.dimension_semantics<parallel>], iteration_bounds = array<i64: 1>, scalar_prefetch = 0 : i64, scratch_operands = 0 : i64, tpu.core_type = #tpu.core_type<tc>, window_params = [{transform_indices = @transform_0, window_bounds = array<i64: 1, 256, 256>}, {transform_indices = @transform_1, window_bounds = array<i64: 1, 256, 256>}, {transform_indices = @transform_2, window_bounds = array<i64: 1, 256, 8>}, {transform_indices = @transform_3, window_bounds = array<i64: 1, 32, 256>}, {pipeline_mode = #tpu.pipeline_mode<synchronous>, transform_indices = @transform_4, window_bounds = array<i64: 8, 512>}, {pipeline_mode = #tpu.pipeline_mode<synchronous>, transform_indices = @transform_5, window_bounds = array<i64: 256, 512>}, {pipeline_mode = #tpu.pipeline_mode<synchronous>, transform_indices = @transform_6, window_bounds = array<i64: 256, 512>}, {pipeline_mode = #tpu.pipeline_mode<synchronous>, transform_indices = @transform_7, window_bounds = array<i64: 256, 512>}, {pipeline_mode = #tpu.pipeline_mode<synchronous>, transform_indices = @transform_8, window_bounds = array<i64: 256, 128>}, {transform_indices = @transform_9, window_bounds = array<i64: 1, 32, 128>}]} {
    %c0 = arith.constant 0 : index
    %c0_0 = arith.constant 0 : index
    %c0_1 = arith.constant 0 : index
    %0 = vector.load %arg1[%c0, %c0_0, %c0_1] : memref<1x256x256xf32, #tpu.memory_space<vmem>>, vector<1x256x256xf32>
    %1 = vector.shape_cast %0 : vector<1x256x256xf32> to vector<256x256xf32>
    %c0_2 = arith.constant 0 : index
    %c0_3 = arith.constant 0 : index
    %c0_4 = arith.constant 0 : index
    %2 = vector.load %arg2[%c0_2, %c0_3, %c0_4] : memref<1x256x256xf32, #tpu.memory_space<vmem>>, vector<1x256x256xf32>
    %3 = vector.shape_cast %2 : vector<1x256x256xf32> to vector<256x256xf32>
    %c0_5 = arith.constant 0 : index
    %c0_6 = arith.constant 0 : index
    %c0_7 = arith.constant 0 : index
    %4 = vector.load %arg3[%c0_5, %c0_6, %c0_7] : memref<1x256x8xf32, #tpu.memory_space<vmem>>, vector<1x256x8xf32>
    %5 = vector.shape_cast %4 : vector<1x256x8xf32> to vector<256x8xf32>
    %c0_8 = arith.constant 0 : index
    %c0_9 = arith.constant 0 : index
    %6 = vector.load %arg5[%c0_8, %c0_9] : memref<8x512xf32, #tpu.memory_space<vmem>>, vector<8x512xf32>
    %cst = arith.constant dense<0.000000e+00> : vector<256x512xf32>
    %7 = tpu.matmul %5, %6, %cst {dimension_numbers = #tpu.dot_dimension_numbers<[1], [0], [0], [1], [0, 0, 1, 1], [], []>} : vector<256x8xf32>, vector<8x512xf32>, vector<256x512xf32> -> vector<256x512xf32>
    %8 = vector.extract_strided_slice %7 {offsets = [0, 0], sizes = [256, 256], strides = [1, 1]} : vector<256x512xf32> to vector<256x256xf32>
    %cst_10 = arith.constant dense<0.000000e+00> : vector<256x256xf32>
    %9 = tpu.matmul %1, %8, %cst_10 {dimension_numbers = #tpu.dot_dimension_numbers<[1], [0], [0], [1], [0, 0, 1, 1], [], []>} : vector<256x256xf32>, vector<256x256xf32>, vector<256x256xf32> -> vector<256x256xf32>
    %cst_11 = arith.constant 0.000000e+00 : f32
    %10 = vector.broadcast %cst_11 : f32 to vector<256x256xf32>
    %11 = arith.maximumf %9, %10 : vector<256x256xf32>
    %12 = vector.extract_strided_slice %7 {offsets = [0, 256], sizes = [256, 256], strides = [1, 1]} : vector<256x512xf32> to vector<256x256xf32>
    %cst_12 = arith.constant dense<0.000000e+00> : vector<256x256xf32>
    %13 = tpu.matmul %3, %12, %cst_12 {dimension_numbers = #tpu.dot_dimension_numbers<[1], [0], [0], [1], [0, 0, 1, 1], [], []>} : vector<256x256xf32>, vector<256x256xf32>, vector<256x256xf32> -> vector<256x256xf32>
    %cst_13 = arith.constant 0.000000e+00 : f32
    %14 = vector.broadcast %cst_13 : f32 to vector<256x256xf32>
    %15 = arith.maximumf %13, %14 : vector<256x256xf32>
    %16 = arith.addf %11, %15 : vector<256x256xf32>
    %cst_14 = arith.constant 5.000000e-01 : f32
    %17 = vector.broadcast %cst_14 : f32 to vector<256x256xf32>
    %18 = arith.mulf %17, %16 : vector<256x256xf32>
    %c0_15 = arith.constant 0 : index
    %c0_16 = arith.constant 0 : index
    %19 = vector.load %arg6[%c0_15, %c0_16] : memref<256x512xf32, #tpu.memory_space<vmem>>, vector<256x512xf32>
    %cst_17 = arith.constant dense<0.000000e+00> : vector<256x512xf32>
    %20 = tpu.matmul %18, %19, %cst_17 {dimension_numbers = #tpu.dot_dimension_numbers<[1], [0], [0], [1], [0, 0, 1, 1], [], []>} : vector<256x256xf32>, vector<256x512xf32>, vector<256x512xf32> -> vector<256x512xf32>
    %21 = vector.extract_strided_slice %20 {offsets = [0, 0], sizes = [256, 256], strides = [1, 1]} : vector<256x512xf32> to vector<256x256xf32>
    %cst_18 = arith.constant dense<0.000000e+00> : vector<256x256xf32>
    %22 = tpu.matmul %1, %21, %cst_18 {dimension_numbers = #tpu.dot_dimension_numbers<[1], [0], [0], [1], [0, 0, 1, 1], [], []>} : vector<256x256xf32>, vector<256x256xf32>, vector<256x256xf32> -> vector<256x256xf32>
    %cst_19 = arith.constant 0.000000e+00 : f32
    %23 = vector.broadcast %cst_19 : f32 to vector<256x256xf32>
    %24 = arith.maximumf %22, %23 : vector<256x256xf32>
    %25 = vector.extract_strided_slice %20 {offsets = [0, 256], sizes = [256, 256], strides = [1, 1]} : vector<256x512xf32> to vector<256x256xf32>
    %cst_20 = arith.constant dense<0.000000e+00> : vector<256x256xf32>
    %26 = tpu.matmul %3, %25, %cst_20 {dimension_numbers = #tpu.dot_dimension_numbers<[1], [0], [0], [1], [0, 0, 1, 1], [], []>} : vector<256x256xf32>, vector<256x256xf32>, vector<256x256xf32> -> vector<256x256xf32>
    %cst_21 = arith.constant 0.000000e+00 : f32
    %27 = vector.broadcast %cst_21 : f32 to vector<256x256xf32>
    %28 = arith.maximumf %26, %27 : vector<256x256xf32>
    %29 = arith.addf %24, %28 : vector<256x256xf32>
    %cst_22 = arith.constant 5.000000e-01 : f32
    %30 = vector.broadcast %cst_22 : f32 to vector<256x256xf32>
    %31 = arith.mulf %30, %29 : vector<256x256xf32>
    %c0_23 = arith.constant 0 : index
    %c0_24 = arith.constant 0 : index
    %32 = vector.load %arg7[%c0_23, %c0_24] : memref<256x512xf32, #tpu.memory_space<vmem>>, vector<256x512xf32>
    %cst_25 = arith.constant dense<0.000000e+00> : vector<256x512xf32>
    %33 = tpu.matmul %31, %32, %cst_25 {dimension_numbers = #tpu.dot_dimension_numbers<[1], [0], [0], [1], [0, 0, 1, 1], [], []>} : vector<256x256xf32>, vector<256x512xf32>, vector<256x512xf32> -> vector<256x512xf32>
    %34 = vector.extract_strided_slice %33 {offsets = [0, 0], sizes = [256, 256], strides = [1, 1]} : vector<256x512xf32> to vector<256x256xf32>
    %cst_26 = arith.constant dense<0.000000e+00> : vector<256x256xf32>
    %35 = tpu.matmul %1, %34, %cst_26 {dimension_numbers = #tpu.dot_dimension_numbers<[1], [0], [0], [1], [0, 0, 1, 1], [], []>} : vector<256x256xf32>, vector<256x256xf32>, vector<256x256xf32> -> vector<256x256xf32>
    %cst_27 = arith.constant 0.000000e+00 : f32
    %36 = vector.broadcast %cst_27 : f32 to vector<256x256xf32>
    %37 = arith.maximumf %35, %36 : vector<256x256xf32>
    %38 = vector.extract_strided_slice %33 {offsets = [0, 256], sizes = [256, 256], strides = [1, 1]} : vector<256x512xf32> to vector<256x256xf32>
    %cst_28 = arith.constant dense<0.000000e+00> : vector<256x256xf32>
    %39 = tpu.matmul %3, %38, %cst_28 {dimension_numbers = #tpu.dot_dimension_numbers<[1], [0], [0], [1], [0, 0, 1, 1], [], []>} : vector<256x256xf32>, vector<256x256xf32>, vector<256x256xf32> -> vector<256x256xf32>
    %cst_29 = arith.constant 0.000000e+00 : f32
    %40 = vector.broadcast %cst_29 : f32 to vector<256x256xf32>
    %41 = arith.maximumf %39, %40 : vector<256x256xf32>
    %42 = arith.addf %37, %41 : vector<256x256xf32>
    %cst_30 = arith.constant 5.000000e-01 : f32
    %43 = vector.broadcast %cst_30 : f32 to vector<256x256xf32>
    %44 = arith.mulf %43, %42 : vector<256x256xf32>
    %c0_31 = arith.constant 0 : index
    %c0_32 = arith.constant 0 : index
    %45 = vector.load %arg8[%c0_31, %c0_32] : memref<256x512xf32, #tpu.memory_space<vmem>>, vector<256x512xf32>
    %cst_33 = arith.constant dense<0.000000e+00> : vector<256x512xf32>
    %46 = tpu.matmul %44, %45, %cst_33 {dimension_numbers = #tpu.dot_dimension_numbers<[1], [0], [0], [1], [0, 0, 1, 1], [], []>} : vector<256x256xf32>, vector<256x512xf32>, vector<256x512xf32> -> vector<256x512xf32>
    %47 = vector.extract_strided_slice %46 {offsets = [0, 0], sizes = [256, 256], strides = [1, 1]} : vector<256x512xf32> to vector<256x256xf32>
    %cst_34 = arith.constant dense<0.000000e+00> : vector<256x256xf32>
    %48 = tpu.matmul %1, %47, %cst_34 {dimension_numbers = #tpu.dot_dimension_numbers<[1], [0], [0], [1], [0, 0, 1, 1], [], []>} : vector<256x256xf32>, vector<256x256xf32>, vector<256x256xf32> -> vector<256x256xf32>
    %cst_35 = arith.constant 0.000000e+00 : f32
    %49 = vector.broadcast %cst_35 : f32 to vector<256x256xf32>
    %50 = arith.maximumf %48, %49 : vector<256x256xf32>
    %51 = vector.extract_strided_slice %46 {offsets = [0, 256], sizes = [256, 256], strides = [1, 1]} : vector<256x512xf32> to vector<256x256xf32>
    %cst_36 = arith.constant dense<0.000000e+00> : vector<256x256xf32>
    %52 = tpu.matmul %3, %51, %cst_36 {dimension_numbers = #tpu.dot_dimension_numbers<[1], [0], [0], [1], [0, 0, 1, 1], [], []>} : vector<256x256xf32>, vector<256x256xf32>, vector<256x256xf32> -> vector<256x256xf32>
    %cst_37 = arith.constant 0.000000e+00 : f32
    %53 = vector.broadcast %cst_37 : f32 to vector<256x256xf32>
    %54 = arith.maximumf %52, %53 : vector<256x256xf32>
    %55 = arith.addf %50, %54 : vector<256x256xf32>
    %cst_38 = arith.constant 5.000000e-01 : f32
    %56 = vector.broadcast %cst_38 : f32 to vector<256x256xf32>
    %57 = arith.mulf %56, %55 : vector<256x256xf32>
    %c0_39 = arith.constant 0 : index
    %c0_40 = arith.constant 0 : index
    %c0_41 = arith.constant 0 : index
    %58 = vector.load %arg4[%c0_39, %c0_40, %c0_41] : memref<1x32x256xf32, #tpu.memory_space<vmem>>, vector<1x32x256xf32>
    %59 = vector.shape_cast %58 : vector<1x32x256xf32> to vector<32x256xf32>
    %cst_42 = arith.constant dense<0.000000e+00> : vector<32x256xf32>
    %60 = tpu.matmul %59, %57, %cst_42 {dimension_numbers = #tpu.dot_dimension_numbers<[1], [0], [0], [1], [0, 0, 1, 1], [], []>} : vector<32x256xf32>, vector<256x256xf32>, vector<32x256xf32> -> vector<32x256xf32>
    %c0_43 = arith.constant 0 : index
    %c0_44 = arith.constant 0 : index
    %61 = vector.load %arg9[%c0_43, %c0_44] : memref<256x128xf32, #tpu.memory_space<vmem>>, vector<256x128xf32>
    %cst_45 = arith.constant dense<0.000000e+00> : vector<32x128xf32>
    %62 = tpu.matmul %60, %61, %cst_45 {dimension_numbers = #tpu.dot_dimension_numbers<[1], [0], [0], [1], [0, 0, 1, 1], [], []>} : vector<32x256xf32>, vector<256x128xf32>, vector<32x128xf32> -> vector<32x128xf32>
    %c0_46 = arith.constant 0 : index
    %c0_47 = arith.constant 0 : index
    %c0_48 = arith.constant 0 : index
    %63 = vector.load %arg10[%c0_46, %c0_47, %c0_48] : memref<1x32x128xf32, #tpu.memory_space<vmem>>, vector<1x32x128xf32>
    %64 = vector.shape_cast %63 : vector<1x32x128xf32> to vector<32x128xf32>
    %65 = vector.shape_cast %62 : vector<32x128xf32> to vector<1x32x128xf32>
    tpu.vector_store %arg10[%c0_46, %c0_47, %c0_48], %65 {strides = array<i32>} : memref<1x32x128xf32, #tpu.memory_space<vmem>>, vector<1x32x128xf32>,
    return
  }
  func.func @transform_0(%arg0: i32) -> (i32, i32, i32) {
    %c0_i32 = arith.constant 0 : i32
    %c0_i32_0 = arith.constant 0 : i32
    %c0_i32_1 = arith.constant 0 : i32
    return %arg0, %c0_i32, %c0_i32_0 : i32, i32, i32
  }
  func.func @transform_1(%arg0: i32) -> (i32, i32, i32) {
    %c0_i32 = arith.constant 0 : i32
    %c0_i32_0 = arith.constant 0 : i32
    %c0_i32_1 = arith.constant 0 : i32
    return %arg0, %c0_i32, %c0_i32_0 : i32, i32, i32
  }
  func.func @transform_2(%arg0: i32) -> (i32, i32, i32) {
    %c0_i32 = arith.constant 0 : i32
    %c0_i32_0 = arith.constant 0 : i32
    %c0_i32_1 = arith.constant 0 : i32
    return %arg0, %c0_i32, %c0_i32_0 : i32, i32, i32
  }
  func.func @transform_3(%arg0: i32) -> (i32, i32, i32) {
    %c0_i32 = arith.constant 0 : i32
    %c0_i32_0 = arith.constant 0 : i32
    %c0_i32_1 = arith.constant 0 : i32
    return %arg0, %c0_i32, %c0_i32_0 : i32, i32, i32
  }
  func.func @transform_4(%arg0: i32) -> (i32, i32) {
    %c0_i32 = arith.constant 0 : i32
    %c0_i32_0 = arith.constant 0 : i32
    %c0_i32_1 = arith.constant 0 : i32
    return %c0_i32, %c0_i32_0 : i32, i32
  }
  func.func @transform_5(%arg0: i32) -> (i32, i32) {
    %c0_i32 = arith.constant 0 : i32
    %c0_i32_0 = arith.constant 0 : i32
    %c0_i32_1 = arith.constant 0 : i32
    return %c0_i32, %c0_i32_0 : i32, i32
  }
  func.func @transform_6(%arg0: i32) -> (i32, i32) {
    %c0_i32 = arith.constant 0 : i32
    %c0_i32_0 = arith.constant 0 : i32
    %c0_i32_1 = arith.constant 0 : i32
    return %c0_i32, %c0_i32_0 : i32, i32
  }
  func.func @transform_7(%arg0: i32) -> (i32, i32) {
    %c0_i32 = arith.constant 0 : i32
    %c0_i32_0 = arith.constant 0 : i32
    %c0_i32_1 = arith.constant 0 : i32
    return %c0_i32, %c0_i32_0 : i32, i32
  }
  func.func @transform_8(%arg0: i32) -> (i32, i32) {
    %c0_i32 = arith.constant 0 : i32
    %c0_i32_0 = arith.constant 0 : i32
    %c0_i32_1 = arith.constant 0 : i32
    return %c0_i32, %c0_i32_0 : i32, i32
  }
  func.func @transform_9(%arg0: i32) -> (i32, i32, i32) {
    %c0_i32 = arith.constant 0 : i32
    %c0_i32_0 = arith.constant 0 : i32
    %c0_i32_1 = arith.constant 0 : i32
    return %arg0, %c0_i32, %c0_i32_0 : i32, i32, i32
  }
}

</mosaic_0001>

<bundles_post_ra>
// kernel: neural_predictor_forward.1
= control target key start
LH: loop header
LB: loop body
LE: loop exit
PB: predicated region body
PF: predicated region fallthrough
CT: control target
= control target key end

     0   :  { %v7520_v3 = vmov 0.0   ;;  %vm196_vm0 = vcmask 64512   ;;  %s10627_s4 = inlined_call_operand.vmem [shape: f32[8,512], index: 4, kind: input, shape index: {}]   ;;  %s10628_s2 = inlined_call_operand.vmem [shape: f32[1,256,8], index: 2, kind: input, shape index: {}]   ;;  %s10629_s0 = inlined_call_operand.vmem [shape: f32[1,256,256], index: 0, kind: input, shape index: {}]   ;;  %s10630_s1 = inlined_call_operand.vmem [shape: f32[1,256,256], index: 1, kind: input, shape index: {}]   ;;  %s10631_s5 = inlined_call_operand.vmem [shape: f32[256,512], index: 5, kind: input, shape index: {}]   ;;  %s10632_s6 = inlined_call_operand.vmem [shape: f32[256,512], index: 6, kind: input, shape index: {}]   ;;  %s10633_s7 = inlined_call_operand.vmem [shape: f32[256,512], index: 7, kind: input, shape index: {}]   ;;  %s10634_s3 = inlined_call_operand.vmem [shape: f32[1,32,256], index: 3, kind: input, shape index: {}]   ;;  %s10635_s8 = inlined_call_operand.vmem [shape: f32[256,128], index: 8, kind: input, shape index: {}]   ;;  %s10636_s9 = inlined_call_operand.vmem [shape: f32[1,32,128], index: 9, kind: output, shape index: {}]  }
   0x1   :  { %v193_v0 = vld [vmem:[%s10627_s4 + $0x8] sm:$0xff]  ;;  %v195_v1 = vld [vmem:[%s10627_s4 + $0x18] sm:$0xff]  ;;  %v192_v2 = vld [vmem:[%s10627_s4] sm:$0xff]  ;;  %357 = vmatprep.mubr.f32.mxu0 %v7520_v3  ;;  %614 = vmatprep.mubr.f32.mxu1 %v7520_v3 }
   0x2   :  { %293 = vmatprep.subr.mxu0 %v193_v0  ;;  %550 = vmatprep.subr.mxu1 %v195_v1  ;;  %v194_v4 = vld [vmem:[%s10627_s4 + $0x10] sm:$0xff]  ;;  %v160_v5 = vld [vmem:[%s10628_s2] sm:$0xff]  ;;  %v161_v6 = vld [vmem:[%s10628_s2 + $0x8] sm:$0xff] }
   0x3   :  { %294 = vmatpush1.msra.mxu0 %v192_v2  ;;  %551 = vmatpush1.msra.mxu1 %v194_v4  ;;  %v162_v7 = vld [vmem:[%s10628_s2 + $0x10] sm:$0xff]  ;;  %v163_v8 = vld [vmem:[%s10628_s2 + $0x18] sm:$0xff]  ;;  %v164_v9 = vld [vmem:[%s10628_s2 + $0x20] sm:$0xff] }
   0x4   :  { %6035 = vmatmul.mubr.msk.f32.vlgmr.msra.gmra.mrb[0].mxu0 %vm196_vm0, %v160_v5  ;;  %6067 = vmatmul.mubr.msk.f32.vlgmr.msra.gmra.mrb[0].mxu1 %vm196_vm0, %v160_v5  ;;  %v165_v10 = vld [vmem:[%s10628_s2 + $0x28] sm:$0xff]  ;;  %v166_v11 = vld [vmem:[%s10628_s2 + $0x30] sm:$0xff]  ;;  %v167_v12 = vld [vmem:[%s10628_s2 + $0x38] sm:$0xff] }
   0x5   :  { %363 = vmatprep.mubr.f32.mxu0 %v7520_v3  ;;  %620 = vmatprep.mubr.f32.mxu1 %v7520_v3  ;;  %v168_v13 = vld [vmem:[%s10628_s2 + $0x40] sm:$0xff]  ;;  %v169_v14 = vld [vmem:[%s10628_s2 + $0x48] sm:$0xff]  ;;  %v170_v15 = vld [vmem:[%s10628_s2 + $0x50] sm:$0xff] }
   0x6   :  { %v171_v16 = vld [vmem:[%s10628_s2 + $0x58] sm:$0xff]  ;;  %v172_v17 = vld [vmem:[%s10628_s2 + $0x60] sm:$0xff]  ;;  %v173_v18 = vld [vmem:[%s10628_s2 + $0x68] sm:$0xff] }
   0x7   :  { %v174_v19 = vld [vmem:[%s10628_s2 + $0x70] sm:$0xff]  ;;  %v175_v20 = vld [vmem:[%s10628_s2 + $0x78] sm:$0xff]  ;;  %v176_v21 = vld [vmem:[%s10628_s2 + $0x80] sm:$0xff] }
   0x8   :  { %6036 = vmatmul.mubr.msk.f32.gmra.mrb[2].mxu0 %vm196_vm0, %v161_v6  ;;  %6068 = vmatmul.mubr.msk.f32.gmra.mrb[2].mxu1 %vm196_vm0, %v161_v6  ;;  %v177_v22 = vld [vmem:[%s10628_s2 + $0x88] sm:$0xff]  ;;  %v178_v23 = vld [vmem:[%s10628_s2 + $0x90] sm:$0xff]  ;;  %v179_v24 = vld [vmem:[%s10628_s2 + $0x98] sm:$0xff] }
   0x9   :  { %369 = vmatprep.mubr.f32.mxu0 %v7520_v3  ;;  %626 = vmatprep.mubr.f32.mxu1 %v7520_v3  ;;  %v180_v25 = vld [vmem:[%s10628_s2 + $0xa0] sm:$0xff]  ;;  %v181_v26 = vld [vmem:[%s10628_s2 + $0xa8] sm:$0xff]  ;;  %v182_v27 = vld [vmem:[%s10628_s2 + $0xb0] sm:$0xff] }
   0xa   :  { %v183_v28 = vld [vmem:[%s10628_s2 + $0xb8] sm:$0xff]  ;;  %v184_v29 = vld [vmem:[%s10628_s2 + $0xc0] sm:$0xff]  ;;  %v185_v30 = vld [vmem:[%s10628_s2 + $0xc8] sm:$0xff] }
   0xb   :  { %v186_v31 = vld [vmem:[%s10628_s2 + $0xd0] sm:$0xff]  ;;  %v187_v32 = vld [vmem:[%s10628_s2 + $0xd8] sm:$0xff]  ;;  %v188_v33 = vld [vmem:[%s10628_s2 + $0xe0] sm:$0xff] }
   0xc   :  { %6037 = vmatmul.mubr.msk.f32.gmra.mrb[4].mxu0 %vm196_vm0, %v162_v7  ;;  %6069 = vmatmul.mubr.msk.f32.gmra.mrb[4].mxu1 %vm196_vm0, %v162_v7  ;;  %v189_v34 = vld [vmem:[%s10628_s2 + $0xe8] sm:$0xff]  ;;  %v190_v35 = vld [vmem:[%s10628_s2 + $0xf0] sm:$0xff]  ;;  %v191_v36 = vld [vmem:[%s10628_s2 + $0xf8] sm:$0xff] }
   0xd   :  { %375 = vmatprep.mubr.f32.mxu0 %v7520_v3  ;;  %632 = vmatprep.mubr.f32.mxu1 %v7520_v3  ;;  %v33_v41 = vld [vmem:[%s10629_s0 + $0x8] sm:$0xff] }
   0xe   :  { %v97_v42 = vld [vmem:[%s10630_s1 + $0x8] sm:$0xff] }
  0x10   :  { %6038 = vmatmul.mubr.msk.f32.gmra.mrb[6].mxu0 %vm196_vm0, %v163_v8  ;;  %6070 = vmatmul.mubr.msk.f32.gmra.mrb[6].mxu1 %vm196_vm0, %v163_v8 }
  0x11   :  { %381 = vmatprep.mubr.f32.mxu0 %v7520_v3  ;;  %638 = vmatprep.mubr.f32.mxu1 %v7520_v3 }
  0x14   :  { %6039 = vmatmul.mubr.msk.f32.gmra.mrb[8].mxu0 %vm196_vm0, %v164_v9  ;;  %6071 = vmatmul.mubr.msk.f32.gmra.mrb[8].mxu1 %vm196_vm0, %v164_v9 }
  0x15   :  { %387 = vmatprep.mubr.f32.mxu0 %v7520_v3  ;;  %644 = vmatprep.mubr.f32.mxu1 %v7520_v3 }
  0x18   :  { %6040 = vmatmul.mubr.msk.f32.gmra.mrb[10].mxu0 %vm196_vm0, %v165_v10  ;;  %6072 = vmatmul.mubr.msk.f32.gmra.mrb[10].mxu1 %vm196_vm0, %v165_v10 }
  0x19   :  { %393 = vmatprep.mubr.f32.mxu0 %v7520_v3  ;;  %650 = vmatprep.mubr.f32.mxu1 %v7520_v3 }
  0x1c   :  { %6041 = vmatmul.mubr.msk.f32.gmra.mrb[12].mxu0 %vm196_vm0, %v166_v11  ;;  %6073 = vmatmul.mubr.msk.f32.gmra.mrb[12].mxu1 %vm196_vm0, %v166_v11 }
  0x1d   :  { %399 = vmatprep.mubr.f32.mxu0 %v7520_v3  ;;  %656 = vmatprep.mubr.f32.mxu1 %v7520_v3 }
  0x20   :  { %6042 = vmatmul.mubr.msk.f32.gmra.mrb[14].mxu0 %vm196_vm0, %v167_v12  ;;  %6074 = vmatmul.mubr.msk.f32.gmra.mrb[14].mxu1 %vm196_vm0, %v167_v12 }
  0x21   :  { %405 = vmatprep.mubr.f32.mxu0 %v7520_v3  ;;  %662 = vmatprep.mubr.f32.mxu1 %v7520_v3 }
  0x24   :  { %6043 = vmatmul.mubr.msk.f32.gmra.mrb[16].mxu0 %vm196_vm0, %v168_v13  ;;  %6075 = vmatmul.mubr.msk.f32.gmra.mrb[16].mxu1 %vm196_vm0, %v168_v13 }
  0x25   :  { %411 = vmatprep.mubr.f32.mxu0 %v7520_v3  ;;  %668 = vmatprep.mubr.f32.mxu1 %v7520_v3 }
  0x28   :  { %6044 = vmatmul.mubr.msk.f32.gmra.mrb[18].mxu0 %vm196_vm0, %v169_v14  ;;  %6076 = vmatmul.mubr.msk.f32.gmra.mrb[18].mxu1 %vm196_vm0, %v169_v14 }
  0x29   :  { %417 = vmatprep.mubr.f32.mxu0 %v7520_v3  ;;  %674 = vmatprep.mubr.f32.mxu1 %v7520_v3 }
  0x2c   :  { %6045 = vmatmul.mubr.msk.f32.gmra.mrb[20].mxu0 %vm196_vm0, %v170_v15  ;;  %6077 = vmatmul.mubr.msk.f32.gmra.mrb[20].mxu1 %vm196_vm0, %v170_v15 }
  0x2d   :  { %423 = vmatprep.mubr.f32.mxu0 %v7520_v3  ;;  %680 = vmatprep.mubr.f32.mxu1 %v7520_v3 }
  0x30   :  { %6046 = vmatmul.mubr.msk.f32.gmra.mrb[22].mxu0 %vm196_vm0, %v171_v16  ;;  %6078 = vmatmul.mubr.msk.f32.gmra.mrb[22].mxu1 %vm196_vm0, %v171_v16 }
  0x31   :  { %429 = vmatprep.mubr.f32.mxu0 %v7520_v3  ;;  %686 = vmatprep.mubr.f32.mxu1 %v7520_v3 }
  0x34   :  { %6047 = vmatmul.mubr.msk.f32.gmra.mrb[24].mxu0 %vm196_vm0, %v172_v17  ;;  %6079 = vmatmul.mubr.msk.f32.gmra.mrb[24].mxu1 %vm196_vm0, %v172_v17 }
  0x35   :  { %435 = vmatprep.mubr.f32.mxu0 %v7520_v3  ;;  %692 = vmatprep.mubr.f32.mxu1 %v7520_v3 }
  0x38   :  { %6048 = vmatmul.mubr.msk.f32.gmra.mrb[26].mxu0 %vm196_vm0, %v173_v18  ;;  %6080 = vmatmul.mubr.msk.f32.gmra.mrb[26].mxu1 %vm196_vm0, %v173_v18 }
  0x39   :  { %441 = vmatprep.mubr.f32.mxu0 %v7520_v3  ;;  %698 = vmatprep.mubr.f32.mxu1 %v7520_v3 }
  0x3c   :  { %6049 = vmatmul.mubr.msk.f32.gmra.mrb[28].mxu0 %vm196_vm0, %v174_v19  ;;  %6081 = vmatmul.mubr.msk.f32.gmra.mrb[28].mxu1 %vm196_vm0, %v174_v19 }
  0x3d   :  { %447 = vmatprep.mubr.f32.mxu0 %v7520_v3  ;;  %704 = vmatprep.mubr.f32.mxu1 %v7520_v3 }
  0x40   :  { %6050 = vmatmul.mubr.msk.f32.gmra.mrb[30].mxu0 %vm196_vm0, %v175_v20  ;;  %6082 = vmatmul.mubr.msk.f32.gmra.mrb[30].mxu1 %vm196_vm0, %v175_v20 }
  0x41   :  { %453 = vmatprep.mubr.f32.mxu0 %v7520_v3  ;;  %710 = vmatprep.mubr.f32.mxu1 %v7520_v3 }
  0x44   :  { %6051 = vmatmul.mubr.msk.f32.gmra.mrb[32].mxu0 %vm196_vm0, %v176_v21  ;;  %6083 = vmatmul.mubr.msk.f32.gmra.mrb[32].mxu1 %vm196_vm0, %v176_v21 }
  0x45   :  { %459 = vmatprep.mubr.f32.mxu0 %v7520_v3  ;;  %716 = vmatprep.mubr.f32.mxu1 %v7520_v3 }
  0x48   :  { %6052 = vmatmul.mubr.msk.f32.gmra.mrb[34].mxu0 %vm196_vm0, %v177_v22  ;;  %6084 = vmatmul.mubr.msk.f32.gmra.mrb[34].mxu1 %vm196_vm0, %v177_v22 }
  0x49   :  { %465 = vmatprep.mubr.f32.mxu0 %v7520_v3  ;;  %722 = vmatprep.mubr.f32.mxu1 %v7520_v3 }
  0x4c   :  { %6053 = vmatmul.mubr.msk.f32.gmra.mrb[36].mxu0 %vm196_vm0, %v178_v23  ;;  %6085 = vmatmul.mubr.msk.f32.gmra.mrb[36].mxu1 %vm196_vm0, %v178_v23 }
  0x4d   :  { %471 = vmatprep.mubr.f32.mxu0 %v7520_v3  ;;  %728 = vmatprep.mubr.f32.mxu1 %v7520_v3 }
  0x50   :  { %6054 = vmatmul.mubr.msk.f32.gmra.mrb[38].mxu0 %vm196_vm0, %v179_v24  ;;  %6086 = vmatmul.mubr.msk.f32.gmra.mrb[38].mxu1 %vm196_vm0, %v179_v24 }
  0x51   :  { %477 = vmatprep.mubr.f32.mxu0 %v7520_v3  ;;  %734 = vmatprep.mubr.f32.mxu1 %v7520_v3 }
  0x54   :  { %6055 = vmatmul.mubr.msk.f32.gmra.mrb[40].mxu0 %vm196_vm0, %v180_v25  ;;  %6087 = vmatmul.mubr.msk.f32.gmra.mrb[40].mxu1 %vm196_vm0, %v180_v25 }
  0x55   :  { %483 = vmatprep.mubr.f32.mxu0 %v7520_v3  ;;  %740 = vmatprep.mubr.f32.mxu1 %v7520_v3 }
  0x58   :  { %6056 = vmatmul.mubr.msk.f32.gmra.mrb[42].mxu0 %vm196_vm0, %v181_v26  ;;  %6088 = vmatmul.mubr.msk.f32.gmra.mrb[42].mxu1 %vm196_vm0, %v181_v26 }
  0x59   :  { %489 = vmatprep.mubr.f32.mxu0 %v7520_v3  ;;  %746 = vmatprep.mubr.f32.mxu1 %v7520_v3 }
  0x5c   :  { %6057 = vmatmul.mubr.msk.f32.gmra.mrb[44].mxu0 %vm196_vm0, %v182_v27  ;;  %6089 = vmatmul.mubr.msk.f32.gmra.mrb[44].mxu1 %vm196_vm0, %v182_v27 }
  0x5d   :  { %495 = vmatprep.mubr.f32.mxu0 %v7520_v3  ;;  %752 = vmatprep.mubr.f32.mxu1 %v7520_v3 }
  0x60   :  { %6058 = vmatmul.mubr.msk.f32.gmra.mrb[46].mxu0 %vm196_vm0, %v183_v28  ;;  %6090 = vmatmul.mubr.msk.f32.gmra.mrb[46].mxu1 %vm196_vm0, %v183_v28 }
  0x61   :  { %501 = vmatprep.mubr.f32.mxu0 %v7520_v3  ;;  %758 = vmatprep.mubr.f32.mxu1 %v7520_v3 }
  0x64   :  { %6059 = vmatmul.mubr.msk.f32.gmra.mrb[48].mxu0 %vm196_vm0, %v184_v29  ;;  %6091 = vmatmul.mubr.msk.f32.gmra.mrb[48].mxu1 %vm196_vm0, %v184_v29 }
  0x65   :  { %507 = vmatprep.mubr.f32.mxu0 %v7520_v3  ;;  %764 = vmatprep.mubr.f32.mxu1 %v7520_v3 }
  0x68   :  { %6060 = vmatmul.mubr.msk.f32.gmra.mrb[50].mxu0 %vm196_vm0, %v185_v30  ;;  %6092 = vmatmul.mubr.msk.f32.gmra.mrb[50].mxu1 %vm196_vm0, %v185_v30 }
  0x69   :  { %513 = vmatprep.mubr.f32.mxu0 %v7520_v3  ;;  %770 = vmatprep.mubr.f32.mxu1 %v7520_v3 }
  0x6c   :  { %6061 = vmatmul.mubr.msk.f32.gmra.mrb[52].mxu0 %vm196_vm0, %v186_v31  ;;  %6093 = vmatmul.mubr.msk.f32.gmra.mrb[52].mxu1 %vm196_vm0, %v186_v31 }
  0x6d   :  { %519 = vmatprep.mubr.f32.mxu0 %v7520_v3  ;;  %776 = vmatprep.mubr.f32.mxu1 %v7520_v3 }
  0x70   :  { %6062 = vmatmul.mubr.msk.f32.gmra.mrb[54].mxu0 %vm196_vm0, %v187_v32  ;;  %6094 = vmatmul.mubr.msk.f32.gmra.mrb[54].mxu1 %vm196_vm0, %v187_v32 }
  0x71   :  { %525 = vmatprep.mubr.f32.mxu0 %v7520_v3  ;;  %782 = vmatprep.mubr.f32.mxu1 %v7520_v3 }
  0x74   :  { %6063 = vmatmul.mubr.msk.f32.gmra.mrb[56].mxu0 %vm196_vm0, %v188_v33  ;;  %6095 = vmatmul.mubr.msk.f32.gmra.mrb[56].mxu1 %vm196_vm0, %v188_v33 }
  0x75   :  { %531 = vmatprep.mubr.f32.mxu0 %v7520_v3  ;;  %788 = vmatprep.mubr.f32.mxu1 %v7520_v3 }
  0x78   :  { %6064 = vmatmul.mubr.msk.f32.gmra.mrb[58].mxu0 %vm196_vm0, %v189_v34  ;;  %6096 = vmatmul.mubr.msk.f32.gmra.mrb[58].mxu1 %vm196_vm0, %v189_v34 }
  0x79   :  { %537 = vmatprep.mubr.f32.mxu0 %v7520_v3  ;;  %794 = vmatprep.mubr.f32.mxu1 %v7520_v3 }
  0x7c   :  { %6065 = vmatmul.mubr.msk.f32.gmra.mrb[60].mxu0 %vm196_vm0, %v190_v35  ;;  %6097 = vmatmul.mubr.msk.f32.gmra.mrb[60].mxu1 %vm196_vm0, %v190_v35 }
  0x7d   :  { %543 = vmatprep.mubr.f32.mxu0 %v7520_v3  ;;  %800 = vmatprep.mubr.f32.mxu1 %v7520_v3 }
  0x80   :  { %6066 = vmatmul.mubr.msk.f32.gmra.mrb[62].mxu0 %vm196_vm0, %v191_v36  ;;  %6098 = vmatmul.mubr.msk.f32.gmra.mrb[62].mxu1 %vm196_vm0, %v191_v36 }
  0x81   :  { %871 = vmatprep.mubr.f32.mxu0 %v33_v41  ;;  %1192 = vmatprep.mubr.f32.mxu1 %v97_v42 }
  0xd7   :  { %v359_v37 = vpop.f32.mrb[0].mxu0  ;;  %v616_v38 = vpop.f32.mrb[0].mxu1 }
  0xd8   :  { %v361_v39 = vpop.f32.mrb[1].mxu0  ;;  %v618_v40 = vpop.f32.mrb[1].mxu1 }
  0xdb   :  { %v365_v43 = vpop.f32.mrb[2].mxu0  ;;  %v622_v44 = vpop.f32.mrb[2].mxu1 }
  0xdc   :  { %v6145_v45 = vpack.c.bf16 %v365_v43, %v359_v37  ;;  %v6209_v46 = vpack.c.bf16 %v622_v44, %v616_v38  ;;  %v367_v47 = vpop.f32.mrb[3].mxu0  ;;  %v624_v48 = vpop.f32.mrb[3].mxu1 }
  0xdd   :  { %v6143_v49 = vpack.c.bf16 %v367_v47, %v361_v39  ;;  %v6207_v50 = vpack.c.bf16 %v624_v48, %v618_v40 }
  0xdf   :  { %v371_v51 = vpop.f32.mrb[4].mxu0  ;;  %v628_v52 = vpop.f32.mrb[4].mxu1  ;;  %6144 = vmatprep.subr.bf16.mxu0 %v6143_v49  ;;  %6208 = vmatprep.subr.bf16.mxu1 %v6207_v50 }
  0xe0   :  { %v373_v53 = vpop.f32.mrb[5].mxu0  ;;  %v630_v54 = vpop.f32.mrb[5].mxu1  ;;  %6146 = vmatpush1.bf16.msra.mxu0 %v6145_v45  ;;  %6210 = vmatpush1.bf16.msra.mxu1 %v6209_v46 }
  0xe3   :  { %v377_v55 = vpop.f32.mrb[6].mxu0  ;;  %v634_v56 = vpop.f32.mrb[6].mxu1 }
  0xe4   :  { %v6149_v57 = vpack.c.bf16 %v377_v55, %v371_v51  ;;  %v6213_v58 = vpack.c.bf16 %v634_v56, %v628_v52  ;;  %v379_v59 = vpop.f32.mrb[7].mxu0  ;;  %v636_v60 = vpop.f32.mrb[7].mxu1 }
  0xe5   :  { %v6147_v61 = vpack.c.bf16 %v379_v59, %v373_v53  ;;  %v6211_v62 = vpack.c.bf16 %v636_v60, %v630_v54 }
  0xe7   :  { %v383_v63 = vpop.f32.mrb[8].mxu0  ;;  %v640_v0 = vpop.f32.mrb[8].mxu1  ;;  %6148 = vmatprep.subr.bf16.mxu0 %v6147_v61  ;;  %6212 = vmatprep.subr.bf16.mxu1 %v6211_v62 }
  0xe8   :  { %v385_v1 = vpop.f32.mrb[9].mxu0  ;;  %v642_v2 = vpop.f32.mrb[9].mxu1  ;;  %6150 = vmatpush1.bf16.msra.mxu0 %v6149_v57  ;;  %6214 = vmatpush1.bf16.msra.mxu1 %v6213_v58 }
  0xeb   :  { %v389_v3 = vpop.f32.mrb[10].mxu0  ;;  %v646_v4 = vpop.f32.mrb[10].mxu1 }
  0xec   :  { %v6153_v5 = vpack.c.bf16 %v389_v3, %v383_v63  ;;  %v6217_v6 = vpack.c.bf16 %v646_v4, %v640_v0  ;;  %v391_v7 = vpop.f32.mrb[11].mxu0  ;;  %v648_v8 = vpop.f32.mrb[11].mxu1 }
  0xed   :  { %v6151_v9 = vpack.c.bf16 %v391_v7, %v385_v1  ;;  %v6215_v10 = vpack.c.bf16 %v648_v8, %v642_v2 }
  0xef   :  { %v395_v11 = vpop.f32.mrb[12].mxu0  ;;  %v652_v12 = vpop.f32.mrb[12].mxu1  ;;  %6152 = vmatprep.subr.bf16.mxu0 %v6151_v9  ;;  %6216 = vmatprep.subr.bf16.mxu1 %v6215_v10 }
  0xf0   :  { %v397_v13 = vpop.f32.mrb[13].mxu0  ;;  %v654_v14 = vpop.f32.mrb[13].mxu1  ;;  %6154 = vmatpush1.bf16.msra.mxu0 %v6153_v5  ;;  %6218 = vmatpush1.bf16.msra.mxu1 %v6217_v6 }
  0xf3   :  { %v401_v15 = vpop.f32.mrb[14].mxu0  ;;  %v658_v16 = vpop.f32.mrb[14].mxu1 }
  0xf4   :  { %v6157_v17 = vpack.c.bf16 %v401_v15, %v395_v11  ;;  %v6221_v18 = vpack.c.bf16 %v658_v16, %v652_v12  ;;  %v403_v19 = vpop.f32.mrb[15].mxu0  ;;  %v660_v20 = vpop.f32.mrb[15].mxu1 }
  0xf5   :  { %v6155_v21 = vpack.c.bf16 %v403_v19, %v397_v13  ;;  %v6219_v22 = vpack.c.bf16 %v660_v20, %v654_v14 }
  0xf7   :  { %v407_v23 = vpop.f32.mrb[16].mxu0  ;;  %v664_v24 = vpop.f32.mrb[16].mxu1  ;;  %6156 = vmatprep.subr.bf16.mxu0 %v6155_v21  ;;  %6220 = vmatprep.subr.bf16.mxu1 %v6219_v22 }
  0xf8   :  { %v409_v25 = vpop.f32.mrb[17].mxu0  ;;  %v666_v26 = vpop.f32.mrb[17].mxu1  ;;  %6158 = vmatpush1.bf16.msra.mxu0 %v6157_v17  ;;  %6222 = vmatpush1.bf16.msra.mxu1 %v6221_v18 }
  0xfb   :  { %v413_v27 = vpop.f32.mrb[18].mxu0  ;;  %v670_v28 = vpop.f32.mrb[18].mxu1 }
  0xfc   :  { %v6161_v29 = vpack.c.bf16 %v413_v27, %v407_v23  ;;  %v6225_v30 = vpack.c.bf16 %v670_v28, %v664_v24  ;;  %v415_v31 = vpop.f32.mrb[19].mxu0  ;;  %v672_v32 = vpop.f32.mrb[19].mxu1 }
  0xfd   :  { %v6159_v33 = vpack.c.bf16 %v415_v31, %v409_v25  ;;  %v6223_v34 = vpack.c.bf16 %v672_v32, %v666_v26 }
  0xff   :  { %v419_v35 = vpop.f32.mrb[20].mxu0  ;;  %v676_v36 = vpop.f32.mrb[20].mxu1  ;;  %6160 = vmatprep.subr.bf16.mxu0 %v6159_v33  ;;  %6224 = vmatprep.subr.bf16.mxu1 %v6223_v34 }
 0x100   :  { %v421_v37 = vpop.f32.mrb[21].mxu0  ;;  %v678_v38 = vpop.f32.mrb[21].mxu1  ;;  %6162 = vmatpush1.bf16.msra.mxu0 %v6161_v29  ;;  %6226 = vmatpush1.bf16.msra.mxu1 %v6225_v30 }
 0x103   :  { %v425_v39 = vpop.f32.mrb[22].mxu0  ;;  %v682_v40 = vpop.f32.mrb[22].mxu1 }
 0x104   :  { %v6165_v41 = vpack.c.bf16 %v425_v39, %v419_v35  ;;  %v6229_v42 = vpack.c.bf16 %v682_v40, %v676_v36  ;;  %v427_v43 = vpop.f32.mrb[23].mxu0  ;;  %v684_v44 = vpop.f32.mrb[23].mxu1 }
 0x105   :  { %v6163_v45 = vpack.c.bf16 %v427_v43, %v421_v37  ;;  %v6227_v46 = vpack.c.bf16 %v684_v44, %v678_v38 }
 0x107   :  { %v431_v47 = vpop.f32.mrb[24].mxu0  ;;  %v688_v48 = vpop.f32.mrb[24].mxu1  ;;  %6164 = vmatprep.subr.bf16.mxu0 %v6163_v45  ;;  %6228 = vmatprep.subr.bf16.mxu1 %v6227_v46 }
 0x108   :  { %v433_v49 = vpop.f32.mrb[25].mxu0  ;;  %v690_v50 = vpop.f32.mrb[25].mxu1  ;;  %6166 = vmatpush1.bf16.msra.mxu0 %v6165_v41  ;;  %6230 = vmatpush1.bf16.msra.mxu1 %v6229_v42 }
 0x10b   :  { %v437_v51 = vpop.f32.mrb[26].mxu0  ;;  %v694_v52 = vpop.f32.mrb[26].mxu1 }
 0x10c   :  { %v6169_v53 = vpack.c.bf16 %v437_v51, %v431_v47  ;;  %v6233_v54 = vpack.c.bf16 %v694_v52, %v688_v48  ;;  %v439_v55 = vpop.f32.mrb[27].mxu0  ;;  %v696_v56 = vpop.f32.mrb[27].mxu1 }
 0x10d   :  { %v6167_v57 = vpack.c.bf16 %v439_v55, %v433_v49  ;;  %v6231_v58 = vpack.c.bf16 %v696_v56, %v690_v50 }
 0x10f   :  { %v443_v59 = vpop.f32.mrb[28].mxu0  ;;  %v700_v60 = vpop.f32.mrb[28].mxu1  ;;  %6168 = vmatprep.subr.bf16.mxu0 %v6167_v57  ;;  %6232 = vmatprep.subr.bf16.mxu1 %v6231_v58 }
 0x110   :  { %v445_v61 = vpop.f32.mrb[29].mxu0  ;;  %v702_v62 = vpop.f32.mrb[29].mxu1  ;;  %6170 = vmatpush1.bf16.msra.mxu0 %v6169_v53  ;;  %6234 = vmatpush1.bf16.msra.mxu1 %v6233_v54 }
 0x113   :  { %v449_v63 = vpop.f32.mrb[30].mxu0  ;;  %v706_v0 = vpop.f32.mrb[30].mxu1 }
 0x114   :  { %v6173_v1 = vpack.c.bf16 %v449_v63, %v443_v59  ;;  %v6237_v2 = vpack.c.bf16 %v706_v0, %v700_v60  ;;  %v451_v3 = vpop.f32.mrb[31].mxu0  ;;  %v708_v4 = vpop.f32.mrb[31].mxu1 }
 0x115   :  { %v6171_v5 = vpack.c.bf16 %v451_v3, %v445_v61  ;;  %v6235_v6 = vpack.c.bf16 %v708_v4, %v702_v62 }
 0x117   :  { %v455_v7 = vpop.f32.mrb[32].mxu0  ;;  %v712_v8 = vpop.f32.mrb[32].mxu1  ;;  %6172 = vmatprep.subr.bf16.mxu0 %v6171_v5  ;;  %6236 = vmatprep.subr.bf16.mxu1 %v6235_v6 }
 0x118   :  { %v457_v9 = vpop.f32.mrb[33].mxu0  ;;  %v714_v10 = vpop.f32.mrb[33].mxu1  ;;  %6174 = vmatpush1.bf16.msra.mxu0 %v6173_v1  ;;  %6238 = vmatpush1.bf16.msra.mxu1 %v6237_v2 }
 0x11b   :  { %v461_v11 = vpop.f32.mrb[34].mxu0  ;;  %v718_v12 = vpop.f32.mrb[34].mxu1 }
 0x11c   :  { %v6177_v13 = vpack.c.bf16 %v461_v11, %v455_v7  ;;  %v6241_v14 = vpack.c.bf16 %v718_v12, %v712_v8  ;;  %v463_v15 = vpop.f32.mrb[35].mxu0  ;;  %v720_v16 = vpop.f32.mrb[35].mxu1 }
 0x11d   :  { %v6175_v17 = vpack.c.bf16 %v463_v15, %v457_v9  ;;  %v6239_v18 = vpack.c.bf16 %v720_v16, %v714_v10 }
 0x11f   :  { %v467_v19 = vpop.f32.mrb[36].mxu0  ;;  %v724_v20 = vpop.f32.mrb[36].mxu1  ;;  %6176 = vmatprep.subr.bf16.mxu0 %v6175_v17  ;;  %6240 = vmatprep.subr.bf16.mxu1 %v6239_v18 }
 0x120   :  { %v469_v21 = vpop.f32.mrb[37].mxu0  ;;  %v726_v22 = vpop.f32.mrb[37].mxu1  ;;  %6178 = vmatpush1.bf16.msra.mxu0 %v6177_v13  ;;  %6242 = vmatpush1.bf16.msra.mxu1 %v6241_v14 }
 0x123   :  { %v473_v23 = vpop.f32.mrb[38].mxu0  ;;  %v730_v24 = vpop.f32.mrb[38].mxu1 }
 0x124   :  { %v6181_v25 = vpack.c.bf16 %v473_v23, %v467_v19  ;;  %v6245_v26 = vpack.c.bf16 %v730_v24, %v724_v20  ;;  %v475_v27 = vpop.f32.mrb[39].mxu0  ;;  %v732_v28 = vpop.f32.mrb[39].mxu1 }
 0x125   :  { %v6179_v29 = vpack.c.bf16 %v475_v27, %v469_v21  ;;  %v6243_v30 = vpack.c.bf16 %v732_v28, %v726_v22 }
 0x127   :  { %v479_v31 = vpop.f32.mrb[40].mxu0  ;;  %v736_v32 = vpop.f32.mrb[40].mxu1  ;;  %6180 = vmatprep.subr.bf16.mxu0 %v6179_v29  ;;  %6244 = vmatprep.subr.bf16.mxu1 %v6243_v30 }
 0x128   :  { %v481_v33 = vpop.f32.mrb[41].mxu0  ;;  %v738_v34 = vpop.f32.mrb[41].mxu1  ;;  %6182 = vmatpush1.bf16.msra.mxu0 %v6181_v25  ;;  %6246 = vmatpush1.bf16.msra.mxu1 %v6245_v26 }
 0x12b   :  { %v485_v35 = vpop.f32.mrb[42].mxu0  ;;  %v742_v36 = vpop.f32.mrb[42].mxu1 }
 0x12c   :  { %v6185_v37 = vpack.c.bf16 %v485_v35, %v479_v31  ;;  %v6249_v38 = vpack.c.bf16 %v742_v36, %v736_v32  ;;  %v487_v39 = vpop.f32.mrb[43].mxu0  ;;  %v744_v40 = vpop.f32.mrb[43].mxu1  ;;  %v1578_v31 = vld [vmem:[%s10631_s5 + $0x8] sm:$0xff] }
 0x12d   :  { %v6183_v41 = vpack.c.bf16 %v487_v39, %v481_v33  ;;  %v6247_v42 = vpack.c.bf16 %v744_v40, %v738_v34  ;;  %v1582_v32 = vld [vmem:[%s10631_s5 + $0x28] sm:$0xff]  ;;  %v1580_v33 = vld [vmem:[%s10631_s5 + $0x18] sm:$0xff] }
 0x12e   :  { %v1584_v34 = vld [vmem:[%s10631_s5 + $0x38] sm:$0xff] }
 0x12f   :  { %v491_v43 = vpop.f32.mrb[44].mxu0  ;;  %v748_v44 = vpop.f32.mrb[44].mxu1  ;;  %6184 = vmatprep.subr.bf16.mxu0 %v6183_v41  ;;  %6248 = vmatprep.subr.bf16.mxu1 %v6247_v42 }
 0x130   :  { %v493_v45 = vpop.f32.mrb[45].mxu0  ;;  %v750_v46 = vpop.f32.mrb[45].mxu1  ;;  %6186 = vmatpush1.bf16.msra.mxu0 %v6185_v37  ;;  %6250 = vmatpush1.bf16.msra.mxu1 %v6249_v38 }
 0x133   :  { %v497_v47 = vpop.f32.mrb[46].mxu0  ;;  %v754_v48 = vpop.f32.mrb[46].mxu1 }
 0x134   :  { %v6189_v49 = vpack.c.bf16 %v497_v47, %v491_v43  ;;  %v6253_v50 = vpack.c.bf16 %v754_v48, %v748_v44  ;;  %v499_v51 = vpop.f32.mrb[47].mxu0  ;;  %v756_v52 = vpop.f32.mrb[47].mxu1  ;;  %v6271_v43 = vpack.c.bf16 %v1582_v32, %v1578_v31  ;;  %v6335_v44 = vpack.c.bf16 %v1584_v34, %v1580_v33  ;;  %v1579_v47 = vld [vmem:[%s10631_s5 + $0x10] sm:$0xff]  ;;  %v1610_v33 = vld [vmem:[%s10631_s5 + $0x108] sm:$0xff] }
 0x135   :  { %v6187_v53 = vpack.c.bf16 %v499_v51, %v493_v45  ;;  %v6251_v54 = vpack.c.bf16 %v756_v52, %v750_v46  ;;  %v1577_v45 = vld [vmem:[%s10631_s5] sm:$0xff]  ;;  %v1583_v48 = vld [vmem:[%s10631_s5 + $0x30] sm:$0xff]  ;;  %v1588_v51 = vld [vmem:[%s10631_s5 + $0x58] sm:$0xff] }
 0x136   :  { %v1581_v46 = vld [vmem:[%s10631_s5 + $0x20] sm:$0xff]  ;;  %v1592_v52 = vld [vmem:[%s10631_s5 + $0x78] sm:$0xff]  ;;  %v1603_v31 = vld [vmem:[%s10631_s5 + $0xd0] sm:$0xff] }
 0x137   :  { %v503_v55 = vpop.f32.mrb[48].mxu0  ;;  %v760_v56 = vpop.f32.mrb[48].mxu1  ;;  %6188 = vmatprep.subr.bf16.mxu0 %v6187_v53  ;;  %6252 = vmatprep.subr.bf16.mxu1 %v6251_v54  ;;  %v32_v53 = vld [vmem:[%s10629_s0] sm:$0xff]  ;;  %v1607_v32 = vld [vmem:[%s10631_s5 + $0xf0] sm:$0xff]  ;;  %v1614_v34 = vld [vmem:[%s10631_s5 + $0x128] sm:$0xff] }
 0x138   :  { %v505_v57 = vpop.f32.mrb[49].mxu0  ;;  %v762_v58 = vpop.f32.mrb[49].mxu1  ;;  %6190 = vmatpush1.bf16.msra.mxu0 %v6189_v49  ;;  %6254 = vmatpush1.bf16.msra.mxu1 %v6253_v50  ;;  %v1586_v49 = vld [vmem:[%s10631_s5 + $0x48] sm:$0xff]  ;;  %v96_v54 = vld [vmem:[%s10630_s1] sm:$0xff] }
 0x139   :  { %v1590_v50 = vld [vmem:[%s10631_s5 + $0x68] sm:$0xff] }
 0x13b   :  { %v509_v59 = vpop.f32.mrb[50].mxu0  ;;  %v766_v60 = vpop.f32.mrb[50].mxu1 }
 0x13c   :  { %v6193_v61 = vpack.c.bf16 %v509_v59, %v503_v55  ;;  %v6257_v62 = vpack.c.bf16 %v766_v60, %v760_v56  ;;  %v511_v63 = vpop.f32.mrb[51].mxu0  ;;  %v768_v0 = vpop.f32.mrb[51].mxu1  ;;  %v35_v55 = vld [vmem:[%s10629_s0 + $0x18] sm:$0xff]  ;;  %v1585_v59 = vld [vmem:[%s10631_s5 + $0x40] sm:$0xff] }
 0x13d   :  { %v6191_v1 = vpack.c.bf16 %v511_v63, %v505_v57  ;;  %v6255_v2 = vpack.c.bf16 %v768_v0, %v762_v58  ;;  %v99_v56 = vld [vmem:[%s10630_s1 + $0x18] sm:$0xff]  ;;  %v6273_v57 = vpack.c.bf16 %v1581_v46, %v1577_v45  ;;  %v6337_v58 = vpack.c.bf16 %v1583_v48, %v1579_v47  ;;  %v1589_v60 = vld [vmem:[%s10631_s5 + $0x60] sm:$0xff]  ;;  %v1587_v63 = vld [vmem:[%s10631_s5 + $0x50] sm:$0xff] }
 0x13e   :  { %v1591_v0 = vld [vmem:[%s10631_s5 + $0x70] sm:$0xff]  ;;  %v6287_v45 = vpack.c.bf16 %v1614_v34, %v1610_v33  ;;  %v1642_v33 = vld [vmem:[%s10631_s5 + $0x208] sm:$0xff] }
 0x13f   :  { %v515_v3 = vpop.f32.mrb[52].mxu0  ;;  %v772_v4 = vpop.f32.mrb[52].mxu1  ;;  %6192 = vmatprep.subr.bf16.mxu0 %v6191_v1  ;;  %6256 = vmatprep.subr.bf16.mxu1 %v6255_v2  ;;  %v1594_v1 = vld [vmem:[%s10631_s5 + $0x88] sm:$0xff]  ;;  %v1611_v47 = vld [vmem:[%s10631_s5 + $0x110] sm:$0xff] }
 0x140   :  { %v517_v5 = vpop.f32.mrb[53].mxu0  ;;  %v774_v6 = vpop.f32.mrb[53].mxu1  ;;  %6194 = vmatpush1.bf16.msra.mxu0 %v6193_v61  ;;  %6258 = vmatpush1.bf16.msra.mxu1 %v6257_v62  ;;  %v6275_v61 = vpack.c.bf16 %v1590_v50, %v1586_v49  ;;  %v6339_v62 = vpack.c.bf16 %v1592_v52, %v1588_v51  ;;  %v1598_v2 = vld [vmem:[%s10631_s5 + $0xa8] sm:$0xff]  ;;  %v1615_v48 = vld [vmem:[%s10631_s5 + $0x130] sm:$0xff]  ;;  %v1620_v51 = vld [vmem:[%s10631_s5 + $0x158] sm:$0xff] }
 0x141   :  { %v1618_v49 = vld [vmem:[%s10631_s5 + $0x148] sm:$0xff]  ;;  %v1624_v52 = vld [vmem:[%s10631_s5 + $0x178] sm:$0xff] }
 0x142   :  { %v1622_v50 = vld [vmem:[%s10631_s5 + $0x168] sm:$0xff] }
 0x143   :  { %v521_v7 = vpop.f32.mrb[54].mxu0  ;;  %v778_v8 = vpop.f32.mrb[54].mxu1  ;;  %v1646_v34 = vld [vmem:[%s10631_s5 + $0x228] sm:$0xff] }
 0x144   :  { %v6197_v9 = vpack.c.bf16 %v521_v7, %v515_v3  ;;  %v6261_v10 = vpack.c.bf16 %v778_v8, %v772_v4  ;;  %v523_v11 = vpop.f32.mrb[55].mxu0  ;;  %v780_v12 = vpop.f32.mrb[55].mxu1  ;;  %v1596_v3 = vld [vmem:[%s10631_s5 + $0x98] sm:$0xff]  ;;  %v37_v7 = vld [vmem:[%s10629_s0 + $0x28] sm:$0xff] }
 0x145   :  { %v6195_v13 = vpack.c.bf16 %v523_v11, %v517_v5  ;;  %v6259_v14 = vpack.c.bf16 %v780_v12, %v774_v6  ;;  %v1600_v4 = vld [vmem:[%s10631_s5 + $0xb8] sm:$0xff]  ;;  %v34_v5 = vld [vmem:[%s10629_s0 + $0x10] sm:$0xff]  ;;  %v101_v8 = vld [vmem:[%s10630_s1 + $0x28] sm:$0xff] }
 0x146   :  { %v98_v6 = vld [vmem:[%s10630_s1 + $0x10] sm:$0xff]  ;;  %v1593_v11 = vld [vmem:[%s10631_s5 + $0x80] sm:$0xff] }
 0x147   :  { %v527_v15 = vpop.f32.mrb[56].mxu0  ;;  %v784_v16 = vpop.f32.mrb[56].mxu1  ;;  %6196 = vmatprep.subr.bf16.mxu0 %v6195_v13  ;;  %6260 = vmatprep.subr.bf16.mxu1 %v6259_v14  ;;  %v1597_v12 = vld [vmem:[%s10631_s5 + $0xa0] sm:$0xff]  ;;  %v6279_v13 = vpack.c.bf16 %v1598_v2, %v1594_v1  ;;  %v6343_v14 = vpack.c.bf16 %v1600_v4, %v1596_v3  ;;  %v1626_v1 = vld [vmem:[%s10631_s5 + $0x188] sm:$0xff]  ;;  %v1628_v3 = vld [vmem:[%s10631_s5 + $0x198] sm:$0xff] }
 0x148   :  { %v529_v17 = vpop.f32.mrb[57].mxu0  ;;  %v786_v18 = vpop.f32.mrb[57].mxu1  ;;  %6198 = vmatpush1.bf16.msra.mxu0 %v6197_v9  ;;  %6262 = vmatpush1.bf16.msra.mxu1 %v6261_v10  ;;  %v6277_v9 = vpack.c.bf16 %v1589_v60, %v1585_v59  ;;  %v6341_v10 = vpack.c.bf16 %v1591_v0, %v1587_v63  ;;  %v1617_v59 = vld [vmem:[%s10631_s5 + $0x140] sm:$0xff]  ;;  %v1619_v63 = vld [vmem:[%s10631_s5 + $0x150] sm:$0xff]  ;;  %v1630_v2 = vld [vmem:[%s10631_s5 + $0x1a8] sm:$0xff] }
 0x149   :  { %v1621_v60 = vld [vmem:[%s10631_s5 + $0x160] sm:$0xff]  ;;  %v1623_v0 = vld [vmem:[%s10631_s5 + $0x170] sm:$0xff]  ;;  %v1632_v4 = vld [vmem:[%s10631_s5 + $0x1b8] sm:$0xff] }
 0x14b   :  { %v533_v19 = vpop.f32.mrb[58].mxu0  ;;  %v790_v20 = vpop.f32.mrb[58].mxu1 }
 0x14c   :  { %v6201_v21 = vpack.c.bf16 %v533_v19, %v527_v15  ;;  %v6265_v22 = vpack.c.bf16 %v790_v20, %v784_v16  ;;  %v535_v23 = vpop.f32.mrb[59].mxu0  ;;  %v792_v24 = vpop.f32.mrb[59].mxu1  ;;  %v1595_v15 = vld [vmem:[%s10631_s5 + $0x90] sm:$0xff]  ;;  %v1604_v19 = vld [vmem:[%s10631_s5 + $0xd8] sm:$0xff] }
 0x14d   :  { %v6199_v25 = vpack.c.bf16 %v535_v23, %v529_v17  ;;  %v6263_v26 = vpack.c.bf16 %v792_v24, %v786_v18  ;;  %v1599_v16 = vld [vmem:[%s10631_s5 + $0xb0] sm:$0xff]  ;;  %v1602_v17 = vld [vmem:[%s10631_s5 + $0xc8] sm:$0xff]  ;;  %v1608_v20 = vld [vmem:[%s10631_s5 + $0xf8] sm:$0xff] }
 0x14e   :  { %v1606_v18 = vld [vmem:[%s10631_s5 + $0xe8] sm:$0xff]  ;;  %v39_v23 = vld [vmem:[%s10629_s0 + $0x38] sm:$0xff] }
 0x14f   :  { %v539_v27 = vpop.f32.mrb[60].mxu0  ;;  %v796_v28 = vpop.f32.mrb[60].mxu1  ;;  %6200 = vmatprep.subr.bf16.mxu0 %v6199_v25  ;;  %6264 = vmatprep.subr.bf16.mxu1 %v6263_v26  ;;  %v103_v24 = vld [vmem:[%s10630_s1 + $0x38] sm:$0xff]  ;;  %v6281_v25 = vpack.c.bf16 %v1597_v12, %v1593_v11  ;;  %v6345_v26 = vpack.c.bf16 %v1599_v16, %v1595_v15  ;;  %v1625_v11 = vld [vmem:[%s10631_s5 + $0x180] sm:$0xff]  ;;  %v1627_v15 = vld [vmem:[%s10631_s5 + $0x190] sm:$0xff] }
 0x150   :  { %v541_v29 = vpop.f32.mrb[61].mxu0  ;;  %v798_v30 = vpop.f32.mrb[61].mxu1  ;;  %6202 = vmatpush1.bf16.msra.mxu0 %v6201_v21  ;;  %6266 = vmatpush1.bf16.msra.mxu1 %v6265_v22  ;;  %v36_v21 = vld [vmem:[%s10629_s0 + $0x20] sm:$0xff]  ;;  %v1631_v16 = vld [vmem:[%s10631_s5 + $0x1b0] sm:$0xff] }
 0x151   :  { %v100_v22 = vld [vmem:[%s10630_s1 + $0x20] sm:$0xff] }
 0x152   :  { %v1629_v12 = vld [vmem:[%s10631_s5 + $0x1a0] sm:$0xff] }
 0x153   :  { %v545_v35 = vpop.f32.mrb[62].mxu0  ;;  %v802_v36 = vpop.f32.mrb[62].mxu1 }
 0x154   :  { %v6205_v37 = vpack.c.bf16 %v545_v35, %v539_v27  ;;  %v6269_v38 = vpack.c.bf16 %v802_v36, %v796_v28  ;;  %v547_v39 = vpop.f32.mrb[63].mxu0  ;;  %v804_v40 = vpop.f32.mrb[63].mxu1  ;;  %v1601_v27 = vld [vmem:[%s10631_s5 + $0xc0] sm:$0xff]  ;;  %v1612_v35 = vld [vmem:[%s10631_s5 + $0x118] sm:$0xff] }
 0x155   :  { %v6203_v41 = vpack.c.bf16 %v547_v39, %v541_v29  ;;  %v6267_v42 = vpack.c.bf16 %v804_v40, %v798_v30  ;;  %v1605_v28 = vld [vmem:[%s10631_s5 + $0xe0] sm:$0xff]  ;;  %v6283_v29 = vpack.c.bf16 %v1606_v18, %v1602_v17  ;;  %v6347_v30 = vpack.c.bf16 %v1608_v20, %v1604_v19  ;;  %v1616_v36 = vld [vmem:[%s10631_s5 + $0x138] sm:$0xff]  ;;  %v41_v39 = vld [vmem:[%s10629_s0 + $0x48] sm:$0xff] }
 0x156   :  { %v105_v40 = vld [vmem:[%s10630_s1 + $0x48] sm:$0xff]  ;;  %v6351_v46 = vpack.c.bf16 %v1616_v36, %v1612_v35  ;;  %v1636_v19 = vld [vmem:[%s10631_s5 + $0x1d8] sm:$0xff] }
 0x157   :  { %6204 = vmatprep.subr.bf16.mxu0 %v6203_v41  ;;  %6268 = vmatprep.subr.bf16.mxu1 %v6267_v42  ;;  %v6285_v41 = vpack.c.bf16 %v1605_v28, %v1601_v27  ;;  %v6349_v42 = vpack.c.bf16 %v1607_v32, %v1603_v31  ;;  %v1634_v17 = vld [vmem:[%s10631_s5 + $0x1c8] sm:$0xff]  ;;  %v1640_v20 = vld [vmem:[%s10631_s5 + $0x1f8] sm:$0xff]  ;;  %v1633_v27 = vld [vmem:[%s10631_s5 + $0x1c0] sm:$0xff] }
 0x158   :  { %6206 = vmatpush1.bf16.msra.mxu0 %v6205_v37  ;;  %6270 = vmatpush1.bf16.msra.mxu1 %v6269_v38  ;;  %v38_v37 = vld [vmem:[%s10629_s0 + $0x30] sm:$0xff]  ;;  %v1638_v18 = vld [vmem:[%s10631_s5 + $0x1e8] sm:$0xff]  ;;  %v1637_v28 = vld [vmem:[%s10631_s5 + $0x1e0] sm:$0xff] }
 0x159   :  { %6272 = vmatprep.subr.bf16.mxu0 %v6271_v43  ;;  %6336 = vmatprep.subr.bf16.mxu1 %v6335_v44  ;;  %v102_v38 = vld [vmem:[%s10630_s1 + $0x30] sm:$0xff]  ;;  %v1609_v43 = vld [vmem:[%s10631_s5 + $0x100] sm:$0xff]  ;;  %v1644_v35 = vld [vmem:[%s10631_s5 + $0x218] sm:$0xff] }
 0x15a   :  { %v1613_v44 = vld [vmem:[%s10631_s5 + $0x120] sm:$0xff]  ;;  %v1635_v31 = vld [vmem:[%s10631_s5 + $0x1d0] sm:$0xff]  ;;  %v1648_v36 = vld [vmem:[%s10631_s5 + $0x238] sm:$0xff] }
 0x15b   :  { %872 = vmatmul.mubr.f32.vlgmr.msra.gmra.mrb[64].mxu0 %v32_v53  ;;  %1193 = vmatmul.mubr.f32.vlgmr.msra.gmra.mrb[64].mxu1 %v96_v54  ;;  %v40_v53 = vld [vmem:[%s10629_s0 + $0x40] sm:$0xff]  ;;  %v1639_v32 = vld [vmem:[%s10631_s5 + $0x1f0] sm:$0xff] }
 0x15c   :  { %877 = vmatprep.mubr.f32.mxu0 %v35_v55  ;;  %1198 = vmatprep.mubr.f32.mxu1 %v99_v56  ;;  %v104_v54 = vld [vmem:[%s10630_s1 + $0x40] sm:$0xff]  ;;  %v43_v55 = vld [vmem:[%s10629_s0 + $0x58] sm:$0xff] }
 0x15d   :  { %6274 = vmatpush1.bf16.msra.mxu0 %v6273_v57  ;;  %6338 = vmatpush1.bf16.msra.mxu1 %v6337_v58  ;;  %v107_v56 = vld [vmem:[%s10630_s1 + $0x58] sm:$0xff]  ;;  %v6289_v57 = vpack.c.bf16 %v1613_v44, %v1609_v43  ;;  %v6353_v58 = vpack.c.bf16 %v1615_v48, %v1611_v47  ;;  %v1641_v43 = vld [vmem:[%s10631_s5 + $0x200] sm:$0xff]  ;;  %v1643_v47 = vld [vmem:[%s10631_s5 + $0x210] sm:$0xff] }
 0x15e   :  { %6276 = vmatprep.subr.bf16.mxu0 %v6275_v61  ;;  %6340 = vmatprep.subr.bf16.mxu1 %v6339_v62  ;;  %v6291_v61 = vpack.c.bf16 %v1622_v50, %v1618_v49  ;;  %v6355_v62 = vpack.c.bf16 %v1624_v52, %v1620_v51  ;;  %v1645_v44 = vld [vmem:[%s10631_s5 + $0x220] sm:$0xff]  ;;  %v1647_v48 = vld [vmem:[%s10631_s5 + $0x230] sm:$0xff]  ;;  %v1650_v49 = vld [vmem:[%s10631_s5 + $0x248] sm:$0xff] }
 0x15f   :  { %878 = vmatmul.mubr.f32.gmra.mrb[66].mxu0 %v34_v5  ;;  %1199 = vmatmul.mubr.f32.gmra.mrb[66].mxu1 %v98_v6  ;;  %v42_v5 = vld [vmem:[%s10629_s0 + $0x50] sm:$0xff]  ;;  %v1654_v50 = vld [vmem:[%s10631_s5 + $0x268] sm:$0xff]  ;;  %v1652_v51 = vld [vmem:[%s10631_s5 + $0x258] sm:$0xff] }
 0x160   :  { %883 = vmatprep.mubr.f32.mxu0 %v37_v7  ;;  %1204 = vmatprep.mubr.f32.mxu1 %v101_v8  ;;  %v106_v6 = vld [vmem:[%s10630_s1 + $0x50] sm:$0xff]  ;;  %v45_v7 = vld [vmem:[%s10629_s0 + $0x68] sm:$0xff]  ;;  %v1656_v52 = vld [vmem:[%s10631_s5 + $0x278] sm:$0xff] }
 0x161   :  { %6278 = vmatpush1.bf16.msra.mxu0 %v6277_v9  ;;  %6342 = vmatpush1.bf16.msra.mxu1 %v6341_v10  ;;  %v109_v8 = vld [vmem:[%s10630_s1 + $0x68] sm:$0xff]  ;;  %v6293_v9 = vpack.c.bf16 %v1621_v60, %v1617_v59  ;;  %v6357_v10 = vpack.c.bf16 %v1623_v0, %v1619_v63  ;;  %v1649_v59 = vld [vmem:[%s10631_s5 + $0x240] sm:$0xff]  ;;  %v1651_v63 = vld [vmem:[%s10631_s5 + $0x250] sm:$0xff] }
 0x162   :  { %6280 = vmatprep.subr.bf16.mxu0 %v6279_v13  ;;  %6344 = vmatprep.subr.bf16.mxu1 %v6343_v14  ;;  %v6295_v13 = vpack.c.bf16 %v1630_v2, %v1626_v1  ;;  %v6359_v14 = vpack.c.bf16 %v1632_v4, %v1628_v3  ;;  %v1653_v60 = vld [vmem:[%s10631_s5 + $0x260] sm:$0xff]  ;;  %v1655_v0 = vld [vmem:[%s10631_s5 + $0x270] sm:$0xff]  ;;  %v1658_v1 = vld [vmem:[%s10631_s5 + $0x288] sm:$0xff] }
 0x163   :  { %884 = vmatmul.mubr.f32.gmra.mrb[68].mxu0 %v36_v21  ;;  %1205 = vmatmul.mubr.f32.gmra.mrb[68].mxu1 %v100_v22  ;;  %v44_v21 = vld [vmem:[%s10629_s0 + $0x60] sm:$0xff]  ;;  %v1662_v2 = vld [vmem:[%s10631_s5 + $0x2a8] sm:$0xff]  ;;  %v1660_v3 = vld [vmem:[%s10631_s5 + $0x298] sm:$0xff] }
 0x164   :  { %889 = vmatprep.mubr.f32.mxu0 %v39_v23  ;;  %1210 = vmatprep.mubr.f32.mxu1 %v103_v24  ;;  %v108_v22 = vld [vmem:[%s10630_s1 + $0x60] sm:$0xff]  ;;  %v47_v23 = vld [vmem:[%s10629_s0 + $0x78] sm:$0xff] }
 0x165   :  { %6282 = vmatpush1.bf16.msra.mxu0 %v6281_v25  ;;  %6346 = vmatpush1.bf16.msra.mxu1 %v6345_v26  ;;  %v111_v24 = vld [vmem:[%s10630_s1 + $0x78] sm:$0xff]  ;;  %v6297_v25 = vpack.c.bf16 %v1629_v12, %v1625_v11  ;;  %v6361_v26 = vpack.c.bf16 %v1631_v16, %v1627_v15  ;;  %v1657_v11 = vld [vmem:[%s10631_s5 + $0x280] sm:$0xff]  ;;  %v1659_v15 = vld [vmem:[%s10631_s5 + $0x290] sm:$0xff] }
 0x166   :  { %6284 = vmatprep.subr.bf16.mxu0 %v6283_v29  ;;  %6348 = vmatprep.subr.bf16.mxu1 %v6347_v30  ;;  %v6299_v29 = vpack.c.bf16 %v1638_v18, %v1634_v17  ;;  %v6363_v30 = vpack.c.bf16 %v1640_v20, %v1636_v19  ;;  %v1664_v4 = vld [vmem:[%s10631_s5 + $0x2b8] sm:$0xff]  ;;  %v1661_v12 = vld [vmem:[%s10631_s5 + $0x2a0] sm:$0xff]  ;;  %v1663_v16 = vld [vmem:[%s10631_s5 + $0x2b0] sm:$0xff] }
 0x167   :  { %890 = vmatmul.mubr.f32.gmra.mrb[70].mxu0 %v38_v37  ;;  %1211 = vmatmul.mubr.f32.gmra.mrb[70].mxu1 %v102_v38  ;;  %v46_v37 = vld [vmem:[%s10629_s0 + $0x70] sm:$0xff]  ;;  %v1666_v17 = vld [vmem:[%s10631_s5 + $0x2c8] sm:$0xff]  ;;  %v1668_v19 = vld [vmem:[%s10631_s5 + $0x2d8] sm:$0xff] }
 0x168   :  { %895 = vmatprep.mubr.f32.mxu0 %v41_v39  ;;  %1216 = vmatprep.mubr.f32.mxu1 %v105_v40  ;;  %v110_v38 = vld [vmem:[%s10630_s1 + $0x70] sm:$0xff]  ;;  %v49_v39 = vld [vmem:[%s10629_s0 + $0x88] sm:$0xff]  ;;  %v1672_v20 = vld [vmem:[%s10631_s5 + $0x2f8] sm:$0xff] }
 0x169   :  { %6286 = vmatpush1.bf16.msra.mxu0 %v6285_v41  ;;  %6350 = vmatpush1.bf16.msra.mxu1 %v6349_v42  ;;  %v113_v40 = vld [vmem:[%s10630_s1 + $0x88] sm:$0xff]  ;;  %v6301_v41 = vpack.c.bf16 %v1637_v28, %v1633_v27  ;;  %v6365_v42 = vpack.c.bf16 %v1639_v32, %v1635_v31  ;;  %v1665_v27 = vld [vmem:[%s10631_s5 + $0x2c0] sm:$0xff]  ;;  %v1667_v31 = vld [vmem:[%s10631_s5 + $0x2d0] sm:$0xff] }
 0x16a   :  { %6288 = vmatprep.subr.bf16.mxu0 %v6287_v45  ;;  %6352 = vmatprep.subr.bf16.mxu1 %v6351_v46  ;;  %v6303_v45 = vpack.c.bf16 %v1646_v34, %v1642_v33  ;;  %v6367_v46 = vpack.c.bf16 %v1648_v36, %v1644_v35  ;;  %v1670_v18 = vld [vmem:[%s10631_s5 + $0x2e8] sm:$0xff]  ;;  %v1669_v28 = vld [vmem:[%s10631_s5 + $0x2e0] sm:$0xff]  ;;  %v1671_v32 = vld [vmem:[%s10631_s5 + $0x2f0] sm:$0xff] }
 0x16b   :  { %896 = vmatmul.mubr.f32.gmra.mrb[72].mxu0 %v40_v53  ;;  %1217 = vmatmul.mubr.f32.gmra.mrb[72].mxu1 %v104_v54  ;;  %v48_v53 = vld [vmem:[%s10629_s0 + $0x80] sm:$0xff]  ;;  %v1674_v33 = vld [vmem:[%s10631_s5 + $0x308] sm:$0xff]  ;;  %v1676_v35 = vld [vmem:[%s10631_s5 + $0x318] sm:$0xff] }
 0x16c   :  { %901 = vmatprep.mubr.f32.mxu0 %v43_v55  ;;  %1222 = vmatprep.mubr.f32.mxu1 %v107_v56  ;;  %v112_v54 = vld [vmem:[%s10630_s1 + $0x80] sm:$0xff]  ;;  %v51_v55 = vld [vmem:[%s10629_s0 + $0x98] sm:$0xff]  ;;  %v1678_v34 = vld [vmem:[%s10631_s5 + $0x328] sm:$0xff] }
 0x16d   :  { %6290 = vmatpush1.bf16.msra.mxu0 %v6289_v57  ;;  %6354 = vmatpush1.bf16.msra.mxu1 %v6353_v58  ;;  %v115_v56 = vld [vmem:[%s10630_s1 + $0x98] sm:$0xff]  ;;  %v6305_v57 = vpack.c.bf16 %v1645_v44, %v1641_v43  ;;  %v6369_v58 = vpack.c.bf16 %v1647_v48, %v1643_v47  ;;  %v1673_v43 = vld [vmem:[%s10631_s5 + $0x300] sm:$0xff]  ;;  %v1675_v47 = vld [vmem:[%s10631_s5 + $0x310] sm:$0xff] }
 0x16e   :  { %6292 = vmatprep.subr.bf16.mxu0 %v6291_v61  ;;  %6356 = vmatprep.subr.bf16.mxu1 %v6355_v62  ;;  %v6307_v61 = vpack.c.bf16 %v1654_v50, %v1650_v49  ;;  %v6371_v62 = vpack.c.bf16 %v1656_v52, %v1652_v51  ;;  %v1680_v36 = vld [vmem:[%s10631_s5 + $0x338] sm:$0xff]  ;;  %v1677_v44 = vld [vmem:[%s10631_s5 + $0x320] sm:$0xff]  ;;  %v1679_v48 = vld [vmem:[%s10631_s5 + $0x330] sm:$0xff] }
 0x16f   :  { %902 = vmatmul.mubr.f32.gmra.mrb[74].mxu0 %v42_v5  ;;  %1223 = vmatmul.mubr.f32.gmra.mrb[74].mxu1 %v106_v6  ;;  %v50_v5 = vld [vmem:[%s10629_s0 + $0x90] sm:$0xff]  ;;  %v1682_v49 = vld [vmem:[%s10631_s5 + $0x348] sm:$0xff]  ;;  %v1684_v51 = vld [vmem:[%s10631_s5 + $0x358] sm:$0xff] }
 0x170   :  { %907 = vmatprep.mubr.f32.mxu0 %v45_v7  ;;  %1228 = vmatprep.mubr.f32.mxu1 %v109_v8  ;;  %v114_v6 = vld [vmem:[%s10630_s1 + $0x90] sm:$0xff]  ;;  %v53_v7 = vld [vmem:[%s10629_s0 + $0xa8] sm:$0xff]  ;;  %v1688_v52 = vld [vmem:[%s10631_s5 + $0x378] sm:$0xff] }
 0x171   :  { %6294 = vmatpush1.bf16.msra.mxu0 %v6293_v9  ;;  %6358 = vmatpush1.bf16.msra.mxu1 %v6357_v10  ;;  %v117_v8 = vld [vmem:[%s10630_s1 + $0xa8] sm:$0xff]  ;;  %v6309_v9 = vpack.c.bf16 %v1653_v60, %v1649_v59  ;;  %v6373_v10 = vpack.c.bf16 %v1655_v0, %v1651_v63  ;;  %v1681_v59 = vld [vmem:[%s10631_s5 + $0x340] sm:$0xff]  ;;  %v1683_v63 = vld [vmem:[%s10631_s5 + $0x350] sm:$0xff] }
 0x172   :  { %6296 = vmatprep.subr.bf16.mxu0 %v6295_v13  ;;  %6360 = vmatprep.subr.bf16.mxu1 %v6359_v14  ;;  %v6311_v13 = vpack.c.bf16 %v1662_v2, %v1658_v1  ;;  %v6375_v14 = vpack.c.bf16 %v1664_v4, %v1660_v3  ;;  %v1686_v50 = vld [vmem:[%s10631_s5 + $0x368] sm:$0xff]  ;;  %v1685_v60 = vld [vmem:[%s10631_s5 + $0x360] sm:$0xff]  ;;  %v1687_v0 = vld [vmem:[%s10631_s5 + $0x370] sm:$0xff] }
 0x173   :  { %908 = vmatmul.mubr.f32.gmra.mrb[76].mxu0 %v44_v21  ;;  %1229 = vmatmul.mubr.f32.gmra.mrb[76].mxu1 %v108_v22  ;;  %v52_v21 = vld [vmem:[%s10629_s0 + $0xa0] sm:$0xff]  ;;  %v1690_v1 = vld [vmem:[%s10631_s5 + $0x388] sm:$0xff]  ;;  %v1692_v3 = vld [vmem:[%s10631_s5 + $0x398] sm:$0xff] }
 0x174   :  { %913 = vmatprep.mubr.f32.mxu0 %v47_v23  ;;  %1234 = vmatprep.mubr.f32.mxu1 %v111_v24  ;;  %v116_v22 = vld [vmem:[%s10630_s1 + $0xa0] sm:$0xff]  ;;  %v55_v23 = vld [vmem:[%s10629_s0 + $0xb8] sm:$0xff]  ;;  %v1694_v2 = vld [vmem:[%s10631_s5 + $0x3a8] sm:$0xff] }
 0x175   :  { %6298 = vmatpush1.bf16.msra.mxu0 %v6297_v25  ;;  %6362 = vmatpush1.bf16.msra.mxu1 %v6361_v26  ;;  %v119_v24 = vld [vmem:[%s10630_s1 + $0xb8] sm:$0xff]  ;;  %v6313_v25 = vpack.c.bf16 %v1661_v12, %v1657_v11  ;;  %v6377_v26 = vpack.c.bf16 %v1663_v16, %v1659_v15  ;;  %v1689_v11 = vld [vmem:[%s10631_s5 + $0x380] sm:$0xff]  ;;  %v6327_v12 = vpack.c.bf16 %v1694_v2, %v1690_v1  ;;  %v1691_v15 = vld [vmem:[%s10631_s5 + $0x390] sm:$0xff] }
 0x176   :  { %6300 = vmatprep.subr.bf16.mxu0 %v6299_v29  ;;  %6364 = vmatprep.subr.bf16.mxu1 %v6363_v30  ;;  %v6315_v29 = vpack.c.bf16 %v1670_v18, %v1666_v17  ;;  %v6379_v30 = vpack.c.bf16 %v1672_v20, %v1668_v19  ;;  %v1696_v4 = vld [vmem:[%s10631_s5 + $0x3b8] sm:$0xff]  ;;  %v1695_v16 = vld [vmem:[%s10631_s5 + $0x3b0] sm:$0xff]  ;;  %v60_v17 = vld [vmem:[%s10629_s0 + $0xe0] sm:$0xff] }
 0x177   :  { %914 = vmatmul.mubr.f32.gmra.mrb[78].mxu0 %v46_v37  ;;  %1235 = vmatmul.mubr.f32.gmra.mrb[78].mxu1 %v110_v38  ;;  %v54_v37 = vld [vmem:[%s10629_s0 + $0xb0] sm:$0xff]  ;;  %v124_v18 = vld [vmem:[%s10630_s1 + $0xe0] sm:$0xff]  ;;  %v63_v19 = vld [vmem:[%s10629_s0 + $0xf8] sm:$0xff] }
 0x178   :  { %919 = vmatprep.mubr.f32.mxu0 %v49_v39  ;;  %1240 = vmatprep.mubr.f32.mxu1 %v113_v40  ;;  %v118_v38 = vld [vmem:[%s10630_s1 + $0xb0] sm:$0xff]  ;;  %v57_v39 = vld [vmem:[%s10629_s0 + $0xc8] sm:$0xff]  ;;  %v127_v20 = vld [vmem:[%s10630_s1 + $0xf8] sm:$0xff] }
 0x179   :  { %6302 = vmatpush1.bf16.msra.mxu0 %v6301_v41  ;;  %6366 = vmatpush1.bf16.msra.mxu1 %v6365_v42  ;;  %v121_v40 = vld [vmem:[%s10630_s1 + $0xc8] sm:$0xff]  ;;  %v6317_v41 = vpack.c.bf16 %v1669_v28, %v1665_v27  ;;  %v6381_v42 = vpack.c.bf16 %v1671_v32, %v1667_v31  ;;  %v64_v27 = vld [vmem:[%s10629_s0 + $0x100] sm:$0xff]  ;;  %v66_v31 = vld [vmem:[%s10629_s0 + $0x110] sm:$0xff] }
 0x17a   :  { %6304 = vmatprep.subr.bf16.mxu0 %v6303_v45  ;;  %6368 = vmatprep.subr.bf16.mxu1 %v6367_v46  ;;  %v6319_v45 = vpack.c.bf16 %v1678_v34, %v1674_v33  ;;  %v6383_v46 = vpack.c.bf16 %v1680_v36, %v1676_v35  ;;  %v128_v28 = vld [vmem:[%s10630_s1 + $0x100] sm:$0xff]  ;;  %v130_v32 = vld [vmem:[%s10630_s1 + $0x110] sm:$0xff]  ;;  %v69_v33 = vld [vmem:[%s10629_s0 + $0x128] sm:$0xff] }
 0x17b   :  { %920 = vmatmul.mubr.f32.gmra.mrb[80].mxu0 %v48_v53  ;;  %1241 = vmatmul.mubr.f32.gmra.mrb[80].mxu1 %v112_v54  ;;  %v56_v53 = vld [vmem:[%s10629_s0 + $0xc0] sm:$0xff]  ;;  %v133_v34 = vld [vmem:[%s10630_s1 + $0x128] sm:$0xff]  ;;  %v1703_v1 = vld [vmem:[%s10631_s5 + $0x3f0] sm:$0xff] }
 0x17c   :  { %925 = vmatprep.mubr.f32.mxu0 %v51_v55  ;;  %1246 = vmatprep.mubr.f32.mxu1 %v115_v56  ;;  %v120_v54 = vld [vmem:[%s10630_s1 + $0xc0] sm:$0xff]  ;;  %v59_v55 = vld [vmem:[%s10629_s0 + $0xd8] sm:$0xff] }
 0x17d   :  { %6306 = vmatpush1.bf16.msra.mxu0 %v6305_v57  ;;  %6370 = vmatpush1.bf16.msra.mxu1 %v6369_v58  ;;  %v123_v56 = vld [vmem:[%s10630_s1 + $0xd8] sm:$0xff]  ;;  %v6321_v57 = vpack.c.bf16 %v1677_v44, %v1673_v43  ;;  %v6385_v58 = vpack.c.bf16 %v1679_v48, %v1675_v47  ;;  %v68_v35 = vld [vmem:[%s10629_s0 + $0x120] sm:$0xff]  ;;  %v74_v47 = vld [vmem:[%s10629_s0 + $0x150] sm:$0xff] }
 0x17e   :  { %6308 = vmatprep.subr.bf16.mxu0 %v6307_v61  ;;  %6372 = vmatprep.subr.bf16.mxu1 %v6371_v62  ;;  %v6323_v61 = vpack.c.bf16 %v1686_v50, %v1682_v49  ;;  %v6387_v62 = vpack.c.bf16 %v1688_v52, %v1684_v51  ;;  %v132_v36 = vld [vmem:[%s10630_s1 + $0x120] sm:$0xff]  ;;  %v138_v48 = vld [vmem:[%s10630_s1 + $0x150] sm:$0xff]  ;;  %v77_v49 = vld [vmem:[%s10629_s0 + $0x168] sm:$0xff] }
 0x17f   :  { %926 = vmatmul.mubr.f32.gmra.mrb[82].mxu0 %v50_v5  ;;  %1247 = vmatmul.mubr.f32.gmra.mrb[82].mxu1 %v114_v6  ;;  %v58_v5 = vld [vmem:[%s10629_s0 + $0xd0] sm:$0xff]  ;;  %v72_v43 = vld [vmem:[%s10629_s0 + $0x140] sm:$0xff]  ;;  %v141_v50 = vld [vmem:[%s10630_s1 + $0x168] sm:$0xff] }
 0x180   :  { %931 = vmatprep.mubr.f32.mxu0 %v53_v7  ;;  %1252 = vmatprep.mubr.f32.mxu1 %v117_v8  ;;  %v122_v6 = vld [vmem:[%s10630_s1 + $0xd0] sm:$0xff]  ;;  %v61_v7 = vld [vmem:[%s10629_s0 + $0xe8] sm:$0xff]  ;;  %v136_v44 = vld [vmem:[%s10630_s1 + $0x140] sm:$0xff] }
 0x181   :  { %6310 = vmatpush1.bf16.msra.mxu0 %v6309_v9  ;;  %6374 = vmatpush1.bf16.msra.mxu1 %v6373_v10  ;;  %v125_v8 = vld [vmem:[%s10630_s1 + $0xe8] sm:$0xff]  ;;  %v6325_v9 = vpack.c.bf16 %v1685_v60, %v1681_v59  ;;  %v6389_v10 = vpack.c.bf16 %v1687_v0, %v1683_v63  ;;  %v76_v51 = vld [vmem:[%s10629_s0 + $0x160] sm:$0xff]  ;;  %v1704_v59 = vld [vmem:[%s10631_s5 + $0x3f8] sm:$0xff] }
 0x182   :  { %6312 = vmatprep.subr.bf16.mxu0 %v6311_v13  ;;  %6376 = vmatprep.subr.bf16.mxu1 %v6375_v14  ;;  %v6391_v13 = vpack.c.bf16 %v1696_v4, %v1692_v3  ;;  %v1693_v14 = vld [vmem:[%s10631_s5 + $0x3a0] sm:$0xff]  ;;  %v1699_v0 = vld [vmem:[%s10631_s5 + $0x3d0] sm:$0xff] }
 0x183   :  { %932 = vmatmul.mubr.f32.gmra.mrb[84].mxu0 %v52_v21  ;;  %1253 = vmatmul.mubr.f32.gmra.mrb[84].mxu1 %v116_v22  ;;  %v6329_v21 = vpack.c.bf16 %v1693_v14, %v1689_v11  ;;  %v6393_v22 = vpack.c.bf16 %v1695_v16, %v1691_v15  ;;  %v140_v52 = vld [vmem:[%s10630_s1 + $0x160] sm:$0xff]  ;;  %v6397_v2 = vpack.c.bf16 %v1703_v1, %v1699_v0  ;;  %v78_v3 = vld [vmem:[%s10629_s0 + $0x170] sm:$0xff]  ;;  %v149_v14 = vld [vmem:[%s10630_s1 + $0x1a8] sm:$0xff] }
 0x184   :  { %937 = vmatprep.mubr.f32.mxu0 %v55_v23  ;;  %1258 = vmatprep.mubr.f32.mxu1 %v119_v24  ;;  %v62_v23 = vld [vmem:[%s10629_s0 + $0xf0] sm:$0xff]  ;;  %v1697_v60 = vld [vmem:[%s10631_s5 + $0x3c0] sm:$0xff] }
 0x185   :  { %6314 = vmatpush1.bf16.msra.mxu0 %v6313_v25  ;;  %6378 = vmatpush1.bf16.msra.mxu1 %v6377_v26  ;;  %v126_v24 = vld [vmem:[%s10630_s1 + $0xf0] sm:$0xff]  ;;  %v65_v25 = vld [vmem:[%s10629_s0 + $0x108] sm:$0xff]  ;;  %v84_v15 = vld [vmem:[%s10629_s0 + $0x1a0] sm:$0xff] }
 0x186   :  { %6316 = vmatprep.subr.bf16.mxu0 %v6315_v29  ;;  %6380 = vmatprep.subr.bf16.mxu1 %v6379_v30  ;;  %v129_v26 = vld [vmem:[%s10630_s1 + $0x108] sm:$0xff]  ;;  %v67_v29 = vld [vmem:[%s10629_s0 + $0x118] sm:$0xff]  ;;  %v142_v4 = vld [vmem:[%s10630_s1 + $0x170] sm:$0xff] }
 0x187   :  { %938 = vmatmul.mubr.f32.gmra.mrb[86].mxu0 %v54_v37  ;;  %1259 = vmatmul.mubr.f32.gmra.mrb[86].mxu1 %v118_v38  ;;  %v131_v30 = vld [vmem:[%s10630_s1 + $0x118] sm:$0xff]  ;;  %v82_v11 = vld [vmem:[%s10629_s0 + $0x190] sm:$0xff]  ;;  %v148_v16 = vld [vmem:[%s10630_s1 + $0x1a0] sm:$0xff] }
 0x188   :  { %943 = vmatprep.mubr.f32.mxu0 %v57_v39  ;;  %1264 = vmatprep.mubr.f32.mxu1 %v121_v40  ;;  %v71_v37 = vld [vmem:[%s10629_s0 + $0x138] sm:$0xff]  ;;  %v70_v39 = vld [vmem:[%s10629_s0 + $0x130] sm:$0xff] }
 0x189   :  { %6318 = vmatpush1.bf16.msra.mxu0 %v6317_v41  ;;  %6382 = vmatpush1.bf16.msra.mxu1 %v6381_v42  ;;  %v135_v38 = vld [vmem:[%s10630_s1 + $0x138] sm:$0xff]  ;;  %v134_v40 = vld [vmem:[%s10630_s1 + $0x130] sm:$0xff]  ;;  %v73_v41 = vld [vmem:[%s10629_s0 + $0x148] sm:$0xff] }
 0x18a   :  { %6320 = vmatprep.subr.bf16.mxu0 %v6319_v45  ;;  %6384 = vmatprep.subr.bf16.mxu1 %v6383_v46  ;;  %v137_v42 = vld [vmem:[%s10630_s1 + $0x148] sm:$0xff]  ;;  %v75_v45 = vld [vmem:[%s10629_s0 + $0x158] sm:$0xff] }
 0x18b   :  { %944 = vmatmul.mubr.f32.gmra.mrb[88].mxu0 %v56_v53  ;;  %1265 = vmatmul.mubr.f32.gmra.mrb[88].mxu1 %v120_v54  ;;  %v139_v46 = vld [vmem:[%s10630_s1 + $0x158] sm:$0xff] }
 0x18c   :  { %949 = vmatprep.mubr.f32.mxu0 %v59_v55  ;;  %1270 = vmatprep.mubr.f32.mxu1 %v123_v56  ;;  %v79_v53 = vld [vmem:[%s10629_s0 + $0x178] sm:$0xff]  ;;  %v1698_v55 = vld [vmem:[%s10631_s5 + $0x3c8] sm:$0xff] }
 0x18d   :  { %6322 = vmatpush1.bf16.msra.mxu0 %v6321_v57  ;;  %6386 = vmatpush1.bf16.msra.mxu1 %v6385_v58  ;;  %v143_v54 = vld [vmem:[%s10630_s1 + $0x178] sm:$0xff]  ;;  %v1702_v56 = vld [vmem:[%s10631_s5 + $0x3e8] sm:$0xff] }
 0x18e   :  { %6324 = vmatprep.subr.bf16.mxu0 %v6323_v61  ;;  %6388 = vmatprep.subr.bf16.mxu1 %v6387_v62  ;;  %v1700_v57 = vld [vmem:[%s10631_s5 + $0x3d8] sm:$0xff]  ;;  %v6331_v58 = vpack.c.bf16 %v1702_v56, %v1698_v55  ;;  %v1701_v61 = vld [vmem:[%s10631_s5 + $0x3e0] sm:$0xff] }
 0x18f   :  { %950 = vmatmul.mubr.f32.gmra.mrb[90].mxu0 %v58_v5  ;;  %1271 = vmatmul.mubr.f32.gmra.mrb[90].mxu1 %v122_v6  ;;  %v6395_v62 = vpack.c.bf16 %v1704_v59, %v1700_v57  ;;  %v6333_v63 = vpack.c.bf16 %v1701_v61, %v1697_v60  ;;  %v81_v5 = vld [vmem:[%s10629_s0 + $0x188] sm:$0xff] }
 0x190   :  { %955 = vmatprep.mubr.f32.mxu0 %v61_v7  ;;  %1276 = vmatprep.mubr.f32.mxu1 %v125_v8  ;;  %v145_v6 = vld [vmem:[%s10630_s1 + $0x188] sm:$0xff]  ;;  %v80_v7 = vld [vmem:[%s10629_s0 + $0x180] sm:$0xff] }
 0x191   :  { %6326 = vmatpush1.bf16.msra.mxu0 %v6325_v9  ;;  %6390 = vmatpush1.bf16.msra.mxu1 %v6389_v10  ;;  %v144_v8 = vld [vmem:[%s10630_s1 + $0x180] sm:$0xff]  ;;  %v83_v9 = vld [vmem:[%s10629_s0 + $0x198] sm:$0xff] }
 0x192   :  { %6328 = vmatprep.subr.bf16.mxu0 %v6327_v12  ;;  %6392 = vmatprep.subr.bf16.mxu1 %v6391_v13  ;;  %v147_v10 = vld [vmem:[%s10630_s1 + $0x198] sm:$0xff]  ;;  %v146_v12 = vld [vmem:[%s10630_s1 + $0x190] sm:$0xff]  ;;  %v85_v13 = vld [vmem:[%s10629_s0 + $0x1a8] sm:$0xff] }
 0x193   :  { %956 = vmatmul.mubr.f32.gmra.mrb[92].mxu0 %v60_v17  ;;  %1277 = vmatmul.mubr.f32.gmra.mrb[92].mxu1 %v124_v18  ;;  %v87_v17 = vld [vmem:[%s10629_s0 + $0x1b8] sm:$0xff] }
 0x194   :  { %961 = vmatprep.mubr.f32.mxu0 %v63_v19  ;;  %1282 = vmatprep.mubr.f32.mxu1 %v127_v20  ;;  %v151_v18 = vld [vmem:[%s10630_s1 + $0x1b8] sm:$0xff]  ;;  %v86_v19 = vld [vmem:[%s10629_s0 + $0x1b0] sm:$0xff] }
 0x195   :  { %6330 = vmatpush1.bf16.msra.mxu0 %v6329_v21  ;;  %6394 = vmatpush1.bf16.msra.mxu1 %v6393_v22  ;;  %v150_v20 = vld [vmem:[%s10630_s1 + $0x1b0] sm:$0xff]  ;;  %v89_v21 = vld [vmem:[%s10629_s0 + $0x1c8] sm:$0xff] }
 0x196   :  { %6332 = vmatprep.subr.bf16.mxu0 %v6331_v58  ;;  %6396 = vmatprep.subr.bf16.mxu1 %v6395_v62  ;;  %v153_v22 = vld [vmem:[%s10630_s1 + $0x1c8] sm:$0xff] }
 0x197   :  { %962 = vmatmul.mubr.f32.gmra.mrb[94].mxu0 %v62_v23  ;;  %1283 = vmatmul.mubr.f32.gmra.mrb[94].mxu1 %v126_v24  ;;  %v88_v23 = vld [vmem:[%s10629_s0 + $0x1c0] sm:$0xff] }
 0x198   :  { %967 = vmatprep.mubr.f32.mxu0 %v65_v25  ;;  %1288 = vmatprep.mubr.f32.mxu1 %v129_v26  ;;  %v152_v24 = vld [vmem:[%s10630_s1 + $0x1c0] sm:$0xff]  ;;  %v91_v25 = vld [vmem:[%s10629_s0 + $0x1d8] sm:$0xff] }
 0x199   :  { %6334 = vmatpush1.bf16.msra.mxu0 %v6333_v63  ;;  %6398 = vmatpush1.bf16.msra.mxu1 %v6397_v2  ;;  %v155_v26 = vld [vmem:[%s10630_s1 + $0x1d8] sm:$0xff] }
 0x19b   :  { %968 = vmatmul.mubr.f32.gmra.mrb[96].mxu0 %v64_v27  ;;  %1289 = vmatmul.mubr.f32.gmra.mrb[96].mxu1 %v128_v28  ;;  %v90_v27 = vld [vmem:[%s10629_s0 + $0x1d0] sm:$0xff] }
 0x19c   :  { %973 = vmatprep.mubr.f32.mxu0 %v67_v29  ;;  %1294 = vmatprep.mubr.f32.mxu1 %v131_v30  ;;  %v154_v28 = vld [vmem:[%s10630_s1 + $0x1d0] sm:$0xff]  ;;  %v93_v29 = vld [vmem:[%s10629_s0 + $0x1e8] sm:$0xff] }
 0x19d   :  { %v157_v30 = vld [vmem:[%s10630_s1 + $0x1e8] sm:$0xff] }
 0x19f   :  { %974 = vmatmul.mubr.f32.gmra.mrb[98].mxu0 %v66_v31  ;;  %1295 = vmatmul.mubr.f32.gmra.mrb[98].mxu1 %v130_v32  ;;  %v92_v31 = vld [vmem:[%s10629_s0 + $0x1e0] sm:$0xff] }
 0x1a0   :  { %979 = vmatprep.mubr.f32.mxu0 %v69_v33  ;;  %1300 = vmatprep.mubr.f32.mxu1 %v133_v34  ;;  %v156_v32 = vld [vmem:[%s10630_s1 + $0x1e0] sm:$0xff]  ;;  %v95_v33 = vld [vmem:[%s10629_s0 + $0x1f8] sm:$0xff] }
 0x1a1   :  { %v159_v34 = vld [vmem:[%s10630_s1 + $0x1f8] sm:$0xff] }
 0x1a3   :  { %980 = vmatmul.mubr.f32.gmra.mrb[100].mxu0 %v68_v35  ;;  %1301 = vmatmul.mubr.f32.gmra.mrb[100].mxu1 %v132_v36  ;;  %v94_v35 = vld [vmem:[%s10629_s0 + $0x1f0] sm:$0xff] }
 0x1a4   :  { %985 = vmatprep.mubr.f32.mxu0 %v71_v37  ;;  %1306 = vmatprep.mubr.f32.mxu1 %v135_v38  ;;  %v158_v36 = vld [vmem:[%s10630_s1 + $0x1f0] sm:$0xff] }
 0x1a7   :  { %986 = vmatmul.mubr.f32.gmra.mrb[102].mxu0 %v70_v39  ;;  %1307 = vmatmul.mubr.f32.gmra.mrb[102].mxu1 %v134_v40 }
 0x1a8   :  { %991 = vmatprep.mubr.f32.mxu0 %v73_v41  ;;  %1312 = vmatprep.mubr.f32.mxu1 %v137_v42 }
 0x1ab   :  { %992 = vmatmul.mubr.f32.gmra.mrb[104].mxu0 %v72_v43  ;;  %1313 = vmatmul.mubr.f32.gmra.mrb[104].mxu1 %v136_v44 }
 0x1ac   :  { %997 = vmatprep.mubr.f32.mxu0 %v75_v45  ;;  %1318 = vmatprep.mubr.f32.mxu1 %v139_v46 }
 0x1af   :  { %998 = vmatmul.mubr.f32.gmra.mrb[106].mxu0 %v74_v47  ;;  %1319 = vmatmul.mubr.f32.gmra.mrb[106].mxu1 %v138_v48 }
 0x1b0   :  { %1003 = vmatprep.mubr.f32.mxu0 %v77_v49  ;;  %1324 = vmatprep.mubr.f32.mxu1 %v141_v50 }
 0x1b3   :  { %1004 = vmatmul.mubr.f32.gmra.mrb[108].mxu0 %v76_v51  ;;  %1325 = vmatmul.mubr.f32.gmra.mrb[108].mxu1 %v140_v52 }
 0x1b4   :  { %1009 = vmatprep.mubr.f32.mxu0 %v79_v53  ;;  %1330 = vmatprep.mubr.f32.mxu1 %v143_v54 }
 0x1b7   :  { %1010 = vmatmul.mubr.f32.gmra.mrb[110].mxu0 %v78_v3  ;;  %1331 = vmatmul.mubr.f32.gmra.mrb[110].mxu1 %v142_v4 }
 0x1b8   :  { %1015 = vmatprep.mubr.f32.mxu0 %v81_v5  ;;  %1336 = vmatprep.mubr.f32.mxu1 %v145_v6 }
 0x1bb   :  { %1016 = vmatmul.mubr.f32.gmra.mrb[112].mxu0 %v80_v7  ;;  %1337 = vmatmul.mubr.f32.gmra.mrb[112].mxu1 %v144_v8 }
 0x1bc   :  { %1021 = vmatprep.mubr.f32.mxu0 %v83_v9  ;;  %1342 = vmatprep.mubr.f32.mxu1 %v147_v10 }
 0x1bf   :  { %1022 = vmatmul.mubr.f32.gmra.mrb[114].mxu0 %v82_v11  ;;  %1343 = vmatmul.mubr.f32.gmra.mrb[114].mxu1 %v146_v12 }
 0x1c0   :  { %1027 = vmatprep.mubr.f32.mxu0 %v85_v13  ;;  %1348 = vmatprep.mubr.f32.mxu1 %v149_v14 }
 0x1c3   :  { %1028 = vmatmul.mubr.f32.gmra.mrb[116].mxu0 %v84_v15  ;;  %1349 = vmatmul.mubr.f32.gmra.mrb[116].mxu1 %v148_v16 }
 0x1c4   :  { %1033 = vmatprep.mubr.f32.mxu0 %v87_v17  ;;  %1354 = vmatprep.mubr.f32.mxu1 %v151_v18 }
 0x1c7   :  { %1034 = vmatmul.mubr.f32.gmra.mrb[118].mxu0 %v86_v19  ;;  %1355 = vmatmul.mubr.f32.gmra.mrb[118].mxu1 %v150_v20 }
 0x1c8   :  { %1039 = vmatprep.mubr.f32.mxu0 %v89_v21  ;;  %1360 = vmatprep.mubr.f32.mxu1 %v153_v22 }
 0x1cb   :  { %1040 = vmatmul.mubr.f32.gmra.mrb[120].mxu0 %v88_v23  ;;  %1361 = vmatmul.mubr.f32.gmra.mrb[120].mxu1 %v152_v24 }
 0x1cc   :  { %1045 = vmatprep.mubr.f32.mxu0 %v91_v25  ;;  %1366 = vmatprep.mubr.f32.mxu1 %v155_v26 }
 0x1cf   :  { %1046 = vmatmul.mubr.f32.gmra.mrb[122].mxu0 %v90_v27  ;;  %1367 = vmatmul.mubr.f32.gmra.mrb[122].mxu1 %v154_v28 }
 0x1d0   :  { %1051 = vmatprep.mubr.f32.mxu0 %v93_v29  ;;  %1372 = vmatprep.mubr.f32.mxu1 %v157_v30 }
 0x1d3   :  { %1052 = vmatmul.mubr.f32.gmra.mrb[124].mxu0 %v92_v31  ;;  %1373 = vmatmul.mubr.f32.gmra.mrb[124].mxu1 %v156_v32 }
 0x1d4   :  { %1057 = vmatprep.mubr.f32.mxu0 %v95_v33  ;;  %1378 = vmatprep.mubr.f32.mxu1 %v159_v34 }
 0x1d7   :  { %1058 = vmatmul.mubr.f32.gmra.mrb[126].mxu0 %v94_v35  ;;  %1379 = vmatmul.mubr.f32.gmra.mrb[126].mxu1 %v158_v36 }
 0x22e   :  { %v873_v37 = vpop.f32.mrb[64].mxu0  ;;  %v1194_v38 = vpop.f32.mrb[64].mxu1 }
 0x22f   :  { %v1064_v39 = vmax.f32 %v873_v37, 0.0  ;;  %v1385_v40 = vmax.f32 %v1194_v38, 0.0  ;;  %v875_v41 = vpop.f32.mrb[65].mxu0  ;;  %v1196_v42 = vpop.f32.mrb[65].mxu1 }
 0x230   :  { %v1065_v43 = vmax.f32 %v875_v41, 0.0  ;;  %v1386_v44 = vmax.f32 %v1196_v42, 0.0 }
 0x231   :  { %v1449_v45 = vadd.f32 %v1385_v40, %v1064_v39 }
 0x232   :  { %v879_v46 = vpop.f32.mrb[66].mxu0  ;;  %v1200_v47 = vpop.f32.mrb[66].mxu1  ;;  %v1450_v48 = vadd.f32 %v1386_v44, %v1065_v43 }
 0x233   :  { %v1066_v49 = vmax.f32 %v879_v46, 0.0  ;;  %v1387_v50 = vmax.f32 %v1200_v47, 0.0  ;;  %v881_v51 = vpop.f32.mrb[67].mxu0  ;;  %v1202_v52 = vpop.f32.mrb[67].mxu1  ;;  %v1513_v56 = vmul.f32 0.5, %v1449_v45 }
 0x234   :  { %v1067_v53 = vmax.f32 %v881_v51, 0.0  ;;  %v1388_v54 = vmax.f32 %v1202_v52, 0.0  ;;  %v1514_v55 = vmul.f32 0.5, %v1450_v48 }
 0x235   :  { %v1451_v57 = vadd.f32 %v1387_v50, %v1066_v49 }
 0x236   :  { %v885_v58 = vpop.f32.mrb[68].mxu0  ;;  %v1206_v59 = vpop.f32.mrb[68].mxu1  ;;  %1769 = vmatprep.mubr.f32.mxu0 %v1514_v55  ;;  %2026 = vmatprep.mubr.f32.mxu1 %v1514_v55  ;;  %v1452_v60 = vadd.f32 %v1388_v54, %v1067_v53 }
 0x237   :  { %v1068_v61 = vmax.f32 %v885_v58, 0.0  ;;  %v1389_v62 = vmax.f32 %v1206_v59, 0.0  ;;  %v887_v63 = vpop.f32.mrb[69].mxu0  ;;  %v1208_v0 = vpop.f32.mrb[69].mxu1  ;;  %1770 = vmatmul.mubr.f32.vlgmr.msra.gmra.mrb[128].mxu0 %v1513_v56  ;;  %2027 = vmatmul.mubr.f32.vlgmr.msra.gmra.mrb[128].mxu1 %v1513_v56  ;;  %v1515_v4 = vmul.f32 0.5, %v1451_v57 }
 0x238   :  { %v1069_v1 = vmax.f32 %v887_v63, 0.0  ;;  %v1390_v2 = vmax.f32 %v1208_v0, 0.0  ;;  %v1516_v3 = vmul.f32 0.5, %v1452_v60 }
 0x239   :  { %v1453_v5 = vadd.f32 %v1389_v62, %v1068_v61 }
 0x23a   :  { %v891_v6 = vpop.f32.mrb[70].mxu0  ;;  %v1212_v7 = vpop.f32.mrb[70].mxu1  ;;  %1775 = vmatprep.mubr.f32.mxu0 %v1516_v3  ;;  %2032 = vmatprep.mubr.f32.mxu1 %v1516_v3  ;;  %v1454_v8 = vadd.f32 %v1390_v2, %v1069_v1 }
 0x23b   :  { %v1070_v9 = vmax.f32 %v891_v6, 0.0  ;;  %v1391_v10 = vmax.f32 %v1212_v7, 0.0  ;;  %v893_v11 = vpop.f32.mrb[71].mxu0  ;;  %v1214_v12 = vpop.f32.mrb[71].mxu1  ;;  %1776 = vmatmul.mubr.f32.gmra.mrb[130].mxu0 %v1515_v4  ;;  %2033 = vmatmul.mubr.f32.gmra.mrb[130].mxu1 %v1515_v4  ;;  %v1517_v16 = vmul.f32 0.5, %v1453_v5 }
 0x23c   :  { %v1071_v13 = vmax.f32 %v893_v11, 0.0  ;;  %v1392_v14 = vmax.f32 %v1214_v12, 0.0  ;;  %v1518_v15 = vmul.f32 0.5, %v1454_v8 }
 0x23d   :  { %v1455_v17 = vadd.f32 %v1391_v10, %v1070_v9 }
 0x23e   :  { %v897_v18 = vpop.f32.mrb[72].mxu0  ;;  %v1218_v19 = vpop.f32.mrb[72].mxu1  ;;  %1781 = vmatprep.mubr.f32.mxu0 %v1518_v15  ;;  %2038 = vmatprep.mubr.f32.mxu1 %v1518_v15  ;;  %v1456_v20 = vadd.f32 %v1392_v14, %v1071_v13 }
 0x23f   :  { %v1072_v21 = vmax.f32 %v897_v18, 0.0  ;;  %v1393_v22 = vmax.f32 %v1218_v19, 0.0  ;;  %v899_v23 = vpop.f32.mrb[73].mxu0  ;;  %v1220_v24 = vpop.f32.mrb[73].mxu1  ;;  %1782 = vmatmul.mubr.f32.gmra.mrb[132].mxu0 %v1517_v16  ;;  %2039 = vmatmul.mubr.f32.gmra.mrb[132].mxu1 %v1517_v16  ;;  %v1519_v28 = vmul.f32 0.5, %v1455_v17 }
 0x240   :  { %v1073_v25 = vmax.f32 %v899_v23, 0.0  ;;  %v1394_v26 = vmax.f32 %v1220_v24, 0.0  ;;  %v1520_v27 = vmul.f32 0.5, %v1456_v20 }
 0x241   :  { %v1457_v29 = vadd.f32 %v1393_v22, %v1072_v21 }
 0x242   :  { %v903_v30 = vpop.f32.mrb[74].mxu0  ;;  %v1224_v31 = vpop.f32.mrb[74].mxu1  ;;  %1787 = vmatprep.mubr.f32.mxu0 %v1520_v27  ;;  %2044 = vmatprep.mubr.f32.mxu1 %v1520_v27  ;;  %v1458_v32 = vadd.f32 %v1394_v26, %v1073_v25 }
 0x243   :  { %v1074_v33 = vmax.f32 %v903_v30, 0.0  ;;  %v1395_v34 = vmax.f32 %v1224_v31, 0.0  ;;  %v905_v35 = vpop.f32.mrb[75].mxu0  ;;  %v1226_v36 = vpop.f32.mrb[75].mxu1  ;;  %1788 = vmatmul.mubr.f32.gmra.mrb[134].mxu0 %v1519_v28  ;;  %2045 = vmatmul.mubr.f32.gmra.mrb[134].mxu1 %v1519_v28  ;;  %v1521_v40 = vmul.f32 0.5, %v1457_v29 }
 0x244   :  { %v1075_v37 = vmax.f32 %v905_v35, 0.0  ;;  %v1396_v38 = vmax.f32 %v1226_v36, 0.0  ;;  %v1522_v39 = vmul.f32 0.5, %v1458_v32 }
 0x245   :  { %v1459_v41 = vadd.f32 %v1395_v34, %v1074_v33 }
 0x246   :  { %v909_v42 = vpop.f32.mrb[76].mxu0  ;;  %v1230_v43 = vpop.f32.mrb[76].mxu1  ;;  %1793 = vmatprep.mubr.f32.mxu0 %v1522_v39  ;;  %2050 = vmatprep.mubr.f32.mxu1 %v1522_v39  ;;  %v1460_v44 = vadd.f32 %v1396_v38, %v1075_v37 }
 0x247   :  { %v1076_v45 = vmax.f32 %v909_v42, 0.0  ;;  %v1397_v46 = vmax.f32 %v1230_v43, 0.0  ;;  %v911_v47 = vpop.f32.mrb[77].mxu0  ;;  %v1232_v48 = vpop.f32.mrb[77].mxu1  ;;  %1794 = vmatmul.mubr.f32.gmra.mrb[136].mxu0 %v1521_v40  ;;  %2051 = vmatmul.mubr.f32.gmra.mrb[136].mxu1 %v1521_v40  ;;  %v1523_v52 = vmul.f32 0.5, %v1459_v41 }
 0x248   :  { %v1077_v49 = vmax.f32 %v911_v47, 0.0  ;;  %v1398_v50 = vmax.f32 %v1232_v48, 0.0  ;;  %v1524_v51 = vmul.f32 0.5, %v1460_v44 }
 0x249   :  { %v1461_v53 = vadd.f32 %v1397_v46, %v1076_v45 }
 0x24a   :  { %v915_v54 = vpop.f32.mrb[78].mxu0  ;;  %v1236_v55 = vpop.f32.mrb[78].mxu1  ;;  %1799 = vmatprep.mubr.f32.mxu0 %v1524_v51  ;;  %2056 = vmatprep.mubr.f32.mxu1 %v1524_v51  ;;  %v1462_v56 = vadd.f32 %v1398_v50, %v1077_v49 }
 0x24b   :  { %v1078_v57 = vmax.f32 %v915_v54, 0.0  ;;  %v1399_v58 = vmax.f32 %v1236_v55, 0.0  ;;  %v917_v59 = vpop.f32.mrb[79].mxu0  ;;  %v1238_v60 = vpop.f32.mrb[79].mxu1  ;;  %1800 = vmatmul.mubr.f32.gmra.mrb[138].mxu0 %v1523_v52  ;;  %2057 = vmatmul.mubr.f32.gmra.mrb[138].mxu1 %v1523_v52  ;;  %v1525_v0 = vmul.f32 0.5, %v1461_v53 }
 0x24c   :  { %v1079_v61 = vmax.f32 %v917_v59, 0.0  ;;  %v1400_v62 = vmax.f32 %v1238_v60, 0.0  ;;  %v1526_v63 = vmul.f32 0.5, %v1462_v56 }
 0x24d   :  { %v1463_v1 = vadd.f32 %v1399_v58, %v1078_v57 }
 0x24e   :  { %v921_v2 = vpop.f32.mrb[80].mxu0  ;;  %v1242_v3 = vpop.f32.mrb[80].mxu1  ;;  %1805 = vmatprep.mubr.f32.mxu0 %v1526_v63  ;;  %2062 = vmatprep.mubr.f32.mxu1 %v1526_v63  ;;  %v1464_v4 = vadd.f32 %v1400_v62, %v1079_v61 }
 0x24f   :  { %v1080_v5 = vmax.f32 %v921_v2, 0.0  ;;  %v1401_v6 = vmax.f32 %v1242_v3, 0.0  ;;  %v923_v7 = vpop.f32.mrb[81].mxu0  ;;  %v1244_v8 = vpop.f32.mrb[81].mxu1  ;;  %1806 = vmatmul.mubr.f32.gmra.mrb[140].mxu0 %v1525_v0  ;;  %2063 = vmatmul.mubr.f32.gmra.mrb[140].mxu1 %v1525_v0  ;;  %v1527_v12 = vmul.f32 0.5, %v1463_v1 }
 0x250   :  { %v1081_v9 = vmax.f32 %v923_v7, 0.0  ;;  %v1402_v10 = vmax.f32 %v1244_v8, 0.0  ;;  %v1528_v11 = vmul.f32 0.5, %v1464_v4 }
 0x251   :  { %v1465_v13 = vadd.f32 %v1401_v6, %v1080_v5 }
 0x252   :  { %v927_v14 = vpop.f32.mrb[82].mxu0  ;;  %v1248_v15 = vpop.f32.mrb[82].mxu1  ;;  %1811 = vmatprep.mubr.f32.mxu0 %v1528_v11  ;;  %2068 = vmatprep.mubr.f32.mxu1 %v1528_v11  ;;  %v1466_v16 = vadd.f32 %v1402_v10, %v1081_v9 }
 0x253   :  { %v1082_v17 = vmax.f32 %v927_v14, 0.0  ;;  %v1403_v18 = vmax.f32 %v1248_v15, 0.0  ;;  %v929_v19 = vpop.f32.mrb[83].mxu0  ;;  %v1250_v20 = vpop.f32.mrb[83].mxu1  ;;  %1812 = vmatmul.mubr.f32.gmra.mrb[142].mxu0 %v1527_v12  ;;  %2069 = vmatmul.mubr.f32.gmra.mrb[142].mxu1 %v1527_v12  ;;  %v1529_v24 = vmul.f32 0.5, %v1465_v13 }
 0x254   :  { %v1083_v21 = vmax.f32 %v929_v19, 0.0  ;;  %v1404_v22 = vmax.f32 %v1250_v20, 0.0  ;;  %v1530_v23 = vmul.f32 0.5, %v1466_v16 }
 0x255   :  { %v1467_v25 = vadd.f32 %v1403_v18, %v1082_v17 }
 0x256   :  { %v933_v26 = vpop.f32.mrb[84].mxu0  ;;  %v1254_v27 = vpop.f32.mrb[84].mxu1  ;;  %1817 = vmatprep.mubr.f32.mxu0 %v1530_v23  ;;  %2074 = vmatprep.mubr.f32.mxu1 %v1530_v23  ;;  %v1468_v28 = vadd.f32 %v1404_v22, %v1083_v21 }
 0x257   :  { %v1084_v29 = vmax.f32 %v933_v26, 0.0  ;;  %v1405_v30 = vmax.f32 %v1254_v27, 0.0  ;;  %v935_v31 = vpop.f32.mrb[85].mxu0  ;;  %v1256_v32 = vpop.f32.mrb[85].mxu1  ;;  %1818 = vmatmul.mubr.f32.gmra.mrb[144].mxu0 %v1529_v24  ;;  %2075 = vmatmul.mubr.f32.gmra.mrb[144].mxu1 %v1529_v24  ;;  %v1531_v36 = vmul.f32 0.5, %v1467_v25 }
 0x258   :  { %v1085_v33 = vmax.f32 %v935_v31, 0.0  ;;  %v1406_v34 = vmax.f32 %v1256_v32, 0.0  ;;  %v1532_v35 = vmul.f32 0.5, %v1468_v28 }
 0x259   :  { %v1469_v37 = vadd.f32 %v1405_v30, %v1084_v29 }
 0x25a   :  { %v939_v38 = vpop.f32.mrb[86].mxu0  ;;  %v1260_v39 = vpop.f32.mrb[86].mxu1  ;;  %1823 = vmatprep.mubr.f32.mxu0 %v1532_v35  ;;  %2080 = vmatprep.mubr.f32.mxu1 %v1532_v35  ;;  %v1470_v40 = vadd.f32 %v1406_v34, %v1085_v33 }
 0x25b   :  { %v1086_v41 = vmax.f32 %v939_v38, 0.0  ;;  %v1407_v42 = vmax.f32 %v1260_v39, 0.0  ;;  %v941_v43 = vpop.f32.mrb[87].mxu0  ;;  %v1262_v44 = vpop.f32.mrb[87].mxu1  ;;  %1824 = vmatmul.mubr.f32.gmra.mrb[146].mxu0 %v1531_v36  ;;  %2081 = vmatmul.mubr.f32.gmra.mrb[146].mxu1 %v1531_v36  ;;  %v1533_v48 = vmul.f32 0.5, %v1469_v37 }
 0x25c   :  { %v1087_v45 = vmax.f32 %v941_v43, 0.0  ;;  %v1408_v46 = vmax.f32 %v1262_v44, 0.0  ;;  %v1534_v47 = vmul.f32 0.5, %v1470_v40 }
 0x25d   :  { %v1471_v49 = vadd.f32 %v1407_v42, %v1086_v41 }
 0x25e   :  { %v945_v50 = vpop.f32.mrb[88].mxu0  ;;  %v1266_v51 = vpop.f32.mrb[88].mxu1  ;;  %1829 = vmatprep.mubr.f32.mxu0 %v1534_v47  ;;  %2086 = vmatprep.mubr.f32.mxu1 %v1534_v47  ;;  %v1472_v52 = vadd.f32 %v1408_v46, %v1087_v45 }
 0x25f   :  { %v1088_v53 = vmax.f32 %v945_v50, 0.0  ;;  %v1409_v54 = vmax.f32 %v1266_v51, 0.0  ;;  %v947_v55 = vpop.f32.mrb[89].mxu0  ;;  %v1268_v56 = vpop.f32.mrb[89].mxu1  ;;  %1830 = vmatmul.mubr.f32.gmra.mrb[148].mxu0 %v1533_v48  ;;  %2087 = vmatmul.mubr.f32.gmra.mrb[148].mxu1 %v1533_v48  ;;  %v1535_v60 = vmul.f32 0.5, %v1471_v49 }
 0x260   :  { %v1089_v57 = vmax.f32 %v947_v55, 0.0  ;;  %v1410_v58 = vmax.f32 %v1268_v56, 0.0  ;;  %v1536_v59 = vmul.f32 0.5, %v1472_v52 }
 0x261   :  { %v1473_v61 = vadd.f32 %v1409_v54, %v1088_v53 }
 0x262   :  { %v951_v62 = vpop.f32.mrb[90].mxu0  ;;  %v1272_v63 = vpop.f32.mrb[90].mxu1  ;;  %1835 = vmatprep.mubr.f32.mxu0 %v1536_v59  ;;  %2092 = vmatprep.mubr.f32.mxu1 %v1536_v59  ;;  %v1474_v0 = vadd.f32 %v1410_v58, %v1089_v57 }
 0x263   :  { %v1090_v1 = vmax.f32 %v951_v62, 0.0  ;;  %v1411_v2 = vmax.f32 %v1272_v63, 0.0  ;;  %v953_v3 = vpop.f32.mrb[91].mxu0  ;;  %v1274_v4 = vpop.f32.mrb[91].mxu1  ;;  %1836 = vmatmul.mubr.f32.gmra.mrb[150].mxu0 %v1535_v60  ;;  %2093 = vmatmul.mubr.f32.gmra.mrb[150].mxu1 %v1535_v60  ;;  %v1537_v8 = vmul.f32 0.5, %v1473_v61 }
 0x264   :  { %v1091_v5 = vmax.f32 %v953_v3, 0.0  ;;  %v1412_v6 = vmax.f32 %v1274_v4, 0.0  ;;  %v1538_v7 = vmul.f32 0.5, %v1474_v0 }
 0x265   :  { %v1475_v9 = vadd.f32 %v1411_v2, %v1090_v1 }
 0x266   :  { %v957_v10 = vpop.f32.mrb[92].mxu0  ;;  %v1278_v11 = vpop.f32.mrb[92].mxu1  ;;  %1841 = vmatprep.mubr.f32.mxu0 %v1538_v7  ;;  %2098 = vmatprep.mubr.f32.mxu1 %v1538_v7  ;;  %v1476_v12 = vadd.f32 %v1412_v6, %v1091_v5 }
 0x267   :  { %v1092_v13 = vmax.f32 %v957_v10, 0.0  ;;  %v1413_v14 = vmax.f32 %v1278_v11, 0.0  ;;  %v959_v15 = vpop.f32.mrb[93].mxu0  ;;  %v1280_v16 = vpop.f32.mrb[93].mxu1  ;;  %1842 = vmatmul.mubr.f32.gmra.mrb[152].mxu0 %v1537_v8  ;;  %2099 = vmatmul.mubr.f32.gmra.mrb[152].mxu1 %v1537_v8  ;;  %v1539_v20 = vmul.f32 0.5, %v1475_v9 }
 0x268   :  { %v1093_v17 = vmax.f32 %v959_v15, 0.0  ;;  %v1414_v18 = vmax.f32 %v1280_v16, 0.0  ;;  %v1540_v19 = vmul.f32 0.5, %v1476_v12 }
 0x269   :  { %v1477_v21 = vadd.f32 %v1413_v14, %v1092_v13 }
 0x26a   :  { %v963_v22 = vpop.f32.mrb[94].mxu0  ;;  %v1284_v23 = vpop.f32.mrb[94].mxu1  ;;  %1847 = vmatprep.mubr.f32.mxu0 %v1540_v19  ;;  %2104 = vmatprep.mubr.f32.mxu1 %v1540_v19  ;;  %v1478_v24 = vadd.f32 %v1414_v18, %v1093_v17 }
 0x26b   :  { %v1094_v25 = vmax.f32 %v963_v22, 0.0  ;;  %v1415_v26 = vmax.f32 %v1284_v23, 0.0  ;;  %v965_v27 = vpop.f32.mrb[95].mxu0  ;;  %v1286_v28 = vpop.f32.mrb[95].mxu1  ;;  %1848 = vmatmul.mubr.f32.gmra.mrb[154].mxu0 %v1539_v20  ;;  %2105 = vmatmul.mubr.f32.gmra.mrb[154].mxu1 %v1539_v20  ;;  %v1541_v32 = vmul.f32 0.5, %v1477_v21 }
 0x26c   :  { %v1095_v29 = vmax.f32 %v965_v27, 0.0  ;;  %v1416_v30 = vmax.f32 %v1286_v28, 0.0  ;;  %v1542_v31 = vmul.f32 0.5, %v1478_v24 }
 0x26d   :  { %v1479_v33 = vadd.f32 %v1415_v26, %v1094_v25 }
 0x26e   :  { %v969_v34 = vpop.f32.mrb[96].mxu0  ;;  %v1290_v35 = vpop.f32.mrb[96].mxu1  ;;  %1853 = vmatprep.mubr.f32.mxu0 %v1542_v31  ;;  %2110 = vmatprep.mubr.f32.mxu1 %v1542_v31  ;;  %v1480_v36 = vadd.f32 %v1416_v30, %v1095_v29 }
 0x26f   :  { %v1096_v37 = vmax.f32 %v969_v34, 0.0  ;;  %v1417_v38 = vmax.f32 %v1290_v35, 0.0  ;;  %v971_v39 = vpop.f32.mrb[97].mxu0  ;;  %v1292_v40 = vpop.f32.mrb[97].mxu1  ;;  %1854 = vmatmul.mubr.f32.gmra.mrb[156].mxu0 %v1541_v32  ;;  %2111 = vmatmul.mubr.f32.gmra.mrb[156].mxu1 %v1541_v32  ;;  %v1543_v44 = vmul.f32 0.5, %v1479_v33 }
 0x270   :  { %v1097_v41 = vmax.f32 %v971_v39, 0.0  ;;  %v1418_v42 = vmax.f32 %v1292_v40, 0.0  ;;  %v1544_v43 = vmul.f32 0.5, %v1480_v36 }
 0x271   :  { %v1481_v45 = vadd.f32 %v1417_v38, %v1096_v37 }
 0x272   :  { %v975_v46 = vpop.f32.mrb[98].mxu0  ;;  %v1296_v47 = vpop.f32.mrb[98].mxu1  ;;  %1859 = vmatprep.mubr.f32.mxu0 %v1544_v43  ;;  %2116 = vmatprep.mubr.f32.mxu1 %v1544_v43  ;;  %v1482_v48 = vadd.f32 %v1418_v42, %v1097_v41 }
 0x273   :  { %v1098_v49 = vmax.f32 %v975_v46, 0.0  ;;  %v1419_v50 = vmax.f32 %v1296_v47, 0.0  ;;  %v977_v51 = vpop.f32.mrb[99].mxu0  ;;  %v1298_v52 = vpop.f32.mrb[99].mxu1  ;;  %1860 = vmatmul.mubr.f32.gmra.mrb[158].mxu0 %v1543_v44  ;;  %2117 = vmatmul.mubr.f32.gmra.mrb[158].mxu1 %v1543_v44  ;;  %v1545_v56 = vmul.f32 0.5, %v1481_v45 }
 0x274   :  { %v1099_v53 = vmax.f32 %v977_v51, 0.0  ;;  %v1420_v54 = vmax.f32 %v1298_v52, 0.0  ;;  %v1546_v55 = vmul.f32 0.5, %v1482_v48 }
 0x275   :  { %v1483_v57 = vadd.f32 %v1419_v50, %v1098_v49 }
 0x276   :  { %v981_v58 = vpop.f32.mrb[100].mxu0  ;;  %v1302_v59 = vpop.f32.mrb[100].mxu1  ;;  %1865 = vmatprep.mubr.f32.mxu0 %v1546_v55  ;;  %2122 = vmatprep.mubr.f32.mxu1 %v1546_v55  ;;  %v1484_v60 = vadd.f32 %v1420_v54, %v1099_v53 }
 0x277   :  { %v1100_v61 = vmax.f32 %v981_v58, 0.0  ;;  %v1421_v62 = vmax.f32 %v1302_v59, 0.0  ;;  %v983_v63 = vpop.f32.mrb[101].mxu0  ;;  %v1304_v0 = vpop.f32.mrb[101].mxu1  ;;  %1866 = vmatmul.mubr.f32.gmra.mrb[160].mxu0 %v1545_v56  ;;  %2123 = vmatmul.mubr.f32.gmra.mrb[160].mxu1 %v1545_v56  ;;  %v1547_v4 = vmul.f32 0.5, %v1483_v57 }
 0x278   :  { %v1101_v1 = vmax.f32 %v983_v63, 0.0  ;;  %v1422_v2 = vmax.f32 %v1304_v0, 0.0  ;;  %v1548_v3 = vmul.f32 0.5, %v1484_v60 }
 0x279   :  { %v1485_v5 = vadd.f32 %v1421_v62, %v1100_v61 }
 0x27a   :  { %v987_v6 = vpop.f32.mrb[102].mxu0  ;;  %v1308_v7 = vpop.f32.mrb[102].mxu1  ;;  %1871 = vmatprep.mubr.f32.mxu0 %v1548_v3  ;;  %2128 = vmatprep.mubr.f32.mxu1 %v1548_v3  ;;  %v1486_v8 = vadd.f32 %v1422_v2, %v1101_v1 }
 0x27b   :  { %v1102_v9 = vmax.f32 %v987_v6, 0.0  ;;  %v1423_v10 = vmax.f32 %v1308_v7, 0.0  ;;  %v989_v11 = vpop.f32.mrb[103].mxu0  ;;  %v1310_v12 = vpop.f32.mrb[103].mxu1  ;;  %1872 = vmatmul.mubr.f32.gmra.mrb[162].mxu0 %v1547_v4  ;;  %2129 = vmatmul.mubr.f32.gmra.mrb[162].mxu1 %v1547_v4  ;;  %v1549_v16 = vmul.f32 0.5, %v1485_v5 }
 0x27c   :  { %v1103_v13 = vmax.f32 %v989_v11, 0.0  ;;  %v1424_v14 = vmax.f32 %v1310_v12, 0.0  ;;  %v1550_v15 = vmul.f32 0.5, %v1486_v8 }
 0x27d   :  { %v1487_v17 = vadd.f32 %v1423_v10, %v1102_v9 }
 0x27e   :  { %v993_v18 = vpop.f32.mrb[104].mxu0  ;;  %v1314_v19 = vpop.f32.mrb[104].mxu1  ;;  %1877 = vmatprep.mubr.f32.mxu0 %v1550_v15  ;;  %2134 = vmatprep.mubr.f32.mxu1 %v1550_v15  ;;  %v1488_v20 = vadd.f32 %v1424_v14, %v1103_v13 }
 0x27f   :  { %v1104_v21 = vmax.f32 %v993_v18, 0.0  ;;  %v1425_v22 = vmax.f32 %v1314_v19, 0.0  ;;  %v995_v23 = vpop.f32.mrb[105].mxu0  ;;  %v1316_v24 = vpop.f32.mrb[105].mxu1  ;;  %1878 = vmatmul.mubr.f32.gmra.mrb[164].mxu0 %v1549_v16  ;;  %2135 = vmatmul.mubr.f32.gmra.mrb[164].mxu1 %v1549_v16  ;;  %v1551_v28 = vmul.f32 0.5, %v1487_v17 }
 0x280   :  { %v1105_v25 = vmax.f32 %v995_v23, 0.0  ;;  %v1426_v26 = vmax.f32 %v1316_v24, 0.0  ;;  %v1552_v27 = vmul.f32 0.5, %v1488_v20 }
 0x281   :  { %v1489_v29 = vadd.f32 %v1425_v22, %v1104_v21 }
 0x282   :  { %v999_v30 = vpop.f32.mrb[106].mxu0  ;;  %v1320_v31 = vpop.f32.mrb[106].mxu1  ;;  %1883 = vmatprep.mubr.f32.mxu0 %v1552_v27  ;;  %2140 = vmatprep.mubr.f32.mxu1 %v1552_v27  ;;  %v1490_v32 = vadd.f32 %v1426_v26, %v1105_v25 }
 0x283   :  { %v1106_v33 = vmax.f32 %v999_v30, 0.0  ;;  %v1427_v34 = vmax.f32 %v1320_v31, 0.0  ;;  %v1001_v35 = vpop.f32.mrb[107].mxu0  ;;  %v1322_v36 = vpop.f32.mrb[107].mxu1  ;;  %1884 = vmatmul.mubr.f32.gmra.mrb[166].mxu0 %v1551_v28  ;;  %2141 = vmatmul.mubr.f32.gmra.mrb[166].mxu1 %v1551_v28  ;;  %v1553_v40 = vmul.f32 0.5, %v1489_v29 }
 0x284   :  { %v1107_v37 = vmax.f32 %v1001_v35, 0.0  ;;  %v1428_v38 = vmax.f32 %v1322_v36, 0.0  ;;  %v1554_v39 = vmul.f32 0.5, %v1490_v32 }
 0x285   :  { %v1491_v41 = vadd.f32 %v1427_v34, %v1106_v33 }
 0x286   :  { %v1005_v42 = vpop.f32.mrb[108].mxu0  ;;  %v1326_v43 = vpop.f32.mrb[108].mxu1  ;;  %1889 = vmatprep.mubr.f32.mxu0 %v1554_v39  ;;  %2146 = vmatprep.mubr.f32.mxu1 %v1554_v39  ;;  %v1492_v44 = vadd.f32 %v1428_v38, %v1107_v37 }
 0x287   :  { %v1108_v45 = vmax.f32 %v1005_v42, 0.0  ;;  %v1429_v46 = vmax.f32 %v1326_v43, 0.0  ;;  %v1007_v47 = vpop.f32.mrb[109].mxu0  ;;  %v1328_v48 = vpop.f32.mrb[109].mxu1  ;;  %1890 = vmatmul.mubr.f32.gmra.mrb[168].mxu0 %v1553_v40  ;;  %2147 = vmatmul.mubr.f32.gmra.mrb[168].mxu1 %v1553_v40  ;;  %v1555_v52 = vmul.f32 0.5, %v1491_v41 }
 0x288   :  { %v1109_v49 = vmax.f32 %v1007_v47, 0.0  ;;  %v1430_v50 = vmax.f32 %v1328_v48, 0.0  ;;  %v1556_v51 = vmul.f32 0.5, %v1492_v44 }
 0x289   :  { %v1493_v53 = vadd.f32 %v1429_v46, %v1108_v45 }
 0x28a   :  { %v1011_v54 = vpop.f32.mrb[110].mxu0  ;;  %v1332_v55 = vpop.f32.mrb[110].mxu1  ;;  %1895 = vmatprep.mubr.f32.mxu0 %v1556_v51  ;;  %2152 = vmatprep.mubr.f32.mxu1 %v1556_v51  ;;  %v1494_v56 = vadd.f32 %v1430_v50, %v1109_v49 }
 0x28b   :  { %v1110_v57 = vmax.f32 %v1011_v54, 0.0  ;;  %v1431_v58 = vmax.f32 %v1332_v55, 0.0  ;;  %v1013_v59 = vpop.f32.mrb[111].mxu0  ;;  %v1334_v60 = vpop.f32.mrb[111].mxu1  ;;  %1896 = vmatmul.mubr.f32.gmra.mrb[170].mxu0 %v1555_v52  ;;  %2153 = vmatmul.mubr.f32.gmra.mrb[170].mxu1 %v1555_v52  ;;  %v1557_v0 = vmul.f32 0.5, %v1493_v53 }
 0x28c   :  { %v1111_v61 = vmax.f32 %v1013_v59, 0.0  ;;  %v1432_v62 = vmax.f32 %v1334_v60, 0.0  ;;  %v1558_v63 = vmul.f32 0.5, %v1494_v56 }
 0x28d   :  { %v1495_v1 = vadd.f32 %v1431_v58, %v1110_v57 }
 0x28e   :  { %v1017_v2 = vpop.f32.mrb[112].mxu0  ;;  %v1338_v3 = vpop.f32.mrb[112].mxu1  ;;  %1901 = vmatprep.mubr.f32.mxu0 %v1558_v63  ;;  %2158 = vmatprep.mubr.f32.mxu1 %v1558_v63  ;;  %v1496_v4 = vadd.f32 %v1432_v62, %v1111_v61 }
 0x28f   :  { %v1112_v5 = vmax.f32 %v1017_v2, 0.0  ;;  %v1433_v6 = vmax.f32 %v1338_v3, 0.0  ;;  %v1019_v7 = vpop.f32.mrb[113].mxu0  ;;  %v1340_v8 = vpop.f32.mrb[113].mxu1  ;;  %1902 = vmatmul.mubr.f32.gmra.mrb[172].mxu0 %v1557_v0  ;;  %2159 = vmatmul.mubr.f32.gmra.mrb[172].mxu1 %v1557_v0  ;;  %v1559_v12 = vmul.f32 0.5, %v1495_v1 }
 0x290   :  { %v1113_v9 = vmax.f32 %v1019_v7, 0.0  ;;  %v1434_v10 = vmax.f32 %v1340_v8, 0.0  ;;  %v1560_v11 = vmul.f32 0.5, %v1496_v4 }
 0x291   :  { %v1497_v13 = vadd.f32 %v1433_v6, %v1112_v5 }
 0x292   :  { %v1023_v14 = vpop.f32.mrb[114].mxu0  ;;  %v1344_v15 = vpop.f32.mrb[114].mxu1  ;;  %1907 = vmatprep.mubr.f32.mxu0 %v1560_v11  ;;  %2164 = vmatprep.mubr.f32.mxu1 %v1560_v11  ;;  %v1498_v16 = vadd.f32 %v1434_v10, %v1113_v9 }
 0x293   :  { %v1114_v17 = vmax.f32 %v1023_v14, 0.0  ;;  %v1435_v18 = vmax.f32 %v1344_v15, 0.0  ;;  %v1025_v19 = vpop.f32.mrb[115].mxu0  ;;  %v1346_v20 = vpop.f32.mrb[115].mxu1  ;;  %1908 = vmatmul.mubr.f32.gmra.mrb[174].mxu0 %v1559_v12  ;;  %2165 = vmatmul.mubr.f32.gmra.mrb[174].mxu1 %v1559_v12  ;;  %v1561_v24 = vmul.f32 0.5, %v1497_v13 }
 0x294   :  { %v1115_v21 = vmax.f32 %v1025_v19, 0.0  ;;  %v1436_v22 = vmax.f32 %v1346_v20, 0.0  ;;  %v1562_v23 = vmul.f32 0.5, %v1498_v16 }
 0x295   :  { %v1499_v25 = vadd.f32 %v1435_v18, %v1114_v17 }
 0x296   :  { %v1029_v26 = vpop.f32.mrb[116].mxu0  ;;  %v1350_v27 = vpop.f32.mrb[116].mxu1  ;;  %1913 = vmatprep.mubr.f32.mxu0 %v1562_v23  ;;  %2170 = vmatprep.mubr.f32.mxu1 %v1562_v23  ;;  %v1500_v28 = vadd.f32 %v1436_v22, %v1115_v21 }
 0x297   :  { %v1116_v29 = vmax.f32 %v1029_v26, 0.0  ;;  %v1437_v30 = vmax.f32 %v1350_v27, 0.0  ;;  %v1031_v31 = vpop.f32.mrb[117].mxu0  ;;  %v1352_v32 = vpop.f32.mrb[117].mxu1  ;;  %1914 = vmatmul.mubr.f32.gmra.mrb[176].mxu0 %v1561_v24  ;;  %2171 = vmatmul.mubr.f32.gmra.mrb[176].mxu1 %v1561_v24  ;;  %v1563_v36 = vmul.f32 0.5, %v1499_v25 }
 0x298   :  { %v1117_v33 = vmax.f32 %v1031_v31, 0.0  ;;  %v1438_v34 = vmax.f32 %v1352_v32, 0.0  ;;  %v1564_v35 = vmul.f32 0.5, %v1500_v28 }
 0x299   :  { %v1501_v37 = vadd.f32 %v1437_v30, %v1116_v29 }
 0x29a   :  { %v1035_v38 = vpop.f32.mrb[118].mxu0  ;;  %v1356_v39 = vpop.f32.mrb[118].mxu1  ;;  %1919 = vmatprep.mubr.f32.mxu0 %v1564_v35  ;;  %2176 = vmatprep.mubr.f32.mxu1 %v1564_v35  ;;  %v1502_v40 = vadd.f32 %v1438_v34, %v1117_v33 }
 0x29b   :  { %v1118_v41 = vmax.f32 %v1035_v38, 0.0  ;;  %v1439_v42 = vmax.f32 %v1356_v39, 0.0  ;;  %v1037_v43 = vpop.f32.mrb[119].mxu0  ;;  %v1358_v44 = vpop.f32.mrb[119].mxu1  ;;  %1920 = vmatmul.mubr.f32.gmra.mrb[178].mxu0 %v1563_v36  ;;  %2177 = vmatmul.mubr.f32.gmra.mrb[178].mxu1 %v1563_v36  ;;  %v1565_v48 = vmul.f32 0.5, %v1501_v37  ;;  %v7136_v37 = vld [vmem:[%s10629_s0 + $0x8] sm:$0xff] }
 0x29c   :  { %v1119_v45 = vmax.f32 %v1037_v43, 0.0  ;;  %v1440_v46 = vmax.f32 %v1358_v44, 0.0  ;;  %v1566_v47 = vmul.f32 0.5, %v1502_v40  ;;  %v7137_v38 = vld [vmem:[%s10630_s1 + $0x8] sm:$0xff] }
 0x29d   :  { %v1503_v49 = vadd.f32 %v1439_v42, %v1118_v41 }
 0x29e   :  { %v1041_v50 = vpop.f32.mrb[120].mxu0  ;;  %v1362_v51 = vpop.f32.mrb[120].mxu1  ;;  %1925 = vmatprep.mubr.f32.mxu0 %v1566_v47  ;;  %2182 = vmatprep.mubr.f32.mxu1 %v1566_v47  ;;  %v1504_v52 = vadd.f32 %v1440_v46, %v1119_v45 }
 0x29f   :  { %v1120_v53 = vmax.f32 %v1041_v50, 0.0  ;;  %v1441_v54 = vmax.f32 %v1362_v51, 0.0  ;;  %v1043_v55 = vpop.f32.mrb[121].mxu0  ;;  %v1364_v56 = vpop.f32.mrb[121].mxu1  ;;  %1926 = vmatmul.mubr.f32.gmra.mrb[180].mxu0 %v1565_v48  ;;  %2183 = vmatmul.mubr.f32.gmra.mrb[180].mxu1 %v1565_v48  ;;  %v1567_v60 = vmul.f32 0.5, %v1503_v49 }
 0x2a0   :  { %v1121_v57 = vmax.f32 %v1043_v55, 0.0  ;;  %v1442_v58 = vmax.f32 %v1364_v56, 0.0  ;;  %v1568_v59 = vmul.f32 0.5, %v1504_v52 }
 0x2a1   :  { %v1505_v61 = vadd.f32 %v1441_v54, %v1120_v53 }
 0x2a2   :  { %v1047_v62 = vpop.f32.mrb[122].mxu0  ;;  %v1368_v63 = vpop.f32.mrb[122].mxu1  ;;  %1931 = vmatprep.mubr.f32.mxu0 %v1568_v59  ;;  %2188 = vmatprep.mubr.f32.mxu1 %v1568_v59  ;;  %v1506_v0 = vadd.f32 %v1442_v58, %v1121_v57 }
 0x2a3   :  { %v1122_v1 = vmax.f32 %v1047_v62, 0.0  ;;  %v1443_v2 = vmax.f32 %v1368_v63, 0.0  ;;  %v1049_v3 = vpop.f32.mrb[123].mxu0  ;;  %v1370_v4 = vpop.f32.mrb[123].mxu1  ;;  %1932 = vmatmul.mubr.f32.gmra.mrb[182].mxu0 %v1567_v60  ;;  %2189 = vmatmul.mubr.f32.gmra.mrb[182].mxu1 %v1567_v60  ;;  %v1569_v8 = vmul.f32 0.5, %v1505_v61 }
 0x2a4   :  { %v1123_v5 = vmax.f32 %v1049_v3, 0.0  ;;  %v1444_v6 = vmax.f32 %v1370_v4, 0.0  ;;  %v1570_v7 = vmul.f32 0.5, %v1506_v0 }
 0x2a5   :  { %v1507_v9 = vadd.f32 %v1443_v2, %v1122_v1 }
 0x2a6   :  { %v1053_v10 = vpop.f32.mrb[124].mxu0  ;;  %v1374_v11 = vpop.f32.mrb[124].mxu1  ;;  %1937 = vmatprep.mubr.f32.mxu0 %v1570_v7  ;;  %2194 = vmatprep.mubr.f32.mxu1 %v1570_v7  ;;  %v1508_v12 = vadd.f32 %v1444_v6, %v1123_v5 }
 0x2a7   :  { %v1124_v13 = vmax.f32 %v1053_v10, 0.0  ;;  %v1445_v14 = vmax.f32 %v1374_v11, 0.0  ;;  %v1055_v15 = vpop.f32.mrb[125].mxu0  ;;  %v1376_v16 = vpop.f32.mrb[125].mxu1  ;;  %1938 = vmatmul.mubr.f32.gmra.mrb[184].mxu0 %v1569_v8  ;;  %2195 = vmatmul.mubr.f32.gmra.mrb[184].mxu1 %v1569_v8  ;;  %v1571_v20 = vmul.f32 0.5, %v1507_v9 }
 0x2a8   :  { %v1125_v17 = vmax.f32 %v1055_v15, 0.0  ;;  %v1446_v18 = vmax.f32 %v1376_v16, 0.0  ;;  %v1572_v19 = vmul.f32 0.5, %v1508_v12 }
 0x2a9   :  { %v1509_v21 = vadd.f32 %v1445_v14, %v1124_v13 }
 0x2aa   :  { %v1059_v22 = vpop.f32.mrb[126].mxu0  ;;  %v1380_v23 = vpop.f32.mrb[126].mxu1  ;;  %1943 = vmatprep.mubr.f32.mxu0 %v1572_v19  ;;  %2200 = vmatprep.mubr.f32.mxu1 %v1572_v19  ;;  %v1510_v24 = vadd.f32 %v1446_v18, %v1125_v17 }
 0x2ab   :  { %v1126_v25 = vmax.f32 %v1059_v22, 0.0  ;;  %v1447_v26 = vmax.f32 %v1380_v23, 0.0  ;;  %v1061_v27 = vpop.f32.mrb[127].mxu0  ;;  %v1382_v28 = vpop.f32.mrb[127].mxu1  ;;  %1944 = vmatmul.mubr.f32.gmra.mrb[186].mxu0 %v1571_v20  ;;  %2201 = vmatmul.mubr.f32.gmra.mrb[186].mxu1 %v1571_v20  ;;  %v1573_v32 = vmul.f32 0.5, %v1509_v21 }
 0x2ac   :  { %v1127_v29 = vmax.f32 %v1061_v27, 0.0  ;;  %v1448_v30 = vmax.f32 %v1382_v28, 0.0  ;;  %v1574_v31 = vmul.f32 0.5, %v1510_v24 }
 0x2ad   :  { %v1511_v33 = vadd.f32 %v1447_v26, %v1126_v25 }
 0x2ae   :  { %1949 = vmatprep.mubr.f32.mxu0 %v1574_v31  ;;  %2206 = vmatprep.mubr.f32.mxu1 %v1574_v31  ;;  %v1512_v34 = vadd.f32 %v1448_v30, %v1127_v29 }
 0x2af   :  { %1950 = vmatmul.mubr.f32.gmra.mrb[188].mxu0 %v1573_v32  ;;  %2207 = vmatmul.mubr.f32.gmra.mrb[188].mxu1 %v1573_v32  ;;  %v1575_v36 = vmul.f32 0.5, %v1511_v33 }
 0x2b0   :  { %v1576_v35 = vmul.f32 0.5, %v1512_v34 }
 0x2b2   :  { %1955 = vmatprep.mubr.f32.mxu0 %v1576_v35  ;;  %2212 = vmatprep.mubr.f32.mxu1 %v1576_v35 }
 0x2b3   :  { %1956 = vmatmul.mubr.f32.gmra.mrb[190].mxu0 %v1575_v36  ;;  %2213 = vmatmul.mubr.f32.gmra.mrb[190].mxu1 %v1575_v36 }
 0x2b4   :  { %2283 = vmatprep.mubr.f32.mxu0 %v7136_v37  ;;  %2604 = vmatprep.mubr.f32.mxu1 %v7137_v38 }
 0x30a   :  { %v1771_v39 = vpop.f32.mrb[128].mxu0  ;;  %v2028_v40 = vpop.f32.mrb[128].mxu1 }
 0x30b   :  { %v1773_v41 = vpop.f32.mrb[129].mxu0  ;;  %v2030_v42 = vpop.f32.mrb[129].mxu1 }
 0x30e   :  { %v1777_v43 = vpop.f32.mrb[130].mxu0  ;;  %v2034_v44 = vpop.f32.mrb[130].mxu1 }
 0x30f   :  { %v6401_v45 = vpack.c.bf16 %v1777_v43, %v1771_v39  ;;  %v6465_v46 = vpack.c.bf16 %v2034_v44, %v2028_v40  ;;  %v1779_v47 = vpop.f32.mrb[131].mxu0  ;;  %v2036_v48 = vpop.f32.mrb[131].mxu1 }
 0x310   :  { %v6399_v49 = vpack.c.bf16 %v1779_v47, %v1773_v41  ;;  %v6463_v50 = vpack.c.bf16 %v2036_v48, %v2030_v42 }
 0x312   :  { %v1783_v51 = vpop.f32.mrb[132].mxu0  ;;  %v2040_v52 = vpop.f32.mrb[132].mxu1  ;;  %6400 = vmatprep.subr.bf16.mxu0 %v6399_v49  ;;  %6464 = vmatprep.subr.bf16.mxu1 %v6463_v50 }
 0x313   :  { %v1785_v53 = vpop.f32.mrb[133].mxu0  ;;  %v2042_v54 = vpop.f32.mrb[133].mxu1  ;;  %6402 = vmatpush1.bf16.msra.mxu0 %v6401_v45  ;;  %6466 = vmatpush1.bf16.msra.mxu1 %v6465_v46 }
 0x316   :  { %v1789_v55 = vpop.f32.mrb[134].mxu0  ;;  %v2046_v56 = vpop.f32.mrb[134].mxu1 }
 0x317   :  { %v6405_v57 = vpack.c.bf16 %v1789_v55, %v1783_v51  ;;  %v6469_v58 = vpack.c.bf16 %v2046_v56, %v2040_v52  ;;  %v1791_v59 = vpop.f32.mrb[135].mxu0  ;;  %v2048_v60 = vpop.f32.mrb[135].mxu1 }
 0x318   :  { %v6403_v61 = vpack.c.bf16 %v1791_v59, %v1785_v53  ;;  %v6467_v62 = vpack.c.bf16 %v2048_v60, %v2042_v54 }
 0x31a   :  { %v1795_v63 = vpop.f32.mrb[136].mxu0  ;;  %v2052_v0 = vpop.f32.mrb[136].mxu1  ;;  %6404 = vmatprep.subr.bf16.mxu0 %v6403_v61  ;;  %6468 = vmatprep.subr.bf16.mxu1 %v6467_v62 }
 0x31b   :  { %v1797_v1 = vpop.f32.mrb[137].mxu0  ;;  %v2054_v2 = vpop.f32.mrb[137].mxu1  ;;  %6406 = vmatpush1.bf16.msra.mxu0 %v6405_v57  ;;  %6470 = vmatpush1.bf16.msra.mxu1 %v6469_v58 }
 0x31e   :  { %v1801_v3 = vpop.f32.mrb[138].mxu0  ;;  %v2058_v4 = vpop.f32.mrb[138].mxu1 }
 0x31f   :  { %v6409_v5 = vpack.c.bf16 %v1801_v3, %v1795_v63  ;;  %v6473_v6 = vpack.c.bf16 %v2058_v4, %v2052_v0  ;;  %v1803_v7 = vpop.f32.mrb[139].mxu0  ;;  %v2060_v8 = vpop.f32.mrb[139].mxu1 }
 0x320   :  { %v6407_v9 = vpack.c.bf16 %v1803_v7, %v1797_v1  ;;  %v6471_v10 = vpack.c.bf16 %v2060_v8, %v2054_v2 }
 0x322   :  { %v1807_v11 = vpop.f32.mrb[140].mxu0  ;;  %v2064_v12 = vpop.f32.mrb[140].mxu1  ;;  %6408 = vmatprep.subr.bf16.mxu0 %v6407_v9  ;;  %6472 = vmatprep.subr.bf16.mxu1 %v6471_v10 }
 0x323   :  { %v1809_v13 = vpop.f32.mrb[141].mxu0  ;;  %v2066_v14 = vpop.f32.mrb[141].mxu1  ;;  %6410 = vmatpush1.bf16.msra.mxu0 %v6409_v5  ;;  %6474 = vmatpush1.bf16.msra.mxu1 %v6473_v6 }
 0x326   :  { %v1813_v15 = vpop.f32.mrb[142].mxu0  ;;  %v2070_v16 = vpop.f32.mrb[142].mxu1 }
 0x327   :  { %v6413_v17 = vpack.c.bf16 %v1813_v15, %v1807_v11  ;;  %v6477_v18 = vpack.c.bf16 %v2070_v16, %v2064_v12  ;;  %v1815_v19 = vpop.f32.mrb[143].mxu0  ;;  %v2072_v20 = vpop.f32.mrb[143].mxu1 }
 0x328   :  { %v6411_v21 = vpack.c.bf16 %v1815_v19, %v1809_v13  ;;  %v6475_v22 = vpack.c.bf16 %v2072_v20, %v2066_v14 }
 0x32a   :  { %v1819_v23 = vpop.f32.mrb[144].mxu0  ;;  %v2076_v24 = vpop.f32.mrb[144].mxu1  ;;  %6412 = vmatprep.subr.bf16.mxu0 %v6411_v21  ;;  %6476 = vmatprep.subr.bf16.mxu1 %v6475_v22 }
 0x32b   :  { %v1821_v25 = vpop.f32.mrb[145].mxu0  ;;  %v2078_v26 = vpop.f32.mrb[145].mxu1  ;;  %6414 = vmatpush1.bf16.msra.mxu0 %v6413_v17  ;;  %6478 = vmatpush1.bf16.msra.mxu1 %v6477_v18 }
 0x32e   :  { %v1825_v27 = vpop.f32.mrb[146].mxu0  ;;  %v2082_v28 = vpop.f32.mrb[146].mxu1 }
 0x32f   :  { %v6417_v29 = vpack.c.bf16 %v1825_v27, %v1819_v23  ;;  %v6481_v30 = vpack.c.bf16 %v2082_v28, %v2076_v24  ;;  %v1827_v31 = vpop.f32.mrb[147].mxu0  ;;  %v2084_v32 = vpop.f32.mrb[147].mxu1 }
 0x330   :  { %v6415_v33 = vpack.c.bf16 %v1827_v31, %v1821_v25  ;;  %v6479_v34 = vpack.c.bf16 %v2084_v32, %v2078_v26 }
 0x332   :  { %v1831_v35 = vpop.f32.mrb[148].mxu0  ;;  %v2088_v36 = vpop.f32.mrb[148].mxu1  ;;  %6416 = vmatprep.subr.bf16.mxu0 %v6415_v33  ;;  %6480 = vmatprep.subr.bf16.mxu1 %v6479_v34 }
 0x333   :  { %v1833_v37 = vpop.f32.mrb[149].mxu0  ;;  %v2090_v38 = vpop.f32.mrb[149].mxu1  ;;  %6418 = vmatpush1.bf16.msra.mxu0 %v6417_v29  ;;  %6482 = vmatpush1.bf16.msra.mxu1 %v6481_v30 }
 0x336   :  { %v1837_v39 = vpop.f32.mrb[150].mxu0  ;;  %v2094_v40 = vpop.f32.mrb[150].mxu1 }
 0x337   :  { %v6421_v41 = vpack.c.bf16 %v1837_v39, %v1831_v35  ;;  %v6485_v42 = vpack.c.bf16 %v2094_v40, %v2088_v36  ;;  %v1839_v43 = vpop.f32.mrb[151].mxu0  ;;  %v2096_v44 = vpop.f32.mrb[151].mxu1 }
 0x338   :  { %v6419_v45 = vpack.c.bf16 %v1839_v43, %v1833_v37  ;;  %v6483_v46 = vpack.c.bf16 %v2096_v44, %v2090_v38 }
 0x33a   :  { %v1843_v47 = vpop.f32.mrb[152].mxu0  ;;  %v2100_v48 = vpop.f32.mrb[152].mxu1  ;;  %6420 = vmatprep.subr.bf16.mxu0 %v6419_v45  ;;  %6484 = vmatprep.subr.bf16.mxu1 %v6483_v46 }
 0x33b   :  { %v1845_v49 = vpop.f32.mrb[153].mxu0  ;;  %v2102_v50 = vpop.f32.mrb[153].mxu1  ;;  %6422 = vmatpush1.bf16.msra.mxu0 %v6421_v41  ;;  %6486 = vmatpush1.bf16.msra.mxu1 %v6485_v42 }
 0x33e   :  { %v1849_v51 = vpop.f32.mrb[154].mxu0  ;;  %v2106_v52 = vpop.f32.mrb[154].mxu1 }
 0x33f   :  { %v6425_v53 = vpack.c.bf16 %v1849_v51, %v1843_v47  ;;  %v6489_v54 = vpack.c.bf16 %v2106_v52, %v2100_v48  ;;  %v1851_v55 = vpop.f32.mrb[155].mxu0  ;;  %v2108_v56 = vpop.f32.mrb[155].mxu1 }
 0x340   :  { %v6423_v57 = vpack.c.bf16 %v1851_v55, %v1845_v49  ;;  %v6487_v58 = vpack.c.bf16 %v2108_v56, %v2102_v50 }
 0x342   :  { %v1855_v59 = vpop.f32.mrb[156].mxu0  ;;  %v2112_v60 = vpop.f32.mrb[156].mxu1  ;;  %6424 = vmatprep.subr.bf16.mxu0 %v6423_v57  ;;  %6488 = vmatprep.subr.bf16.mxu1 %v6487_v58 }
 0x343   :  { %v1857_v61 = vpop.f32.mrb[157].mxu0  ;;  %v2114_v62 = vpop.f32.mrb[157].mxu1  ;;  %6426 = vmatpush1.bf16.msra.mxu0 %v6425_v53  ;;  %6490 = vmatpush1.bf16.msra.mxu1 %v6489_v54 }
 0x346   :  { %v1861_v63 = vpop.f32.mrb[158].mxu0  ;;  %v2118_v0 = vpop.f32.mrb[158].mxu1 }
 0x347   :  { %v6429_v1 = vpack.c.bf16 %v1861_v63, %v1855_v59  ;;  %v6493_v2 = vpack.c.bf16 %v2118_v0, %v2112_v60  ;;  %v1863_v3 = vpop.f32.mrb[159].mxu0  ;;  %v2120_v4 = vpop.f32.mrb[159].mxu1 }
 0x348   :  { %v6427_v5 = vpack.c.bf16 %v1863_v3, %v1857_v61  ;;  %v6491_v6 = vpack.c.bf16 %v2120_v4, %v2114_v62 }
 0x34a   :  { %v1867_v7 = vpop.f32.mrb[160].mxu0  ;;  %v2124_v8 = vpop.f32.mrb[160].mxu1  ;;  %6428 = vmatprep.subr.bf16.mxu0 %v6427_v5  ;;  %6492 = vmatprep.subr.bf16.mxu1 %v6491_v6 }
 0x34b   :  { %v1869_v9 = vpop.f32.mrb[161].mxu0  ;;  %v2126_v10 = vpop.f32.mrb[161].mxu1  ;;  %6430 = vmatpush1.bf16.msra.mxu0 %v6429_v1  ;;  %6494 = vmatpush1.bf16.msra.mxu1 %v6493_v2 }
 0x34e   :  { %v1873_v11 = vpop.f32.mrb[162].mxu0  ;;  %v2130_v12 = vpop.f32.mrb[162].mxu1 }
 0x34f   :  { %v6433_v13 = vpack.c.bf16 %v1873_v11, %v1867_v7  ;;  %v6497_v14 = vpack.c.bf16 %v2130_v12, %v2124_v8  ;;  %v1875_v15 = vpop.f32.mrb[163].mxu0  ;;  %v2132_v16 = vpop.f32.mrb[163].mxu1 }
 0x350   :  { %v6431_v17 = vpack.c.bf16 %v1875_v15, %v1869_v9  ;;  %v6495_v18 = vpack.c.bf16 %v2132_v16, %v2126_v10 }
 0x352   :  { %v1879_v19 = vpop.f32.mrb[164].mxu0  ;;  %v2136_v20 = vpop.f32.mrb[164].mxu1  ;;  %6432 = vmatprep.subr.bf16.mxu0 %v6431_v17  ;;  %6496 = vmatprep.subr.bf16.mxu1 %v6495_v18 }
 0x353   :  { %v1881_v21 = vpop.f32.mrb[165].mxu0  ;;  %v2138_v22 = vpop.f32.mrb[165].mxu1  ;;  %6434 = vmatpush1.bf16.msra.mxu0 %v6433_v13  ;;  %6498 = vmatpush1.bf16.msra.mxu1 %v6497_v14 }
 0x356   :  { %v1885_v23 = vpop.f32.mrb[166].mxu0  ;;  %v2142_v24 = vpop.f32.mrb[166].mxu1 }
 0x357   :  { %v6437_v25 = vpack.c.bf16 %v1885_v23, %v1879_v19  ;;  %v6501_v26 = vpack.c.bf16 %v2142_v24, %v2136_v20  ;;  %v1887_v27 = vpop.f32.mrb[167].mxu0  ;;  %v2144_v28 = vpop.f32.mrb[167].mxu1 }
 0x358   :  { %v6435_v29 = vpack.c.bf16 %v1887_v27, %v1881_v21  ;;  %v6499_v30 = vpack.c.bf16 %v2144_v28, %v2138_v22 }
 0x35a   :  { %v1891_v31 = vpop.f32.mrb[168].mxu0  ;;  %v2148_v32 = vpop.f32.mrb[168].mxu1  ;;  %6436 = vmatprep.subr.bf16.mxu0 %v6435_v29  ;;  %6500 = vmatprep.subr.bf16.mxu1 %v6499_v30 }
 0x35b   :  { %v1893_v33 = vpop.f32.mrb[169].mxu0  ;;  %v2150_v34 = vpop.f32.mrb[169].mxu1  ;;  %6438 = vmatpush1.bf16.msra.mxu0 %v6437_v25  ;;  %6502 = vmatpush1.bf16.msra.mxu1 %v6501_v26 }
 0x35e   :  { %v1897_v35 = vpop.f32.mrb[170].mxu0  ;;  %v2154_v36 = vpop.f32.mrb[170].mxu1 }
 0x35f   :  { %v6441_v37 = vpack.c.bf16 %v1897_v35, %v1891_v31  ;;  %v6505_v38 = vpack.c.bf16 %v2154_v36, %v2148_v32  ;;  %v1899_v39 = vpop.f32.mrb[171].mxu0  ;;  %v2156_v40 = vpop.f32.mrb[171].mxu1  ;;  %v2990_v31 = vld [vmem:[%s10632_s6 + $0x8] sm:$0xff] }
 0x360   :  { %v6439_v41 = vpack.c.bf16 %v1899_v39, %v1893_v33  ;;  %v6503_v42 = vpack.c.bf16 %v2156_v40, %v2150_v34  ;;  %v2994_v32 = vld [vmem:[%s10632_s6 + $0x28] sm:$0xff]  ;;  %v2992_v33 = vld [vmem:[%s10632_s6 + $0x18] sm:$0xff] }
 0x361   :  { %v2996_v34 = vld [vmem:[%s10632_s6 + $0x38] sm:$0xff] }
 0x362   :  { %v1903_v43 = vpop.f32.mrb[172].mxu0  ;;  %v2160_v44 = vpop.f32.mrb[172].mxu1  ;;  %6440 = vmatprep.subr.bf16.mxu0 %v6439_v41  ;;  %6504 = vmatprep.subr.bf16.mxu1 %v6503_v42 }
 0x363   :  { %v1905_v45 = vpop.f32.mrb[173].mxu0  ;;  %v2162_v46 = vpop.f32.mrb[173].mxu1  ;;  %6442 = vmatpush1.bf16.msra.mxu0 %v6441_v37  ;;  %6506 = vmatpush1.bf16.msra.mxu1 %v6505_v38 }
 0x366   :  { %v1909_v47 = vpop.f32.mrb[174].mxu0  ;;  %v2166_v48 = vpop.f32.mrb[174].mxu1 }
 0x367   :  { %v6445_v49 = vpack.c.bf16 %v1909_v47, %v1903_v43  ;;  %v6509_v50 = vpack.c.bf16 %v2166_v48, %v2160_v44  ;;  %v1911_v51 = vpop.f32.mrb[175].mxu0  ;;  %v2168_v52 = vpop.f32.mrb[175].mxu1  ;;  %v6527_v43 = vpack.c.bf16 %v2994_v32, %v2990_v31  ;;  %v6591_v44 = vpack.c.bf16 %v2996_v34, %v2992_v33  ;;  %v2991_v47 = vld [vmem:[%s10632_s6 + $0x10] sm:$0xff]  ;;  %v7147_v31 = vld [vmem:[%s10630_s1 + $0x20] sm:$0xff]  ;;  %v3026_v32 = vld [vmem:[%s10632_s6 + $0x128] sm:$0xff] }
 0x368   :  { %v6443_v53 = vpack.c.bf16 %v1911_v51, %v1905_v45  ;;  %v6507_v54 = vpack.c.bf16 %v2168_v52, %v2162_v46  ;;  %v2989_v45 = vld [vmem:[%s10632_s6] sm:$0xff]  ;;  %v2995_v48 = vld [vmem:[%s10632_s6 + $0x30] sm:$0xff]  ;;  %v3000_v51 = vld [vmem:[%s10632_s6 + $0x58] sm:$0xff] }
 0x369   :  { %v2993_v46 = vld [vmem:[%s10632_s6 + $0x20] sm:$0xff]  ;;  %v3004_v52 = vld [vmem:[%s10632_s6 + $0x78] sm:$0xff] }
 0x36a   :  { %v1915_v55 = vpop.f32.mrb[176].mxu0  ;;  %v2172_v56 = vpop.f32.mrb[176].mxu1  ;;  %6444 = vmatprep.subr.bf16.mxu0 %v6443_v53  ;;  %6508 = vmatprep.subr.bf16.mxu1 %v6507_v54  ;;  %v6529_v53 = vpack.c.bf16 %v2993_v46, %v2989_v45  ;;  %v6593_v54 = vpack.c.bf16 %v2995_v48, %v2991_v47  ;;  %v3024_v33 = vld [vmem:[%s10632_s6 + $0x118] sm:$0xff]  ;;  %v3030_v45 = vld [vmem:[%s10632_s6 + $0x148] sm:$0xff]  ;;  %v7150_v46 = vld [vmem:[%s10629_s0 + $0x30] sm:$0xff] }
 0x36b   :  { %v1917_v57 = vpop.f32.mrb[177].mxu0  ;;  %v2174_v58 = vpop.f32.mrb[177].mxu1  ;;  %6446 = vmatpush1.bf16.msra.mxu0 %v6445_v49  ;;  %6510 = vmatpush1.bf16.msra.mxu1 %v6509_v50  ;;  %v2998_v49 = vld [vmem:[%s10632_s6 + $0x48] sm:$0xff]  ;;  %v3028_v34 = vld [vmem:[%s10632_s6 + $0x138] sm:$0xff]  ;;  %v7151_v47 = vld [vmem:[%s10630_s1 + $0x30] sm:$0xff] }
 0x36c   :  { %v3002_v50 = vld [vmem:[%s10632_s6 + $0x68] sm:$0xff] }
 0x36d   :  { %v3034_v48 = vld [vmem:[%s10632_s6 + $0x168] sm:$0xff] }
 0x36e   :  { %v1921_v59 = vpop.f32.mrb[178].mxu0  ;;  %v2178_v60 = vpop.f32.mrb[178].mxu1 }
 0x36f   :  { %v6449_v61 = vpack.c.bf16 %v1921_v59, %v1915_v55  ;;  %v6513_v62 = vpack.c.bf16 %v2178_v60, %v2172_v56  ;;  %v1923_v63 = vpop.f32.mrb[179].mxu0  ;;  %v2180_v0 = vpop.f32.mrb[179].mxu1  ;;  %v2997_v55 = vld [vmem:[%s10632_s6 + $0x40] sm:$0xff]  ;;  %v2999_v59 = vld [vmem:[%s10632_s6 + $0x50] sm:$0xff] }
 0x370   :  { %v6447_v1 = vpack.c.bf16 %v1923_v63, %v1917_v57  ;;  %v6511_v2 = vpack.c.bf16 %v2180_v0, %v2174_v58  ;;  %v3001_v56 = vld [vmem:[%s10632_s6 + $0x60] sm:$0xff]  ;;  %v6531_v57 = vpack.c.bf16 %v3002_v50, %v2998_v49  ;;  %v6595_v58 = vpack.c.bf16 %v3004_v52, %v3000_v51  ;;  %v3003_v60 = vld [vmem:[%s10632_s6 + $0x70] sm:$0xff]  ;;  %v3010_v0 = vld [vmem:[%s10632_s6 + $0xa8] sm:$0xff] }
 0x371   :  { %v7139_v63 = vld [vmem:[%s10630_s1] sm:$0xff]  ;;  %v3032_v49 = vld [vmem:[%s10632_s6 + $0x158] sm:$0xff]  ;;  %v7152_v51 = vld [vmem:[%s10629_s0 + $0x48] sm:$0xff] }
 0x372   :  { %v1927_v3 = vpop.f32.mrb[180].mxu0  ;;  %v2184_v4 = vpop.f32.mrb[180].mxu1  ;;  %6448 = vmatprep.subr.bf16.mxu0 %v6447_v1  ;;  %6512 = vmatprep.subr.bf16.mxu1 %v6511_v2  ;;  %v3008_v1 = vld [vmem:[%s10632_s6 + $0x98] sm:$0xff]  ;;  %v7153_v52 = vld [vmem:[%s10630_s1 + $0x48] sm:$0xff] }
 0x373   :  { %v1929_v5 = vpop.f32.mrb[181].mxu0  ;;  %v2186_v6 = vpop.f32.mrb[181].mxu1  ;;  %6450 = vmatpush1.bf16.msra.mxu0 %v6449_v61  ;;  %6514 = vmatpush1.bf16.msra.mxu1 %v6513_v62  ;;  %v3006_v61 = vld [vmem:[%s10632_s6 + $0x88] sm:$0xff]  ;;  %v7138_v62 = vld [vmem:[%s10629_s0] sm:$0xff]  ;;  %v3012_v2 = vld [vmem:[%s10632_s6 + $0xb8] sm:$0xff] }
 0x374   :  { %v3036_v50 = vld [vmem:[%s10632_s6 + $0x178] sm:$0xff] }
 0x376   :  { %v1933_v7 = vpop.f32.mrb[182].mxu0  ;;  %v2190_v8 = vpop.f32.mrb[182].mxu1 }
 0x377   :  { %v6453_v9 = vpack.c.bf16 %v1933_v7, %v1927_v3  ;;  %v6517_v10 = vpack.c.bf16 %v2190_v8, %v2184_v4  ;;  %v1935_v11 = vpop.f32.mrb[183].mxu0  ;;  %v2192_v12 = vpop.f32.mrb[183].mxu1  ;;  %v7140_v3 = vld [vmem:[%s10629_s0 + $0x18] sm:$0xff]  ;;  %v3005_v7 = vld [vmem:[%s10632_s6 + $0x80] sm:$0xff] }
 0x378   :  { %v6451_v13 = vpack.c.bf16 %v1935_v11, %v1929_v5  ;;  %v6515_v14 = vpack.c.bf16 %v2192_v12, %v2186_v6  ;;  %v7141_v4 = vld [vmem:[%s10630_s1 + $0x18] sm:$0xff]  ;;  %v6533_v5 = vpack.c.bf16 %v3001_v56, %v2997_v55  ;;  %v6597_v6 = vpack.c.bf16 %v3003_v60, %v2999_v59  ;;  %v3009_v8 = vld [vmem:[%s10632_s6 + $0xa0] sm:$0xff]  ;;  %v3007_v11 = vld [vmem:[%s10632_s6 + $0x90] sm:$0xff] }
 0x379   :  { %v3011_v12 = vld [vmem:[%s10632_s6 + $0xb0] sm:$0xff]  ;;  %v3029_v55 = vld [vmem:[%s10632_s6 + $0x140] sm:$0xff] }
 0x37a   :  { %v1939_v15 = vpop.f32.mrb[184].mxu0  ;;  %v2196_v16 = vpop.f32.mrb[184].mxu1  ;;  %6452 = vmatprep.subr.bf16.mxu0 %v6451_v13  ;;  %6516 = vmatprep.subr.bf16.mxu1 %v6515_v14  ;;  %v3014_v13 = vld [vmem:[%s10632_s6 + $0xc8] sm:$0xff]  ;;  %v7142_v14 = vld [vmem:[%s10629_s0 + $0x10] sm:$0xff]  ;;  %v3033_v56 = vld [vmem:[%s10632_s6 + $0x160] sm:$0xff] }
 0x37b   :  { %v1941_v17 = vpop.f32.mrb[185].mxu0  ;;  %v2198_v18 = vpop.f32.mrb[185].mxu1  ;;  %6454 = vmatpush1.bf16.msra.mxu0 %v6453_v9  ;;  %6518 = vmatpush1.bf16.msra.mxu1 %v6517_v10  ;;  %v6535_v9 = vpack.c.bf16 %v3010_v0, %v3006_v61  ;;  %v6599_v10 = vpack.c.bf16 %v3012_v2, %v3008_v1  ;;  %v3031_v59 = vld [vmem:[%s10632_s6 + $0x150] sm:$0xff]  ;;  %v3038_v61 = vld [vmem:[%s10632_s6 + $0x188] sm:$0xff]  ;;  %v3040_v1 = vld [vmem:[%s10632_s6 + $0x198] sm:$0xff] }
 0x37c   :  { %v3035_v60 = vld [vmem:[%s10632_s6 + $0x170] sm:$0xff]  ;;  %v3042_v0 = vld [vmem:[%s10632_s6 + $0x1a8] sm:$0xff]  ;;  %v3044_v2 = vld [vmem:[%s10632_s6 + $0x1b8] sm:$0xff] }
 0x37e   :  { %v1945_v19 = vpop.f32.mrb[186].mxu0  ;;  %v2202_v20 = vpop.f32.mrb[186].mxu1 }
 0x37f   :  { %v6457_v21 = vpack.c.bf16 %v1945_v19, %v1939_v15  ;;  %v6521_v22 = vpack.c.bf16 %v2202_v20, %v2196_v16  ;;  %v1947_v23 = vpop.f32.mrb[187].mxu0  ;;  %v2204_v24 = vpop.f32.mrb[187].mxu1  ;;  %v7143_v15 = vld [vmem:[%s10630_s1 + $0x10] sm:$0xff]  ;;  %v3018_v16 = vld [vmem:[%s10632_s6 + $0xe8] sm:$0xff] }
 0x380   :  { %v6455_v25 = vpack.c.bf16 %v1947_v23, %v1941_v17  ;;  %v6519_v26 = vpack.c.bf16 %v2204_v24, %v2198_v18  ;;  %v3016_v17 = vld [vmem:[%s10632_s6 + $0xd8] sm:$0xff]  ;;  %v7144_v19 = vld [vmem:[%s10629_s0 + $0x28] sm:$0xff]  ;;  %v3013_v23 = vld [vmem:[%s10632_s6 + $0xc0] sm:$0xff] }
 0x381   :  { %v3020_v18 = vld [vmem:[%s10632_s6 + $0xf8] sm:$0xff]  ;;  %v7145_v20 = vld [vmem:[%s10630_s1 + $0x28] sm:$0xff]  ;;  %v3017_v24 = vld [vmem:[%s10632_s6 + $0xe0] sm:$0xff] }
 0x382   :  { %v1951_v27 = vpop.f32.mrb[188].mxu0  ;;  %v2208_v28 = vpop.f32.mrb[188].mxu1  ;;  %6456 = vmatprep.subr.bf16.mxu0 %v6455_v25  ;;  %6520 = vmatprep.subr.bf16.mxu1 %v6519_v26  ;;  %v6539_v25 = vpack.c.bf16 %v3018_v16, %v3014_v13  ;;  %v6603_v26 = vpack.c.bf16 %v3020_v18, %v3016_v17  ;;  %v3046_v13 = vld [vmem:[%s10632_s6 + $0x1c8] sm:$0xff]  ;;  %v3048_v17 = vld [vmem:[%s10632_s6 + $0x1d8] sm:$0xff] }
 0x383   :  { %v1953_v29 = vpop.f32.mrb[189].mxu0  ;;  %v2210_v30 = vpop.f32.mrb[189].mxu1  ;;  %6458 = vmatpush1.bf16.msra.mxu0 %v6457_v21  ;;  %6522 = vmatpush1.bf16.msra.mxu1 %v6521_v22  ;;  %v6537_v21 = vpack.c.bf16 %v3009_v8, %v3005_v7  ;;  %v6601_v22 = vpack.c.bf16 %v3011_v12, %v3007_v11  ;;  %v3037_v7 = vld [vmem:[%s10632_s6 + $0x180] sm:$0xff]  ;;  %v3039_v11 = vld [vmem:[%s10632_s6 + $0x190] sm:$0xff]  ;;  %v3050_v16 = vld [vmem:[%s10632_s6 + $0x1e8] sm:$0xff] }
 0x384   :  { %v3041_v8 = vld [vmem:[%s10632_s6 + $0x1a0] sm:$0xff]  ;;  %v3043_v12 = vld [vmem:[%s10632_s6 + $0x1b0] sm:$0xff]  ;;  %v3052_v18 = vld [vmem:[%s10632_s6 + $0x1f8] sm:$0xff] }
 0x386   :  { %v1957_v35 = vpop.f32.mrb[190].mxu0  ;;  %v2214_v36 = vpop.f32.mrb[190].mxu1 }
 0x387   :  { %v6461_v37 = vpack.c.bf16 %v1957_v35, %v1951_v27  ;;  %v6525_v38 = vpack.c.bf16 %v2214_v36, %v2208_v28  ;;  %v1959_v39 = vpop.f32.mrb[191].mxu0  ;;  %v2216_v40 = vpop.f32.mrb[191].mxu1  ;;  %v3015_v27 = vld [vmem:[%s10632_s6 + $0xd0] sm:$0xff]  ;;  %v7148_v35 = vld [vmem:[%s10629_s0 + $0x38] sm:$0xff] }
 0x388   :  { %v6459_v41 = vpack.c.bf16 %v1959_v39, %v1953_v29  ;;  %v6523_v42 = vpack.c.bf16 %v2216_v40, %v2210_v30  ;;  %v3019_v28 = vld [vmem:[%s10632_s6 + $0xf0] sm:$0xff]  ;;  %v3022_v29 = vld [vmem:[%s10632_s6 + $0x108] sm:$0xff]  ;;  %v7146_v30 = vld [vmem:[%s10629_s0 + $0x20] sm:$0xff] }
 0x389   :  { %v7149_v36 = vld [vmem:[%s10630_s1 + $0x38] sm:$0xff]  ;;  %v3021_v39 = vld [vmem:[%s10632_s6 + $0x100] sm:$0xff] }
 0x38a   :  { %6460 = vmatprep.subr.bf16.mxu0 %v6459_v41  ;;  %6524 = vmatprep.subr.bf16.mxu1 %v6523_v42  ;;  %v3025_v40 = vld [vmem:[%s10632_s6 + $0x120] sm:$0xff]  ;;  %v6543_v41 = vpack.c.bf16 %v3026_v32, %v3022_v29  ;;  %v6607_v42 = vpack.c.bf16 %v3028_v34, %v3024_v33  ;;  %v3054_v29 = vld [vmem:[%s10632_s6 + $0x208] sm:$0xff]  ;;  %v3056_v33 = vld [vmem:[%s10632_s6 + $0x218] sm:$0xff] }
 0x38b   :  { %6462 = vmatpush1.bf16.msra.mxu0 %v6461_v37  ;;  %6526 = vmatpush1.bf16.msra.mxu1 %v6525_v38  ;;  %v6541_v37 = vpack.c.bf16 %v3017_v24, %v3013_v23  ;;  %v6605_v38 = vpack.c.bf16 %v3019_v28, %v3015_v27  ;;  %v3045_v23 = vld [vmem:[%s10632_s6 + $0x1c0] sm:$0xff]  ;;  %v3047_v27 = vld [vmem:[%s10632_s6 + $0x1d0] sm:$0xff]  ;;  %v3058_v32 = vld [vmem:[%s10632_s6 + $0x228] sm:$0xff] }
 0x38c   :  { %6528 = vmatprep.subr.bf16.mxu0 %v6527_v43  ;;  %6592 = vmatprep.subr.bf16.mxu1 %v6591_v44  ;;  %v3023_v43 = vld [vmem:[%s10632_s6 + $0x110] sm:$0xff]  ;;  %v3049_v24 = vld [vmem:[%s10632_s6 + $0x1e0] sm:$0xff]  ;;  %v3060_v34 = vld [vmem:[%s10632_s6 + $0x238] sm:$0xff] }
 0x38d   :  { %v3027_v44 = vld [vmem:[%s10632_s6 + $0x130] sm:$0xff] }
 0x38e   :  { %2284 = vmatmul.mubr.f32.vlgmr.msra.gmra.mrb[192].mxu0 %v7138_v62  ;;  %2605 = vmatmul.mubr.f32.vlgmr.msra.gmra.mrb[192].mxu1 %v7139_v63  ;;  %v7154_v62 = vld [vmem:[%s10629_s0 + $0x40] sm:$0xff]  ;;  %v3051_v28 = vld [vmem:[%s10632_s6 + $0x1f0] sm:$0xff] }
 0x38f   :  { %2289 = vmatprep.mubr.f32.mxu0 %v7140_v3  ;;  %2610 = vmatprep.mubr.f32.mxu1 %v7141_v4  ;;  %v7155_v63 = vld [vmem:[%s10630_s1 + $0x40] sm:$0xff]  ;;  %v7156_v3 = vld [vmem:[%s10629_s0 + $0x58] sm:$0xff] }
 0x390   :  { %6530 = vmatpush1.bf16.msra.mxu0 %v6529_v53  ;;  %6594 = vmatpush1.bf16.msra.mxu1 %v6593_v54  ;;  %v6545_v53 = vpack.c.bf16 %v3025_v40, %v3021_v39  ;;  %v6609_v54 = vpack.c.bf16 %v3027_v44, %v3023_v43  ;;  %v7157_v4 = vld [vmem:[%s10630_s1 + $0x58] sm:$0xff]  ;;  %v3053_v39 = vld [vmem:[%s10632_s6 + $0x200] sm:$0xff]  ;;  %v3055_v43 = vld [vmem:[%s10632_s6 + $0x210] sm:$0xff] }
 0x391   :  { %6532 = vmatprep.subr.bf16.mxu0 %v6531_v57  ;;  %6596 = vmatprep.subr.bf16.mxu1 %v6595_v58  ;;  %v6547_v57 = vpack.c.bf16 %v3034_v48, %v3030_v45  ;;  %v6611_v58 = vpack.c.bf16 %v3036_v50, %v3032_v49  ;;  %v3057_v40 = vld [vmem:[%s10632_s6 + $0x220] sm:$0xff]  ;;  %v3059_v44 = vld [vmem:[%s10632_s6 + $0x230] sm:$0xff]  ;;  %v3062_v45 = vld [vmem:[%s10632_s6 + $0x248] sm:$0xff] }
 0x392   :  { %2290 = vmatmul.mubr.f32.gmra.mrb[194].mxu0 %v7142_v14  ;;  %2611 = vmatmul.mubr.f32.gmra.mrb[194].mxu1 %v7143_v15  ;;  %v7158_v14 = vld [vmem:[%s10629_s0 + $0x50] sm:$0xff]  ;;  %v3066_v48 = vld [vmem:[%s10632_s6 + $0x268] sm:$0xff]  ;;  %v3064_v49 = vld [vmem:[%s10632_s6 + $0x258] sm:$0xff] }
 0x393   :  { %2295 = vmatprep.mubr.f32.mxu0 %v7144_v19  ;;  %2616 = vmatprep.mubr.f32.mxu1 %v7145_v20  ;;  %v7159_v15 = vld [vmem:[%s10630_s1 + $0x50] sm:$0xff]  ;;  %v7160_v19 = vld [vmem:[%s10629_s0 + $0x68] sm:$0xff]  ;;  %v3068_v50 = vld [vmem:[%s10632_s6 + $0x278] sm:$0xff] }
 0x394   :  { %6534 = vmatpush1.bf16.msra.mxu0 %v6533_v5  ;;  %6598 = vmatpush1.bf16.msra.mxu1 %v6597_v6  ;;  %v6549_v5 = vpack.c.bf16 %v3033_v56, %v3029_v55  ;;  %v6613_v6 = vpack.c.bf16 %v3035_v60, %v3031_v59  ;;  %v7161_v20 = vld [vmem:[%s10630_s1 + $0x68] sm:$0xff]  ;;  %v3061_v55 = vld [vmem:[%s10632_s6 + $0x240] sm:$0xff]  ;;  %v3063_v59 = vld [vmem:[%s10632_s6 + $0x250] sm:$0xff] }
 0x395   :  { %6536 = vmatprep.subr.bf16.mxu0 %v6535_v9  ;;  %6600 = vmatprep.subr.bf16.mxu1 %v6599_v10  ;;  %v6551_v9 = vpack.c.bf16 %v3042_v0, %v3038_v61  ;;  %v6615_v10 = vpack.c.bf16 %v3044_v2, %v3040_v1  ;;  %v3065_v56 = vld [vmem:[%s10632_s6 + $0x260] sm:$0xff]  ;;  %v3067_v60 = vld [vmem:[%s10632_s6 + $0x270] sm:$0xff]  ;;  %v3070_v61 = vld [vmem:[%s10632_s6 + $0x288] sm:$0xff] }
 0x396   :  { %2296 = vmatmul.mubr.f32.gmra.mrb[196].mxu0 %v7146_v30  ;;  %2617 = vmatmul.mubr.f32.gmra.mrb[196].mxu1 %v7147_v31  ;;  %v7162_v30 = vld [vmem:[%s10629_s0 + $0x60] sm:$0xff]  ;;  %v3074_v0 = vld [vmem:[%s10632_s6 + $0x2a8] sm:$0xff]  ;;  %v3072_v1 = vld [vmem:[%s10632_s6 + $0x298] sm:$0xff] }
 0x397   :  { %2301 = vmatprep.mubr.f32.mxu0 %v7148_v35  ;;  %2622 = vmatprep.mubr.f32.mxu1 %v7149_v36  ;;  %v7163_v31 = vld [vmem:[%s10630_s1 + $0x60] sm:$0xff]  ;;  %v7164_v35 = vld [vmem:[%s10629_s0 + $0x78] sm:$0xff] }
 0x398   :  { %6538 = vmatpush1.bf16.msra.mxu0 %v6537_v21  ;;  %6602 = vmatpush1.bf16.msra.mxu1 %v6601_v22  ;;  %v6553_v21 = vpack.c.bf16 %v3041_v8, %v3037_v7  ;;  %v6617_v22 = vpack.c.bf16 %v3043_v12, %v3039_v11  ;;  %v7165_v36 = vld [vmem:[%s10630_s1 + $0x78] sm:$0xff]  ;;  %v3069_v7 = vld [vmem:[%s10632_s6 + $0x280] sm:$0xff]  ;;  %v3071_v11 = vld [vmem:[%s10632_s6 + $0x290] sm:$0xff] }
 0x399   :  { %6540 = vmatprep.subr.bf16.mxu0 %v6539_v25  ;;  %6604 = vmatprep.subr.bf16.mxu1 %v6603_v26  ;;  %v6555_v25 = vpack.c.bf16 %v3050_v16, %v3046_v13  ;;  %v6619_v26 = vpack.c.bf16 %v3052_v18, %v3048_v17  ;;  %v3076_v2 = vld [vmem:[%s10632_s6 + $0x2b8] sm:$0xff]  ;;  %v3073_v8 = vld [vmem:[%s10632_s6 + $0x2a0] sm:$0xff]  ;;  %v3075_v12 = vld [vmem:[%s10632_s6 + $0x2b0] sm:$0xff] }
 0x39a   :  { %2302 = vmatmul.mubr.f32.gmra.mrb[198].mxu0 %v7150_v46  ;;  %2623 = vmatmul.mubr.f32.gmra.mrb[198].mxu1 %v7151_v47  ;;  %v7166_v46 = vld [vmem:[%s10629_s0 + $0x70] sm:$0xff]  ;;  %v3078_v13 = vld [vmem:[%s10632_s6 + $0x2c8] sm:$0xff]  ;;  %v3080_v17 = vld [vmem:[%s10632_s6 + $0x2d8] sm:$0xff] }
 0x39b   :  { %2307 = vmatprep.mubr.f32.mxu0 %v7152_v51  ;;  %2628 = vmatprep.mubr.f32.mxu1 %v7153_v52  ;;  %v7167_v47 = vld [vmem:[%s10630_s1 + $0x70] sm:$0xff]  ;;  %v7168_v51 = vld [vmem:[%s10629_s0 + $0x88] sm:$0xff]  ;;  %v3084_v18 = vld [vmem:[%s10632_s6 + $0x2f8] sm:$0xff] }
 0x39c   :  { %6542 = vmatpush1.bf16.msra.mxu0 %v6541_v37  ;;  %6606 = vmatpush1.bf16.msra.mxu1 %v6605_v38  ;;  %v6557_v37 = vpack.c.bf16 %v3049_v24, %v3045_v23  ;;  %v6621_v38 = vpack.c.bf16 %v3051_v28, %v3047_v27  ;;  %v7169_v52 = vld [vmem:[%s10630_s1 + $0x88] sm:$0xff]  ;;  %v3077_v23 = vld [vmem:[%s10632_s6 + $0x2c0] sm:$0xff]  ;;  %v3079_v27 = vld [vmem:[%s10632_s6 + $0x2d0] sm:$0xff] }
 0x39d   :  { %6544 = vmatprep.subr.bf16.mxu0 %v6543_v41  ;;  %6608 = vmatprep.subr.bf16.mxu1 %v6607_v42  ;;  %v6559_v41 = vpack.c.bf16 %v3058_v32, %v3054_v29  ;;  %v6623_v42 = vpack.c.bf16 %v3060_v34, %v3056_v33  ;;  %v3082_v16 = vld [vmem:[%s10632_s6 + $0x2e8] sm:$0xff]  ;;  %v3081_v24 = vld [vmem:[%s10632_s6 + $0x2e0] sm:$0xff]  ;;  %v3083_v28 = vld [vmem:[%s10632_s6 + $0x2f0] sm:$0xff] }
 0x39e   :  { %2308 = vmatmul.mubr.f32.gmra.mrb[200].mxu0 %v7154_v62  ;;  %2629 = vmatmul.mubr.f32.gmra.mrb[200].mxu1 %v7155_v63  ;;  %v7170_v62 = vld [vmem:[%s10629_s0 + $0x80] sm:$0xff]  ;;  %v3086_v29 = vld [vmem:[%s10632_s6 + $0x308] sm:$0xff]  ;;  %v3088_v33 = vld [vmem:[%s10632_s6 + $0x318] sm:$0xff] }
 0x39f   :  { %2313 = vmatprep.mubr.f32.mxu0 %v7156_v3  ;;  %2634 = vmatprep.mubr.f32.mxu1 %v7157_v4  ;;  %v7171_v63 = vld [vmem:[%s10630_s1 + $0x80] sm:$0xff]  ;;  %v7172_v3 = vld [vmem:[%s10629_s0 + $0x98] sm:$0xff]  ;;  %v3090_v32 = vld [vmem:[%s10632_s6 + $0x328] sm:$0xff] }
 0x3a0   :  { %6546 = vmatpush1.bf16.msra.mxu0 %v6545_v53  ;;  %6610 = vmatpush1.bf16.msra.mxu1 %v6609_v54  ;;  %v6561_v53 = vpack.c.bf16 %v3057_v40, %v3053_v39  ;;  %v6625_v54 = vpack.c.bf16 %v3059_v44, %v3055_v43  ;;  %v7173_v4 = vld [vmem:[%s10630_s1 + $0x98] sm:$0xff]  ;;  %v3085_v39 = vld [vmem:[%s10632_s6 + $0x300] sm:$0xff]  ;;  %v3087_v43 = vld [vmem:[%s10632_s6 + $0x310] sm:$0xff] }
 0x3a1   :  { %6548 = vmatprep.subr.bf16.mxu0 %v6547_v57  ;;  %6612 = vmatprep.subr.bf16.mxu1 %v6611_v58  ;;  %v6563_v57 = vpack.c.bf16 %v3066_v48, %v3062_v45  ;;  %v6627_v58 = vpack.c.bf16 %v3068_v50, %v3064_v49  ;;  %v3092_v34 = vld [vmem:[%s10632_s6 + $0x338] sm:$0xff]  ;;  %v3089_v40 = vld [vmem:[%s10632_s6 + $0x320] sm:$0xff]  ;;  %v3091_v44 = vld [vmem:[%s10632_s6 + $0x330] sm:$0xff] }
 0x3a2   :  { %2314 = vmatmul.mubr.f32.gmra.mrb[202].mxu0 %v7158_v14  ;;  %2635 = vmatmul.mubr.f32.gmra.mrb[202].mxu1 %v7159_v15  ;;  %v7174_v14 = vld [vmem:[%s10629_s0 + $0x90] sm:$0xff]  ;;  %v3094_v45 = vld [vmem:[%s10632_s6 + $0x348] sm:$0xff]  ;;  %v3096_v49 = vld [vmem:[%s10632_s6 + $0x358] sm:$0xff] }
 0x3a3   :  { %2319 = vmatprep.mubr.f32.mxu0 %v7160_v19  ;;  %2640 = vmatprep.mubr.f32.mxu1 %v7161_v20  ;;  %v7175_v15 = vld [vmem:[%s10630_s1 + $0x90] sm:$0xff]  ;;  %v7176_v19 = vld [vmem:[%s10629_s0 + $0xa8] sm:$0xff]  ;;  %v3100_v50 = vld [vmem:[%s10632_s6 + $0x378] sm:$0xff] }
 0x3a4   :  { %6550 = vmatpush1.bf16.msra.mxu0 %v6549_v5  ;;  %6614 = vmatpush1.bf16.msra.mxu1 %v6613_v6  ;;  %v6565_v5 = vpack.c.bf16 %v3065_v56, %v3061_v55  ;;  %v6629_v6 = vpack.c.bf16 %v3067_v60, %v3063_v59  ;;  %v7177_v20 = vld [vmem:[%s10630_s1 + $0xa8] sm:$0xff]  ;;  %v3093_v55 = vld [vmem:[%s10632_s6 + $0x340] sm:$0xff]  ;;  %v3095_v59 = vld [vmem:[%s10632_s6 + $0x350] sm:$0xff] }
 0x3a5   :  { %6552 = vmatprep.subr.bf16.mxu0 %v6551_v9  ;;  %6616 = vmatprep.subr.bf16.mxu1 %v6615_v10  ;;  %v6567_v9 = vpack.c.bf16 %v3074_v0, %v3070_v61  ;;  %v6631_v10 = vpack.c.bf16 %v3076_v2, %v3072_v1  ;;  %v3098_v48 = vld [vmem:[%s10632_s6 + $0x368] sm:$0xff]  ;;  %v3097_v56 = vld [vmem:[%s10632_s6 + $0x360] sm:$0xff]  ;;  %v3099_v60 = vld [vmem:[%s10632_s6 + $0x370] sm:$0xff] }
 0x3a6   :  { %2320 = vmatmul.mubr.f32.gmra.mrb[204].mxu0 %v7162_v30  ;;  %2641 = vmatmul.mubr.f32.gmra.mrb[204].mxu1 %v7163_v31  ;;  %v7178_v30 = vld [vmem:[%s10629_s0 + $0xa0] sm:$0xff]  ;;  %v3102_v61 = vld [vmem:[%s10632_s6 + $0x388] sm:$0xff]  ;;  %v3104_v1 = vld [vmem:[%s10632_s6 + $0x398] sm:$0xff] }
 0x3a7   :  { %2325 = vmatprep.mubr.f32.mxu0 %v7164_v35  ;;  %2646 = vmatprep.mubr.f32.mxu1 %v7165_v36  ;;  %v7179_v31 = vld [vmem:[%s10630_s1 + $0xa0] sm:$0xff]  ;;  %v7180_v35 = vld [vmem:[%s10629_s0 + $0xb8] sm:$0xff]  ;;  %v3106_v0 = vld [vmem:[%s10632_s6 + $0x3a8] sm:$0xff] }
 0x3a8   :  { %6554 = vmatpush1.bf16.msra.mxu0 %v6553_v21  ;;  %6618 = vmatpush1.bf16.msra.mxu1 %v6617_v22  ;;  %v6569_v21 = vpack.c.bf16 %v3073_v8, %v3069_v7  ;;  %v6633_v22 = vpack.c.bf16 %v3075_v12, %v3071_v11  ;;  %v7181_v36 = vld [vmem:[%s10630_s1 + $0xb8] sm:$0xff]  ;;  %v3101_v7 = vld [vmem:[%s10632_s6 + $0x380] sm:$0xff]  ;;  %v6583_v8 = vpack.c.bf16 %v3106_v0, %v3102_v61  ;;  %v3103_v11 = vld [vmem:[%s10632_s6 + $0x390] sm:$0xff] }
 0x3a9   :  { %6556 = vmatprep.subr.bf16.mxu0 %v6555_v25  ;;  %6620 = vmatprep.subr.bf16.mxu1 %v6619_v26  ;;  %v6571_v25 = vpack.c.bf16 %v3082_v16, %v3078_v13  ;;  %v6635_v26 = vpack.c.bf16 %v3084_v18, %v3080_v17  ;;  %v3108_v2 = vld [vmem:[%s10632_s6 + $0x3b8] sm:$0xff]  ;;  %v3107_v12 = vld [vmem:[%s10632_s6 + $0x3b0] sm:$0xff]  ;;  %v7193_v16 = vld [vmem:[%s10630_s1 + $0xe8] sm:$0xff] }
 0x3aa   :  { %2326 = vmatmul.mubr.f32.gmra.mrb[206].mxu0 %v7166_v46  ;;  %2647 = vmatmul.mubr.f32.gmra.mrb[206].mxu1 %v7167_v47  ;;  %v7182_v46 = vld [vmem:[%s10629_s0 + $0xb0] sm:$0xff]  ;;  %v6649_v18 = vpack.c.bf16 %v3107_v12, %v3103_v11 }
 0x3ab   :  { %2331 = vmatprep.mubr.f32.mxu0 %v7168_v51  ;;  %2652 = vmatprep.mubr.f32.mxu1 %v7169_v52  ;;  %v7183_v47 = vld [vmem:[%s10630_s1 + $0xb0] sm:$0xff]  ;;  %v7184_v51 = vld [vmem:[%s10629_s0 + $0xc8] sm:$0xff] }
 0x3ac   :  { %6558 = vmatpush1.bf16.msra.mxu0 %v6557_v37  ;;  %6622 = vmatpush1.bf16.msra.mxu1 %v6621_v38  ;;  %v6573_v37 = vpack.c.bf16 %v3081_v24, %v3077_v23  ;;  %v6637_v38 = vpack.c.bf16 %v3083_v28, %v3079_v27  ;;  %v7185_v52 = vld [vmem:[%s10630_s1 + $0xc8] sm:$0xff]  ;;  %v7190_v13 = vld [vmem:[%s10629_s0 + $0xd0] sm:$0xff]  ;;  %v7202_v27 = vld [vmem:[%s10629_s0 + $0x100] sm:$0xff] }
 0x3ad   :  { %6560 = vmatprep.subr.bf16.mxu0 %v6559_v41  ;;  %6624 = vmatprep.subr.bf16.mxu1 %v6623_v42  ;;  %v6575_v41 = vpack.c.bf16 %v3090_v32, %v3086_v29  ;;  %v6639_v42 = vpack.c.bf16 %v3092_v34, %v3088_v33  ;;  %v7198_v23 = vld [vmem:[%s10629_s0 + $0xf0] sm:$0xff]  ;;  %v7203_v28 = vld [vmem:[%s10630_s1 + $0x100] sm:$0xff]  ;;  %v7204_v29 = vld [vmem:[%s10629_s0 + $0x118] sm:$0xff] }
 0x3ae   :  { %2332 = vmatmul.mubr.f32.gmra.mrb[208].mxu0 %v7170_v62  ;;  %2653 = vmatmul.mubr.f32.gmra.mrb[208].mxu1 %v7171_v63  ;;  %v7186_v62 = vld [vmem:[%s10629_s0 + $0xc0] sm:$0xff]  ;;  %v7199_v24 = vld [vmem:[%s10630_s1 + $0xf0] sm:$0xff]  ;;  %v7208_v33 = vld [vmem:[%s10629_s0 + $0x128] sm:$0xff] }
 0x3af   :  { %2337 = vmatprep.mubr.f32.mxu0 %v7172_v3  ;;  %2658 = vmatprep.mubr.f32.mxu1 %v7173_v4  ;;  %v7187_v63 = vld [vmem:[%s10630_s1 + $0xc0] sm:$0xff]  ;;  %v7188_v3 = vld [vmem:[%s10629_s0 + $0xd8] sm:$0xff]  ;;  %v7207_v32 = vld [vmem:[%s10630_s1 + $0x110] sm:$0xff] }
 0x3b0   :  { %6562 = vmatpush1.bf16.msra.mxu0 %v6561_v53  ;;  %6626 = vmatpush1.bf16.msra.mxu1 %v6625_v54  ;;  %v6577_v53 = vpack.c.bf16 %v3089_v40, %v3085_v39  ;;  %v6641_v54 = vpack.c.bf16 %v3091_v44, %v3087_v43  ;;  %v7189_v4 = vld [vmem:[%s10630_s1 + $0xd8] sm:$0xff]  ;;  %v7209_v34 = vld [vmem:[%s10630_s1 + $0x128] sm:$0xff]  ;;  %v7214_v39 = vld [vmem:[%s10629_s0 + $0x130] sm:$0xff] }
 0x3b1   :  { %6564 = vmatprep.subr.bf16.mxu0 %v6563_v57  ;;  %6628 = vmatprep.subr.bf16.mxu1 %v6627_v58  ;;  %v6579_v57 = vpack.c.bf16 %v3098_v48, %v3094_v45  ;;  %v6643_v58 = vpack.c.bf16 %v3100_v50, %v3096_v49  ;;  %v7215_v40 = vld [vmem:[%s10630_s1 + $0x130] sm:$0xff]  ;;  %v7218_v43 = vld [vmem:[%s10629_s0 + $0x140] sm:$0xff]  ;;  %v7220_v45 = vld [vmem:[%s10629_s0 + $0x158] sm:$0xff] }
 0x3b2   :  { %2338 = vmatmul.mubr.f32.gmra.mrb[210].mxu0 %v7174_v14  ;;  %2659 = vmatmul.mubr.f32.gmra.mrb[210].mxu1 %v7175_v15  ;;  %v7191_v14 = vld [vmem:[%s10630_s1 + $0xd0] sm:$0xff]  ;;  %v7192_v15 = vld [vmem:[%s10629_s0 + $0xe8] sm:$0xff]  ;;  %v7219_v44 = vld [vmem:[%s10630_s1 + $0x140] sm:$0xff] }
 0x3b3   :  { %2343 = vmatprep.mubr.f32.mxu0 %v7176_v19  ;;  %2664 = vmatprep.mubr.f32.mxu1 %v7177_v20  ;;  %v7194_v19 = vld [vmem:[%s10629_s0 + $0xe0] sm:$0xff]  ;;  %v7223_v48 = vld [vmem:[%s10630_s1 + $0x150] sm:$0xff]  ;;  %v7224_v49 = vld [vmem:[%s10629_s0 + $0x168] sm:$0xff] }
 0x3b4   :  { %6566 = vmatpush1.bf16.msra.mxu0 %v6565_v5  ;;  %6630 = vmatpush1.bf16.msra.mxu1 %v6629_v6  ;;  %v6581_v5 = vpack.c.bf16 %v3097_v56, %v3093_v55  ;;  %v6645_v6 = vpack.c.bf16 %v3099_v60, %v3095_v59  ;;  %v7195_v20 = vld [vmem:[%s10630_s1 + $0xe0] sm:$0xff]  ;;  %v7225_v50 = vld [vmem:[%s10630_s1 + $0x168] sm:$0xff]  ;;  %v3116_v55 = vld [vmem:[%s10632_s6 + $0x3f8] sm:$0xff] }
 0x3b5   :  { %6568 = vmatprep.subr.bf16.mxu0 %v6567_v9  ;;  %6632 = vmatprep.subr.bf16.mxu1 %v6631_v10  ;;  %v6647_v9 = vpack.c.bf16 %v3108_v2, %v3104_v1  ;;  %v3105_v10 = vld [vmem:[%s10632_s6 + $0x3a0] sm:$0xff]  ;;  %v3111_v60 = vld [vmem:[%s10632_s6 + $0x3d0] sm:$0xff]  ;;  %v7228_v1 = vld [vmem:[%s10629_s0 + $0x178] sm:$0xff] }
 0x3b6   :  { %2344 = vmatmul.mubr.f32.gmra.mrb[212].mxu0 %v7178_v30  ;;  %2665 = vmatmul.mubr.f32.gmra.mrb[212].mxu1 %v7179_v31  ;;  %v6585_v17 = vpack.c.bf16 %v3105_v10, %v3101_v7  ;;  %v7205_v30 = vld [vmem:[%s10630_s1 + $0x118] sm:$0xff]  ;;  %v7206_v31 = vld [vmem:[%s10629_s0 + $0x110] sm:$0xff]  ;;  %v3109_v56 = vld [vmem:[%s10632_s6 + $0x3c0] sm:$0xff] }
 0x3b7   :  { %2349 = vmatprep.mubr.f32.mxu0 %v7180_v35  ;;  %2670 = vmatprep.mubr.f32.mxu1 %v7181_v36  ;;  %v7210_v35 = vld [vmem:[%s10629_s0 + $0x120] sm:$0xff]  ;;  %v3115_v61 = vld [vmem:[%s10632_s6 + $0x3f0] sm:$0xff]  ;;  %v7229_v2 = vld [vmem:[%s10630_s1 + $0x178] sm:$0xff] }
 0x3b8   :  { %6570 = vmatpush1.bf16.msra.mxu0 %v6569_v21  ;;  %6634 = vmatpush1.bf16.msra.mxu1 %v6633_v22  ;;  %v7196_v21 = vld [vmem:[%s10629_s0 + $0xf8] sm:$0xff]  ;;  %v7211_v36 = vld [vmem:[%s10630_s1 + $0x120] sm:$0xff]  ;;  %v6653_v0 = vpack.c.bf16 %v3115_v61, %v3111_v60  ;;  %v7238_v11 = vld [vmem:[%s10629_s0 + $0x190] sm:$0xff] }
 0x3b9   :  { %6572 = vmatprep.subr.bf16.mxu0 %v6571_v25  ;;  %6636 = vmatprep.subr.bf16.mxu1 %v6635_v26  ;;  %v7197_v22 = vld [vmem:[%s10630_s1 + $0xf8] sm:$0xff]  ;;  %v7200_v25 = vld [vmem:[%s10629_s0 + $0x108] sm:$0xff]  ;;  %v7234_v7 = vld [vmem:[%s10629_s0 + $0x180] sm:$0xff] }
 0x3ba   :  { %2350 = vmatmul.mubr.f32.gmra.mrb[214].mxu0 %v7182_v46  ;;  %2671 = vmatmul.mubr.f32.gmra.mrb[214].mxu1 %v7183_v47  ;;  %v7201_v26 = vld [vmem:[%s10630_s1 + $0x108] sm:$0xff]  ;;  %v7221_v46 = vld [vmem:[%s10630_s1 + $0x158] sm:$0xff]  ;;  %v7222_v47 = vld [vmem:[%s10629_s0 + $0x150] sm:$0xff] }
 0x3bb   :  { %2355 = vmatprep.mubr.f32.mxu0 %v7184_v51  ;;  %2676 = vmatprep.mubr.f32.mxu1 %v7185_v52  ;;  %v3110_v51 = vld [vmem:[%s10632_s6 + $0x3c8] sm:$0xff]  ;;  %v7237_v10 = vld [vmem:[%s10630_s1 + $0x198] sm:$0xff]  ;;  %v7239_v12 = vld [vmem:[%s10630_s1 + $0x190] sm:$0xff] }
 0x3bc   :  { %6574 = vmatpush1.bf16.msra.mxu0 %v6573_v37  ;;  %6638 = vmatpush1.bf16.msra.mxu1 %v6637_v38  ;;  %v7212_v37 = vld [vmem:[%s10629_s0 + $0x138] sm:$0xff]  ;;  %v3114_v52 = vld [vmem:[%s10632_s6 + $0x3e8] sm:$0xff] }
 0x3bd   :  { %6576 = vmatprep.subr.bf16.mxu0 %v6575_v41  ;;  %6640 = vmatprep.subr.bf16.mxu1 %v6639_v42  ;;  %v7213_v38 = vld [vmem:[%s10630_s1 + $0x138] sm:$0xff]  ;;  %v7216_v41 = vld [vmem:[%s10629_s0 + $0x148] sm:$0xff] }
 0x3be   :  { %2356 = vmatmul.mubr.f32.gmra.mrb[216].mxu0 %v7186_v62  ;;  %2677 = vmatmul.mubr.f32.gmra.mrb[216].mxu1 %v7187_v63  ;;  %v7217_v42 = vld [vmem:[%s10630_s1 + $0x148] sm:$0xff]  ;;  %v7226_v62 = vld [vmem:[%s10629_s0 + $0x160] sm:$0xff] }
 0x3bf   :  { %2361 = vmatprep.mubr.f32.mxu0 %v7188_v3  ;;  %2682 = vmatprep.mubr.f32.mxu1 %v7189_v4  ;;  %v7227_v63 = vld [vmem:[%s10630_s1 + $0x160] sm:$0xff]  ;;  %v7230_v3 = vld [vmem:[%s10629_s0 + $0x170] sm:$0xff] }
 0x3c0   :  { %6578 = vmatpush1.bf16.msra.mxu0 %v6577_v53  ;;  %6642 = vmatpush1.bf16.msra.mxu1 %v6641_v54  ;;  %v3112_v53 = vld [vmem:[%s10632_s6 + $0x3d8] sm:$0xff]  ;;  %v6587_v54 = vpack.c.bf16 %v3114_v52, %v3110_v51  ;;  %v7231_v4 = vld [vmem:[%s10630_s1 + $0x170] sm:$0xff] }
 0x3c1   :  { %6580 = vmatprep.subr.bf16.mxu0 %v6579_v57  ;;  %6644 = vmatprep.subr.bf16.mxu1 %v6643_v58  ;;  %v3113_v57 = vld [vmem:[%s10632_s6 + $0x3e0] sm:$0xff]  ;;  %v6651_v58 = vpack.c.bf16 %v3116_v55, %v3112_v53 }
 0x3c2   :  { %2362 = vmatmul.mubr.f32.gmra.mrb[218].mxu0 %v7190_v13  ;;  %2683 = vmatmul.mubr.f32.gmra.mrb[218].mxu1 %v7191_v14  ;;  %v6589_v59 = vpack.c.bf16 %v3113_v57, %v3109_v56  ;;  %v7240_v13 = vld [vmem:[%s10629_s0 + $0x1a8] sm:$0xff] }
 0x3c3   :  { %2367 = vmatprep.mubr.f32.mxu0 %v7192_v15  ;;  %2688 = vmatprep.mubr.f32.mxu1 %v7193_v16  ;;  %v7241_v14 = vld [vmem:[%s10630_s1 + $0x1a8] sm:$0xff]  ;;  %v7242_v15 = vld [vmem:[%s10629_s0 + $0x1a0] sm:$0xff] }
 0x3c4   :  { %6582 = vmatpush1.bf16.msra.mxu0 %v6581_v5  ;;  %6646 = vmatpush1.bf16.msra.mxu1 %v6645_v6  ;;  %v7232_v5 = vld [vmem:[%s10629_s0 + $0x188] sm:$0xff]  ;;  %v7243_v16 = vld [vmem:[%s10630_s1 + $0x1a0] sm:$0xff] }
 0x3c5   :  { %6584 = vmatprep.subr.bf16.mxu0 %v6583_v8  ;;  %6648 = vmatprep.subr.bf16.mxu1 %v6647_v9  ;;  %v7233_v6 = vld [vmem:[%s10630_s1 + $0x188] sm:$0xff]  ;;  %v7235_v8 = vld [vmem:[%s10630_s1 + $0x180] sm:$0xff]  ;;  %v7236_v9 = vld [vmem:[%s10629_s0 + $0x198] sm:$0xff] }
 0x3c6   :  { %2368 = vmatmul.mubr.f32.gmra.mrb[220].mxu0 %v7194_v19  ;;  %2689 = vmatmul.mubr.f32.gmra.mrb[220].mxu1 %v7195_v20  ;;  %v7246_v19 = vld [vmem:[%s10629_s0 + $0x1b0] sm:$0xff] }
 0x3c7   :  { %2373 = vmatprep.mubr.f32.mxu0 %v7196_v21  ;;  %2694 = vmatprep.mubr.f32.mxu1 %v7197_v22  ;;  %v7247_v20 = vld [vmem:[%s10630_s1 + $0x1b0] sm:$0xff]  ;;  %v7248_v21 = vld [vmem:[%s10629_s0 + $0x1c8] sm:$0xff] }
 0x3c8   :  { %6586 = vmatpush1.bf16.msra.mxu0 %v6585_v17  ;;  %6650 = vmatpush1.bf16.msra.mxu1 %v6649_v18  ;;  %v7244_v17 = vld [vmem:[%s10629_s0 + $0x1b8] sm:$0xff]  ;;  %v7249_v22 = vld [vmem:[%s10630_s1 + $0x1c8] sm:$0xff] }
 0x3c9   :  { %6588 = vmatprep.subr.bf16.mxu0 %v6587_v54  ;;  %6652 = vmatprep.subr.bf16.mxu1 %v6651_v58  ;;  %v7245_v18 = vld [vmem:[%s10630_s1 + $0x1b8] sm:$0xff] }
 0x3ca   :  { %2374 = vmatmul.mubr.f32.gmra.mrb[222].mxu0 %v7198_v23  ;;  %2695 = vmatmul.mubr.f32.gmra.mrb[222].mxu1 %v7199_v24  ;;  %v7250_v23 = vld [vmem:[%s10629_s0 + $0x1c0] sm:$0xff] }
 0x3cb   :  { %2379 = vmatprep.mubr.f32.mxu0 %v7200_v25  ;;  %2700 = vmatprep.mubr.f32.mxu1 %v7201_v26  ;;  %v7251_v24 = vld [vmem:[%s10630_s1 + $0x1c0] sm:$0xff]  ;;  %v7252_v25 = vld [vmem:[%s10629_s0 + $0x1d8] sm:$0xff] }
 0x3cc   :  { %6590 = vmatpush1.bf16.msra.mxu0 %v6589_v59  ;;  %6654 = vmatpush1.bf16.msra.mxu1 %v6653_v0  ;;  %v7253_v26 = vld [vmem:[%s10630_s1 + $0x1d8] sm:$0xff] }
 0x3ce   :  { %2380 = vmatmul.mubr.f32.gmra.mrb[224].mxu0 %v7202_v27  ;;  %2701 = vmatmul.mubr.f32.gmra.mrb[224].mxu1 %v7203_v28  ;;  %v7254_v27 = vld [vmem:[%s10629_s0 + $0x1d0] sm:$0xff] }
 0x3cf   :  { %2385 = vmatprep.mubr.f32.mxu0 %v7204_v29  ;;  %2706 = vmatprep.mubr.f32.mxu1 %v7205_v30  ;;  %v7255_v28 = vld [vmem:[%s10630_s1 + $0x1d0] sm:$0xff]  ;;  %v7256_v29 = vld [vmem:[%s10629_s0 + $0x1e8] sm:$0xff] }
 0x3d0   :  { %v7257_v30 = vld [vmem:[%s10630_s1 + $0x1e8] sm:$0xff] }
 0x3d2   :  { %2386 = vmatmul.mubr.f32.gmra.mrb[226].mxu0 %v7206_v31  ;;  %2707 = vmatmul.mubr.f32.gmra.mrb[226].mxu1 %v7207_v32  ;;  %v7258_v31 = vld [vmem:[%s10629_s0 + $0x1e0] sm:$0xff] }
 0x3d3   :  { %2391 = vmatprep.mubr.f32.mxu0 %v7208_v33  ;;  %2712 = vmatprep.mubr.f32.mxu1 %v7209_v34  ;;  %v7259_v32 = vld [vmem:[%s10630_s1 + $0x1e0] sm:$0xff]  ;;  %v7260_v33 = vld [vmem:[%s10629_s0 + $0x1f8] sm:$0xff] }
 0x3d4   :  { %v7261_v34 = vld [vmem:[%s10630_s1 + $0x1f8] sm:$0xff] }
 0x3d6   :  { %2392 = vmatmul.mubr.f32.gmra.mrb[228].mxu0 %v7210_v35  ;;  %2713 = vmatmul.mubr.f32.gmra.mrb[228].mxu1 %v7211_v36  ;;  %v7262_v35 = vld [vmem:[%s10629_s0 + $0x1f0] sm:$0xff] }
 0x3d7   :  { %2397 = vmatprep.mubr.f32.mxu0 %v7212_v37  ;;  %2718 = vmatprep.mubr.f32.mxu1 %v7213_v38  ;;  %v7263_v36 = vld [vmem:[%s10630_s1 + $0x1f0] sm:$0xff] }
 0x3da   :  { %2398 = vmatmul.mubr.f32.gmra.mrb[230].mxu0 %v7214_v39  ;;  %2719 = vmatmul.mubr.f32.gmra.mrb[230].mxu1 %v7215_v40 }
 0x3db   :  { %2403 = vmatprep.mubr.f32.mxu0 %v7216_v41  ;;  %2724 = vmatprep.mubr.f32.mxu1 %v7217_v42 }
 0x3de   :  { %2404 = vmatmul.mubr.f32.gmra.mrb[232].mxu0 %v7218_v43  ;;  %2725 = vmatmul.mubr.f32.gmra.mrb[232].mxu1 %v7219_v44 }
 0x3df   :  { %2409 = vmatprep.mubr.f32.mxu0 %v7220_v45  ;;  %2730 = vmatprep.mubr.f32.mxu1 %v7221_v46 }
 0x3e2   :  { %2410 = vmatmul.mubr.f32.gmra.mrb[234].mxu0 %v7222_v47  ;;  %2731 = vmatmul.mubr.f32.gmra.mrb[234].mxu1 %v7223_v48 }
 0x3e3   :  { %2415 = vmatprep.mubr.f32.mxu0 %v7224_v49  ;;  %2736 = vmatprep.mubr.f32.mxu1 %v7225_v50 }
 0x3e6   :  { %2416 = vmatmul.mubr.f32.gmra.mrb[236].mxu0 %v7226_v62  ;;  %2737 = vmatmul.mubr.f32.gmra.mrb[236].mxu1 %v7227_v63 }
 0x3e7   :  { %2421 = vmatprep.mubr.f32.mxu0 %v7228_v1  ;;  %2742 = vmatprep.mubr.f32.mxu1 %v7229_v2 }
 0x3ea   :  { %2422 = vmatmul.mubr.f32.gmra.mrb[238].mxu0 %v7230_v3  ;;  %2743 = vmatmul.mubr.f32.gmra.mrb[238].mxu1 %v7231_v4 }
 0x3eb   :  { %2427 = vmatprep.mubr.f32.mxu0 %v7232_v5  ;;  %2748 = vmatprep.mubr.f32.mxu1 %v7233_v6 }
 0x3ee   :  { %2428 = vmatmul.mubr.f32.gmra.mrb[240].mxu0 %v7234_v7  ;;  %2749 = vmatmul.mubr.f32.gmra.mrb[240].mxu1 %v7235_v8 }
 0x3ef   :  { %2433 = vmatprep.mubr.f32.mxu0 %v7236_v9  ;;  %2754 = vmatprep.mubr.f32.mxu1 %v7237_v10 }
 0x3f2   :  { %2434 = vmatmul.mubr.f32.gmra.mrb[242].mxu0 %v7238_v11  ;;  %2755 = vmatmul.mubr.f32.gmra.mrb[242].mxu1 %v7239_v12 }
 0x3f3   :  { %2439 = vmatprep.mubr.f32.mxu0 %v7240_v13  ;;  %2760 = vmatprep.mubr.f32.mxu1 %v7241_v14 }
 0x3f6   :  { %2440 = vmatmul.mubr.f32.gmra.mrb[244].mxu0 %v7242_v15  ;;  %2761 = vmatmul.mubr.f32.gmra.mrb[244].mxu1 %v7243_v16 }
 0x3f7   :  { %2445 = vmatprep.mubr.f32.mxu0 %v7244_v17  ;;  %2766 = vmatprep.mubr.f32.mxu1 %v7245_v18 }
 0x3fa   :  { %2446 = vmatmul.mubr.f32.gmra.mrb[246].mxu0 %v7246_v19  ;;  %2767 = vmatmul.mubr.f32.gmra.mrb[246].mxu1 %v7247_v20 }
 0x3fb   :  { %2451 = vmatprep.mubr.f32.mxu0 %v7248_v21  ;;  %2772 = vmatprep.mubr.f32.mxu1 %v7249_v22 }
 0x3fe   :  { %2452 = vmatmul.mubr.f32.gmra.mrb[248].mxu0 %v7250_v23  ;;  %2773 = vmatmul.mubr.f32.gmra.mrb[248].mxu1 %v7251_v24 }
 0x3ff   :  { %2457 = vmatprep.mubr.f32.mxu0 %v7252_v25  ;;  %2778 = vmatprep.mubr.f32.mxu1 %v7253_v26 }
 0x402   :  { %2458 = vmatmul.mubr.f32.gmra.mrb[250].mxu0 %v7254_v27  ;;  %2779 = vmatmul.mubr.f32.gmra.mrb[250].mxu1 %v7255_v28 }
 0x403   :  { %2463 = vmatprep.mubr.f32.mxu0 %v7256_v29  ;;  %2784 = vmatprep.mubr.f32.mxu1 %v7257_v30 }
 0x406   :  { %2464 = vmatmul.mubr.f32.gmra.mrb[252].mxu0 %v7258_v31  ;;  %2785 = vmatmul.mubr.f32.gmra.mrb[252].mxu1 %v7259_v32 }
 0x407   :  { %2469 = vmatprep.mubr.f32.mxu0 %v7260_v33  ;;  %2790 = vmatprep.mubr.f32.mxu1 %v7261_v34 }
 0x40a   :  { %2470 = vmatmul.mubr.f32.gmra.mrb[254].mxu0 %v7262_v35  ;;  %2791 = vmatmul.mubr.f32.gmra.mrb[254].mxu1 %v7263_v36 }
 0x461   :  { %v2285_v37 = vpop.f32.mrb[192].mxu0  ;;  %v2606_v38 = vpop.f32.mrb[192].mxu1 }
 0x462   :  { %v2476_v39 = vmax.f32 %v2285_v37, 0.0  ;;  %v2797_v40 = vmax.f32 %v2606_v38, 0.0  ;;  %v2287_v41 = vpop.f32.mrb[193].mxu0  ;;  %v2608_v42 = vpop.f32.mrb[193].mxu1 }
 0x463   :  { %v2477_v43 = vmax.f32 %v2287_v41, 0.0  ;;  %v2798_v44 = vmax.f32 %v2608_v42, 0.0 }
 0x464   :  { %v2861_v45 = vadd.f32 %v2797_v40, %v2476_v39 }
 0x465   :  { %v2291_v46 = vpop.f32.mrb[194].mxu0  ;;  %v2612_v47 = vpop.f32.mrb[194].mxu1  ;;  %v2862_v48 = vadd.f32 %v2798_v44, %v2477_v43 }
 0x466   :  { %v2478_v49 = vmax.f32 %v2291_v46, 0.0  ;;  %v2799_v50 = vmax.f32 %v2612_v47, 0.0  ;;  %v2293_v51 = vpop.f32.mrb[195].mxu0  ;;  %v2614_v52 = vpop.f32.mrb[195].mxu1  ;;  %v2925_v56 = vmul.f32 0.5, %v2861_v45 }
 0x467   :  { %v2479_v53 = vmax.f32 %v2293_v51, 0.0  ;;  %v2800_v54 = vmax.f32 %v2614_v52, 0.0  ;;  %v2926_v55 = vmul.f32 0.5, %v2862_v48 }
 0x468   :  { %v2863_v57 = vadd.f32 %v2799_v50, %v2478_v49 }
 0x469   :  { %v2297_v58 = vpop.f32.mrb[196].mxu0  ;;  %v2618_v59 = vpop.f32.mrb[196].mxu1  ;;  %3181 = vmatprep.mubr.f32.mxu0 %v2926_v55  ;;  %3438 = vmatprep.mubr.f32.mxu1 %v2926_v55  ;;  %v2864_v60 = vadd.f32 %v2800_v54, %v2479_v53 }
 0x46a   :  { %v2480_v61 = vmax.f32 %v2297_v58, 0.0  ;;  %v2801_v62 = vmax.f32 %v2618_v59, 0.0  ;;  %v2299_v63 = vpop.f32.mrb[197].mxu0  ;;  %v2620_v0 = vpop.f32.mrb[197].mxu1  ;;  %3182 = vmatmul.mubr.f32.vlgmr.msra.gmra.mrb[0].mxu0 %v2925_v56  ;;  %3439 = vmatmul.mubr.f32.vlgmr.msra.gmra.mrb[0].mxu1 %v2925_v56  ;;  %v2927_v4 = vmul.f32 0.5, %v2863_v57 }
 0x46b   :  { %v2481_v1 = vmax.f32 %v2299_v63, 0.0  ;;  %v2802_v2 = vmax.f32 %v2620_v0, 0.0  ;;  %v2928_v3 = vmul.f32 0.5, %v2864_v60 }
 0x46c   :  { %v2865_v5 = vadd.f32 %v2801_v62, %v2480_v61 }
 0x46d   :  { %v2303_v6 = vpop.f32.mrb[198].mxu0  ;;  %v2624_v7 = vpop.f32.mrb[198].mxu1  ;;  %3187 = vmatprep.mubr.f32.mxu0 %v2928_v3  ;;  %3444 = vmatprep.mubr.f32.mxu1 %v2928_v3  ;;  %v2866_v8 = vadd.f32 %v2802_v2, %v2481_v1 }
 0x46e   :  { %v2482_v9 = vmax.f32 %v2303_v6, 0.0  ;;  %v2803_v10 = vmax.f32 %v2624_v7, 0.0  ;;  %v2305_v11 = vpop.f32.mrb[199].mxu0  ;;  %v2626_v12 = vpop.f32.mrb[199].mxu1  ;;  %3188 = vmatmul.mubr.f32.gmra.mrb[2].mxu0 %v2927_v4  ;;  %3445 = vmatmul.mubr.f32.gmra.mrb[2].mxu1 %v2927_v4  ;;  %v2929_v16 = vmul.f32 0.5, %v2865_v5 }
 0x46f   :  { %v2483_v13 = vmax.f32 %v2305_v11, 0.0  ;;  %v2804_v14 = vmax.f32 %v2626_v12, 0.0  ;;  %v2930_v15 = vmul.f32 0.5, %v2866_v8 }
 0x470   :  { %v2867_v17 = vadd.f32 %v2803_v10, %v2482_v9 }
 0x471   :  { %v2309_v18 = vpop.f32.mrb[200].mxu0  ;;  %v2630_v19 = vpop.f32.mrb[200].mxu1  ;;  %3193 = vmatprep.mubr.f32.mxu0 %v2930_v15  ;;  %3450 = vmatprep.mubr.f32.mxu1 %v2930_v15  ;;  %v2868_v20 = vadd.f32 %v2804_v14, %v2483_v13 }
 0x472   :  { %v2484_v21 = vmax.f32 %v2309_v18, 0.0  ;;  %v2805_v22 = vmax.f32 %v2630_v19, 0.0  ;;  %v2311_v23 = vpop.f32.mrb[201].mxu0  ;;  %v2632_v24 = vpop.f32.mrb[201].mxu1  ;;  %3194 = vmatmul.mubr.f32.gmra.mrb[4].mxu0 %v2929_v16  ;;  %3451 = vmatmul.mubr.f32.gmra.mrb[4].mxu1 %v2929_v16  ;;  %v2931_v28 = vmul.f32 0.5, %v2867_v17 }
 0x473   :  { %v2485_v25 = vmax.f32 %v2311_v23, 0.0  ;;  %v2806_v26 = vmax.f32 %v2632_v24, 0.0  ;;  %v2932_v27 = vmul.f32 0.5, %v2868_v20 }
 0x474   :  { %v2869_v29 = vadd.f32 %v2805_v22, %v2484_v21 }
 0x475   :  { %v2315_v30 = vpop.f32.mrb[202].mxu0  ;;  %v2636_v31 = vpop.f32.mrb[202].mxu1  ;;  %3199 = vmatprep.mubr.f32.mxu0 %v2932_v27  ;;  %3456 = vmatprep.mubr.f32.mxu1 %v2932_v27  ;;  %v2870_v32 = vadd.f32 %v2806_v26, %v2485_v25 }
 0x476   :  { %v2486_v33 = vmax.f32 %v2315_v30, 0.0  ;;  %v2807_v34 = vmax.f32 %v2636_v31, 0.0  ;;  %v2317_v35 = vpop.f32.mrb[203].mxu0  ;;  %v2638_v36 = vpop.f32.mrb[203].mxu1  ;;  %3200 = vmatmul.mubr.f32.gmra.mrb[6].mxu0 %v2931_v28  ;;  %3457 = vmatmul.mubr.f32.gmra.mrb[6].mxu1 %v2931_v28  ;;  %v2933_v40 = vmul.f32 0.5, %v2869_v29 }
 0x477   :  { %v2487_v37 = vmax.f32 %v2317_v35, 0.0  ;;  %v2808_v38 = vmax.f32 %v2638_v36, 0.0  ;;  %v2934_v39 = vmul.f32 0.5, %v2870_v32 }
 0x478   :  { %v2871_v41 = vadd.f32 %v2807_v34, %v2486_v33 }
 0x479   :  { %v2321_v42 = vpop.f32.mrb[204].mxu0  ;;  %v2642_v43 = vpop.f32.mrb[204].mxu1  ;;  %3205 = vmatprep.mubr.f32.mxu0 %v2934_v39  ;;  %3462 = vmatprep.mubr.f32.mxu1 %v2934_v39  ;;  %v2872_v44 = vadd.f32 %v2808_v38, %v2487_v37 }
 0x47a   :  { %v2488_v45 = vmax.f32 %v2321_v42, 0.0  ;;  %v2809_v46 = vmax.f32 %v2642_v43, 0.0  ;;  %v2323_v47 = vpop.f32.mrb[205].mxu0  ;;  %v2644_v48 = vpop.f32.mrb[205].mxu1  ;;  %3206 = vmatmul.mubr.f32.gmra.mrb[8].mxu0 %v2933_v40  ;;  %3463 = vmatmul.mubr.f32.gmra.mrb[8].mxu1 %v2933_v40  ;;  %v2935_v52 = vmul.f32 0.5, %v2871_v41 }
 0x47b   :  { %v2489_v49 = vmax.f32 %v2323_v47, 0.0  ;;  %v2810_v50 = vmax.f32 %v2644_v48, 0.0  ;;  %v2936_v51 = vmul.f32 0.5, %v2872_v44 }
 0x47c   :  { %v2873_v53 = vadd.f32 %v2809_v46, %v2488_v45 }
 0x47d   :  { %v2327_v54 = vpop.f32.mrb[206].mxu0  ;;  %v2648_v55 = vpop.f32.mrb[206].mxu1  ;;  %3211 = vmatprep.mubr.f32.mxu0 %v2936_v51  ;;  %3468 = vmatprep.mubr.f32.mxu1 %v2936_v51  ;;  %v2874_v56 = vadd.f32 %v2810_v50, %v2489_v49 }
 0x47e   :  { %v2490_v57 = vmax.f32 %v2327_v54, 0.0  ;;  %v2811_v58 = vmax.f32 %v2648_v55, 0.0  ;;  %v2329_v59 = vpop.f32.mrb[207].mxu0  ;;  %v2650_v60 = vpop.f32.mrb[207].mxu1  ;;  %3212 = vmatmul.mubr.f32.gmra.mrb[10].mxu0 %v2935_v52  ;;  %3469 = vmatmul.mubr.f32.gmra.mrb[10].mxu1 %v2935_v52  ;;  %v2937_v0 = vmul.f32 0.5, %v2873_v53 }
 0x47f   :  { %v2491_v61 = vmax.f32 %v2329_v59, 0.0  ;;  %v2812_v62 = vmax.f32 %v2650_v60, 0.0  ;;  %v2938_v63 = vmul.f32 0.5, %v2874_v56 }
 0x480   :  { %v2875_v1 = vadd.f32 %v2811_v58, %v2490_v57 }
 0x481   :  { %v2333_v2 = vpop.f32.mrb[208].mxu0  ;;  %v2654_v3 = vpop.f32.mrb[208].mxu1  ;;  %3217 = vmatprep.mubr.f32.mxu0 %v2938_v63  ;;  %3474 = vmatprep.mubr.f32.mxu1 %v2938_v63  ;;  %v2876_v4 = vadd.f32 %v2812_v62, %v2491_v61 }
 0x482   :  { %v2492_v5 = vmax.f32 %v2333_v2, 0.0  ;;  %v2813_v6 = vmax.f32 %v2654_v3, 0.0  ;;  %v2335_v7 = vpop.f32.mrb[209].mxu0  ;;  %v2656_v8 = vpop.f32.mrb[209].mxu1  ;;  %3218 = vmatmul.mubr.f32.gmra.mrb[12].mxu0 %v2937_v0  ;;  %3475 = vmatmul.mubr.f32.gmra.mrb[12].mxu1 %v2937_v0  ;;  %v2939_v12 = vmul.f32 0.5, %v2875_v1 }
 0x483   :  { %v2493_v9 = vmax.f32 %v2335_v7, 0.0  ;;  %v2814_v10 = vmax.f32 %v2656_v8, 0.0  ;;  %v2940_v11 = vmul.f32 0.5, %v2876_v4 }
 0x484   :  { %v2877_v13 = vadd.f32 %v2813_v6, %v2492_v5 }
 0x485   :  { %v2339_v14 = vpop.f32.mrb[210].mxu0  ;;  %v2660_v15 = vpop.f32.mrb[210].mxu1  ;;  %3223 = vmatprep.mubr.f32.mxu0 %v2940_v11  ;;  %3480 = vmatprep.mubr.f32.mxu1 %v2940_v11  ;;  %v2878_v16 = vadd.f32 %v2814_v10, %v2493_v9 }
 0x486   :  { %v2494_v17 = vmax.f32 %v2339_v14, 0.0  ;;  %v2815_v18 = vmax.f32 %v2660_v15, 0.0  ;;  %v2341_v19 = vpop.f32.mrb[211].mxu0  ;;  %v2662_v20 = vpop.f32.mrb[211].mxu1  ;;  %3224 = vmatmul.mubr.f32.gmra.mrb[14].mxu0 %v2939_v12  ;;  %3481 = vmatmul.mubr.f32.gmra.mrb[14].mxu1 %v2939_v12  ;;  %v2941_v24 = vmul.f32 0.5, %v2877_v13 }
 0x487   :  { %v2495_v21 = vmax.f32 %v2341_v19, 0.0  ;;  %v2816_v22 = vmax.f32 %v2662_v20, 0.0  ;;  %v2942_v23 = vmul.f32 0.5, %v2878_v16 }
 0x488   :  { %v2879_v25 = vadd.f32 %v2815_v18, %v2494_v17 }
 0x489   :  { %v2345_v26 = vpop.f32.mrb[212].mxu0  ;;  %v2666_v27 = vpop.f32.mrb[212].mxu1  ;;  %3229 = vmatprep.mubr.f32.mxu0 %v2942_v23  ;;  %3486 = vmatprep.mubr.f32.mxu1 %v2942_v23  ;;  %v2880_v28 = vadd.f32 %v2816_v22, %v2495_v21 }
 0x48a   :  { %v2496_v29 = vmax.f32 %v2345_v26, 0.0  ;;  %v2817_v30 = vmax.f32 %v2666_v27, 0.0  ;;  %v2347_v31 = vpop.f32.mrb[213].mxu0  ;;  %v2668_v32 = vpop.f32.mrb[213].mxu1  ;;  %3230 = vmatmul.mubr.f32.gmra.mrb[16].mxu0 %v2941_v24  ;;  %3487 = vmatmul.mubr.f32.gmra.mrb[16].mxu1 %v2941_v24  ;;  %v2943_v36 = vmul.f32 0.5, %v2879_v25 }
 0x48b   :  { %v2497_v33 = vmax.f32 %v2347_v31, 0.0  ;;  %v2818_v34 = vmax.f32 %v2668_v32, 0.0  ;;  %v2944_v35 = vmul.f32 0.5, %v2880_v28 }
 0x48c   :  { %v2881_v37 = vadd.f32 %v2817_v30, %v2496_v29 }
 0x48d   :  { %v2351_v38 = vpop.f32.mrb[214].mxu0  ;;  %v2672_v39 = vpop.f32.mrb[214].mxu1  ;;  %3235 = vmatprep.mubr.f32.mxu0 %v2944_v35  ;;  %3492 = vmatprep.mubr.f32.mxu1 %v2944_v35  ;;  %v2882_v40 = vadd.f32 %v2818_v34, %v2497_v33 }
 0x48e   :  { %v2498_v41 = vmax.f32 %v2351_v38, 0.0  ;;  %v2819_v42 = vmax.f32 %v2672_v39, 0.0  ;;  %v2353_v43 = vpop.f32.mrb[215].mxu0  ;;  %v2674_v44 = vpop.f32.mrb[215].mxu1  ;;  %3236 = vmatmul.mubr.f32.gmra.mrb[18].mxu0 %v2943_v36  ;;  %3493 = vmatmul.mubr.f32.gmra.mrb[18].mxu1 %v2943_v36  ;;  %v2945_v48 = vmul.f32 0.5, %v2881_v37 }
 0x48f   :  { %v2499_v45 = vmax.f32 %v2353_v43, 0.0  ;;  %v2820_v46 = vmax.f32 %v2674_v44, 0.0  ;;  %v2946_v47 = vmul.f32 0.5, %v2882_v40 }
 0x490   :  { %v2883_v49 = vadd.f32 %v2819_v42, %v2498_v41 }
 0x491   :  { %v2357_v50 = vpop.f32.mrb[216].mxu0  ;;  %v2678_v51 = vpop.f32.mrb[216].mxu1  ;;  %3241 = vmatprep.mubr.f32.mxu0 %v2946_v47  ;;  %3498 = vmatprep.mubr.f32.mxu1 %v2946_v47  ;;  %v2884_v52 = vadd.f32 %v2820_v46, %v2499_v45 }
 0x492   :  { %v2500_v53 = vmax.f32 %v2357_v50, 0.0  ;;  %v2821_v54 = vmax.f32 %v2678_v51, 0.0  ;;  %v2359_v55 = vpop.f32.mrb[217].mxu0  ;;  %v2680_v56 = vpop.f32.mrb[217].mxu1  ;;  %3242 = vmatmul.mubr.f32.gmra.mrb[20].mxu0 %v2945_v48  ;;  %3499 = vmatmul.mubr.f32.gmra.mrb[20].mxu1 %v2945_v48  ;;  %v2947_v60 = vmul.f32 0.5, %v2883_v49 }
 0x493   :  { %v2501_v57 = vmax.f32 %v2359_v55, 0.0  ;;  %v2822_v58 = vmax.f32 %v2680_v56, 0.0  ;;  %v2948_v59 = vmul.f32 0.5, %v2884_v52 }
 0x494   :  { %v2885_v61 = vadd.f32 %v2821_v54, %v2500_v53 }
 0x495   :  { %v2363_v62 = vpop.f32.mrb[218].mxu0  ;;  %v2684_v63 = vpop.f32.mrb[218].mxu1  ;;  %3247 = vmatprep.mubr.f32.mxu0 %v2948_v59  ;;  %3504 = vmatprep.mubr.f32.mxu1 %v2948_v59  ;;  %v2886_v0 = vadd.f32 %v2822_v58, %v2501_v57 }
 0x496   :  { %v2502_v1 = vmax.f32 %v2363_v62, 0.0  ;;  %v2823_v2 = vmax.f32 %v2684_v63, 0.0  ;;  %v2365_v3 = vpop.f32.mrb[219].mxu0  ;;  %v2686_v4 = vpop.f32.mrb[219].mxu1  ;;  %3248 = vmatmul.mubr.f32.gmra.mrb[22].mxu0 %v2947_v60  ;;  %3505 = vmatmul.mubr.f32.gmra.mrb[22].mxu1 %v2947_v60  ;;  %v2949_v8 = vmul.f32 0.5, %v2885_v61 }
 0x497   :  { %v2503_v5 = vmax.f32 %v2365_v3, 0.0  ;;  %v2824_v6 = vmax.f32 %v2686_v4, 0.0  ;;  %v2950_v7 = vmul.f32 0.5, %v2886_v0 }
 0x498   :  { %v2887_v9 = vadd.f32 %v2823_v2, %v2502_v1 }
 0x499   :  { %v2369_v10 = vpop.f32.mrb[220].mxu0  ;;  %v2690_v11 = vpop.f32.mrb[220].mxu1  ;;  %3253 = vmatprep.mubr.f32.mxu0 %v2950_v7  ;;  %3510 = vmatprep.mubr.f32.mxu1 %v2950_v7  ;;  %v2888_v12 = vadd.f32 %v2824_v6, %v2503_v5 }
 0x49a   :  { %v2504_v13 = vmax.f32 %v2369_v10, 0.0  ;;  %v2825_v14 = vmax.f32 %v2690_v11, 0.0  ;;  %v2371_v15 = vpop.f32.mrb[221].mxu0  ;;  %v2692_v16 = vpop.f32.mrb[221].mxu1  ;;  %3254 = vmatmul.mubr.f32.gmra.mrb[24].mxu0 %v2949_v8  ;;  %3511 = vmatmul.mubr.f32.gmra.mrb[24].mxu1 %v2949_v8  ;;  %v2951_v20 = vmul.f32 0.5, %v2887_v9 }
 0x49b   :  { %v2505_v17 = vmax.f32 %v2371_v15, 0.0  ;;  %v2826_v18 = vmax.f32 %v2692_v16, 0.0  ;;  %v2952_v19 = vmul.f32 0.5, %v2888_v12 }
 0x49c   :  { %v2889_v21 = vadd.f32 %v2825_v14, %v2504_v13 }
 0x49d   :  { %v2375_v22 = vpop.f32.mrb[222].mxu0  ;;  %v2696_v23 = vpop.f32.mrb[222].mxu1  ;;  %3259 = vmatprep.mubr.f32.mxu0 %v2952_v19  ;;  %3516 = vmatprep.mubr.f32.mxu1 %v2952_v19  ;;  %v2890_v24 = vadd.f32 %v2826_v18, %v2505_v17 }
 0x49e   :  { %v2506_v25 = vmax.f32 %v2375_v22, 0.0  ;;  %v2827_v26 = vmax.f32 %v2696_v23, 0.0  ;;  %v2377_v27 = vpop.f32.mrb[223].mxu0  ;;  %v2698_v28 = vpop.f32.mrb[223].mxu1  ;;  %3260 = vmatmul.mubr.f32.gmra.mrb[26].mxu0 %v2951_v20  ;;  %3517 = vmatmul.mubr.f32.gmra.mrb[26].mxu1 %v2951_v20  ;;  %v2953_v32 = vmul.f32 0.5, %v2889_v21 }
 0x49f   :  { %v2507_v29 = vmax.f32 %v2377_v27, 0.0  ;;  %v2828_v30 = vmax.f32 %v2698_v28, 0.0  ;;  %v2954_v31 = vmul.f32 0.5, %v2890_v24 }
 0x4a0   :  { %v2891_v33 = vadd.f32 %v2827_v26, %v2506_v25 }
 0x4a1   :  { %v2381_v34 = vpop.f32.mrb[224].mxu0  ;;  %v2702_v35 = vpop.f32.mrb[224].mxu1  ;;  %3265 = vmatprep.mubr.f32.mxu0 %v2954_v31  ;;  %3522 = vmatprep.mubr.f32.mxu1 %v2954_v31  ;;  %v2892_v36 = vadd.f32 %v2828_v30, %v2507_v29 }
 0x4a2   :  { %v2508_v37 = vmax.f32 %v2381_v34, 0.0  ;;  %v2829_v38 = vmax.f32 %v2702_v35, 0.0  ;;  %v2383_v39 = vpop.f32.mrb[225].mxu0  ;;  %v2704_v40 = vpop.f32.mrb[225].mxu1  ;;  %3266 = vmatmul.mubr.f32.gmra.mrb[28].mxu0 %v2953_v32  ;;  %3523 = vmatmul.mubr.f32.gmra.mrb[28].mxu1 %v2953_v32  ;;  %v2955_v44 = vmul.f32 0.5, %v2891_v33 }
 0x4a3   :  { %v2509_v41 = vmax.f32 %v2383_v39, 0.0  ;;  %v2830_v42 = vmax.f32 %v2704_v40, 0.0  ;;  %v2956_v43 = vmul.f32 0.5, %v2892_v36 }
 0x4a4   :  { %v2893_v45 = vadd.f32 %v2829_v38, %v2508_v37 }
 0x4a5   :  { %v2387_v46 = vpop.f32.mrb[226].mxu0  ;;  %v2708_v47 = vpop.f32.mrb[226].mxu1  ;;  %3271 = vmatprep.mubr.f32.mxu0 %v2956_v43  ;;  %3528 = vmatprep.mubr.f32.mxu1 %v2956_v43  ;;  %v2894_v48 = vadd.f32 %v2830_v42, %v2509_v41 }
 0x4a6   :  { %v2510_v49 = vmax.f32 %v2387_v46, 0.0  ;;  %v2831_v50 = vmax.f32 %v2708_v47, 0.0  ;;  %v2389_v51 = vpop.f32.mrb[227].mxu0  ;;  %v2710_v52 = vpop.f32.mrb[227].mxu1  ;;  %3272 = vmatmul.mubr.f32.gmra.mrb[30].mxu0 %v2955_v44  ;;  %3529 = vmatmul.mubr.f32.gmra.mrb[30].mxu1 %v2955_v44  ;;  %v2957_v56 = vmul.f32 0.5, %v2893_v45 }
 0x4a7   :  { %v2511_v53 = vmax.f32 %v2389_v51, 0.0  ;;  %v2832_v54 = vmax.f32 %v2710_v52, 0.0  ;;  %v2958_v55 = vmul.f32 0.5, %v2894_v48 }
 0x4a8   :  { %v2895_v57 = vadd.f32 %v2831_v50, %v2510_v49 }
 0x4a9   :  { %v2393_v58 = vpop.f32.mrb[228].mxu0  ;;  %v2714_v59 = vpop.f32.mrb[228].mxu1  ;;  %3277 = vmatprep.mubr.f32.mxu0 %v2958_v55  ;;  %3534 = vmatprep.mubr.f32.mxu1 %v2958_v55  ;;  %v2896_v60 = vadd.f32 %v2832_v54, %v2511_v53 }
 0x4aa   :  { %v2512_v61 = vmax.f32 %v2393_v58, 0.0  ;;  %v2833_v62 = vmax.f32 %v2714_v59, 0.0  ;;  %v2395_v63 = vpop.f32.mrb[229].mxu0  ;;  %v2716_v0 = vpop.f32.mrb[229].mxu1  ;;  %3278 = vmatmul.mubr.f32.gmra.mrb[32].mxu0 %v2957_v56  ;;  %3535 = vmatmul.mubr.f32.gmra.mrb[32].mxu1 %v2957_v56  ;;  %v2959_v4 = vmul.f32 0.5, %v2895_v57 }
 0x4ab   :  { %v2513_v1 = vmax.f32 %v2395_v63, 0.0  ;;  %v2834_v2 = vmax.f32 %v2716_v0, 0.0  ;;  %v2960_v3 = vmul.f32 0.5, %v2896_v60 }
 0x4ac   :  { %v2897_v5 = vadd.f32 %v2833_v62, %v2512_v61 }
 0x4ad   :  { %v2399_v6 = vpop.f32.mrb[230].mxu0  ;;  %v2720_v7 = vpop.f32.mrb[230].mxu1  ;;  %3283 = vmatprep.mubr.f32.mxu0 %v2960_v3  ;;  %3540 = vmatprep.mubr.f32.mxu1 %v2960_v3  ;;  %v2898_v8 = vadd.f32 %v2834_v2, %v2513_v1 }
 0x4ae   :  { %v2514_v9 = vmax.f32 %v2399_v6, 0.0  ;;  %v2835_v10 = vmax.f32 %v2720_v7, 0.0  ;;  %v2401_v11 = vpop.f32.mrb[231].mxu0  ;;  %v2722_v12 = vpop.f32.mrb[231].mxu1  ;;  %3284 = vmatmul.mubr.f32.gmra.mrb[34].mxu0 %v2959_v4  ;;  %3541 = vmatmul.mubr.f32.gmra.mrb[34].mxu1 %v2959_v4  ;;  %v2961_v16 = vmul.f32 0.5, %v2897_v5 }
 0x4af   :  { %v2515_v13 = vmax.f32 %v2401_v11, 0.0  ;;  %v2836_v14 = vmax.f32 %v2722_v12, 0.0  ;;  %v2962_v15 = vmul.f32 0.5, %v2898_v8 }
 0x4b0   :  { %v2899_v17 = vadd.f32 %v2835_v10, %v2514_v9 }
 0x4b1   :  { %v2405_v18 = vpop.f32.mrb[232].mxu0  ;;  %v2726_v19 = vpop.f32.mrb[232].mxu1  ;;  %3289 = vmatprep.mubr.f32.mxu0 %v2962_v15  ;;  %3546 = vmatprep.mubr.f32.mxu1 %v2962_v15  ;;  %v2900_v20 = vadd.f32 %v2836_v14, %v2515_v13 }
 0x4b2   :  { %v2516_v21 = vmax.f32 %v2405_v18, 0.0  ;;  %v2837_v22 = vmax.f32 %v2726_v19, 0.0  ;;  %v2407_v23 = vpop.f32.mrb[233].mxu0  ;;  %v2728_v24 = vpop.f32.mrb[233].mxu1  ;;  %3290 = vmatmul.mubr.f32.gmra.mrb[36].mxu0 %v2961_v16  ;;  %3547 = vmatmul.mubr.f32.gmra.mrb[36].mxu1 %v2961_v16  ;;  %v2963_v28 = vmul.f32 0.5, %v2899_v17 }
 0x4b3   :  { %v2517_v25 = vmax.f32 %v2407_v23, 0.0  ;;  %v2838_v26 = vmax.f32 %v2728_v24, 0.0  ;;  %v2964_v27 = vmul.f32 0.5, %v2900_v20 }
 0x4b4   :  { %v2901_v29 = vadd.f32 %v2837_v22, %v2516_v21 }
 0x4b5   :  { %v2411_v30 = vpop.f32.mrb[234].mxu0  ;;  %v2732_v31 = vpop.f32.mrb[234].mxu1  ;;  %3295 = vmatprep.mubr.f32.mxu0 %v2964_v27  ;;  %3552 = vmatprep.mubr.f32.mxu1 %v2964_v27  ;;  %v2902_v32 = vadd.f32 %v2838_v26, %v2517_v25 }
 0x4b6   :  { %v2518_v33 = vmax.f32 %v2411_v30, 0.0  ;;  %v2839_v34 = vmax.f32 %v2732_v31, 0.0  ;;  %v2413_v35 = vpop.f32.mrb[235].mxu0  ;;  %v2734_v36 = vpop.f32.mrb[235].mxu1  ;;  %3296 = vmatmul.mubr.f32.gmra.mrb[38].mxu0 %v2963_v28  ;;  %3553 = vmatmul.mubr.f32.gmra.mrb[38].mxu1 %v2963_v28  ;;  %v2965_v40 = vmul.f32 0.5, %v2901_v29 }
 0x4b7   :  { %v2519_v37 = vmax.f32 %v2413_v35, 0.0  ;;  %v2840_v38 = vmax.f32 %v2734_v36, 0.0  ;;  %v2966_v39 = vmul.f32 0.5, %v2902_v32 }
 0x4b8   :  { %v2903_v41 = vadd.f32 %v2839_v34, %v2518_v33 }
 0x4b9   :  { %v2417_v42 = vpop.f32.mrb[236].mxu0  ;;  %v2738_v43 = vpop.f32.mrb[236].mxu1  ;;  %3301 = vmatprep.mubr.f32.mxu0 %v2966_v39  ;;  %3558 = vmatprep.mubr.f32.mxu1 %v2966_v39  ;;  %v2904_v44 = vadd.f32 %v2840_v38, %v2519_v37 }
 0x4ba   :  { %v2520_v45 = vmax.f32 %v2417_v42, 0.0  ;;  %v2841_v46 = vmax.f32 %v2738_v43, 0.0  ;;  %v2419_v47 = vpop.f32.mrb[237].mxu0  ;;  %v2740_v48 = vpop.f32.mrb[237].mxu1  ;;  %3302 = vmatmul.mubr.f32.gmra.mrb[40].mxu0 %v2965_v40  ;;  %3559 = vmatmul.mubr.f32.gmra.mrb[40].mxu1 %v2965_v40  ;;  %v2967_v52 = vmul.f32 0.5, %v2903_v41 }
 0x4bb   :  { %v2521_v49 = vmax.f32 %v2419_v47, 0.0  ;;  %v2842_v50 = vmax.f32 %v2740_v48, 0.0  ;;  %v2968_v51 = vmul.f32 0.5, %v2904_v44 }
 0x4bc   :  { %v2905_v53 = vadd.f32 %v2841_v46, %v2520_v45 }
 0x4bd   :  { %v2423_v54 = vpop.f32.mrb[238].mxu0  ;;  %v2744_v55 = vpop.f32.mrb[238].mxu1  ;;  %3307 = vmatprep.mubr.f32.mxu0 %v2968_v51  ;;  %3564 = vmatprep.mubr.f32.mxu1 %v2968_v51  ;;  %v2906_v56 = vadd.f32 %v2842_v50, %v2521_v49 }
 0x4be   :  { %v2522_v57 = vmax.f32 %v2423_v54, 0.0  ;;  %v2843_v58 = vmax.f32 %v2744_v55, 0.0  ;;  %v2425_v59 = vpop.f32.mrb[239].mxu0  ;;  %v2746_v60 = vpop.f32.mrb[239].mxu1  ;;  %3308 = vmatmul.mubr.f32.gmra.mrb[42].mxu0 %v2967_v52  ;;  %3565 = vmatmul.mubr.f32.gmra.mrb[42].mxu1 %v2967_v52  ;;  %v2969_v0 = vmul.f32 0.5, %v2905_v53 }
 0x4bf   :  { %v2523_v61 = vmax.f32 %v2425_v59, 0.0  ;;  %v2844_v62 = vmax.f32 %v2746_v60, 0.0  ;;  %v2970_v63 = vmul.f32 0.5, %v2906_v56 }
 0x4c0   :  { %v2907_v1 = vadd.f32 %v2843_v58, %v2522_v57 }
 0x4c1   :  { %v2429_v2 = vpop.f32.mrb[240].mxu0  ;;  %v2750_v3 = vpop.f32.mrb[240].mxu1  ;;  %3313 = vmatprep.mubr.f32.mxu0 %v2970_v63  ;;  %3570 = vmatprep.mubr.f32.mxu1 %v2970_v63  ;;  %v2908_v4 = vadd.f32 %v2844_v62, %v2523_v61 }
 0x4c2   :  { %v2524_v5 = vmax.f32 %v2429_v2, 0.0  ;;  %v2845_v6 = vmax.f32 %v2750_v3, 0.0  ;;  %v2431_v7 = vpop.f32.mrb[241].mxu0  ;;  %v2752_v8 = vpop.f32.mrb[241].mxu1  ;;  %3314 = vmatmul.mubr.f32.gmra.mrb[44].mxu0 %v2969_v0  ;;  %3571 = vmatmul.mubr.f32.gmra.mrb[44].mxu1 %v2969_v0  ;;  %v2971_v12 = vmul.f32 0.5, %v2907_v1 }
 0x4c3   :  { %v2525_v9 = vmax.f32 %v2431_v7, 0.0  ;;  %v2846_v10 = vmax.f32 %v2752_v8, 0.0  ;;  %v2972_v11 = vmul.f32 0.5, %v2908_v4 }
 0x4c4   :  { %v2909_v13 = vadd.f32 %v2845_v6, %v2524_v5 }
 0x4c5   :  { %v2435_v14 = vpop.f32.mrb[242].mxu0  ;;  %v2756_v15 = vpop.f32.mrb[242].mxu1  ;;  %3319 = vmatprep.mubr.f32.mxu0 %v2972_v11  ;;  %3576 = vmatprep.mubr.f32.mxu1 %v2972_v11  ;;  %v2910_v16 = vadd.f32 %v2846_v10, %v2525_v9 }
 0x4c6   :  { %v2526_v17 = vmax.f32 %v2435_v14, 0.0  ;;  %v2847_v18 = vmax.f32 %v2756_v15, 0.0  ;;  %v2437_v19 = vpop.f32.mrb[243].mxu0  ;;  %v2758_v20 = vpop.f32.mrb[243].mxu1  ;;  %3320 = vmatmul.mubr.f32.gmra.mrb[46].mxu0 %v2971_v12  ;;  %3577 = vmatmul.mubr.f32.gmra.mrb[46].mxu1 %v2971_v12  ;;  %v2973_v24 = vmul.f32 0.5, %v2909_v13 }
 0x4c7   :  { %v2527_v21 = vmax.f32 %v2437_v19, 0.0  ;;  %v2848_v22 = vmax.f32 %v2758_v20, 0.0  ;;  %v2974_v23 = vmul.f32 0.5, %v2910_v16 }
 0x4c8   :  { %v2911_v25 = vadd.f32 %v2847_v18, %v2526_v17 }
 0x4c9   :  { %v2441_v26 = vpop.f32.mrb[244].mxu0  ;;  %v2762_v27 = vpop.f32.mrb[244].mxu1  ;;  %3325 = vmatprep.mubr.f32.mxu0 %v2974_v23  ;;  %3582 = vmatprep.mubr.f32.mxu1 %v2974_v23  ;;  %v2912_v28 = vadd.f32 %v2848_v22, %v2527_v21 }
 0x4ca   :  { %v2528_v29 = vmax.f32 %v2441_v26, 0.0  ;;  %v2849_v30 = vmax.f32 %v2762_v27, 0.0  ;;  %v2443_v31 = vpop.f32.mrb[245].mxu0  ;;  %v2764_v32 = vpop.f32.mrb[245].mxu1  ;;  %3326 = vmatmul.mubr.f32.gmra.mrb[48].mxu0 %v2973_v24  ;;  %3583 = vmatmul.mubr.f32.gmra.mrb[48].mxu1 %v2973_v24  ;;  %v2975_v36 = vmul.f32 0.5, %v2911_v25 }
 0x4cb   :  { %v2529_v33 = vmax.f32 %v2443_v31, 0.0  ;;  %v2850_v34 = vmax.f32 %v2764_v32, 0.0  ;;  %v2976_v35 = vmul.f32 0.5, %v2912_v28 }
 0x4cc   :  { %v2913_v37 = vadd.f32 %v2849_v30, %v2528_v29 }
 0x4cd   :  { %v2447_v38 = vpop.f32.mrb[246].mxu0  ;;  %v2768_v39 = vpop.f32.mrb[246].mxu1  ;;  %3331 = vmatprep.mubr.f32.mxu0 %v2976_v35  ;;  %3588 = vmatprep.mubr.f32.mxu1 %v2976_v35  ;;  %v2914_v40 = vadd.f32 %v2850_v34, %v2529_v33 }
 0x4ce   :  { %v2530_v41 = vmax.f32 %v2447_v38, 0.0  ;;  %v2851_v42 = vmax.f32 %v2768_v39, 0.0  ;;  %v2449_v43 = vpop.f32.mrb[247].mxu0  ;;  %v2770_v44 = vpop.f32.mrb[247].mxu1  ;;  %3332 = vmatmul.mubr.f32.gmra.mrb[50].mxu0 %v2975_v36  ;;  %3589 = vmatmul.mubr.f32.gmra.mrb[50].mxu1 %v2975_v36  ;;  %v2977_v48 = vmul.f32 0.5, %v2913_v37  ;;  %v7264_v37 = vld [vmem:[%s10629_s0 + $0x8] sm:$0xff] }
 0x4cf   :  { %v2531_v45 = vmax.f32 %v2449_v43, 0.0  ;;  %v2852_v46 = vmax.f32 %v2770_v44, 0.0  ;;  %v2978_v47 = vmul.f32 0.5, %v2914_v40  ;;  %v7265_v38 = vld [vmem:[%s10630_s1 + $0x8] sm:$0xff] }
 0x4d0   :  { %v2915_v49 = vadd.f32 %v2851_v42, %v2530_v41 }
 0x4d1   :  { %v2453_v50 = vpop.f32.mrb[248].mxu0  ;;  %v2774_v51 = vpop.f32.mrb[248].mxu1  ;;  %3337 = vmatprep.mubr.f32.mxu0 %v2978_v47  ;;  %3594 = vmatprep.mubr.f32.mxu1 %v2978_v47  ;;  %v2916_v52 = vadd.f32 %v2852_v46, %v2531_v45 }
 0x4d2   :  { %v2532_v53 = vmax.f32 %v2453_v50, 0.0  ;;  %v2853_v54 = vmax.f32 %v2774_v51, 0.0  ;;  %v2455_v55 = vpop.f32.mrb[249].mxu0  ;;  %v2776_v56 = vpop.f32.mrb[249].mxu1  ;;  %3338 = vmatmul.mubr.f32.gmra.mrb[52].mxu0 %v2977_v48  ;;  %3595 = vmatmul.mubr.f32.gmra.mrb[52].mxu1 %v2977_v48  ;;  %v2979_v60 = vmul.f32 0.5, %v2915_v49 }
 0x4d3   :  { %v2533_v57 = vmax.f32 %v2455_v55, 0.0  ;;  %v2854_v58 = vmax.f32 %v2776_v56, 0.0  ;;  %v2980_v59 = vmul.f32 0.5, %v2916_v52 }
 0x4d4   :  { %v2917_v61 = vadd.f32 %v2853_v54, %v2532_v53 }
 0x4d5   :  { %v2459_v62 = vpop.f32.mrb[250].mxu0  ;;  %v2780_v63 = vpop.f32.mrb[250].mxu1  ;;  %3343 = vmatprep.mubr.f32.mxu0 %v2980_v59  ;;  %3600 = vmatprep.mubr.f32.mxu1 %v2980_v59  ;;  %v2918_v0 = vadd.f32 %v2854_v58, %v2533_v57 }
 0x4d6   :  { %v2534_v1 = vmax.f32 %v2459_v62, 0.0  ;;  %v2855_v2 = vmax.f32 %v2780_v63, 0.0  ;;  %v2461_v3 = vpop.f32.mrb[251].mxu0  ;;  %v2782_v4 = vpop.f32.mrb[251].mxu1  ;;  %3344 = vmatmul.mubr.f32.gmra.mrb[54].mxu0 %v2979_v60  ;;  %3601 = vmatmul.mubr.f32.gmra.mrb[54].mxu1 %v2979_v60  ;;  %v2981_v8 = vmul.f32 0.5, %v2917_v61 }
 0x4d7   :  { %v2535_v5 = vmax.f32 %v2461_v3, 0.0  ;;  %v2856_v6 = vmax.f32 %v2782_v4, 0.0  ;;  %v2982_v7 = vmul.f32 0.5, %v2918_v0 }
 0x4d8   :  { %v2919_v9 = vadd.f32 %v2855_v2, %v2534_v1 }
 0x4d9   :  { %v2465_v10 = vpop.f32.mrb[252].mxu0  ;;  %v2786_v11 = vpop.f32.mrb[252].mxu1  ;;  %3349 = vmatprep.mubr.f32.mxu0 %v2982_v7  ;;  %3606 = vmatprep.mubr.f32.mxu1 %v2982_v7  ;;  %v2920_v12 = vadd.f32 %v2856_v6, %v2535_v5 }
 0x4da   :  { %v2536_v13 = vmax.f32 %v2465_v10, 0.0  ;;  %v2857_v14 = vmax.f32 %v2786_v11, 0.0  ;;  %v2467_v15 = vpop.f32.mrb[253].mxu0  ;;  %v2788_v16 = vpop.f32.mrb[253].mxu1  ;;  %3350 = vmatmul.mubr.f32.gmra.mrb[56].mxu0 %v2981_v8  ;;  %3607 = vmatmul.mubr.f32.gmra.mrb[56].mxu1 %v2981_v8  ;;  %v2983_v20 = vmul.f32 0.5, %v2919_v9 }
 0x4db   :  { %v2537_v17 = vmax.f32 %v2467_v15, 0.0  ;;  %v2858_v18 = vmax.f32 %v2788_v16, 0.0  ;;  %v2984_v19 = vmul.f32 0.5, %v2920_v12 }
 0x4dc   :  { %v2921_v21 = vadd.f32 %v2857_v14, %v2536_v13 }
 0x4dd   :  { %v2471_v22 = vpop.f32.mrb[254].mxu0  ;;  %v2792_v23 = vpop.f32.mrb[254].mxu1  ;;  %3355 = vmatprep.mubr.f32.mxu0 %v2984_v19  ;;  %3612 = vmatprep.mubr.f32.mxu1 %v2984_v19  ;;  %v2922_v24 = vadd.f32 %v2858_v18, %v2537_v17 }
 0x4de   :  { %v2538_v25 = vmax.f32 %v2471_v22, 0.0  ;;  %v2859_v26 = vmax.f32 %v2792_v23, 0.0  ;;  %v2473_v27 = vpop.f32.mrb[255].mxu0  ;;  %v2794_v28 = vpop.f32.mrb[255].mxu1  ;;  %3356 = vmatmul.mubr.f32.gmra.mrb[58].mxu0 %v2983_v20  ;;  %3613 = vmatmul.mubr.f32.gmra.mrb[58].mxu1 %v2983_v20  ;;  %v2985_v32 = vmul.f32 0.5, %v2921_v21 }
 0x4df   :  { %v2539_v29 = vmax.f32 %v2473_v27, 0.0  ;;  %v2860_v30 = vmax.f32 %v2794_v28, 0.0  ;;  %v2986_v31 = vmul.f32 0.5, %v2922_v24 }
 0x4e0   :  { %v2923_v33 = vadd.f32 %v2859_v26, %v2538_v25 }
 0x4e1   :  { %3361 = vmatprep.mubr.f32.mxu0 %v2986_v31  ;;  %3618 = vmatprep.mubr.f32.mxu1 %v2986_v31  ;;  %v2924_v34 = vadd.f32 %v2860_v30, %v2539_v29 }
 0x4e2   :  { %3362 = vmatmul.mubr.f32.gmra.mrb[60].mxu0 %v2985_v32  ;;  %3619 = vmatmul.mubr.f32.gmra.mrb[60].mxu1 %v2985_v32  ;;  %v2987_v36 = vmul.f32 0.5, %v2923_v33 }
 0x4e3   :  { %v2988_v35 = vmul.f32 0.5, %v2924_v34 }
 0x4e5   :  { %3367 = vmatprep.mubr.f32.mxu0 %v2988_v35  ;;  %3624 = vmatprep.mubr.f32.mxu1 %v2988_v35 }
 0x4e6   :  { %3368 = vmatmul.mubr.f32.gmra.mrb[62].mxu0 %v2987_v36  ;;  %3625 = vmatmul.mubr.f32.gmra.mrb[62].mxu1 %v2987_v36 }
 0x4e7   :  { %3695 = vmatprep.mubr.f32.mxu0 %v7264_v37  ;;  %4016 = vmatprep.mubr.f32.mxu1 %v7265_v38 }
 0x53d   :  { %v3183_v39 = vpop.f32.mrb[0].mxu0  ;;  %v3440_v40 = vpop.f32.mrb[0].mxu1 }
 0x53e   :  { %v3185_v41 = vpop.f32.mrb[1].mxu0  ;;  %v3442_v42 = vpop.f32.mrb[1].mxu1 }
 0x541   :  { %v3189_v43 = vpop.f32.mrb[2].mxu0  ;;  %v3446_v44 = vpop.f32.mrb[2].mxu1 }
 0x542   :  { %v6657_v45 = vpack.c.bf16 %v3189_v43, %v3183_v39  ;;  %v6721_v46 = vpack.c.bf16 %v3446_v44, %v3440_v40  ;;  %v3191_v47 = vpop.f32.mrb[3].mxu0  ;;  %v3448_v48 = vpop.f32.mrb[3].mxu1 }
 0x543   :  { %v6655_v49 = vpack.c.bf16 %v3191_v47, %v3185_v41  ;;  %v6719_v50 = vpack.c.bf16 %v3448_v48, %v3442_v42 }
 0x545   :  { %v3195_v51 = vpop.f32.mrb[4].mxu0  ;;  %v3452_v52 = vpop.f32.mrb[4].mxu1  ;;  %6656 = vmatprep.subr.bf16.mxu0 %v6655_v49  ;;  %6720 = vmatprep.subr.bf16.mxu1 %v6719_v50 }
 0x546   :  { %v3197_v53 = vpop.f32.mrb[5].mxu0  ;;  %v3454_v54 = vpop.f32.mrb[5].mxu1  ;;  %6658 = vmatpush1.bf16.msra.mxu0 %v6657_v45  ;;  %6722 = vmatpush1.bf16.msra.mxu1 %v6721_v46 }
 0x549   :  { %v3201_v55 = vpop.f32.mrb[6].mxu0  ;;  %v3458_v56 = vpop.f32.mrb[6].mxu1 }
 0x54a   :  { %v6661_v57 = vpack.c.bf16 %v3201_v55, %v3195_v51  ;;  %v6725_v58 = vpack.c.bf16 %v3458_v56, %v3452_v52  ;;  %v3203_v59 = vpop.f32.mrb[7].mxu0  ;;  %v3460_v60 = vpop.f32.mrb[7].mxu1 }
 0x54b   :  { %v6659_v61 = vpack.c.bf16 %v3203_v59, %v3197_v53  ;;  %v6723_v62 = vpack.c.bf16 %v3460_v60, %v3454_v54 }
 0x54d   :  { %v3207_v63 = vpop.f32.mrb[8].mxu0  ;;  %v3464_v0 = vpop.f32.mrb[8].mxu1  ;;  %6660 = vmatprep.subr.bf16.mxu0 %v6659_v61  ;;  %6724 = vmatprep.subr.bf16.mxu1 %v6723_v62 }
 0x54e   :  { %v3209_v1 = vpop.f32.mrb[9].mxu0  ;;  %v3466_v2 = vpop.f32.mrb[9].mxu1  ;;  %6662 = vmatpush1.bf16.msra.mxu0 %v6661_v57  ;;  %6726 = vmatpush1.bf16.msra.mxu1 %v6725_v58 }
 0x551   :  { %v3213_v3 = vpop.f32.mrb[10].mxu0  ;;  %v3470_v4 = vpop.f32.mrb[10].mxu1 }
 0x552   :  { %v6665_v5 = vpack.c.bf16 %v3213_v3, %v3207_v63  ;;  %v6729_v6 = vpack.c.bf16 %v3470_v4, %v3464_v0  ;;  %v3215_v7 = vpop.f32.mrb[11].mxu0  ;;  %v3472_v8 = vpop.f32.mrb[11].mxu1 }
 0x553   :  { %v6663_v9 = vpack.c.bf16 %v3215_v7, %v3209_v1  ;;  %v6727_v10 = vpack.c.bf16 %v3472_v8, %v3466_v2 }
 0x555   :  { %v3219_v11 = vpop.f32.mrb[12].mxu0  ;;  %v3476_v12 = vpop.f32.mrb[12].mxu1  ;;  %6664 = vmatprep.subr.bf16.mxu0 %v6663_v9  ;;  %6728 = vmatprep.subr.bf16.mxu1 %v6727_v10 }
 0x556   :  { %v3221_v13 = vpop.f32.mrb[13].mxu0  ;;  %v3478_v14 = vpop.f32.mrb[13].mxu1  ;;  %6666 = vmatpush1.bf16.msra.mxu0 %v6665_v5  ;;  %6730 = vmatpush1.bf16.msra.mxu1 %v6729_v6 }
 0x559   :  { %v3225_v15 = vpop.f32.mrb[14].mxu0  ;;  %v3482_v16 = vpop.f32.mrb[14].mxu1 }
 0x55a   :  { %v6669_v17 = vpack.c.bf16 %v3225_v15, %v3219_v11  ;;  %v6733_v18 = vpack.c.bf16 %v3482_v16, %v3476_v12  ;;  %v3227_v19 = vpop.f32.mrb[15].mxu0  ;;  %v3484_v20 = vpop.f32.mrb[15].mxu1 }
 0x55b   :  { %v6667_v21 = vpack.c.bf16 %v3227_v19, %v3221_v13  ;;  %v6731_v22 = vpack.c.bf16 %v3484_v20, %v3478_v14 }
 0x55d   :  { %v3231_v23 = vpop.f32.mrb[16].mxu0  ;;  %v3488_v24 = vpop.f32.mrb[16].mxu1  ;;  %6668 = vmatprep.subr.bf16.mxu0 %v6667_v21  ;;  %6732 = vmatprep.subr.bf16.mxu1 %v6731_v22 }
 0x55e   :  { %v3233_v25 = vpop.f32.mrb[17].mxu0  ;;  %v3490_v26 = vpop.f32.mrb[17].mxu1  ;;  %6670 = vmatpush1.bf16.msra.mxu0 %v6669_v17  ;;  %6734 = vmatpush1.bf16.msra.mxu1 %v6733_v18 }
 0x561   :  { %v3237_v27 = vpop.f32.mrb[18].mxu0  ;;  %v3494_v28 = vpop.f32.mrb[18].mxu1 }
 0x562   :  { %v6673_v29 = vpack.c.bf16 %v3237_v27, %v3231_v23  ;;  %v6737_v30 = vpack.c.bf16 %v3494_v28, %v3488_v24  ;;  %v3239_v31 = vpop.f32.mrb[19].mxu0  ;;  %v3496_v32 = vpop.f32.mrb[19].mxu1 }
 0x563   :  { %v6671_v33 = vpack.c.bf16 %v3239_v31, %v3233_v25  ;;  %v6735_v34 = vpack.c.bf16 %v3496_v32, %v3490_v26 }
 0x565   :  { %v3243_v35 = vpop.f32.mrb[20].mxu0  ;;  %v3500_v36 = vpop.f32.mrb[20].mxu1  ;;  %6672 = vmatprep.subr.bf16.mxu0 %v6671_v33  ;;  %6736 = vmatprep.subr.bf16.mxu1 %v6735_v34 }
 0x566   :  { %v3245_v37 = vpop.f32.mrb[21].mxu0  ;;  %v3502_v38 = vpop.f32.mrb[21].mxu1  ;;  %6674 = vmatpush1.bf16.msra.mxu0 %v6673_v29  ;;  %6738 = vmatpush1.bf16.msra.mxu1 %v6737_v30 }
 0x569   :  { %v3249_v39 = vpop.f32.mrb[22].mxu0  ;;  %v3506_v40 = vpop.f32.mrb[22].mxu1 }
 0x56a   :  { %v6677_v41 = vpack.c.bf16 %v3249_v39, %v3243_v35  ;;  %v6741_v42 = vpack.c.bf16 %v3506_v40, %v3500_v36  ;;  %v3251_v43 = vpop.f32.mrb[23].mxu0  ;;  %v3508_v44 = vpop.f32.mrb[23].mxu1 }
 0x56b   :  { %v6675_v45 = vpack.c.bf16 %v3251_v43, %v3245_v37  ;;  %v6739_v46 = vpack.c.bf16 %v3508_v44, %v3502_v38 }
 0x56d   :  { %v3255_v47 = vpop.f32.mrb[24].mxu0  ;;  %v3512_v48 = vpop.f32.mrb[24].mxu1  ;;  %6676 = vmatprep.subr.bf16.mxu0 %v6675_v45  ;;  %6740 = vmatprep.subr.bf16.mxu1 %v6739_v46 }
 0x56e   :  { %v3257_v49 = vpop.f32.mrb[25].mxu0  ;;  %v3514_v50 = vpop.f32.mrb[25].mxu1  ;;  %6678 = vmatpush1.bf16.msra.mxu0 %v6677_v41  ;;  %6742 = vmatpush1.bf16.msra.mxu1 %v6741_v42 }
 0x571   :  { %v3261_v51 = vpop.f32.mrb[26].mxu0  ;;  %v3518_v52 = vpop.f32.mrb[26].mxu1 }
 0x572   :  { %v6681_v53 = vpack.c.bf16 %v3261_v51, %v3255_v47  ;;  %v6745_v54 = vpack.c.bf16 %v3518_v52, %v3512_v48  ;;  %v3263_v55 = vpop.f32.mrb[27].mxu0  ;;  %v3520_v56 = vpop.f32.mrb[27].mxu1 }
 0x573   :  { %v6679_v57 = vpack.c.bf16 %v3263_v55, %v3257_v49  ;;  %v6743_v58 = vpack.c.bf16 %v3520_v56, %v3514_v50 }
 0x575   :  { %v3267_v59 = vpop.f32.mrb[28].mxu0  ;;  %v3524_v60 = vpop.f32.mrb[28].mxu1  ;;  %6680 = vmatprep.subr.bf16.mxu0 %v6679_v57  ;;  %6744 = vmatprep.subr.bf16.mxu1 %v6743_v58 }
 0x576   :  { %v3269_v61 = vpop.f32.mrb[29].mxu0  ;;  %v3526_v62 = vpop.f32.mrb[29].mxu1  ;;  %6682 = vmatpush1.bf16.msra.mxu0 %v6681_v53  ;;  %6746 = vmatpush1.bf16.msra.mxu1 %v6745_v54 }
 0x579   :  { %v3273_v63 = vpop.f32.mrb[30].mxu0  ;;  %v3530_v0 = vpop.f32.mrb[30].mxu1 }
 0x57a   :  { %v6685_v1 = vpack.c.bf16 %v3273_v63, %v3267_v59  ;;  %v6749_v2 = vpack.c.bf16 %v3530_v0, %v3524_v60  ;;  %v3275_v3 = vpop.f32.mrb[31].mxu0  ;;  %v3532_v4 = vpop.f32.mrb[31].mxu1 }
 0x57b   :  { %v6683_v5 = vpack.c.bf16 %v3275_v3, %v3269_v61  ;;  %v6747_v6 = vpack.c.bf16 %v3532_v4, %v3526_v62 }
 0x57d   :  { %v3279_v7 = vpop.f32.mrb[32].mxu0  ;;  %v3536_v8 = vpop.f32.mrb[32].mxu1  ;;  %6684 = vmatprep.subr.bf16.mxu0 %v6683_v5  ;;  %6748 = vmatprep.subr.bf16.mxu1 %v6747_v6 }
 0x57e   :  { %v3281_v9 = vpop.f32.mrb[33].mxu0  ;;  %v3538_v10 = vpop.f32.mrb[33].mxu1  ;;  %6686 = vmatpush1.bf16.msra.mxu0 %v6685_v1  ;;  %6750 = vmatpush1.bf16.msra.mxu1 %v6749_v2 }
 0x581   :  { %v3285_v11 = vpop.f32.mrb[34].mxu0  ;;  %v3542_v12 = vpop.f32.mrb[34].mxu1 }
 0x582   :  { %v6689_v13 = vpack.c.bf16 %v3285_v11, %v3279_v7  ;;  %v6753_v14 = vpack.c.bf16 %v3542_v12, %v3536_v8  ;;  %v3287_v15 = vpop.f32.mrb[35].mxu0  ;;  %v3544_v16 = vpop.f32.mrb[35].mxu1 }
 0x583   :  { %v6687_v17 = vpack.c.bf16 %v3287_v15, %v3281_v9  ;;  %v6751_v18 = vpack.c.bf16 %v3544_v16, %v3538_v10 }
 0x585   :  { %v3291_v19 = vpop.f32.mrb[36].mxu0  ;;  %v3548_v20 = vpop.f32.mrb[36].mxu1  ;;  %6688 = vmatprep.subr.bf16.mxu0 %v6687_v17  ;;  %6752 = vmatprep.subr.bf16.mxu1 %v6751_v18 }
 0x586   :  { %v3293_v21 = vpop.f32.mrb[37].mxu0  ;;  %v3550_v22 = vpop.f32.mrb[37].mxu1  ;;  %6690 = vmatpush1.bf16.msra.mxu0 %v6689_v13  ;;  %6754 = vmatpush1.bf16.msra.mxu1 %v6753_v14 }
 0x589   :  { %v3297_v23 = vpop.f32.mrb[38].mxu0  ;;  %v3554_v24 = vpop.f32.mrb[38].mxu1 }
 0x58a   :  { %v6693_v25 = vpack.c.bf16 %v3297_v23, %v3291_v19  ;;  %v6757_v26 = vpack.c.bf16 %v3554_v24, %v3548_v20  ;;  %v3299_v27 = vpop.f32.mrb[39].mxu0  ;;  %v3556_v28 = vpop.f32.mrb[39].mxu1 }
 0x58b   :  { %v6691_v29 = vpack.c.bf16 %v3299_v27, %v3293_v21  ;;  %v6755_v30 = vpack.c.bf16 %v3556_v28, %v3550_v22 }
 0x58d   :  { %v3303_v31 = vpop.f32.mrb[40].mxu0  ;;  %v3560_v32 = vpop.f32.mrb[40].mxu1  ;;  %6692 = vmatprep.subr.bf16.mxu0 %v6691_v29  ;;  %6756 = vmatprep.subr.bf16.mxu1 %v6755_v30 }
 0x58e   :  { %v3305_v33 = vpop.f32.mrb[41].mxu0  ;;  %v3562_v34 = vpop.f32.mrb[41].mxu1  ;;  %6694 = vmatpush1.bf16.msra.mxu0 %v6693_v25  ;;  %6758 = vmatpush1.bf16.msra.mxu1 %v6757_v26 }
 0x591   :  { %v3309_v35 = vpop.f32.mrb[42].mxu0  ;;  %v3566_v36 = vpop.f32.mrb[42].mxu1 }
 0x592   :  { %v6697_v37 = vpack.c.bf16 %v3309_v35, %v3303_v31  ;;  %v6761_v38 = vpack.c.bf16 %v3566_v36, %v3560_v32  ;;  %v3311_v39 = vpop.f32.mrb[43].mxu0  ;;  %v3568_v40 = vpop.f32.mrb[43].mxu1  ;;  %v4402_v31 = vld [vmem:[%s10633_s7 + $0x8] sm:$0xff] }
 0x593   :  { %v6695_v41 = vpack.c.bf16 %v3311_v39, %v3305_v33  ;;  %v6759_v42 = vpack.c.bf16 %v3568_v40, %v3562_v34  ;;  %v4406_v32 = vld [vmem:[%s10633_s7 + $0x28] sm:$0xff]  ;;  %v4404_v33 = vld [vmem:[%s10633_s7 + $0x18] sm:$0xff] }
 0x594   :  { %v4408_v34 = vld [vmem:[%s10633_s7 + $0x38] sm:$0xff] }
 0x595   :  { %v3315_v43 = vpop.f32.mrb[44].mxu0  ;;  %v3572_v44 = vpop.f32.mrb[44].mxu1  ;;  %6696 = vmatprep.subr.bf16.mxu0 %v6695_v41  ;;  %6760 = vmatprep.subr.bf16.mxu1 %v6759_v42 }
 0x596   :  { %v3317_v45 = vpop.f32.mrb[45].mxu0  ;;  %v3574_v46 = vpop.f32.mrb[45].mxu1  ;;  %6698 = vmatpush1.bf16.msra.mxu0 %v6697_v37  ;;  %6762 = vmatpush1.bf16.msra.mxu1 %v6761_v38 }
 0x599   :  { %v3321_v47 = vpop.f32.mrb[46].mxu0  ;;  %v3578_v48 = vpop.f32.mrb[46].mxu1 }
 0x59a   :  { %v6701_v49 = vpack.c.bf16 %v3321_v47, %v3315_v43  ;;  %v6765_v50 = vpack.c.bf16 %v3578_v48, %v3572_v44  ;;  %v3323_v51 = vpop.f32.mrb[47].mxu0  ;;  %v3580_v52 = vpop.f32.mrb[47].mxu1  ;;  %v6783_v43 = vpack.c.bf16 %v4406_v32, %v4402_v31  ;;  %v6847_v44 = vpack.c.bf16 %v4408_v34, %v4404_v33  ;;  %v4403_v47 = vld [vmem:[%s10633_s7 + $0x10] sm:$0xff]  ;;  %v7275_v31 = vld [vmem:[%s10630_s1 + $0x20] sm:$0xff]  ;;  %v4438_v32 = vld [vmem:[%s10633_s7 + $0x128] sm:$0xff] }
 0x59b   :  { %v6699_v53 = vpack.c.bf16 %v3323_v51, %v3317_v45  ;;  %v6763_v54 = vpack.c.bf16 %v3580_v52, %v3574_v46  ;;  %v4401_v45 = vld [vmem:[%s10633_s7] sm:$0xff]  ;;  %v4407_v48 = vld [vmem:[%s10633_s7 + $0x30] sm:$0xff]  ;;  %v4412_v51 = vld [vmem:[%s10633_s7 + $0x58] sm:$0xff] }
 0x59c   :  { %v4405_v46 = vld [vmem:[%s10633_s7 + $0x20] sm:$0xff]  ;;  %v4416_v52 = vld [vmem:[%s10633_s7 + $0x78] sm:$0xff] }
 0x59d   :  { %v3327_v55 = vpop.f32.mrb[48].mxu0  ;;  %v3584_v56 = vpop.f32.mrb[48].mxu1  ;;  %6700 = vmatprep.subr.bf16.mxu0 %v6699_v53  ;;  %6764 = vmatprep.subr.bf16.mxu1 %v6763_v54  ;;  %v6785_v53 = vpack.c.bf16 %v4405_v46, %v4401_v45  ;;  %v6849_v54 = vpack.c.bf16 %v4407_v48, %v4403_v47  ;;  %v4436_v33 = vld [vmem:[%s10633_s7 + $0x118] sm:$0xff]  ;;  %v4442_v45 = vld [vmem:[%s10633_s7 + $0x148] sm:$0xff]  ;;  %v7278_v46 = vld [vmem:[%s10629_s0 + $0x30] sm:$0xff] }
 0x59e   :  { %v3329_v57 = vpop.f32.mrb[49].mxu0  ;;  %v3586_v58 = vpop.f32.mrb[49].mxu1  ;;  %6702 = vmatpush1.bf16.msra.mxu0 %v6701_v49  ;;  %6766 = vmatpush1.bf16.msra.mxu1 %v6765_v50  ;;  %v4410_v49 = vld [vmem:[%s10633_s7 + $0x48] sm:$0xff]  ;;  %v4440_v34 = vld [vmem:[%s10633_s7 + $0x138] sm:$0xff]  ;;  %v7279_v47 = vld [vmem:[%s10630_s1 + $0x30] sm:$0xff] }
 0x59f   :  { %v4414_v50 = vld [vmem:[%s10633_s7 + $0x68] sm:$0xff] }
 0x5a0   :  { %v4446_v48 = vld [vmem:[%s10633_s7 + $0x168] sm:$0xff] }
 0x5a1   :  { %v3333_v59 = vpop.f32.mrb[50].mxu0  ;;  %v3590_v60 = vpop.f32.mrb[50].mxu1 }
 0x5a2   :  { %v6705_v61 = vpack.c.bf16 %v3333_v59, %v3327_v55  ;;  %v6769_v62 = vpack.c.bf16 %v3590_v60, %v3584_v56  ;;  %v3335_v63 = vpop.f32.mrb[51].mxu0  ;;  %v3592_v0 = vpop.f32.mrb[51].mxu1  ;;  %v4409_v55 = vld [vmem:[%s10633_s7 + $0x40] sm:$0xff]  ;;  %v4411_v59 = vld [vmem:[%s10633_s7 + $0x50] sm:$0xff] }
 0x5a3   :  { %v6703_v1 = vpack.c.bf16 %v3335_v63, %v3329_v57  ;;  %v6767_v2 = vpack.c.bf16 %v3592_v0, %v3586_v58  ;;  %v4413_v56 = vld [vmem:[%s10633_s7 + $0x60] sm:$0xff]  ;;  %v6787_v57 = vpack.c.bf16 %v4414_v50, %v4410_v49  ;;  %v6851_v58 = vpack.c.bf16 %v4416_v52, %v4412_v51  ;;  %v4415_v60 = vld [vmem:[%s10633_s7 + $0x70] sm:$0xff]  ;;  %v4422_v0 = vld [vmem:[%s10633_s7 + $0xa8] sm:$0xff] }
 0x5a4   :  { %v7267_v63 = vld [vmem:[%s10630_s1] sm:$0xff]  ;;  %v4444_v49 = vld [vmem:[%s10633_s7 + $0x158] sm:$0xff]  ;;  %v7280_v51 = vld [vmem:[%s10629_s0 + $0x48] sm:$0xff] }
 0x5a5   :  { %v3339_v3 = vpop.f32.mrb[52].mxu0  ;;  %v3596_v4 = vpop.f32.mrb[52].mxu1  ;;  %6704 = vmatprep.subr.bf16.mxu0 %v6703_v1  ;;  %6768 = vmatprep.subr.bf16.mxu1 %v6767_v2  ;;  %v4420_v1 = vld [vmem:[%s10633_s7 + $0x98] sm:$0xff]  ;;  %v7281_v52 = vld [vmem:[%s10630_s1 + $0x48] sm:$0xff] }
 0x5a6   :  { %v3341_v5 = vpop.f32.mrb[53].mxu0  ;;  %v3598_v6 = vpop.f32.mrb[53].mxu1  ;;  %6706 = vmatpush1.bf16.msra.mxu0 %v6705_v61  ;;  %6770 = vmatpush1.bf16.msra.mxu1 %v6769_v62  ;;  %v4418_v61 = vld [vmem:[%s10633_s7 + $0x88] sm:$0xff]  ;;  %v7266_v62 = vld [vmem:[%s10629_s0] sm:$0xff]  ;;  %v4424_v2 = vld [vmem:[%s10633_s7 + $0xb8] sm:$0xff] }
 0x5a7   :  { %v4448_v50 = vld [vmem:[%s10633_s7 + $0x178] sm:$0xff] }
 0x5a9   :  { %v3345_v7 = vpop.f32.mrb[54].mxu0  ;;  %v3602_v8 = vpop.f32.mrb[54].mxu1 }
 0x5aa   :  { %v6709_v9 = vpack.c.bf16 %v3345_v7, %v3339_v3  ;;  %v6773_v10 = vpack.c.bf16 %v3602_v8, %v3596_v4  ;;  %v3347_v11 = vpop.f32.mrb[55].mxu0  ;;  %v3604_v12 = vpop.f32.mrb[55].mxu1  ;;  %v7268_v3 = vld [vmem:[%s10629_s0 + $0x18] sm:$0xff]  ;;  %v4417_v7 = vld [vmem:[%s10633_s7 + $0x80] sm:$0xff] }
 0x5ab   :  { %v6707_v13 = vpack.c.bf16 %v3347_v11, %v3341_v5  ;;  %v6771_v14 = vpack.c.bf16 %v3604_v12, %v3598_v6  ;;  %v7269_v4 = vld [vmem:[%s10630_s1 + $0x18] sm:$0xff]  ;;  %v6789_v5 = vpack.c.bf16 %v4413_v56, %v4409_v55  ;;  %v6853_v6 = vpack.c.bf16 %v4415_v60, %v4411_v59  ;;  %v4421_v8 = vld [vmem:[%s10633_s7 + $0xa0] sm:$0xff]  ;;  %v4419_v11 = vld [vmem:[%s10633_s7 + $0x90] sm:$0xff] }
 0x5ac   :  { %v4423_v12 = vld [vmem:[%s10633_s7 + $0xb0] sm:$0xff]  ;;  %v4441_v55 = vld [vmem:[%s10633_s7 + $0x140] sm:$0xff] }
 0x5ad   :  { %v3351_v15 = vpop.f32.mrb[56].mxu0  ;;  %v3608_v16 = vpop.f32.mrb[56].mxu1  ;;  %6708 = vmatprep.subr.bf16.mxu0 %v6707_v13  ;;  %6772 = vmatprep.subr.bf16.mxu1 %v6771_v14  ;;  %v4426_v13 = vld [vmem:[%s10633_s7 + $0xc8] sm:$0xff]  ;;  %v7270_v14 = vld [vmem:[%s10629_s0 + $0x10] sm:$0xff]  ;;  %v4445_v56 = vld [vmem:[%s10633_s7 + $0x160] sm:$0xff] }
 0x5ae   :  { %v3353_v17 = vpop.f32.mrb[57].mxu0  ;;  %v3610_v18 = vpop.f32.mrb[57].mxu1  ;;  %6710 = vmatpush1.bf16.msra.mxu0 %v6709_v9  ;;  %6774 = vmatpush1.bf16.msra.mxu1 %v6773_v10  ;;  %v6791_v9 = vpack.c.bf16 %v4422_v0, %v4418_v61  ;;  %v6855_v10 = vpack.c.bf16 %v4424_v2, %v4420_v1  ;;  %v4443_v59 = vld [vmem:[%s10633_s7 + $0x150] sm:$0xff]  ;;  %v4450_v61 = vld [vmem:[%s10633_s7 + $0x188] sm:$0xff]  ;;  %v4452_v1 = vld [vmem:[%s10633_s7 + $0x198] sm:$0xff] }
 0x5af   :  { %v4447_v60 = vld [vmem:[%s10633_s7 + $0x170] sm:$0xff]  ;;  %v4454_v0 = vld [vmem:[%s10633_s7 + $0x1a8] sm:$0xff]  ;;  %v4456_v2 = vld [vmem:[%s10633_s7 + $0x1b8] sm:$0xff] }
 0x5b1   :  { %v3357_v19 = vpop.f32.mrb[58].mxu0  ;;  %v3614_v20 = vpop.f32.mrb[58].mxu1 }
 0x5b2   :  { %v6713_v21 = vpack.c.bf16 %v3357_v19, %v3351_v15  ;;  %v6777_v22 = vpack.c.bf16 %v3614_v20, %v3608_v16  ;;  %v3359_v23 = vpop.f32.mrb[59].mxu0  ;;  %v3616_v24 = vpop.f32.mrb[59].mxu1  ;;  %v7271_v15 = vld [vmem:[%s10630_s1 + $0x10] sm:$0xff]  ;;  %v4430_v16 = vld [vmem:[%s10633_s7 + $0xe8] sm:$0xff] }
 0x5b3   :  { %v6711_v25 = vpack.c.bf16 %v3359_v23, %v3353_v17  ;;  %v6775_v26 = vpack.c.bf16 %v3616_v24, %v3610_v18  ;;  %v4428_v17 = vld [vmem:[%s10633_s7 + $0xd8] sm:$0xff]  ;;  %v7272_v19 = vld [vmem:[%s10629_s0 + $0x28] sm:$0xff]  ;;  %v4425_v23 = vld [vmem:[%s10633_s7 + $0xc0] sm:$0xff] }
 0x5b4   :  { %v4432_v18 = vld [vmem:[%s10633_s7 + $0xf8] sm:$0xff]  ;;  %v7273_v20 = vld [vmem:[%s10630_s1 + $0x28] sm:$0xff]  ;;  %v4429_v24 = vld [vmem:[%s10633_s7 + $0xe0] sm:$0xff] }
 0x5b5   :  { %v3363_v27 = vpop.f32.mrb[60].mxu0  ;;  %v3620_v28 = vpop.f32.mrb[60].mxu1  ;;  %6712 = vmatprep.subr.bf16.mxu0 %v6711_v25  ;;  %6776 = vmatprep.subr.bf16.mxu1 %v6775_v26  ;;  %v6795_v25 = vpack.c.bf16 %v4430_v16, %v4426_v13  ;;  %v6859_v26 = vpack.c.bf16 %v4432_v18, %v4428_v17  ;;  %v4458_v13 = vld [vmem:[%s10633_s7 + $0x1c8] sm:$0xff]  ;;  %v4460_v17 = vld [vmem:[%s10633_s7 + $0x1d8] sm:$0xff] }
 0x5b6   :  { %v3365_v29 = vpop.f32.mrb[61].mxu0  ;;  %v3622_v30 = vpop.f32.mrb[61].mxu1  ;;  %6714 = vmatpush1.bf16.msra.mxu0 %v6713_v21  ;;  %6778 = vmatpush1.bf16.msra.mxu1 %v6777_v22  ;;  %v6793_v21 = vpack.c.bf16 %v4421_v8, %v4417_v7  ;;  %v6857_v22 = vpack.c.bf16 %v4423_v12, %v4419_v11  ;;  %v4449_v7 = vld [vmem:[%s10633_s7 + $0x180] sm:$0xff]  ;;  %v4451_v11 = vld [vmem:[%s10633_s7 + $0x190] sm:$0xff]  ;;  %v4462_v16 = vld [vmem:[%s10633_s7 + $0x1e8] sm:$0xff] }
 0x5b7   :  { %v4453_v8 = vld [vmem:[%s10633_s7 + $0x1a0] sm:$0xff]  ;;  %v4455_v12 = vld [vmem:[%s10633_s7 + $0x1b0] sm:$0xff]  ;;  %v4464_v18 = vld [vmem:[%s10633_s7 + $0x1f8] sm:$0xff] }
 0x5b9   :  { %v3369_v35 = vpop.f32.mrb[62].mxu0  ;;  %v3626_v36 = vpop.f32.mrb[62].mxu1 }
 0x5ba   :  { %v6717_v37 = vpack.c.bf16 %v3369_v35, %v3363_v27  ;;  %v6781_v38 = vpack.c.bf16 %v3626_v36, %v3620_v28  ;;  %v3371_v39 = vpop.f32.mrb[63].mxu0  ;;  %v3628_v40 = vpop.f32.mrb[63].mxu1  ;;  %v4427_v27 = vld [vmem:[%s10633_s7 + $0xd0] sm:$0xff]  ;;  %v7276_v35 = vld [vmem:[%s10629_s0 + $0x38] sm:$0xff] }
 0x5bb   :  { %v6715_v41 = vpack.c.bf16 %v3371_v39, %v3365_v29  ;;  %v6779_v42 = vpack.c.bf16 %v3628_v40, %v3622_v30  ;;  %v4431_v28 = vld [vmem:[%s10633_s7 + $0xf0] sm:$0xff]  ;;  %v4434_v29 = vld [vmem:[%s10633_s7 + $0x108] sm:$0xff]  ;;  %v7274_v30 = vld [vmem:[%s10629_s0 + $0x20] sm:$0xff] }
 0x5bc   :  { %v7277_v36 = vld [vmem:[%s10630_s1 + $0x38] sm:$0xff]  ;;  %v4433_v39 = vld [vmem:[%s10633_s7 + $0x100] sm:$0xff] }
 0x5bd   :  { %6716 = vmatprep.subr.bf16.mxu0 %v6715_v41  ;;  %6780 = vmatprep.subr.bf16.mxu1 %v6779_v42  ;;  %v4437_v40 = vld [vmem:[%s10633_s7 + $0x120] sm:$0xff]  ;;  %v6799_v41 = vpack.c.bf16 %v4438_v32, %v4434_v29  ;;  %v6863_v42 = vpack.c.bf16 %v4440_v34, %v4436_v33  ;;  %v4466_v29 = vld [vmem:[%s10633_s7 + $0x208] sm:$0xff]  ;;  %v4468_v33 = vld [vmem:[%s10633_s7 + $0x218] sm:$0xff] }
 0x5be   :  { %6718 = vmatpush1.bf16.msra.mxu0 %v6717_v37  ;;  %6782 = vmatpush1.bf16.msra.mxu1 %v6781_v38  ;;  %v6797_v37 = vpack.c.bf16 %v4429_v24, %v4425_v23  ;;  %v6861_v38 = vpack.c.bf16 %v4431_v28, %v4427_v27  ;;  %v4457_v23 = vld [vmem:[%s10633_s7 + $0x1c0] sm:$0xff]  ;;  %v4459_v27 = vld [vmem:[%s10633_s7 + $0x1d0] sm:$0xff]  ;;  %v4470_v32 = vld [vmem:[%s10633_s7 + $0x228] sm:$0xff] }
 0x5bf   :  { %6784 = vmatprep.subr.bf16.mxu0 %v6783_v43  ;;  %6848 = vmatprep.subr.bf16.mxu1 %v6847_v44  ;;  %v4435_v43 = vld [vmem:[%s10633_s7 + $0x110] sm:$0xff]  ;;  %v4461_v24 = vld [vmem:[%s10633_s7 + $0x1e0] sm:$0xff]  ;;  %v4472_v34 = vld [vmem:[%s10633_s7 + $0x238] sm:$0xff] }
 0x5c0   :  { %v4439_v44 = vld [vmem:[%s10633_s7 + $0x130] sm:$0xff] }
 0x5c1   :  { %3696 = vmatmul.mubr.f32.vlgmr.msra.gmra.mrb[64].mxu0 %v7266_v62  ;;  %4017 = vmatmul.mubr.f32.vlgmr.msra.gmra.mrb[64].mxu1 %v7267_v63  ;;  %v7282_v62 = vld [vmem:[%s10629_s0 + $0x40] sm:$0xff]  ;;  %v4463_v28 = vld [vmem:[%s10633_s7 + $0x1f0] sm:$0xff] }
 0x5c2   :  { %3701 = vmatprep.mubr.f32.mxu0 %v7268_v3  ;;  %4022 = vmatprep.mubr.f32.mxu1 %v7269_v4  ;;  %v7283_v63 = vld [vmem:[%s10630_s1 + $0x40] sm:$0xff]  ;;  %v7284_v3 = vld [vmem:[%s10629_s0 + $0x58] sm:$0xff] }
 0x5c3   :  { %6786 = vmatpush1.bf16.msra.mxu0 %v6785_v53  ;;  %6850 = vmatpush1.bf16.msra.mxu1 %v6849_v54  ;;  %v6801_v53 = vpack.c.bf16 %v4437_v40, %v4433_v39  ;;  %v6865_v54 = vpack.c.bf16 %v4439_v44, %v4435_v43  ;;  %v7285_v4 = vld [vmem:[%s10630_s1 + $0x58] sm:$0xff]  ;;  %v4465_v39 = vld [vmem:[%s10633_s7 + $0x200] sm:$0xff]  ;;  %v4467_v43 = vld [vmem:[%s10633_s7 + $0x210] sm:$0xff] }
 0x5c4   :  { %6788 = vmatprep.subr.bf16.mxu0 %v6787_v57  ;;  %6852 = vmatprep.subr.bf16.mxu1 %v6851_v58  ;;  %v6803_v57 = vpack.c.bf16 %v4446_v48, %v4442_v45  ;;  %v6867_v58 = vpack.c.bf16 %v4448_v50, %v4444_v49  ;;  %v4469_v40 = vld [vmem:[%s10633_s7 + $0x220] sm:$0xff]  ;;  %v4471_v44 = vld [vmem:[%s10633_s7 + $0x230] sm:$0xff]  ;;  %v4474_v45 = vld [vmem:[%s10633_s7 + $0x248] sm:$0xff] }
 0x5c5   :  { %3702 = vmatmul.mubr.f32.gmra.mrb[66].mxu0 %v7270_v14  ;;  %4023 = vmatmul.mubr.f32.gmra.mrb[66].mxu1 %v7271_v15  ;;  %v7286_v14 = vld [vmem:[%s10629_s0 + $0x50] sm:$0xff]  ;;  %v4478_v48 = vld [vmem:[%s10633_s7 + $0x268] sm:$0xff]  ;;  %v4476_v49 = vld [vmem:[%s10633_s7 + $0x258] sm:$0xff] }
 0x5c6   :  { %3707 = vmatprep.mubr.f32.mxu0 %v7272_v19  ;;  %4028 = vmatprep.mubr.f32.mxu1 %v7273_v20  ;;  %v7287_v15 = vld [vmem:[%s10630_s1 + $0x50] sm:$0xff]  ;;  %v7288_v19 = vld [vmem:[%s10629_s0 + $0x68] sm:$0xff]  ;;  %v4480_v50 = vld [vmem:[%s10633_s7 + $0x278] sm:$0xff] }
 0x5c7   :  { %6790 = vmatpush1.bf16.msra.mxu0 %v6789_v5  ;;  %6854 = vmatpush1.bf16.msra.mxu1 %v6853_v6  ;;  %v6805_v5 = vpack.c.bf16 %v4445_v56, %v4441_v55  ;;  %v6869_v6 = vpack.c.bf16 %v4447_v60, %v4443_v59  ;;  %v7289_v20 = vld [vmem:[%s10630_s1 + $0x68] sm:$0xff]  ;;  %v4473_v55 = vld [vmem:[%s10633_s7 + $0x240] sm:$0xff]  ;;  %v4475_v59 = vld [vmem:[%s10633_s7 + $0x250] sm:$0xff] }
 0x5c8   :  { %6792 = vmatprep.subr.bf16.mxu0 %v6791_v9  ;;  %6856 = vmatprep.subr.bf16.mxu1 %v6855_v10  ;;  %v6807_v9 = vpack.c.bf16 %v4454_v0, %v4450_v61  ;;  %v6871_v10 = vpack.c.bf16 %v4456_v2, %v4452_v1  ;;  %v4477_v56 = vld [vmem:[%s10633_s7 + $0x260] sm:$0xff]  ;;  %v4479_v60 = vld [vmem:[%s10633_s7 + $0x270] sm:$0xff]  ;;  %v4482_v61 = vld [vmem:[%s10633_s7 + $0x288] sm:$0xff] }
 0x5c9   :  { %3708 = vmatmul.mubr.f32.gmra.mrb[68].mxu0 %v7274_v30  ;;  %4029 = vmatmul.mubr.f32.gmra.mrb[68].mxu1 %v7275_v31  ;;  %v7290_v30 = vld [vmem:[%s10629_s0 + $0x60] sm:$0xff]  ;;  %v4486_v0 = vld [vmem:[%s10633_s7 + $0x2a8] sm:$0xff]  ;;  %v4484_v1 = vld [vmem:[%s10633_s7 + $0x298] sm:$0xff] }
 0x5ca   :  { %3713 = vmatprep.mubr.f32.mxu0 %v7276_v35  ;;  %4034 = vmatprep.mubr.f32.mxu1 %v7277_v36  ;;  %v7291_v31 = vld [vmem:[%s10630_s1 + $0x60] sm:$0xff]  ;;  %v7292_v35 = vld [vmem:[%s10629_s0 + $0x78] sm:$0xff] }
 0x5cb   :  { %6794 = vmatpush1.bf16.msra.mxu0 %v6793_v21  ;;  %6858 = vmatpush1.bf16.msra.mxu1 %v6857_v22  ;;  %v6809_v21 = vpack.c.bf16 %v4453_v8, %v4449_v7  ;;  %v6873_v22 = vpack.c.bf16 %v4455_v12, %v4451_v11  ;;  %v7293_v36 = vld [vmem:[%s10630_s1 + $0x78] sm:$0xff]  ;;  %v4481_v7 = vld [vmem:[%s10633_s7 + $0x280] sm:$0xff]  ;;  %v4483_v11 = vld [vmem:[%s10633_s7 + $0x290] sm:$0xff] }
 0x5cc   :  { %6796 = vmatprep.subr.bf16.mxu0 %v6795_v25  ;;  %6860 = vmatprep.subr.bf16.mxu1 %v6859_v26  ;;  %v6811_v25 = vpack.c.bf16 %v4462_v16, %v4458_v13  ;;  %v6875_v26 = vpack.c.bf16 %v4464_v18, %v4460_v17  ;;  %v4488_v2 = vld [vmem:[%s10633_s7 + $0x2b8] sm:$0xff]  ;;  %v4485_v8 = vld [vmem:[%s10633_s7 + $0x2a0] sm:$0xff]  ;;  %v4487_v12 = vld [vmem:[%s10633_s7 + $0x2b0] sm:$0xff] }
 0x5cd   :  { %3714 = vmatmul.mubr.f32.gmra.mrb[70].mxu0 %v7278_v46  ;;  %4035 = vmatmul.mubr.f32.gmra.mrb[70].mxu1 %v7279_v47  ;;  %v7294_v46 = vld [vmem:[%s10629_s0 + $0x70] sm:$0xff]  ;;  %v4490_v13 = vld [vmem:[%s10633_s7 + $0x2c8] sm:$0xff]  ;;  %v4492_v17 = vld [vmem:[%s10633_s7 + $0x2d8] sm:$0xff] }
 0x5ce   :  { %3719 = vmatprep.mubr.f32.mxu0 %v7280_v51  ;;  %4040 = vmatprep.mubr.f32.mxu1 %v7281_v52  ;;  %v7295_v47 = vld [vmem:[%s10630_s1 + $0x70] sm:$0xff]  ;;  %v7296_v51 = vld [vmem:[%s10629_s0 + $0x88] sm:$0xff]  ;;  %v4496_v18 = vld [vmem:[%s10633_s7 + $0x2f8] sm:$0xff] }
 0x5cf   :  { %6798 = vmatpush1.bf16.msra.mxu0 %v6797_v37  ;;  %6862 = vmatpush1.bf16.msra.mxu1 %v6861_v38  ;;  %v6813_v37 = vpack.c.bf16 %v4461_v24, %v4457_v23  ;;  %v6877_v38 = vpack.c.bf16 %v4463_v28, %v4459_v27  ;;  %v7297_v52 = vld [vmem:[%s10630_s1 + $0x88] sm:$0xff]  ;;  %v4489_v23 = vld [vmem:[%s10633_s7 + $0x2c0] sm:$0xff]  ;;  %v4491_v27 = vld [vmem:[%s10633_s7 + $0x2d0] sm:$0xff] }
 0x5d0   :  { %6800 = vmatprep.subr.bf16.mxu0 %v6799_v41  ;;  %6864 = vmatprep.subr.bf16.mxu1 %v6863_v42  ;;  %v6815_v41 = vpack.c.bf16 %v4470_v32, %v4466_v29  ;;  %v6879_v42 = vpack.c.bf16 %v4472_v34, %v4468_v33  ;;  %v4494_v16 = vld [vmem:[%s10633_s7 + $0x2e8] sm:$0xff]  ;;  %v4493_v24 = vld [vmem:[%s10633_s7 + $0x2e0] sm:$0xff]  ;;  %v4495_v28 = vld [vmem:[%s10633_s7 + $0x2f0] sm:$0xff] }
 0x5d1   :  { %3720 = vmatmul.mubr.f32.gmra.mrb[72].mxu0 %v7282_v62  ;;  %4041 = vmatmul.mubr.f32.gmra.mrb[72].mxu1 %v7283_v63  ;;  %v7298_v62 = vld [vmem:[%s10629_s0 + $0x80] sm:$0xff]  ;;  %v4498_v29 = vld [vmem:[%s10633_s7 + $0x308] sm:$0xff]  ;;  %v4500_v33 = vld [vmem:[%s10633_s7 + $0x318] sm:$0xff] }
 0x5d2   :  { %3725 = vmatprep.mubr.f32.mxu0 %v7284_v3  ;;  %4046 = vmatprep.mubr.f32.mxu1 %v7285_v4  ;;  %v7299_v63 = vld [vmem:[%s10630_s1 + $0x80] sm:$0xff]  ;;  %v7300_v3 = vld [vmem:[%s10629_s0 + $0x98] sm:$0xff]  ;;  %v4502_v32 = vld [vmem:[%s10633_s7 + $0x328] sm:$0xff] }
 0x5d3   :  { %6802 = vmatpush1.bf16.msra.mxu0 %v6801_v53  ;;  %6866 = vmatpush1.bf16.msra.mxu1 %v6865_v54  ;;  %v6817_v53 = vpack.c.bf16 %v4469_v40, %v4465_v39  ;;  %v6881_v54 = vpack.c.bf16 %v4471_v44, %v4467_v43  ;;  %v7301_v4 = vld [vmem:[%s10630_s1 + $0x98] sm:$0xff]  ;;  %v4497_v39 = vld [vmem:[%s10633_s7 + $0x300] sm:$0xff]  ;;  %v4499_v43 = vld [vmem:[%s10633_s7 + $0x310] sm:$0xff] }
 0x5d4   :  { %6804 = vmatprep.subr.bf16.mxu0 %v6803_v57  ;;  %6868 = vmatprep.subr.bf16.mxu1 %v6867_v58  ;;  %v6819_v57 = vpack.c.bf16 %v4478_v48, %v4474_v45  ;;  %v6883_v58 = vpack.c.bf16 %v4480_v50, %v4476_v49  ;;  %v4504_v34 = vld [vmem:[%s10633_s7 + $0x338] sm:$0xff]  ;;  %v4501_v40 = vld [vmem:[%s10633_s7 + $0x320] sm:$0xff]  ;;  %v4503_v44 = vld [vmem:[%s10633_s7 + $0x330] sm:$0xff] }
 0x5d5   :  { %3726 = vmatmul.mubr.f32.gmra.mrb[74].mxu0 %v7286_v14  ;;  %4047 = vmatmul.mubr.f32.gmra.mrb[74].mxu1 %v7287_v15  ;;  %v7302_v14 = vld [vmem:[%s10629_s0 + $0x90] sm:$0xff]  ;;  %v4506_v45 = vld [vmem:[%s10633_s7 + $0x348] sm:$0xff]  ;;  %v4508_v49 = vld [vmem:[%s10633_s7 + $0x358] sm:$0xff] }
 0x5d6   :  { %3731 = vmatprep.mubr.f32.mxu0 %v7288_v19  ;;  %4052 = vmatprep.mubr.f32.mxu1 %v7289_v20  ;;  %v7303_v15 = vld [vmem:[%s10630_s1 + $0x90] sm:$0xff]  ;;  %v7304_v19 = vld [vmem:[%s10629_s0 + $0xa8] sm:$0xff]  ;;  %v4512_v50 = vld [vmem:[%s10633_s7 + $0x378] sm:$0xff] }
 0x5d7   :  { %6806 = vmatpush1.bf16.msra.mxu0 %v6805_v5  ;;  %6870 = vmatpush1.bf16.msra.mxu1 %v6869_v6  ;;  %v6821_v5 = vpack.c.bf16 %v4477_v56, %v4473_v55  ;;  %v6885_v6 = vpack.c.bf16 %v4479_v60, %v4475_v59  ;;  %v7305_v20 = vld [vmem:[%s10630_s1 + $0xa8] sm:$0xff]  ;;  %v4505_v55 = vld [vmem:[%s10633_s7 + $0x340] sm:$0xff]  ;;  %v4507_v59 = vld [vmem:[%s10633_s7 + $0x350] sm:$0xff] }
 0x5d8   :  { %6808 = vmatprep.subr.bf16.mxu0 %v6807_v9  ;;  %6872 = vmatprep.subr.bf16.mxu1 %v6871_v10  ;;  %v6823_v9 = vpack.c.bf16 %v4486_v0, %v4482_v61  ;;  %v6887_v10 = vpack.c.bf16 %v4488_v2, %v4484_v1  ;;  %v4510_v48 = vld [vmem:[%s10633_s7 + $0x368] sm:$0xff]  ;;  %v4509_v56 = vld [vmem:[%s10633_s7 + $0x360] sm:$0xff]  ;;  %v4511_v60 = vld [vmem:[%s10633_s7 + $0x370] sm:$0xff] }
 0x5d9   :  { %3732 = vmatmul.mubr.f32.gmra.mrb[76].mxu0 %v7290_v30  ;;  %4053 = vmatmul.mubr.f32.gmra.mrb[76].mxu1 %v7291_v31  ;;  %v7306_v30 = vld [vmem:[%s10629_s0 + $0xa0] sm:$0xff]  ;;  %v4514_v61 = vld [vmem:[%s10633_s7 + $0x388] sm:$0xff]  ;;  %v4516_v1 = vld [vmem:[%s10633_s7 + $0x398] sm:$0xff] }
 0x5da   :  { %3737 = vmatprep.mubr.f32.mxu0 %v7292_v35  ;;  %4058 = vmatprep.mubr.f32.mxu1 %v7293_v36  ;;  %v7307_v31 = vld [vmem:[%s10630_s1 + $0xa0] sm:$0xff]  ;;  %v7308_v35 = vld [vmem:[%s10629_s0 + $0xb8] sm:$0xff]  ;;  %v4518_v0 = vld [vmem:[%s10633_s7 + $0x3a8] sm:$0xff] }
 0x5db   :  { %6810 = vmatpush1.bf16.msra.mxu0 %v6809_v21  ;;  %6874 = vmatpush1.bf16.msra.mxu1 %v6873_v22  ;;  %v6825_v21 = vpack.c.bf16 %v4485_v8, %v4481_v7  ;;  %v6889_v22 = vpack.c.bf16 %v4487_v12, %v4483_v11  ;;  %v7309_v36 = vld [vmem:[%s10630_s1 + $0xb8] sm:$0xff]  ;;  %v4513_v7 = vld [vmem:[%s10633_s7 + $0x380] sm:$0xff]  ;;  %v6839_v8 = vpack.c.bf16 %v4518_v0, %v4514_v61  ;;  %v4515_v11 = vld [vmem:[%s10633_s7 + $0x390] sm:$0xff] }
 0x5dc   :  { %6812 = vmatprep.subr.bf16.mxu0 %v6811_v25  ;;  %6876 = vmatprep.subr.bf16.mxu1 %v6875_v26  ;;  %v6827_v25 = vpack.c.bf16 %v4494_v16, %v4490_v13  ;;  %v6891_v26 = vpack.c.bf16 %v4496_v18, %v4492_v17  ;;  %v4520_v2 = vld [vmem:[%s10633_s7 + $0x3b8] sm:$0xff]  ;;  %v4519_v12 = vld [vmem:[%s10633_s7 + $0x3b0] sm:$0xff]  ;;  %v7321_v16 = vld [vmem:[%s10630_s1 + $0xe8] sm:$0xff] }
 0x5dd   :  { %3738 = vmatmul.mubr.f32.gmra.mrb[78].mxu0 %v7294_v46  ;;  %4059 = vmatmul.mubr.f32.gmra.mrb[78].mxu1 %v7295_v47  ;;  %v7310_v46 = vld [vmem:[%s10629_s0 + $0xb0] sm:$0xff]  ;;  %v6905_v18 = vpack.c.bf16 %v4519_v12, %v4515_v11 }
 0x5de   :  { %3743 = vmatprep.mubr.f32.mxu0 %v7296_v51  ;;  %4064 = vmatprep.mubr.f32.mxu1 %v7297_v52  ;;  %v7311_v47 = vld [vmem:[%s10630_s1 + $0xb0] sm:$0xff]  ;;  %v7312_v51 = vld [vmem:[%s10629_s0 + $0xc8] sm:$0xff] }
 0x5df   :  { %6814 = vmatpush1.bf16.msra.mxu0 %v6813_v37  ;;  %6878 = vmatpush1.bf16.msra.mxu1 %v6877_v38  ;;  %v6829_v37 = vpack.c.bf16 %v4493_v24, %v4489_v23  ;;  %v6893_v38 = vpack.c.bf16 %v4495_v28, %v4491_v27  ;;  %v7313_v52 = vld [vmem:[%s10630_s1 + $0xc8] sm:$0xff]  ;;  %v7318_v13 = vld [vmem:[%s10629_s0 + $0xd0] sm:$0xff]  ;;  %v7330_v27 = vld [vmem:[%s10629_s0 + $0x100] sm:$0xff] }
 0x5e0   :  { %6816 = vmatprep.subr.bf16.mxu0 %v6815_v41  ;;  %6880 = vmatprep.subr.bf16.mxu1 %v6879_v42  ;;  %v6831_v41 = vpack.c.bf16 %v4502_v32, %v4498_v29  ;;  %v6895_v42 = vpack.c.bf16 %v4504_v34, %v4500_v33  ;;  %v7326_v23 = vld [vmem:[%s10629_s0 + $0xf0] sm:$0xff]  ;;  %v7331_v28 = vld [vmem:[%s10630_s1 + $0x100] sm:$0xff]  ;;  %v7332_v29 = vld [vmem:[%s10629_s0 + $0x118] sm:$0xff] }
 0x5e1   :  { %3744 = vmatmul.mubr.f32.gmra.mrb[80].mxu0 %v7298_v62  ;;  %4065 = vmatmul.mubr.f32.gmra.mrb[80].mxu1 %v7299_v63  ;;  %v7314_v62 = vld [vmem:[%s10629_s0 + $0xc0] sm:$0xff]  ;;  %v7327_v24 = vld [vmem:[%s10630_s1 + $0xf0] sm:$0xff]  ;;  %v7336_v33 = vld [vmem:[%s10629_s0 + $0x128] sm:$0xff] }
 0x5e2   :  { %3749 = vmatprep.mubr.f32.mxu0 %v7300_v3  ;;  %4070 = vmatprep.mubr.f32.mxu1 %v7301_v4  ;;  %v7315_v63 = vld [vmem:[%s10630_s1 + $0xc0] sm:$0xff]  ;;  %v7316_v3 = vld [vmem:[%s10629_s0 + $0xd8] sm:$0xff]  ;;  %v7335_v32 = vld [vmem:[%s10630_s1 + $0x110] sm:$0xff] }
 0x5e3   :  { %6818 = vmatpush1.bf16.msra.mxu0 %v6817_v53  ;;  %6882 = vmatpush1.bf16.msra.mxu1 %v6881_v54  ;;  %v6833_v53 = vpack.c.bf16 %v4501_v40, %v4497_v39  ;;  %v6897_v54 = vpack.c.bf16 %v4503_v44, %v4499_v43  ;;  %v7317_v4 = vld [vmem:[%s10630_s1 + $0xd8] sm:$0xff]  ;;  %v7337_v34 = vld [vmem:[%s10630_s1 + $0x128] sm:$0xff]  ;;  %v7342_v39 = vld [vmem:[%s10629_s0 + $0x130] sm:$0xff] }
 0x5e4   :  { %6820 = vmatprep.subr.bf16.mxu0 %v6819_v57  ;;  %6884 = vmatprep.subr.bf16.mxu1 %v6883_v58  ;;  %v6835_v57 = vpack.c.bf16 %v4510_v48, %v4506_v45  ;;  %v6899_v58 = vpack.c.bf16 %v4512_v50, %v4508_v49  ;;  %v7343_v40 = vld [vmem:[%s10630_s1 + $0x130] sm:$0xff]  ;;  %v7346_v43 = vld [vmem:[%s10629_s0 + $0x140] sm:$0xff]  ;;  %v7348_v45 = vld [vmem:[%s10629_s0 + $0x158] sm:$0xff] }
 0x5e5   :  { %3750 = vmatmul.mubr.f32.gmra.mrb[82].mxu0 %v7302_v14  ;;  %4071 = vmatmul.mubr.f32.gmra.mrb[82].mxu1 %v7303_v15  ;;  %v7319_v14 = vld [vmem:[%s10630_s1 + $0xd0] sm:$0xff]  ;;  %v7320_v15 = vld [vmem:[%s10629_s0 + $0xe8] sm:$0xff]  ;;  %v7347_v44 = vld [vmem:[%s10630_s1 + $0x140] sm:$0xff] }
 0x5e6   :  { %3755 = vmatprep.mubr.f32.mxu0 %v7304_v19  ;;  %4076 = vmatprep.mubr.f32.mxu1 %v7305_v20  ;;  %v7322_v19 = vld [vmem:[%s10629_s0 + $0xe0] sm:$0xff]  ;;  %v7351_v48 = vld [vmem:[%s10630_s1 + $0x150] sm:$0xff]  ;;  %v7352_v49 = vld [vmem:[%s10629_s0 + $0x168] sm:$0xff] }
 0x5e7   :  { %6822 = vmatpush1.bf16.msra.mxu0 %v6821_v5  ;;  %6886 = vmatpush1.bf16.msra.mxu1 %v6885_v6  ;;  %v6837_v5 = vpack.c.bf16 %v4509_v56, %v4505_v55  ;;  %v6901_v6 = vpack.c.bf16 %v4511_v60, %v4507_v59  ;;  %v7323_v20 = vld [vmem:[%s10630_s1 + $0xe0] sm:$0xff]  ;;  %v7353_v50 = vld [vmem:[%s10630_s1 + $0x168] sm:$0xff]  ;;  %v4528_v55 = vld [vmem:[%s10633_s7 + $0x3f8] sm:$0xff] }
 0x5e8   :  { %6824 = vmatprep.subr.bf16.mxu0 %v6823_v9  ;;  %6888 = vmatprep.subr.bf16.mxu1 %v6887_v10  ;;  %v6903_v9 = vpack.c.bf16 %v4520_v2, %v4516_v1  ;;  %v4517_v10 = vld [vmem:[%s10633_s7 + $0x3a0] sm:$0xff]  ;;  %v4523_v60 = vld [vmem:[%s10633_s7 + $0x3d0] sm:$0xff]  ;;  %v7356_v1 = vld [vmem:[%s10629_s0 + $0x178] sm:$0xff] }
 0x5e9   :  { %3756 = vmatmul.mubr.f32.gmra.mrb[84].mxu0 %v7306_v30  ;;  %4077 = vmatmul.mubr.f32.gmra.mrb[84].mxu1 %v7307_v31  ;;  %v6841_v17 = vpack.c.bf16 %v4517_v10, %v4513_v7  ;;  %v7333_v30 = vld [vmem:[%s10630_s1 + $0x118] sm:$0xff]  ;;  %v7334_v31 = vld [vmem:[%s10629_s0 + $0x110] sm:$0xff]  ;;  %v4521_v56 = vld [vmem:[%s10633_s7 + $0x3c0] sm:$0xff] }
 0x5ea   :  { %3761 = vmatprep.mubr.f32.mxu0 %v7308_v35  ;;  %4082 = vmatprep.mubr.f32.mxu1 %v7309_v36  ;;  %v7338_v35 = vld [vmem:[%s10629_s0 + $0x120] sm:$0xff]  ;;  %v4527_v61 = vld [vmem:[%s10633_s7 + $0x3f0] sm:$0xff]  ;;  %v7357_v2 = vld [vmem:[%s10630_s1 + $0x178] sm:$0xff] }
 0x5eb   :  { %6826 = vmatpush1.bf16.msra.mxu0 %v6825_v21  ;;  %6890 = vmatpush1.bf16.msra.mxu1 %v6889_v22  ;;  %v7324_v21 = vld [vmem:[%s10629_s0 + $0xf8] sm:$0xff]  ;;  %v7339_v36 = vld [vmem:[%s10630_s1 + $0x120] sm:$0xff]  ;;  %v6909_v0 = vpack.c.bf16 %v4527_v61, %v4523_v60  ;;  %v7366_v11 = vld [vmem:[%s10629_s0 + $0x190] sm:$0xff] }
 0x5ec   :  { %6828 = vmatprep.subr.bf16.mxu0 %v6827_v25  ;;  %6892 = vmatprep.subr.bf16.mxu1 %v6891_v26  ;;  %v7325_v22 = vld [vmem:[%s10630_s1 + $0xf8] sm:$0xff]  ;;  %v7328_v25 = vld [vmem:[%s10629_s0 + $0x108] sm:$0xff]  ;;  %v7362_v7 = vld [vmem:[%s10629_s0 + $0x180] sm:$0xff] }
 0x5ed   :  { %3762 = vmatmul.mubr.f32.gmra.mrb[86].mxu0 %v7310_v46  ;;  %4083 = vmatmul.mubr.f32.gmra.mrb[86].mxu1 %v7311_v47  ;;  %v7329_v26 = vld [vmem:[%s10630_s1 + $0x108] sm:$0xff]  ;;  %v7349_v46 = vld [vmem:[%s10630_s1 + $0x158] sm:$0xff]  ;;  %v7350_v47 = vld [vmem:[%s10629_s0 + $0x150] sm:$0xff] }
 0x5ee   :  { %3767 = vmatprep.mubr.f32.mxu0 %v7312_v51  ;;  %4088 = vmatprep.mubr.f32.mxu1 %v7313_v52  ;;  %v4522_v51 = vld [vmem:[%s10633_s7 + $0x3c8] sm:$0xff]  ;;  %v7365_v10 = vld [vmem:[%s10630_s1 + $0x198] sm:$0xff]  ;;  %v7367_v12 = vld [vmem:[%s10630_s1 + $0x190] sm:$0xff] }
 0x5ef   :  { %6830 = vmatpush1.bf16.msra.mxu0 %v6829_v37  ;;  %6894 = vmatpush1.bf16.msra.mxu1 %v6893_v38  ;;  %v7340_v37 = vld [vmem:[%s10629_s0 + $0x138] sm:$0xff]  ;;  %v4526_v52 = vld [vmem:[%s10633_s7 + $0x3e8] sm:$0xff] }
 0x5f0   :  { %6832 = vmatprep.subr.bf16.mxu0 %v6831_v41  ;;  %6896 = vmatprep.subr.bf16.mxu1 %v6895_v42  ;;  %v7341_v38 = vld [vmem:[%s10630_s1 + $0x138] sm:$0xff]  ;;  %v7344_v41 = vld [vmem:[%s10629_s0 + $0x148] sm:$0xff] }
 0x5f1   :  { %3768 = vmatmul.mubr.f32.gmra.mrb[88].mxu0 %v7314_v62  ;;  %4089 = vmatmul.mubr.f32.gmra.mrb[88].mxu1 %v7315_v63  ;;  %v7345_v42 = vld [vmem:[%s10630_s1 + $0x148] sm:$0xff]  ;;  %v7354_v62 = vld [vmem:[%s10629_s0 + $0x160] sm:$0xff] }
 0x5f2   :  { %3773 = vmatprep.mubr.f32.mxu0 %v7316_v3  ;;  %4094 = vmatprep.mubr.f32.mxu1 %v7317_v4  ;;  %v7355_v63 = vld [vmem:[%s10630_s1 + $0x160] sm:$0xff]  ;;  %v7358_v3 = vld [vmem:[%s10629_s0 + $0x170] sm:$0xff] }
 0x5f3   :  { %6834 = vmatpush1.bf16.msra.mxu0 %v6833_v53  ;;  %6898 = vmatpush1.bf16.msra.mxu1 %v6897_v54  ;;  %v4524_v53 = vld [vmem:[%s10633_s7 + $0x3d8] sm:$0xff]  ;;  %v6843_v54 = vpack.c.bf16 %v4526_v52, %v4522_v51  ;;  %v7359_v4 = vld [vmem:[%s10630_s1 + $0x170] sm:$0xff] }
 0x5f4   :  { %6836 = vmatprep.subr.bf16.mxu0 %v6835_v57  ;;  %6900 = vmatprep.subr.bf16.mxu1 %v6899_v58  ;;  %v4525_v57 = vld [vmem:[%s10633_s7 + $0x3e0] sm:$0xff]  ;;  %v6907_v58 = vpack.c.bf16 %v4528_v55, %v4524_v53 }
 0x5f5   :  { %3774 = vmatmul.mubr.f32.gmra.mrb[90].mxu0 %v7318_v13  ;;  %4095 = vmatmul.mubr.f32.gmra.mrb[90].mxu1 %v7319_v14  ;;  %v6845_v59 = vpack.c.bf16 %v4525_v57, %v4521_v56  ;;  %v7368_v13 = vld [vmem:[%s10629_s0 + $0x1a8] sm:$0xff] }
 0x5f6   :  { %3779 = vmatprep.mubr.f32.mxu0 %v7320_v15  ;;  %4100 = vmatprep.mubr.f32.mxu1 %v7321_v16  ;;  %v7369_v14 = vld [vmem:[%s10630_s1 + $0x1a8] sm:$0xff]  ;;  %v7370_v15 = vld [vmem:[%s10629_s0 + $0x1a0] sm:$0xff] }
 0x5f7   :  { %6838 = vmatpush1.bf16.msra.mxu0 %v6837_v5  ;;  %6902 = vmatpush1.bf16.msra.mxu1 %v6901_v6  ;;  %v7360_v5 = vld [vmem:[%s10629_s0 + $0x188] sm:$0xff]  ;;  %v7371_v16 = vld [vmem:[%s10630_s1 + $0x1a0] sm:$0xff] }
 0x5f8   :  { %6840 = vmatprep.subr.bf16.mxu0 %v6839_v8  ;;  %6904 = vmatprep.subr.bf16.mxu1 %v6903_v9  ;;  %v7361_v6 = vld [vmem:[%s10630_s1 + $0x188] sm:$0xff]  ;;  %v7363_v8 = vld [vmem:[%s10630_s1 + $0x180] sm:$0xff]  ;;  %v7364_v9 = vld [vmem:[%s10629_s0 + $0x198] sm:$0xff] }
 0x5f9   :  { %3780 = vmatmul.mubr.f32.gmra.mrb[92].mxu0 %v7322_v19  ;;  %4101 = vmatmul.mubr.f32.gmra.mrb[92].mxu1 %v7323_v20  ;;  %v7374_v19 = vld [vmem:[%s10629_s0 + $0x1b0] sm:$0xff] }
 0x5fa   :  { %3785 = vmatprep.mubr.f32.mxu0 %v7324_v21  ;;  %4106 = vmatprep.mubr.f32.mxu1 %v7325_v22  ;;  %v7375_v20 = vld [vmem:[%s10630_s1 + $0x1b0] sm:$0xff]  ;;  %v7376_v21 = vld [vmem:[%s10629_s0 + $0x1c8] sm:$0xff] }
 0x5fb   :  { %6842 = vmatpush1.bf16.msra.mxu0 %v6841_v17  ;;  %6906 = vmatpush1.bf16.msra.mxu1 %v6905_v18  ;;  %v7372_v17 = vld [vmem:[%s10629_s0 + $0x1b8] sm:$0xff]  ;;  %v7377_v22 = vld [vmem:[%s10630_s1 + $0x1c8] sm:$0xff] }
 0x5fc   :  { %6844 = vmatprep.subr.bf16.mxu0 %v6843_v54  ;;  %6908 = vmatprep.subr.bf16.mxu1 %v6907_v58  ;;  %v7373_v18 = vld [vmem:[%s10630_s1 + $0x1b8] sm:$0xff] }
 0x5fd   :  { %3786 = vmatmul.mubr.f32.gmra.mrb[94].mxu0 %v7326_v23  ;;  %4107 = vmatmul.mubr.f32.gmra.mrb[94].mxu1 %v7327_v24  ;;  %v7378_v23 = vld [vmem:[%s10629_s0 + $0x1c0] sm:$0xff] }
 0x5fe   :  { %3791 = vmatprep.mubr.f32.mxu0 %v7328_v25  ;;  %4112 = vmatprep.mubr.f32.mxu1 %v7329_v26  ;;  %v7379_v24 = vld [vmem:[%s10630_s1 + $0x1c0] sm:$0xff]  ;;  %v7380_v25 = vld [vmem:[%s10629_s0 + $0x1d8] sm:$0xff] }
 0x5ff   :  { %6846 = vmatpush1.bf16.msra.mxu0 %v6845_v59  ;;  %6910 = vmatpush1.bf16.msra.mxu1 %v6909_v0  ;;  %v7381_v26 = vld [vmem:[%s10630_s1 + $0x1d8] sm:$0xff] }
 0x601   :  { %3792 = vmatmul.mubr.f32.gmra.mrb[96].mxu0 %v7330_v27  ;;  %4113 = vmatmul.mubr.f32.gmra.mrb[96].mxu1 %v7331_v28  ;;  %v7382_v27 = vld [vmem:[%s10629_s0 + $0x1d0] sm:$0xff] }
 0x602   :  { %3797 = vmatprep.mubr.f32.mxu0 %v7332_v29  ;;  %4118 = vmatprep.mubr.f32.mxu1 %v7333_v30  ;;  %v7383_v28 = vld [vmem:[%s10630_s1 + $0x1d0] sm:$0xff]  ;;  %v7384_v29 = vld [vmem:[%s10629_s0 + $0x1e8] sm:$0xff] }
 0x603   :  { %v7385_v30 = vld [vmem:[%s10630_s1 + $0x1e8] sm:$0xff] }
 0x605   :  { %3798 = vmatmul.mubr.f32.gmra.mrb[98].mxu0 %v7334_v31  ;;  %4119 = vmatmul.mubr.f32.gmra.mrb[98].mxu1 %v7335_v32  ;;  %v7386_v31 = vld [vmem:[%s10629_s0 + $0x1e0] sm:$0xff] }
 0x606   :  { %3803 = vmatprep.mubr.f32.mxu0 %v7336_v33  ;;  %4124 = vmatprep.mubr.f32.mxu1 %v7337_v34  ;;  %v7387_v32 = vld [vmem:[%s10630_s1 + $0x1e0] sm:$0xff]  ;;  %v7388_v33 = vld [vmem:[%s10629_s0 + $0x1f8] sm:$0xff] }
 0x607   :  { %v7389_v34 = vld [vmem:[%s10630_s1 + $0x1f8] sm:$0xff] }
 0x609   :  { %3804 = vmatmul.mubr.f32.gmra.mrb[100].mxu0 %v7338_v35  ;;  %4125 = vmatmul.mubr.f32.gmra.mrb[100].mxu1 %v7339_v36  ;;  %v7390_v35 = vld [vmem:[%s10629_s0 + $0x1f0] sm:$0xff] }
 0x60a   :  { %3809 = vmatprep.mubr.f32.mxu0 %v7340_v37  ;;  %4130 = vmatprep.mubr.f32.mxu1 %v7341_v38  ;;  %v7391_v36 = vld [vmem:[%s10630_s1 + $0x1f0] sm:$0xff] }
 0x60d   :  { %3810 = vmatmul.mubr.f32.gmra.mrb[102].mxu0 %v7342_v39  ;;  %4131 = vmatmul.mubr.f32.gmra.mrb[102].mxu1 %v7343_v40 }
 0x60e   :  { %3815 = vmatprep.mubr.f32.mxu0 %v7344_v41  ;;  %4136 = vmatprep.mubr.f32.mxu1 %v7345_v42 }
 0x611   :  { %3816 = vmatmul.mubr.f32.gmra.mrb[104].mxu0 %v7346_v43  ;;  %4137 = vmatmul.mubr.f32.gmra.mrb[104].mxu1 %v7347_v44 }
 0x612   :  { %3821 = vmatprep.mubr.f32.mxu0 %v7348_v45  ;;  %4142 = vmatprep.mubr.f32.mxu1 %v7349_v46 }
 0x615   :  { %3822 = vmatmul.mubr.f32.gmra.mrb[106].mxu0 %v7350_v47  ;;  %4143 = vmatmul.mubr.f32.gmra.mrb[106].mxu1 %v7351_v48 }
 0x616   :  { %3827 = vmatprep.mubr.f32.mxu0 %v7352_v49  ;;  %4148 = vmatprep.mubr.f32.mxu1 %v7353_v50 }
 0x619   :  { %3828 = vmatmul.mubr.f32.gmra.mrb[108].mxu0 %v7354_v62  ;;  %4149 = vmatmul.mubr.f32.gmra.mrb[108].mxu1 %v7355_v63 }
 0x61a   :  { %3833 = vmatprep.mubr.f32.mxu0 %v7356_v1  ;;  %4154 = vmatprep.mubr.f32.mxu1 %v7357_v2 }
 0x61d   :  { %3834 = vmatmul.mubr.f32.gmra.mrb[110].mxu0 %v7358_v3  ;;  %4155 = vmatmul.mubr.f32.gmra.mrb[110].mxu1 %v7359_v4 }
 0x61e   :  { %3839 = vmatprep.mubr.f32.mxu0 %v7360_v5  ;;  %4160 = vmatprep.mubr.f32.mxu1 %v7361_v6 }
 0x621   :  { %3840 = vmatmul.mubr.f32.gmra.mrb[112].mxu0 %v7362_v7  ;;  %4161 = vmatmul.mubr.f32.gmra.mrb[112].mxu1 %v7363_v8 }
 0x622   :  { %3845 = vmatprep.mubr.f32.mxu0 %v7364_v9  ;;  %4166 = vmatprep.mubr.f32.mxu1 %v7365_v10 }
 0x625   :  { %3846 = vmatmul.mubr.f32.gmra.mrb[114].mxu0 %v7366_v11  ;;  %4167 = vmatmul.mubr.f32.gmra.mrb[114].mxu1 %v7367_v12 }
 0x626   :  { %3851 = vmatprep.mubr.f32.mxu0 %v7368_v13  ;;  %4172 = vmatprep.mubr.f32.mxu1 %v7369_v14 }
 0x629   :  { %3852 = vmatmul.mubr.f32.gmra.mrb[116].mxu0 %v7370_v15  ;;  %4173 = vmatmul.mubr.f32.gmra.mrb[116].mxu1 %v7371_v16 }
 0x62a   :  { %3857 = vmatprep.mubr.f32.mxu0 %v7372_v17  ;;  %4178 = vmatprep.mubr.f32.mxu1 %v7373_v18 }
 0x62d   :  { %3858 = vmatmul.mubr.f32.gmra.mrb[118].mxu0 %v7374_v19  ;;  %4179 = vmatmul.mubr.f32.gmra.mrb[118].mxu1 %v7375_v20 }
 0x62e   :  { %3863 = vmatprep.mubr.f32.mxu0 %v7376_v21  ;;  %4184 = vmatprep.mubr.f32.mxu1 %v7377_v22 }
 0x631   :  { %3864 = vmatmul.mubr.f32.gmra.mrb[120].mxu0 %v7378_v23  ;;  %4185 = vmatmul.mubr.f32.gmra.mrb[120].mxu1 %v7379_v24 }
 0x632   :  { %3869 = vmatprep.mubr.f32.mxu0 %v7380_v25  ;;  %4190 = vmatprep.mubr.f32.mxu1 %v7381_v26 }
 0x635   :  { %3870 = vmatmul.mubr.f32.gmra.mrb[122].mxu0 %v7382_v27  ;;  %4191 = vmatmul.mubr.f32.gmra.mrb[122].mxu1 %v7383_v28 }
 0x636   :  { %3875 = vmatprep.mubr.f32.mxu0 %v7384_v29  ;;  %4196 = vmatprep.mubr.f32.mxu1 %v7385_v30 }
 0x639   :  { %3876 = vmatmul.mubr.f32.gmra.mrb[124].mxu0 %v7386_v31  ;;  %4197 = vmatmul.mubr.f32.gmra.mrb[124].mxu1 %v7387_v32 }
 0x63a   :  { %3881 = vmatprep.mubr.f32.mxu0 %v7388_v33  ;;  %4202 = vmatprep.mubr.f32.mxu1 %v7389_v34 }
 0x63d   :  { %3882 = vmatmul.mubr.f32.gmra.mrb[126].mxu0 %v7390_v35  ;;  %4203 = vmatmul.mubr.f32.gmra.mrb[126].mxu1 %v7391_v36 }
 0x694   :  { %v3697_v37 = vpop.f32.mrb[64].mxu0  ;;  %v4018_v38 = vpop.f32.mrb[64].mxu1 }
 0x695   :  { %v3888_v39 = vmax.f32 %v3697_v37, 0.0  ;;  %v4209_v40 = vmax.f32 %v4018_v38, 0.0  ;;  %v3699_v41 = vpop.f32.mrb[65].mxu0  ;;  %v4020_v42 = vpop.f32.mrb[65].mxu1 }
 0x696   :  { %v3889_v43 = vmax.f32 %v3699_v41, 0.0  ;;  %v4210_v44 = vmax.f32 %v4020_v42, 0.0 }
 0x697   :  { %v4273_v45 = vadd.f32 %v4209_v40, %v3888_v39 }
 0x698   :  { %v4274_v46 = vadd.f32 %v4210_v44, %v3889_v43  ;;  %v3703_v47 = vpop.f32.mrb[66].mxu0  ;;  %v4024_v48 = vpop.f32.mrb[66].mxu1 }
 0x699   :  { %v3890_v49 = vmax.f32 %v3703_v47, 0.0  ;;  %v4211_v50 = vmax.f32 %v4024_v48, 0.0  ;;  %v3705_v51 = vpop.f32.mrb[67].mxu0  ;;  %v4026_v52 = vpop.f32.mrb[67].mxu1  ;;  %v4337_v56 = vmul.f32 0.5, %v4273_v45 }
 0x69a   :  { %v4338_v53 = vmul.f32 0.5, %v4274_v46  ;;  %v3891_v54 = vmax.f32 %v3705_v51, 0.0  ;;  %v4212_v55 = vmax.f32 %v4026_v52, 0.0 }
 0x69b   :  { %v4275_v57 = vadd.f32 %v4211_v50, %v3890_v49 }
 0x69c   :  { %v4276_v58 = vadd.f32 %v4212_v55, %v3891_v54  ;;  %v3709_v59 = vpop.f32.mrb[68].mxu0  ;;  %v4030_v60 = vpop.f32.mrb[68].mxu1  ;;  %4593 = vmatprep.mubr.f32.mxu0 %v4338_v53  ;;  %4850 = vmatprep.mubr.f32.mxu1 %v4338_v53 }
 0x69d   :  { %v3892_v61 = vmax.f32 %v3709_v59, 0.0  ;;  %v4213_v62 = vmax.f32 %v4030_v60, 0.0  ;;  %v3711_v63 = vpop.f32.mrb[69].mxu0  ;;  %v4032_v0 = vpop.f32.mrb[69].mxu1  ;;  %4594 = vmatmul.mubr.f32.vlgmr.msra.gmra.mrb[128].mxu0 %v4337_v56  ;;  %4851 = vmatmul.mubr.f32.vlgmr.msra.gmra.mrb[128].mxu1 %v4337_v56  ;;  %v4339_v4 = vmul.f32 0.5, %v4275_v57 }
 0x69e   :  { %v4340_v1 = vmul.f32 0.5, %v4276_v58  ;;  %v3893_v2 = vmax.f32 %v3711_v63, 0.0  ;;  %v4214_v3 = vmax.f32 %v4032_v0, 0.0 }
 0x69f   :  { %v4277_v5 = vadd.f32 %v4213_v62, %v3892_v61 }
 0x6a0   :  { %v4278_v6 = vadd.f32 %v4214_v3, %v3893_v2  ;;  %v3715_v7 = vpop.f32.mrb[70].mxu0  ;;  %v4036_v8 = vpop.f32.mrb[70].mxu1  ;;  %4599 = vmatprep.mubr.f32.mxu0 %v4340_v1  ;;  %4856 = vmatprep.mubr.f32.mxu1 %v4340_v1 }
 0x6a1   :  { %v3894_v9 = vmax.f32 %v3715_v7, 0.0  ;;  %v4215_v10 = vmax.f32 %v4036_v8, 0.0  ;;  %v3717_v11 = vpop.f32.mrb[71].mxu0  ;;  %v4038_v12 = vpop.f32.mrb[71].mxu1  ;;  %4600 = vmatmul.mubr.f32.gmra.mrb[130].mxu0 %v4339_v4  ;;  %4857 = vmatmul.mubr.f32.gmra.mrb[130].mxu1 %v4339_v4  ;;  %v4341_v16 = vmul.f32 0.5, %v4277_v5 }
 0x6a2   :  { %v4342_v13 = vmul.f32 0.5, %v4278_v6  ;;  %v3895_v14 = vmax.f32 %v3717_v11, 0.0  ;;  %v4216_v15 = vmax.f32 %v4038_v12, 0.0 }
 0x6a3   :  { %v4279_v17 = vadd.f32 %v4215_v10, %v3894_v9 }
 0x6a4   :  { %v4280_v18 = vadd.f32 %v4216_v15, %v3895_v14  ;;  %v3721_v19 = vpop.f32.mrb[72].mxu0  ;;  %v4042_v20 = vpop.f32.mrb[72].mxu1  ;;  %4605 = vmatprep.mubr.f32.mxu0 %v4342_v13  ;;  %4862 = vmatprep.mubr.f32.mxu1 %v4342_v13 }
 0x6a5   :  { %v3896_v21 = vmax.f32 %v3721_v19, 0.0  ;;  %v4217_v22 = vmax.f32 %v4042_v20, 0.0  ;;  %v3723_v23 = vpop.f32.mrb[73].mxu0  ;;  %v4044_v24 = vpop.f32.mrb[73].mxu1  ;;  %4606 = vmatmul.mubr.f32.gmra.mrb[132].mxu0 %v4341_v16  ;;  %4863 = vmatmul.mubr.f32.gmra.mrb[132].mxu1 %v4341_v16  ;;  %v4343_v28 = vmul.f32 0.5, %v4279_v17 }
 0x6a6   :  { %v4344_v25 = vmul.f32 0.5, %v4280_v18  ;;  %v3897_v26 = vmax.f32 %v3723_v23, 0.0  ;;  %v4218_v27 = vmax.f32 %v4044_v24, 0.0 }
 0x6a7   :  { %v4281_v29 = vadd.f32 %v4217_v22, %v3896_v21 }
 0x6a8   :  { %v4282_v30 = vadd.f32 %v4218_v27, %v3897_v26  ;;  %v3727_v31 = vpop.f32.mrb[74].mxu0  ;;  %v4048_v32 = vpop.f32.mrb[74].mxu1  ;;  %4611 = vmatprep.mubr.f32.mxu0 %v4344_v25  ;;  %4868 = vmatprep.mubr.f32.mxu1 %v4344_v25 }
 0x6a9   :  { %v3898_v33 = vmax.f32 %v3727_v31, 0.0  ;;  %v4219_v34 = vmax.f32 %v4048_v32, 0.0  ;;  %v3729_v35 = vpop.f32.mrb[75].mxu0  ;;  %v4050_v36 = vpop.f32.mrb[75].mxu1  ;;  %4612 = vmatmul.mubr.f32.gmra.mrb[134].mxu0 %v4343_v28  ;;  %4869 = vmatmul.mubr.f32.gmra.mrb[134].mxu1 %v4343_v28  ;;  %v4345_v40 = vmul.f32 0.5, %v4281_v29 }
 0x6aa   :  { %v4346_v37 = vmul.f32 0.5, %v4282_v30  ;;  %v3899_v38 = vmax.f32 %v3729_v35, 0.0  ;;  %v4220_v39 = vmax.f32 %v4050_v36, 0.0 }
 0x6ab   :  { %v4283_v41 = vadd.f32 %v4219_v34, %v3898_v33 }
 0x6ac   :  { %v4284_v42 = vadd.f32 %v4220_v39, %v3899_v38  ;;  %v3733_v43 = vpop.f32.mrb[76].mxu0  ;;  %v4054_v44 = vpop.f32.mrb[76].mxu1  ;;  %4617 = vmatprep.mubr.f32.mxu0 %v4346_v37  ;;  %4874 = vmatprep.mubr.f32.mxu1 %v4346_v37 }
 0x6ad   :  { %v3900_v45 = vmax.f32 %v3733_v43, 0.0  ;;  %v4221_v46 = vmax.f32 %v4054_v44, 0.0  ;;  %v3735_v47 = vpop.f32.mrb[77].mxu0  ;;  %v4056_v48 = vpop.f32.mrb[77].mxu1  ;;  %4618 = vmatmul.mubr.f32.gmra.mrb[136].mxu0 %v4345_v40  ;;  %4875 = vmatmul.mubr.f32.gmra.mrb[136].mxu1 %v4345_v40  ;;  %v4347_v52 = vmul.f32 0.5, %v4283_v41 }
 0x6ae   :  { %v4348_v49 = vmul.f32 0.5, %v4284_v42  ;;  %v3901_v50 = vmax.f32 %v3735_v47, 0.0  ;;  %v4222_v51 = vmax.f32 %v4056_v48, 0.0 }
 0x6af   :  { %v4285_v53 = vadd.f32 %v4221_v46, %v3900_v45 }
 0x6b0   :  { %v4286_v54 = vadd.f32 %v4222_v51, %v3901_v50  ;;  %v3739_v55 = vpop.f32.mrb[78].mxu0  ;;  %v4060_v56 = vpop.f32.mrb[78].mxu1  ;;  %4623 = vmatprep.mubr.f32.mxu0 %v4348_v49  ;;  %4880 = vmatprep.mubr.f32.mxu1 %v4348_v49 }
 0x6b1   :  { %v3902_v57 = vmax.f32 %v3739_v55, 0.0  ;;  %v4223_v58 = vmax.f32 %v4060_v56, 0.0  ;;  %v3741_v59 = vpop.f32.mrb[79].mxu0  ;;  %v4062_v60 = vpop.f32.mrb[79].mxu1  ;;  %4624 = vmatmul.mubr.f32.gmra.mrb[138].mxu0 %v4347_v52  ;;  %4881 = vmatmul.mubr.f32.gmra.mrb[138].mxu1 %v4347_v52  ;;  %v4349_v0 = vmul.f32 0.5, %v4285_v53 }
 0x6b2   :  { %v4350_v61 = vmul.f32 0.5, %v4286_v54  ;;  %v3903_v62 = vmax.f32 %v3741_v59, 0.0  ;;  %v4224_v63 = vmax.f32 %v4062_v60, 0.0 }
 0x6b3   :  { %v4287_v1 = vadd.f32 %v4223_v58, %v3902_v57 }
 0x6b4   :  { %v4288_v2 = vadd.f32 %v4224_v63, %v3903_v62  ;;  %v3745_v3 = vpop.f32.mrb[80].mxu0  ;;  %v4066_v4 = vpop.f32.mrb[80].mxu1  ;;  %4629 = vmatprep.mubr.f32.mxu0 %v4350_v61  ;;  %4886 = vmatprep.mubr.f32.mxu1 %v4350_v61 }
 0x6b5   :  { %v3904_v5 = vmax.f32 %v3745_v3, 0.0  ;;  %v4225_v6 = vmax.f32 %v4066_v4, 0.0  ;;  %v3747_v7 = vpop.f32.mrb[81].mxu0  ;;  %v4068_v8 = vpop.f32.mrb[81].mxu1  ;;  %4630 = vmatmul.mubr.f32.gmra.mrb[140].mxu0 %v4349_v0  ;;  %4887 = vmatmul.mubr.f32.gmra.mrb[140].mxu1 %v4349_v0  ;;  %v4351_v12 = vmul.f32 0.5, %v4287_v1 }
 0x6b6   :  { %v4352_v9 = vmul.f32 0.5, %v4288_v2  ;;  %v3905_v10 = vmax.f32 %v3747_v7, 0.0  ;;  %v4226_v11 = vmax.f32 %v4068_v8, 0.0 }
 0x6b7   :  { %v4289_v13 = vadd.f32 %v4225_v6, %v3904_v5 }
 0x6b8   :  { %v4290_v14 = vadd.f32 %v4226_v11, %v3905_v10  ;;  %v3751_v15 = vpop.f32.mrb[82].mxu0  ;;  %v4072_v16 = vpop.f32.mrb[82].mxu1  ;;  %4635 = vmatprep.mubr.f32.mxu0 %v4352_v9  ;;  %4892 = vmatprep.mubr.f32.mxu1 %v4352_v9 }
 0x6b9   :  { %v3906_v17 = vmax.f32 %v3751_v15, 0.0  ;;  %v4227_v18 = vmax.f32 %v4072_v16, 0.0  ;;  %v3753_v19 = vpop.f32.mrb[83].mxu0  ;;  %v4074_v20 = vpop.f32.mrb[83].mxu1  ;;  %4636 = vmatmul.mubr.f32.gmra.mrb[142].mxu0 %v4351_v12  ;;  %4893 = vmatmul.mubr.f32.gmra.mrb[142].mxu1 %v4351_v12  ;;  %v4353_v24 = vmul.f32 0.5, %v4289_v13 }
 0x6ba   :  { %v4354_v21 = vmul.f32 0.5, %v4290_v14  ;;  %v3907_v22 = vmax.f32 %v3753_v19, 0.0  ;;  %v4228_v23 = vmax.f32 %v4074_v20, 0.0 }
 0x6bb   :  { %v4291_v25 = vadd.f32 %v4227_v18, %v3906_v17 }
 0x6bc   :  { %v4292_v26 = vadd.f32 %v4228_v23, %v3907_v22  ;;  %v3757_v27 = vpop.f32.mrb[84].mxu0  ;;  %v4078_v28 = vpop.f32.mrb[84].mxu1  ;;  %4641 = vmatprep.mubr.f32.mxu0 %v4354_v21  ;;  %4898 = vmatprep.mubr.f32.mxu1 %v4354_v21 }
 0x6bd   :  { %v3908_v29 = vmax.f32 %v3757_v27, 0.0  ;;  %v4229_v30 = vmax.f32 %v4078_v28, 0.0  ;;  %v3759_v31 = vpop.f32.mrb[85].mxu0  ;;  %v4080_v32 = vpop.f32.mrb[85].mxu1  ;;  %4642 = vmatmul.mubr.f32.gmra.mrb[144].mxu0 %v4353_v24  ;;  %4899 = vmatmul.mubr.f32.gmra.mrb[144].mxu1 %v4353_v24  ;;  %v4355_v36 = vmul.f32 0.5, %v4291_v25 }
 0x6be   :  { %v4356_v33 = vmul.f32 0.5, %v4292_v26  ;;  %v3909_v34 = vmax.f32 %v3759_v31, 0.0  ;;  %v4230_v35 = vmax.f32 %v4080_v32, 0.0 }
 0x6bf   :  { %v4293_v37 = vadd.f32 %v4229_v30, %v3908_v29 }
 0x6c0   :  { %v4294_v38 = vadd.f32 %v4230_v35, %v3909_v34  ;;  %v3763_v39 = vpop.f32.mrb[86].mxu0  ;;  %v4084_v40 = vpop.f32.mrb[86].mxu1  ;;  %4647 = vmatprep.mubr.f32.mxu0 %v4356_v33  ;;  %4904 = vmatprep.mubr.f32.mxu1 %v4356_v33 }
 0x6c1   :  { %v3910_v41 = vmax.f32 %v3763_v39, 0.0  ;;  %v4231_v42 = vmax.f32 %v4084_v40, 0.0  ;;  %v3765_v43 = vpop.f32.mrb[87].mxu0  ;;  %v4086_v44 = vpop.f32.mrb[87].mxu1  ;;  %4648 = vmatmul.mubr.f32.gmra.mrb[146].mxu0 %v4355_v36  ;;  %4905 = vmatmul.mubr.f32.gmra.mrb[146].mxu1 %v4355_v36  ;;  %v4357_v48 = vmul.f32 0.5, %v4293_v37 }
 0x6c2   :  { %v4358_v45 = vmul.f32 0.5, %v4294_v38  ;;  %v3911_v46 = vmax.f32 %v3765_v43, 0.0  ;;  %v4232_v47 = vmax.f32 %v4086_v44, 0.0 }
 0x6c3   :  { %v4295_v49 = vadd.f32 %v4231_v42, %v3910_v41 }
 0x6c4   :  { %v4296_v50 = vadd.f32 %v4232_v47, %v3911_v46  ;;  %v3769_v51 = vpop.f32.mrb[88].mxu0  ;;  %v4090_v52 = vpop.f32.mrb[88].mxu1  ;;  %4653 = vmatprep.mubr.f32.mxu0 %v4358_v45  ;;  %4910 = vmatprep.mubr.f32.mxu1 %v4358_v45 }
 0x6c5   :  { %v3912_v53 = vmax.f32 %v3769_v51, 0.0  ;;  %v4233_v54 = vmax.f32 %v4090_v52, 0.0  ;;  %v3771_v55 = vpop.f32.mrb[89].mxu0  ;;  %v4092_v56 = vpop.f32.mrb[89].mxu1  ;;  %4654 = vmatmul.mubr.f32.gmra.mrb[148].mxu0 %v4357_v48  ;;  %4911 = vmatmul.mubr.f32.gmra.mrb[148].mxu1 %v4357_v48  ;;  %v4359_v60 = vmul.f32 0.5, %v4295_v49 }
 0x6c6   :  { %v4360_v57 = vmul.f32 0.5, %v4296_v50  ;;  %v3913_v58 = vmax.f32 %v3771_v55, 0.0  ;;  %v4234_v59 = vmax.f32 %v4092_v56, 0.0 }
 0x6c7   :  { %v4297_v61 = vadd.f32 %v4233_v54, %v3912_v53 }
 0x6c8   :  { %v4298_v62 = vadd.f32 %v4234_v59, %v3913_v58  ;;  %v3775_v63 = vpop.f32.mrb[90].mxu0  ;;  %v4096_v0 = vpop.f32.mrb[90].mxu1  ;;  %4659 = vmatprep.mubr.f32.mxu0 %v4360_v57  ;;  %4916 = vmatprep.mubr.f32.mxu1 %v4360_v57 }
 0x6c9   :  { %v3914_v1 = vmax.f32 %v3775_v63, 0.0  ;;  %v4235_v2 = vmax.f32 %v4096_v0, 0.0  ;;  %v3777_v3 = vpop.f32.mrb[91].mxu0  ;;  %v4098_v4 = vpop.f32.mrb[91].mxu1  ;;  %4660 = vmatmul.mubr.f32.gmra.mrb[150].mxu0 %v4359_v60  ;;  %4917 = vmatmul.mubr.f32.gmra.mrb[150].mxu1 %v4359_v60  ;;  %v4361_v8 = vmul.f32 0.5, %v4297_v61 }
 0x6ca   :  { %v4362_v5 = vmul.f32 0.5, %v4298_v62  ;;  %v3915_v6 = vmax.f32 %v3777_v3, 0.0  ;;  %v4236_v7 = vmax.f32 %v4098_v4, 0.0 }
 0x6cb   :  { %v4299_v9 = vadd.f32 %v4235_v2, %v3914_v1 }
 0x6cc   :  { %v4300_v10 = vadd.f32 %v4236_v7, %v3915_v6  ;;  %v3781_v11 = vpop.f32.mrb[92].mxu0  ;;  %v4102_v12 = vpop.f32.mrb[92].mxu1  ;;  %4665 = vmatprep.mubr.f32.mxu0 %v4362_v5  ;;  %4922 = vmatprep.mubr.f32.mxu1 %v4362_v5 }
 0x6cd   :  { %v3916_v13 = vmax.f32 %v3781_v11, 0.0  ;;  %v4237_v14 = vmax.f32 %v4102_v12, 0.0  ;;  %v3783_v15 = vpop.f32.mrb[93].mxu0  ;;  %v4104_v16 = vpop.f32.mrb[93].mxu1  ;;  %4666 = vmatmul.mubr.f32.gmra.mrb[152].mxu0 %v4361_v8  ;;  %4923 = vmatmul.mubr.f32.gmra.mrb[152].mxu1 %v4361_v8  ;;  %v4363_v20 = vmul.f32 0.5, %v4299_v9 }
 0x6ce   :  { %v4364_v17 = vmul.f32 0.5, %v4300_v10  ;;  %v3917_v18 = vmax.f32 %v3783_v15, 0.0  ;;  %v4238_v19 = vmax.f32 %v4104_v16, 0.0 }
 0x6cf   :  { %v4301_v21 = vadd.f32 %v4237_v14, %v3916_v13 }
 0x6d0   :  { %v4302_v22 = vadd.f32 %v4238_v19, %v3917_v18  ;;  %v3787_v23 = vpop.f32.mrb[94].mxu0  ;;  %v4108_v24 = vpop.f32.mrb[94].mxu1  ;;  %4671 = vmatprep.mubr.f32.mxu0 %v4364_v17  ;;  %4928 = vmatprep.mubr.f32.mxu1 %v4364_v17 }
 0x6d1   :  { %v3918_v25 = vmax.f32 %v3787_v23, 0.0  ;;  %v4239_v26 = vmax.f32 %v4108_v24, 0.0  ;;  %v3789_v27 = vpop.f32.mrb[95].mxu0  ;;  %v4110_v28 = vpop.f32.mrb[95].mxu1  ;;  %4672 = vmatmul.mubr.f32.gmra.mrb[154].mxu0 %v4363_v20  ;;  %4929 = vmatmul.mubr.f32.gmra.mrb[154].mxu1 %v4363_v20  ;;  %v4365_v32 = vmul.f32 0.5, %v4301_v21 }
 0x6d2   :  { %v4366_v29 = vmul.f32 0.5, %v4302_v22  ;;  %v3919_v30 = vmax.f32 %v3789_v27, 0.0  ;;  %v4240_v31 = vmax.f32 %v4110_v28, 0.0 }
 0x6d3   :  { %v4303_v33 = vadd.f32 %v4239_v26, %v3918_v25 }
 0x6d4   :  { %v4304_v34 = vadd.f32 %v4240_v31, %v3919_v30  ;;  %v3793_v35 = vpop.f32.mrb[96].mxu0  ;;  %v4114_v36 = vpop.f32.mrb[96].mxu1  ;;  %4677 = vmatprep.mubr.f32.mxu0 %v4366_v29  ;;  %4934 = vmatprep.mubr.f32.mxu1 %v4366_v29 }
 0x6d5   :  { %v3920_v37 = vmax.f32 %v3793_v35, 0.0  ;;  %v4241_v38 = vmax.f32 %v4114_v36, 0.0  ;;  %v3795_v39 = vpop.f32.mrb[97].mxu0  ;;  %v4116_v40 = vpop.f32.mrb[97].mxu1  ;;  %4678 = vmatmul.mubr.f32.gmra.mrb[156].mxu0 %v4365_v32  ;;  %4935 = vmatmul.mubr.f32.gmra.mrb[156].mxu1 %v4365_v32  ;;  %v4367_v44 = vmul.f32 0.5, %v4303_v33 }
 0x6d6   :  { %v4368_v41 = vmul.f32 0.5, %v4304_v34  ;;  %v3921_v42 = vmax.f32 %v3795_v39, 0.0  ;;  %v4242_v43 = vmax.f32 %v4116_v40, 0.0 }
 0x6d7   :  { %v4305_v45 = vadd.f32 %v4241_v38, %v3920_v37 }
 0x6d8   :  { %v4306_v46 = vadd.f32 %v4242_v43, %v3921_v42  ;;  %v3799_v47 = vpop.f32.mrb[98].mxu0  ;;  %v4120_v48 = vpop.f32.mrb[98].mxu1  ;;  %4683 = vmatprep.mubr.f32.mxu0 %v4368_v41  ;;  %4940 = vmatprep.mubr.f32.mxu1 %v4368_v41 }
 0x6d9   :  { %v3922_v49 = vmax.f32 %v3799_v47, 0.0  ;;  %v4243_v50 = vmax.f32 %v4120_v48, 0.0  ;;  %v3801_v51 = vpop.f32.mrb[99].mxu0  ;;  %v4122_v52 = vpop.f32.mrb[99].mxu1  ;;  %4684 = vmatmul.mubr.f32.gmra.mrb[158].mxu0 %v4367_v44  ;;  %4941 = vmatmul.mubr.f32.gmra.mrb[158].mxu1 %v4367_v44  ;;  %v4369_v56 = vmul.f32 0.5, %v4305_v45 }
 0x6da   :  { %v4370_v53 = vmul.f32 0.5, %v4306_v46  ;;  %v3923_v54 = vmax.f32 %v3801_v51, 0.0  ;;  %v4244_v55 = vmax.f32 %v4122_v52, 0.0 }
 0x6db   :  { %v4307_v57 = vadd.f32 %v4243_v50, %v3922_v49 }
 0x6dc   :  { %v4308_v58 = vadd.f32 %v4244_v55, %v3923_v54  ;;  %v3805_v59 = vpop.f32.mrb[100].mxu0  ;;  %v4126_v60 = vpop.f32.mrb[100].mxu1  ;;  %4689 = vmatprep.mubr.f32.mxu0 %v4370_v53  ;;  %4946 = vmatprep.mubr.f32.mxu1 %v4370_v53 }
 0x6dd   :  { %v3924_v61 = vmax.f32 %v3805_v59, 0.0  ;;  %v4245_v62 = vmax.f32 %v4126_v60, 0.0  ;;  %v3807_v63 = vpop.f32.mrb[101].mxu0  ;;  %v4128_v0 = vpop.f32.mrb[101].mxu1  ;;  %4690 = vmatmul.mubr.f32.gmra.mrb[160].mxu0 %v4369_v56  ;;  %4947 = vmatmul.mubr.f32.gmra.mrb[160].mxu1 %v4369_v56  ;;  %v4371_v4 = vmul.f32 0.5, %v4307_v57 }
 0x6de   :  { %v4372_v1 = vmul.f32 0.5, %v4308_v58  ;;  %v3925_v2 = vmax.f32 %v3807_v63, 0.0  ;;  %v4246_v3 = vmax.f32 %v4128_v0, 0.0 }
 0x6df   :  { %v4309_v5 = vadd.f32 %v4245_v62, %v3924_v61 }
 0x6e0   :  { %v4310_v6 = vadd.f32 %v4246_v3, %v3925_v2  ;;  %v3811_v7 = vpop.f32.mrb[102].mxu0  ;;  %v4132_v8 = vpop.f32.mrb[102].mxu1  ;;  %4695 = vmatprep.mubr.f32.mxu0 %v4372_v1  ;;  %4952 = vmatprep.mubr.f32.mxu1 %v4372_v1 }
 0x6e1   :  { %v3926_v9 = vmax.f32 %v3811_v7, 0.0  ;;  %v4247_v10 = vmax.f32 %v4132_v8, 0.0  ;;  %v3813_v11 = vpop.f32.mrb[103].mxu0  ;;  %v4134_v12 = vpop.f32.mrb[103].mxu1  ;;  %4696 = vmatmul.mubr.f32.gmra.mrb[162].mxu0 %v4371_v4  ;;  %4953 = vmatmul.mubr.f32.gmra.mrb[162].mxu1 %v4371_v4  ;;  %v4373_v16 = vmul.f32 0.5, %v4309_v5 }
 0x6e2   :  { %v4374_v13 = vmul.f32 0.5, %v4310_v6  ;;  %v3927_v14 = vmax.f32 %v3813_v11, 0.0  ;;  %v4248_v15 = vmax.f32 %v4134_v12, 0.0 }
 0x6e3   :  { %v4311_v17 = vadd.f32 %v4247_v10, %v3926_v9 }
 0x6e4   :  { %v4312_v18 = vadd.f32 %v4248_v15, %v3927_v14  ;;  %v3817_v19 = vpop.f32.mrb[104].mxu0  ;;  %v4138_v20 = vpop.f32.mrb[104].mxu1  ;;  %4701 = vmatprep.mubr.f32.mxu0 %v4374_v13  ;;  %4958 = vmatprep.mubr.f32.mxu1 %v4374_v13 }
 0x6e5   :  { %v3928_v21 = vmax.f32 %v3817_v19, 0.0  ;;  %v4249_v22 = vmax.f32 %v4138_v20, 0.0  ;;  %v3819_v23 = vpop.f32.mrb[105].mxu0  ;;  %v4140_v24 = vpop.f32.mrb[105].mxu1  ;;  %4702 = vmatmul.mubr.f32.gmra.mrb[164].mxu0 %v4373_v16  ;;  %4959 = vmatmul.mubr.f32.gmra.mrb[164].mxu1 %v4373_v16  ;;  %v4375_v28 = vmul.f32 0.5, %v4311_v17 }
 0x6e6   :  { %v4376_v25 = vmul.f32 0.5, %v4312_v18  ;;  %v3929_v26 = vmax.f32 %v3819_v23, 0.0  ;;  %v4250_v27 = vmax.f32 %v4140_v24, 0.0 }
 0x6e7   :  { %v4313_v29 = vadd.f32 %v4249_v22, %v3928_v21 }
 0x6e8   :  { %v4314_v30 = vadd.f32 %v4250_v27, %v3929_v26  ;;  %v3823_v31 = vpop.f32.mrb[106].mxu0  ;;  %v4144_v32 = vpop.f32.mrb[106].mxu1  ;;  %4707 = vmatprep.mubr.f32.mxu0 %v4376_v25  ;;  %4964 = vmatprep.mubr.f32.mxu1 %v4376_v25 }
 0x6e9   :  { %v3930_v33 = vmax.f32 %v3823_v31, 0.0  ;;  %v4251_v34 = vmax.f32 %v4144_v32, 0.0  ;;  %v3825_v35 = vpop.f32.mrb[107].mxu0  ;;  %v4146_v36 = vpop.f32.mrb[107].mxu1  ;;  %4708 = vmatmul.mubr.f32.gmra.mrb[166].mxu0 %v4375_v28  ;;  %4965 = vmatmul.mubr.f32.gmra.mrb[166].mxu1 %v4375_v28  ;;  %v4377_v40 = vmul.f32 0.5, %v4313_v29 }
 0x6ea   :  { %v4378_v37 = vmul.f32 0.5, %v4314_v30  ;;  %v3931_v38 = vmax.f32 %v3825_v35, 0.0  ;;  %v4252_v39 = vmax.f32 %v4146_v36, 0.0 }
 0x6eb   :  { %v4315_v41 = vadd.f32 %v4251_v34, %v3930_v33 }
 0x6ec   :  { %v4316_v42 = vadd.f32 %v4252_v39, %v3931_v38  ;;  %v3829_v43 = vpop.f32.mrb[108].mxu0  ;;  %v4150_v44 = vpop.f32.mrb[108].mxu1  ;;  %4713 = vmatprep.mubr.f32.mxu0 %v4378_v37  ;;  %4970 = vmatprep.mubr.f32.mxu1 %v4378_v37 }
 0x6ed   :  { %v3932_v45 = vmax.f32 %v3829_v43, 0.0  ;;  %v4253_v46 = vmax.f32 %v4150_v44, 0.0  ;;  %v3831_v47 = vpop.f32.mrb[109].mxu0  ;;  %v4152_v48 = vpop.f32.mrb[109].mxu1  ;;  %4714 = vmatmul.mubr.f32.gmra.mrb[168].mxu0 %v4377_v40  ;;  %4971 = vmatmul.mubr.f32.gmra.mrb[168].mxu1 %v4377_v40  ;;  %v4379_v52 = vmul.f32 0.5, %v4315_v41 }
 0x6ee   :  { %v4380_v49 = vmul.f32 0.5, %v4316_v42  ;;  %v3933_v50 = vmax.f32 %v3831_v47, 0.0  ;;  %v4254_v51 = vmax.f32 %v4152_v48, 0.0 }
 0x6ef   :  { %v4317_v53 = vadd.f32 %v4253_v46, %v3932_v45 }
 0x6f0   :  { %v4318_v54 = vadd.f32 %v4254_v51, %v3933_v50  ;;  %v3835_v55 = vpop.f32.mrb[110].mxu0  ;;  %v4156_v56 = vpop.f32.mrb[110].mxu1  ;;  %4719 = vmatprep.mubr.f32.mxu0 %v4380_v49  ;;  %4976 = vmatprep.mubr.f32.mxu1 %v4380_v49 }
 0x6f1   :  { %v3934_v57 = vmax.f32 %v3835_v55, 0.0  ;;  %v4255_v58 = vmax.f32 %v4156_v56, 0.0  ;;  %v3837_v59 = vpop.f32.mrb[111].mxu0  ;;  %v4158_v60 = vpop.f32.mrb[111].mxu1  ;;  %4720 = vmatmul.mubr.f32.gmra.mrb[170].mxu0 %v4379_v52  ;;  %4977 = vmatmul.mubr.f32.gmra.mrb[170].mxu1 %v4379_v52  ;;  %v4381_v0 = vmul.f32 0.5, %v4317_v53 }
 0x6f2   :  { %v4382_v61 = vmul.f32 0.5, %v4318_v54  ;;  %v3935_v62 = vmax.f32 %v3837_v59, 0.0  ;;  %v4256_v63 = vmax.f32 %v4158_v60, 0.0 }
 0x6f3   :  { %v4319_v1 = vadd.f32 %v4255_v58, %v3934_v57 }
 0x6f4   :  { %v4320_v2 = vadd.f32 %v4256_v63, %v3935_v62  ;;  %v3841_v3 = vpop.f32.mrb[112].mxu0  ;;  %v4162_v4 = vpop.f32.mrb[112].mxu1  ;;  %4725 = vmatprep.mubr.f32.mxu0 %v4382_v61  ;;  %4982 = vmatprep.mubr.f32.mxu1 %v4382_v61 }
 0x6f5   :  { %v3936_v5 = vmax.f32 %v3841_v3, 0.0  ;;  %v4257_v6 = vmax.f32 %v4162_v4, 0.0  ;;  %v3843_v7 = vpop.f32.mrb[113].mxu0  ;;  %v4164_v8 = vpop.f32.mrb[113].mxu1  ;;  %4726 = vmatmul.mubr.f32.gmra.mrb[172].mxu0 %v4381_v0  ;;  %4983 = vmatmul.mubr.f32.gmra.mrb[172].mxu1 %v4381_v0  ;;  %v4383_v12 = vmul.f32 0.5, %v4319_v1 }
 0x6f6   :  { %v4384_v9 = vmul.f32 0.5, %v4320_v2  ;;  %v3937_v10 = vmax.f32 %v3843_v7, 0.0  ;;  %v4258_v11 = vmax.f32 %v4164_v8, 0.0 }
 0x6f7   :  { %v4321_v13 = vadd.f32 %v4257_v6, %v3936_v5 }
 0x6f8   :  { %v4322_v14 = vadd.f32 %v4258_v11, %v3937_v10  ;;  %v3847_v15 = vpop.f32.mrb[114].mxu0  ;;  %v4168_v16 = vpop.f32.mrb[114].mxu1  ;;  %4731 = vmatprep.mubr.f32.mxu0 %v4384_v9  ;;  %4988 = vmatprep.mubr.f32.mxu1 %v4384_v9 }
 0x6f9   :  { %v3938_v17 = vmax.f32 %v3847_v15, 0.0  ;;  %v4259_v18 = vmax.f32 %v4168_v16, 0.0  ;;  %v3849_v19 = vpop.f32.mrb[115].mxu0  ;;  %v4170_v20 = vpop.f32.mrb[115].mxu1  ;;  %4732 = vmatmul.mubr.f32.gmra.mrb[174].mxu0 %v4383_v12  ;;  %4989 = vmatmul.mubr.f32.gmra.mrb[174].mxu1 %v4383_v12  ;;  %v4385_v24 = vmul.f32 0.5, %v4321_v13 }
 0x6fa   :  { %v4386_v21 = vmul.f32 0.5, %v4322_v14  ;;  %v3939_v22 = vmax.f32 %v3849_v19, 0.0  ;;  %v4260_v23 = vmax.f32 %v4170_v20, 0.0 }
 0x6fb   :  { %v4323_v25 = vadd.f32 %v4259_v18, %v3938_v17 }
 0x6fc   :  { %v4324_v26 = vadd.f32 %v4260_v23, %v3939_v22  ;;  %v3853_v27 = vpop.f32.mrb[116].mxu0  ;;  %v4174_v28 = vpop.f32.mrb[116].mxu1  ;;  %4737 = vmatprep.mubr.f32.mxu0 %v4386_v21  ;;  %4994 = vmatprep.mubr.f32.mxu1 %v4386_v21 }
 0x6fd   :  { %v3940_v29 = vmax.f32 %v3853_v27, 0.0  ;;  %v4261_v30 = vmax.f32 %v4174_v28, 0.0  ;;  %v3855_v31 = vpop.f32.mrb[117].mxu0  ;;  %v4176_v32 = vpop.f32.mrb[117].mxu1  ;;  %4738 = vmatmul.mubr.f32.gmra.mrb[176].mxu0 %v4385_v24  ;;  %4995 = vmatmul.mubr.f32.gmra.mrb[176].mxu1 %v4385_v24  ;;  %v4387_v36 = vmul.f32 0.5, %v4323_v25 }
 0x6fe   :  { %v4388_v33 = vmul.f32 0.5, %v4324_v26  ;;  %v3941_v34 = vmax.f32 %v3855_v31, 0.0  ;;  %v4262_v35 = vmax.f32 %v4176_v32, 0.0 }
 0x6ff   :  { %v4325_v37 = vadd.f32 %v4261_v30, %v3940_v29 }
 0x700   :  { %v4326_v38 = vadd.f32 %v4262_v35, %v3941_v34  ;;  %v3859_v39 = vpop.f32.mrb[118].mxu0  ;;  %v4180_v40 = vpop.f32.mrb[118].mxu1  ;;  %4743 = vmatprep.mubr.f32.mxu0 %v4388_v33  ;;  %5000 = vmatprep.mubr.f32.mxu1 %v4388_v33 }
 0x701   :  { %v3942_v41 = vmax.f32 %v3859_v39, 0.0  ;;  %v4263_v42 = vmax.f32 %v4180_v40, 0.0  ;;  %v3861_v43 = vpop.f32.mrb[119].mxu0  ;;  %v4182_v44 = vpop.f32.mrb[119].mxu1  ;;  %4744 = vmatmul.mubr.f32.gmra.mrb[178].mxu0 %v4387_v36  ;;  %5001 = vmatmul.mubr.f32.gmra.mrb[178].mxu1 %v4387_v36  ;;  %v4389_v48 = vmul.f32 0.5, %v4325_v37  ;;  %v7392_v37 = vld [vmem:[%s10629_s0 + $0x8] sm:$0xff] }
 0x702   :  { %v4390_v45 = vmul.f32 0.5, %v4326_v38  ;;  %v3943_v46 = vmax.f32 %v3861_v43, 0.0  ;;  %v4264_v47 = vmax.f32 %v4182_v44, 0.0  ;;  %v7393_v38 = vld [vmem:[%s10630_s1 + $0x8] sm:$0xff] }
 0x703   :  { %v4327_v49 = vadd.f32 %v4263_v42, %v3942_v41 }
 0x704   :  { %v4328_v50 = vadd.f32 %v4264_v47, %v3943_v46  ;;  %v3865_v51 = vpop.f32.mrb[120].mxu0  ;;  %v4186_v52 = vpop.f32.mrb[120].mxu1  ;;  %4749 = vmatprep.mubr.f32.mxu0 %v4390_v45  ;;  %5006 = vmatprep.mubr.f32.mxu1 %v4390_v45 }
 0x705   :  { %v3944_v53 = vmax.f32 %v3865_v51, 0.0  ;;  %v4265_v54 = vmax.f32 %v4186_v52, 0.0  ;;  %v3867_v55 = vpop.f32.mrb[121].mxu0  ;;  %v4188_v56 = vpop.f32.mrb[121].mxu1  ;;  %4750 = vmatmul.mubr.f32.gmra.mrb[180].mxu0 %v4389_v48  ;;  %5007 = vmatmul.mubr.f32.gmra.mrb[180].mxu1 %v4389_v48  ;;  %v4391_v60 = vmul.f32 0.5, %v4327_v49 }
 0x706   :  { %v4392_v57 = vmul.f32 0.5, %v4328_v50  ;;  %v3945_v58 = vmax.f32 %v3867_v55, 0.0  ;;  %v4266_v59 = vmax.f32 %v4188_v56, 0.0 }
 0x707   :  { %v4329_v61 = vadd.f32 %v4265_v54, %v3944_v53 }
 0x708   :  { %v4330_v62 = vadd.f32 %v4266_v59, %v3945_v58  ;;  %v3871_v63 = vpop.f32.mrb[122].mxu0  ;;  %v4192_v0 = vpop.f32.mrb[122].mxu1  ;;  %4755 = vmatprep.mubr.f32.mxu0 %v4392_v57  ;;  %5012 = vmatprep.mubr.f32.mxu1 %v4392_v57 }
 0x709   :  { %v3946_v1 = vmax.f32 %v3871_v63, 0.0  ;;  %v4267_v2 = vmax.f32 %v4192_v0, 0.0  ;;  %v3873_v3 = vpop.f32.mrb[123].mxu0  ;;  %v4194_v4 = vpop.f32.mrb[123].mxu1  ;;  %4756 = vmatmul.mubr.f32.gmra.mrb[182].mxu0 %v4391_v60  ;;  %5013 = vmatmul.mubr.f32.gmra.mrb[182].mxu1 %v4391_v60  ;;  %v4393_v8 = vmul.f32 0.5, %v4329_v61 }
 0x70a   :  { %v4394_v5 = vmul.f32 0.5, %v4330_v62  ;;  %v3947_v6 = vmax.f32 %v3873_v3, 0.0  ;;  %v4268_v7 = vmax.f32 %v4194_v4, 0.0 }
 0x70b   :  { %v4331_v9 = vadd.f32 %v4267_v2, %v3946_v1 }
 0x70c   :  { %v4332_v10 = vadd.f32 %v4268_v7, %v3947_v6  ;;  %v3877_v11 = vpop.f32.mrb[124].mxu0  ;;  %v4198_v12 = vpop.f32.mrb[124].mxu1  ;;  %4761 = vmatprep.mubr.f32.mxu0 %v4394_v5  ;;  %5018 = vmatprep.mubr.f32.mxu1 %v4394_v5 }
 0x70d   :  { %v3948_v13 = vmax.f32 %v3877_v11, 0.0  ;;  %v4269_v14 = vmax.f32 %v4198_v12, 0.0  ;;  %v3879_v15 = vpop.f32.mrb[125].mxu0  ;;  %v4200_v16 = vpop.f32.mrb[125].mxu1  ;;  %4762 = vmatmul.mubr.f32.gmra.mrb[184].mxu0 %v4393_v8  ;;  %5019 = vmatmul.mubr.f32.gmra.mrb[184].mxu1 %v4393_v8  ;;  %v4395_v20 = vmul.f32 0.5, %v4331_v9 }
 0x70e   :  { %v4396_v17 = vmul.f32 0.5, %v4332_v10  ;;  %v3949_v18 = vmax.f32 %v3879_v15, 0.0  ;;  %v4270_v19 = vmax.f32 %v4200_v16, 0.0 }
 0x70f   :  { %v4333_v21 = vadd.f32 %v4269_v14, %v3948_v13 }
 0x710   :  { %v4334_v22 = vadd.f32 %v4270_v19, %v3949_v18  ;;  %v3883_v23 = vpop.f32.mrb[126].mxu0  ;;  %v4204_v24 = vpop.f32.mrb[126].mxu1  ;;  %4767 = vmatprep.mubr.f32.mxu0 %v4396_v17  ;;  %5024 = vmatprep.mubr.f32.mxu1 %v4396_v17 }
 0x711   :  { %v3950_v25 = vmax.f32 %v3883_v23, 0.0  ;;  %v4271_v26 = vmax.f32 %v4204_v24, 0.0  ;;  %v3885_v27 = vpop.f32.mrb[127].mxu0  ;;  %v4206_v28 = vpop.f32.mrb[127].mxu1  ;;  %4768 = vmatmul.mubr.f32.gmra.mrb[186].mxu0 %v4395_v20  ;;  %5025 = vmatmul.mubr.f32.gmra.mrb[186].mxu1 %v4395_v20  ;;  %v4397_v32 = vmul.f32 0.5, %v4333_v21 }
 0x712   :  { %v4398_v29 = vmul.f32 0.5, %v4334_v22  ;;  %v3951_v30 = vmax.f32 %v3885_v27, 0.0  ;;  %v4272_v31 = vmax.f32 %v4206_v28, 0.0 }
 0x713   :  { %v4335_v33 = vadd.f32 %v4271_v26, %v3950_v25 }
 0x714   :  { %v4336_v34 = vadd.f32 %v4272_v31, %v3951_v30  ;;  %4773 = vmatprep.mubr.f32.mxu0 %v4398_v29  ;;  %5030 = vmatprep.mubr.f32.mxu1 %v4398_v29 }
 0x715   :  { %4774 = vmatmul.mubr.f32.gmra.mrb[188].mxu0 %v4397_v32  ;;  %5031 = vmatmul.mubr.f32.gmra.mrb[188].mxu1 %v4397_v32  ;;  %v4399_v36 = vmul.f32 0.5, %v4335_v33 }
 0x716   :  { %v4400_v35 = vmul.f32 0.5, %v4336_v34 }
 0x718   :  { %4779 = vmatprep.mubr.f32.mxu0 %v4400_v35  ;;  %5036 = vmatprep.mubr.f32.mxu1 %v4400_v35 }
 0x719   :  { %4780 = vmatmul.mubr.f32.gmra.mrb[190].mxu0 %v4399_v36  ;;  %5037 = vmatmul.mubr.f32.gmra.mrb[190].mxu1 %v4399_v36 }
 0x71a   :  { %5107 = vmatprep.mubr.f32.mxu0 %v7392_v37  ;;  %5428 = vmatprep.mubr.f32.mxu1 %v7393_v38 }
 0x770   :  { %v4595_v39 = vpop.f32.mrb[128].mxu0  ;;  %v4852_v40 = vpop.f32.mrb[128].mxu1 }
 0x771   :  { %v4597_v41 = vpop.f32.mrb[129].mxu0  ;;  %v4854_v42 = vpop.f32.mrb[129].mxu1 }
 0x774   :  { %v4601_v43 = vpop.f32.mrb[130].mxu0  ;;  %v4858_v44 = vpop.f32.mrb[130].mxu1 }
 0x775   :  { %v6913_v45 = vpack.c.bf16 %v4601_v43, %v4595_v39  ;;  %v6977_v46 = vpack.c.bf16 %v4858_v44, %v4852_v40  ;;  %v4603_v47 = vpop.f32.mrb[131].mxu0  ;;  %v4860_v48 = vpop.f32.mrb[131].mxu1 }
 0x776   :  { %v6911_v49 = vpack.c.bf16 %v4603_v47, %v4597_v41  ;;  %v6975_v50 = vpack.c.bf16 %v4860_v48, %v4854_v42 }
 0x778   :  { %v4607_v51 = vpop.f32.mrb[132].mxu0  ;;  %v4864_v52 = vpop.f32.mrb[132].mxu1  ;;  %6912 = vmatprep.subr.bf16.mxu0 %v6911_v49  ;;  %6976 = vmatprep.subr.bf16.mxu1 %v6975_v50 }
 0x779   :  { %v4609_v53 = vpop.f32.mrb[133].mxu0  ;;  %v4866_v54 = vpop.f32.mrb[133].mxu1  ;;  %6914 = vmatpush1.bf16.msra.mxu0 %v6913_v45  ;;  %6978 = vmatpush1.bf16.msra.mxu1 %v6977_v46 }
 0x77c   :  { %v4613_v55 = vpop.f32.mrb[134].mxu0  ;;  %v4870_v56 = vpop.f32.mrb[134].mxu1 }
 0x77d   :  { %v6917_v57 = vpack.c.bf16 %v4613_v55, %v4607_v51  ;;  %v6981_v58 = vpack.c.bf16 %v4870_v56, %v4864_v52  ;;  %v4615_v59 = vpop.f32.mrb[135].mxu0  ;;  %v4872_v60 = vpop.f32.mrb[135].mxu1 }
 0x77e   :  { %v6915_v61 = vpack.c.bf16 %v4615_v59, %v4609_v53  ;;  %v6979_v62 = vpack.c.bf16 %v4872_v60, %v4866_v54 }
 0x780   :  { %v4619_v63 = vpop.f32.mrb[136].mxu0  ;;  %v4876_v0 = vpop.f32.mrb[136].mxu1  ;;  %6916 = vmatprep.subr.bf16.mxu0 %v6915_v61  ;;  %6980 = vmatprep.subr.bf16.mxu1 %v6979_v62 }
 0x781   :  { %v4621_v1 = vpop.f32.mrb[137].mxu0  ;;  %v4878_v2 = vpop.f32.mrb[137].mxu1  ;;  %6918 = vmatpush1.bf16.msra.mxu0 %v6917_v57  ;;  %6982 = vmatpush1.bf16.msra.mxu1 %v6981_v58 }
 0x784   :  { %v4625_v3 = vpop.f32.mrb[138].mxu0  ;;  %v4882_v4 = vpop.f32.mrb[138].mxu1 }
 0x785   :  { %v6921_v5 = vpack.c.bf16 %v4625_v3, %v4619_v63  ;;  %v6985_v6 = vpack.c.bf16 %v4882_v4, %v4876_v0  ;;  %v4627_v7 = vpop.f32.mrb[139].mxu0  ;;  %v4884_v8 = vpop.f32.mrb[139].mxu1 }
 0x786   :  { %v6919_v9 = vpack.c.bf16 %v4627_v7, %v4621_v1  ;;  %v6983_v10 = vpack.c.bf16 %v4884_v8, %v4878_v2 }
 0x788   :  { %v4631_v11 = vpop.f32.mrb[140].mxu0  ;;  %v4888_v12 = vpop.f32.mrb[140].mxu1  ;;  %6920 = vmatprep.subr.bf16.mxu0 %v6919_v9  ;;  %6984 = vmatprep.subr.bf16.mxu1 %v6983_v10 }
 0x789   :  { %v4633_v13 = vpop.f32.mrb[141].mxu0  ;;  %v4890_v14 = vpop.f32.mrb[141].mxu1  ;;  %6922 = vmatpush1.bf16.msra.mxu0 %v6921_v5  ;;  %6986 = vmatpush1.bf16.msra.mxu1 %v6985_v6 }
 0x78c   :  { %v4637_v15 = vpop.f32.mrb[142].mxu0  ;;  %v4894_v16 = vpop.f32.mrb[142].mxu1 }
 0x78d   :  { %v6925_v17 = vpack.c.bf16 %v4637_v15, %v4631_v11  ;;  %v6989_v18 = vpack.c.bf16 %v4894_v16, %v4888_v12  ;;  %v4639_v19 = vpop.f32.mrb[143].mxu0  ;;  %v4896_v20 = vpop.f32.mrb[143].mxu1 }
 0x78e   :  { %v6923_v21 = vpack.c.bf16 %v4639_v19, %v4633_v13  ;;  %v6987_v22 = vpack.c.bf16 %v4896_v20, %v4890_v14 }
 0x790   :  { %v4643_v23 = vpop.f32.mrb[144].mxu0  ;;  %v4900_v24 = vpop.f32.mrb[144].mxu1  ;;  %6924 = vmatprep.subr.bf16.mxu0 %v6923_v21  ;;  %6988 = vmatprep.subr.bf16.mxu1 %v6987_v22 }
 0x791   :  { %v4645_v25 = vpop.f32.mrb[145].mxu0  ;;  %v4902_v26 = vpop.f32.mrb[145].mxu1  ;;  %6926 = vmatpush1.bf16.msra.mxu0 %v6925_v17  ;;  %6990 = vmatpush1.bf16.msra.mxu1 %v6989_v18 }
 0x794   :  { %v4649_v27 = vpop.f32.mrb[146].mxu0  ;;  %v4906_v28 = vpop.f32.mrb[146].mxu1 }
 0x795   :  { %v6929_v29 = vpack.c.bf16 %v4649_v27, %v4643_v23  ;;  %v6993_v30 = vpack.c.bf16 %v4906_v28, %v4900_v24  ;;  %v4651_v31 = vpop.f32.mrb[147].mxu0  ;;  %v4908_v32 = vpop.f32.mrb[147].mxu1 }
 0x796   :  { %v6927_v33 = vpack.c.bf16 %v4651_v31, %v4645_v25  ;;  %v6991_v34 = vpack.c.bf16 %v4908_v32, %v4902_v26 }
 0x798   :  { %v4655_v35 = vpop.f32.mrb[148].mxu0  ;;  %v4912_v36 = vpop.f32.mrb[148].mxu1  ;;  %6928 = vmatprep.subr.bf16.mxu0 %v6927_v33  ;;  %6992 = vmatprep.subr.bf16.mxu1 %v6991_v34 }
 0x799   :  { %v4657_v37 = vpop.f32.mrb[149].mxu0  ;;  %v4914_v38 = vpop.f32.mrb[149].mxu1  ;;  %6930 = vmatpush1.bf16.msra.mxu0 %v6929_v29  ;;  %6994 = vmatpush1.bf16.msra.mxu1 %v6993_v30 }
 0x79c   :  { %v4661_v39 = vpop.f32.mrb[150].mxu0  ;;  %v4918_v40 = vpop.f32.mrb[150].mxu1 }
 0x79d   :  { %v6933_v41 = vpack.c.bf16 %v4661_v39, %v4655_v35  ;;  %v6997_v42 = vpack.c.bf16 %v4918_v40, %v4912_v36  ;;  %v4663_v43 = vpop.f32.mrb[151].mxu0  ;;  %v4920_v44 = vpop.f32.mrb[151].mxu1 }
 0x79e   :  { %v6931_v45 = vpack.c.bf16 %v4663_v43, %v4657_v37  ;;  %v6995_v46 = vpack.c.bf16 %v4920_v44, %v4914_v38 }
 0x7a0   :  { %v4667_v47 = vpop.f32.mrb[152].mxu0  ;;  %v4924_v48 = vpop.f32.mrb[152].mxu1  ;;  %6932 = vmatprep.subr.bf16.mxu0 %v6931_v45  ;;  %6996 = vmatprep.subr.bf16.mxu1 %v6995_v46 }
 0x7a1   :  { %v4669_v49 = vpop.f32.mrb[153].mxu0  ;;  %v4926_v50 = vpop.f32.mrb[153].mxu1  ;;  %6934 = vmatpush1.bf16.msra.mxu0 %v6933_v41  ;;  %6998 = vmatpush1.bf16.msra.mxu1 %v6997_v42 }
 0x7a4   :  { %v4673_v51 = vpop.f32.mrb[154].mxu0  ;;  %v4930_v52 = vpop.f32.mrb[154].mxu1 }
 0x7a5   :  { %v6937_v53 = vpack.c.bf16 %v4673_v51, %v4667_v47  ;;  %v7001_v54 = vpack.c.bf16 %v4930_v52, %v4924_v48  ;;  %v4675_v55 = vpop.f32.mrb[155].mxu0  ;;  %v4932_v56 = vpop.f32.mrb[155].mxu1 }
 0x7a6   :  { %v6935_v57 = vpack.c.bf16 %v4675_v55, %v4669_v49  ;;  %v6999_v58 = vpack.c.bf16 %v4932_v56, %v4926_v50 }
 0x7a8   :  { %v4679_v59 = vpop.f32.mrb[156].mxu0  ;;  %v4936_v60 = vpop.f32.mrb[156].mxu1  ;;  %6936 = vmatprep.subr.bf16.mxu0 %v6935_v57  ;;  %7000 = vmatprep.subr.bf16.mxu1 %v6999_v58 }
 0x7a9   :  { %v4681_v61 = vpop.f32.mrb[157].mxu0  ;;  %v4938_v62 = vpop.f32.mrb[157].mxu1  ;;  %6938 = vmatpush1.bf16.msra.mxu0 %v6937_v53  ;;  %7002 = vmatpush1.bf16.msra.mxu1 %v7001_v54 }
 0x7ac   :  { %v4685_v63 = vpop.f32.mrb[158].mxu0  ;;  %v4942_v0 = vpop.f32.mrb[158].mxu1 }
 0x7ad   :  { %v6941_v1 = vpack.c.bf16 %v4685_v63, %v4679_v59  ;;  %v7005_v2 = vpack.c.bf16 %v4942_v0, %v4936_v60  ;;  %v4687_v3 = vpop.f32.mrb[159].mxu0  ;;  %v4944_v4 = vpop.f32.mrb[159].mxu1 }
 0x7ae   :  { %v6939_v5 = vpack.c.bf16 %v4687_v3, %v4681_v61  ;;  %v7003_v6 = vpack.c.bf16 %v4944_v4, %v4938_v62 }
 0x7b0   :  { %v4691_v7 = vpop.f32.mrb[160].mxu0  ;;  %v4948_v8 = vpop.f32.mrb[160].mxu1  ;;  %6940 = vmatprep.subr.bf16.mxu0 %v6939_v5  ;;  %7004 = vmatprep.subr.bf16.mxu1 %v7003_v6 }
 0x7b1   :  { %v4693_v9 = vpop.f32.mrb[161].mxu0  ;;  %v4950_v10 = vpop.f32.mrb[161].mxu1  ;;  %6942 = vmatpush1.bf16.msra.mxu0 %v6941_v1  ;;  %7006 = vmatpush1.bf16.msra.mxu1 %v7005_v2 }
 0x7b4   :  { %v4697_v11 = vpop.f32.mrb[162].mxu0  ;;  %v4954_v12 = vpop.f32.mrb[162].mxu1 }
 0x7b5   :  { %v6945_v13 = vpack.c.bf16 %v4697_v11, %v4691_v7  ;;  %v7009_v14 = vpack.c.bf16 %v4954_v12, %v4948_v8  ;;  %v4699_v15 = vpop.f32.mrb[163].mxu0  ;;  %v4956_v16 = vpop.f32.mrb[163].mxu1 }
 0x7b6   :  { %v6943_v17 = vpack.c.bf16 %v4699_v15, %v4693_v9  ;;  %v7007_v18 = vpack.c.bf16 %v4956_v16, %v4950_v10 }
 0x7b8   :  { %v4703_v19 = vpop.f32.mrb[164].mxu0  ;;  %v4960_v20 = vpop.f32.mrb[164].mxu1  ;;  %6944 = vmatprep.subr.bf16.mxu0 %v6943_v17  ;;  %7008 = vmatprep.subr.bf16.mxu1 %v7007_v18 }
 0x7b9   :  { %v4705_v21 = vpop.f32.mrb[165].mxu0  ;;  %v4962_v22 = vpop.f32.mrb[165].mxu1  ;;  %6946 = vmatpush1.bf16.msra.mxu0 %v6945_v13  ;;  %7010 = vmatpush1.bf16.msra.mxu1 %v7009_v14 }
 0x7bc   :  { %v4709_v23 = vpop.f32.mrb[166].mxu0  ;;  %v4966_v24 = vpop.f32.mrb[166].mxu1 }
 0x7bd   :  { %v6949_v25 = vpack.c.bf16 %v4709_v23, %v4703_v19  ;;  %v7013_v26 = vpack.c.bf16 %v4966_v24, %v4960_v20  ;;  %v4711_v27 = vpop.f32.mrb[167].mxu0  ;;  %v4968_v28 = vpop.f32.mrb[167].mxu1 }
 0x7be   :  { %v6947_v29 = vpack.c.bf16 %v4711_v27, %v4705_v21  ;;  %v7011_v30 = vpack.c.bf16 %v4968_v28, %v4962_v22 }
 0x7c0   :  { %v4715_v31 = vpop.f32.mrb[168].mxu0  ;;  %v4972_v32 = vpop.f32.mrb[168].mxu1  ;;  %6948 = vmatprep.subr.bf16.mxu0 %v6947_v29  ;;  %7012 = vmatprep.subr.bf16.mxu1 %v7011_v30 }
 0x7c1   :  { %v4717_v33 = vpop.f32.mrb[169].mxu0  ;;  %v4974_v34 = vpop.f32.mrb[169].mxu1  ;;  %6950 = vmatpush1.bf16.msra.mxu0 %v6949_v25  ;;  %7014 = vmatpush1.bf16.msra.mxu1 %v7013_v26 }
 0x7c4   :  { %v4721_v35 = vpop.f32.mrb[170].mxu0  ;;  %v4978_v36 = vpop.f32.mrb[170].mxu1 }
 0x7c5   :  { %v6953_v37 = vpack.c.bf16 %v4721_v35, %v4715_v31  ;;  %v7017_v38 = vpack.c.bf16 %v4978_v36, %v4972_v32  ;;  %v4723_v39 = vpop.f32.mrb[171].mxu0  ;;  %v4980_v40 = vpop.f32.mrb[171].mxu1 }
 0x7c6   :  { %v6951_v41 = vpack.c.bf16 %v4723_v39, %v4717_v33  ;;  %v7015_v42 = vpack.c.bf16 %v4980_v40, %v4974_v34  ;;  %v7394_v39 = vld [vmem:[%s10629_s0] sm:$0xff] }
 0x7c7   :  { %v7395_v40 = vld [vmem:[%s10630_s1] sm:$0xff] }
 0x7c8   :  { %v4727_v43 = vpop.f32.mrb[172].mxu0  ;;  %v4984_v44 = vpop.f32.mrb[172].mxu1  ;;  %6952 = vmatprep.subr.bf16.mxu0 %v6951_v41  ;;  %7016 = vmatprep.subr.bf16.mxu1 %v7015_v42  ;;  %v7396_v41 = vld [vmem:[%s10629_s0 + $0x18] sm:$0xff] }
 0x7c9   :  { %v4729_v45 = vpop.f32.mrb[173].mxu0  ;;  %v4986_v46 = vpop.f32.mrb[173].mxu1  ;;  %6954 = vmatpush1.bf16.msra.mxu0 %v6953_v37  ;;  %7018 = vmatpush1.bf16.msra.mxu1 %v7017_v38  ;;  %v7397_v42 = vld [vmem:[%s10630_s1 + $0x18] sm:$0xff] }
 0x7cc   :  { %v4733_v47 = vpop.f32.mrb[174].mxu0  ;;  %v4990_v48 = vpop.f32.mrb[174].mxu1 }
 0x7cd   :  { %v6957_v49 = vpack.c.bf16 %v4733_v47, %v4727_v43  ;;  %v7021_v50 = vpack.c.bf16 %v4990_v48, %v4984_v44  ;;  %v4735_v51 = vpop.f32.mrb[175].mxu0  ;;  %v4992_v52 = vpop.f32.mrb[175].mxu1  ;;  %v7398_v43 = vld [vmem:[%s10629_s0 + $0x10] sm:$0xff]  ;;  %v7402_v47 = vld [vmem:[%s10629_s0 + $0x20] sm:$0xff] }
 0x7ce   :  { %v6955_v53 = vpack.c.bf16 %v4735_v51, %v4729_v45  ;;  %v7019_v54 = vpack.c.bf16 %v4992_v52, %v4986_v46  ;;  %v7399_v44 = vld [vmem:[%s10630_s1 + $0x10] sm:$0xff]  ;;  %v7400_v45 = vld [vmem:[%s10629_s0 + $0x28] sm:$0xff]  ;;  %v7403_v48 = vld [vmem:[%s10630_s1 + $0x20] sm:$0xff] }
 0x7cf   :  { %v7401_v46 = vld [vmem:[%s10630_s1 + $0x28] sm:$0xff]  ;;  %v7406_v51 = vld [vmem:[%s10629_s0 + $0x30] sm:$0xff] }
 0x7d0   :  { %v4739_v55 = vpop.f32.mrb[176].mxu0  ;;  %v4996_v56 = vpop.f32.mrb[176].mxu1  ;;  %6956 = vmatprep.subr.bf16.mxu0 %v6955_v53  ;;  %7020 = vmatprep.subr.bf16.mxu1 %v7019_v54  ;;  %v7407_v52 = vld [vmem:[%s10630_s1 + $0x30] sm:$0xff]  ;;  %v7408_v53 = vld [vmem:[%s10629_s0 + $0x48] sm:$0xff] }
 0x7d1   :  { %v4741_v57 = vpop.f32.mrb[177].mxu0  ;;  %v4998_v58 = vpop.f32.mrb[177].mxu1  ;;  %6958 = vmatpush1.bf16.msra.mxu0 %v6957_v49  ;;  %7022 = vmatpush1.bf16.msra.mxu1 %v7021_v50  ;;  %v7404_v49 = vld [vmem:[%s10629_s0 + $0x38] sm:$0xff]  ;;  %v7409_v54 = vld [vmem:[%s10630_s1 + $0x48] sm:$0xff] }
 0x7d2   :  { %v7405_v50 = vld [vmem:[%s10630_s1 + $0x38] sm:$0xff] }
 0x7d4   :  { %v4745_v59 = vpop.f32.mrb[178].mxu0  ;;  %v5002_v60 = vpop.f32.mrb[178].mxu1 }
 0x7d5   :  { %v6961_v61 = vpack.c.bf16 %v4745_v59, %v4739_v55  ;;  %v7025_v62 = vpack.c.bf16 %v5002_v60, %v4996_v56  ;;  %v4747_v63 = vpop.f32.mrb[179].mxu0  ;;  %v5004_v0 = vpop.f32.mrb[179].mxu1  ;;  %v7410_v55 = vld [vmem:[%s10629_s0 + $0x40] sm:$0xff]  ;;  %v7414_v59 = vld [vmem:[%s10629_s0 + $0x50] sm:$0xff] }
 0x7d6   :  { %v6959_v1 = vpack.c.bf16 %v4747_v63, %v4741_v57  ;;  %v7023_v2 = vpack.c.bf16 %v5004_v0, %v4998_v58  ;;  %v7411_v56 = vld [vmem:[%s10630_s1 + $0x40] sm:$0xff]  ;;  %v7412_v57 = vld [vmem:[%s10629_s0 + $0x58] sm:$0xff]  ;;  %v7415_v60 = vld [vmem:[%s10630_s1 + $0x50] sm:$0xff] }
 0x7d7   :  { %v7413_v58 = vld [vmem:[%s10630_s1 + $0x58] sm:$0xff]  ;;  %v7418_v63 = vld [vmem:[%s10629_s0 + $0x60] sm:$0xff] }
 0x7d8   :  { %v4751_v3 = vpop.f32.mrb[180].mxu0  ;;  %v5008_v4 = vpop.f32.mrb[180].mxu1  ;;  %6960 = vmatprep.subr.bf16.mxu0 %v6959_v1  ;;  %7024 = vmatprep.subr.bf16.mxu1 %v7023_v2  ;;  %v7419_v0 = vld [vmem:[%s10630_s1 + $0x60] sm:$0xff]  ;;  %v7420_v1 = vld [vmem:[%s10629_s0 + $0x78] sm:$0xff] }
 0x7d9   :  { %v4753_v5 = vpop.f32.mrb[181].mxu0  ;;  %v5010_v6 = vpop.f32.mrb[181].mxu1  ;;  %6962 = vmatpush1.bf16.msra.mxu0 %v6961_v61  ;;  %7026 = vmatpush1.bf16.msra.mxu1 %v7025_v62  ;;  %v7416_v61 = vld [vmem:[%s10629_s0 + $0x68] sm:$0xff]  ;;  %v7421_v2 = vld [vmem:[%s10630_s1 + $0x78] sm:$0xff] }
 0x7da   :  { %v7417_v62 = vld [vmem:[%s10630_s1 + $0x68] sm:$0xff] }
 0x7dc   :  { %v4757_v7 = vpop.f32.mrb[182].mxu0  ;;  %v5014_v8 = vpop.f32.mrb[182].mxu1 }
 0x7dd   :  { %v6965_v9 = vpack.c.bf16 %v4757_v7, %v4751_v3  ;;  %v7029_v10 = vpack.c.bf16 %v5014_v8, %v5008_v4  ;;  %v4759_v11 = vpop.f32.mrb[183].mxu0  ;;  %v5016_v12 = vpop.f32.mrb[183].mxu1  ;;  %v7422_v3 = vld [vmem:[%s10629_s0 + $0x70] sm:$0xff]  ;;  %v7426_v7 = vld [vmem:[%s10629_s0 + $0x80] sm:$0xff] }
 0x7de   :  { %v6963_v13 = vpack.c.bf16 %v4759_v11, %v4753_v5  ;;  %v7027_v14 = vpack.c.bf16 %v5016_v12, %v5010_v6  ;;  %v7423_v4 = vld [vmem:[%s10630_s1 + $0x70] sm:$0xff]  ;;  %v7424_v5 = vld [vmem:[%s10629_s0 + $0x88] sm:$0xff]  ;;  %v7427_v8 = vld [vmem:[%s10630_s1 + $0x80] sm:$0xff] }
 0x7df   :  { %v7425_v6 = vld [vmem:[%s10630_s1 + $0x88] sm:$0xff]  ;;  %v7430_v11 = vld [vmem:[%s10629_s0 + $0x90] sm:$0xff] }
 0x7e0   :  { %v4763_v15 = vpop.f32.mrb[184].mxu0  ;;  %v5020_v16 = vpop.f32.mrb[184].mxu1  ;;  %6964 = vmatprep.subr.bf16.mxu0 %v6963_v13  ;;  %7028 = vmatprep.subr.bf16.mxu1 %v7027_v14  ;;  %v7431_v12 = vld [vmem:[%s10630_s1 + $0x90] sm:$0xff]  ;;  %v7432_v13 = vld [vmem:[%s10629_s0 + $0xa8] sm:$0xff] }
 0x7e1   :  { %v4765_v17 = vpop.f32.mrb[185].mxu0  ;;  %v5022_v18 = vpop.f32.mrb[185].mxu1  ;;  %6966 = vmatpush1.bf16.msra.mxu0 %v6965_v9  ;;  %7030 = vmatpush1.bf16.msra.mxu1 %v7029_v10  ;;  %v7428_v9 = vld [vmem:[%s10629_s0 + $0x98] sm:$0xff]  ;;  %v7433_v14 = vld [vmem:[%s10630_s1 + $0xa8] sm:$0xff] }
 0x7e2   :  { %v7429_v10 = vld [vmem:[%s10630_s1 + $0x98] sm:$0xff] }
 0x7e4   :  { %v4769_v19 = vpop.f32.mrb[186].mxu0  ;;  %v5026_v20 = vpop.f32.mrb[186].mxu1 }
 0x7e5   :  { %v6969_v21 = vpack.c.bf16 %v4769_v19, %v4763_v15  ;;  %v7033_v22 = vpack.c.bf16 %v5026_v20, %v5020_v16  ;;  %v4771_v23 = vpop.f32.mrb[187].mxu0  ;;  %v5028_v24 = vpop.f32.mrb[187].mxu1  ;;  %v7434_v15 = vld [vmem:[%s10629_s0 + $0xa0] sm:$0xff]  ;;  %v7438_v19 = vld [vmem:[%s10629_s0 + $0xb0] sm:$0xff] }
 0x7e6   :  { %v6967_v25 = vpack.c.bf16 %v4771_v23, %v4765_v17  ;;  %v7031_v26 = vpack.c.bf16 %v5028_v24, %v5022_v18  ;;  %v7435_v16 = vld [vmem:[%s10630_s1 + $0xa0] sm:$0xff]  ;;  %v7436_v17 = vld [vmem:[%s10629_s0 + $0xb8] sm:$0xff]  ;;  %v7439_v20 = vld [vmem:[%s10630_s1 + $0xb0] sm:$0xff] }
 0x7e7   :  { %v7437_v18 = vld [vmem:[%s10630_s1 + $0xb8] sm:$0xff]  ;;  %v7442_v23 = vld [vmem:[%s10629_s0 + $0xc0] sm:$0xff] }
 0x7e8   :  { %v4775_v27 = vpop.f32.mrb[188].mxu0  ;;  %v5032_v28 = vpop.f32.mrb[188].mxu1  ;;  %6968 = vmatprep.subr.bf16.mxu0 %v6967_v25  ;;  %7032 = vmatprep.subr.bf16.mxu1 %v7031_v26  ;;  %v7443_v24 = vld [vmem:[%s10630_s1 + $0xc0] sm:$0xff]  ;;  %v7444_v25 = vld [vmem:[%s10629_s0 + $0xd8] sm:$0xff] }
 0x7e9   :  { %v4777_v29 = vpop.f32.mrb[189].mxu0  ;;  %v5034_v30 = vpop.f32.mrb[189].mxu1  ;;  %6970 = vmatpush1.bf16.msra.mxu0 %v6969_v21  ;;  %7034 = vmatpush1.bf16.msra.mxu1 %v7033_v22  ;;  %v7440_v21 = vld [vmem:[%s10629_s0 + $0xc8] sm:$0xff]  ;;  %v7445_v26 = vld [vmem:[%s10630_s1 + $0xd8] sm:$0xff] }
 0x7ea   :  { %v7441_v22 = vld [vmem:[%s10630_s1 + $0xc8] sm:$0xff] }
 0x7ec   :  { %v4781_v31 = vpop.f32.mrb[190].mxu0  ;;  %v5038_v32 = vpop.f32.mrb[190].mxu1 }
 0x7ed   :  { %v6973_v33 = vpack.c.bf16 %v4781_v31, %v4775_v27  ;;  %v7037_v34 = vpack.c.bf16 %v5038_v32, %v5032_v28  ;;  %v4783_v35 = vpop.f32.mrb[191].mxu0  ;;  %v5040_v36 = vpop.f32.mrb[191].mxu1  ;;  %v7446_v27 = vld [vmem:[%s10629_s0 + $0xd0] sm:$0xff]  ;;  %v7450_v31 = vld [vmem:[%s10629_s0 + $0xe0] sm:$0xff] }
 0x7ee   :  { %v6971_v37 = vpack.c.bf16 %v4783_v35, %v4777_v29  ;;  %v7035_v38 = vpack.c.bf16 %v5040_v36, %v5034_v30  ;;  %v7447_v28 = vld [vmem:[%s10630_s1 + $0xd0] sm:$0xff]  ;;  %v7448_v29 = vld [vmem:[%s10629_s0 + $0xe8] sm:$0xff]  ;;  %v7451_v32 = vld [vmem:[%s10630_s1 + $0xe0] sm:$0xff] }
 0x7ef   :  { %v7449_v30 = vld [vmem:[%s10630_s1 + $0xe8] sm:$0xff]  ;;  %v7454_v35 = vld [vmem:[%s10629_s0 + $0xf0] sm:$0xff] }
 0x7f0   :  { %6972 = vmatprep.subr.bf16.mxu0 %v6971_v37  ;;  %7036 = vmatprep.subr.bf16.mxu1 %v7035_v38  ;;  %v7455_v36 = vld [vmem:[%s10630_s1 + $0xf0] sm:$0xff]  ;;  %v7456_v37 = vld [vmem:[%s10629_s0 + $0x108] sm:$0xff] }
 0x7f1   :  { %6974 = vmatpush1.bf16.msra.mxu0 %v6973_v33  ;;  %7038 = vmatpush1.bf16.msra.mxu1 %v7037_v34  ;;  %v7452_v33 = vld [vmem:[%s10629_s0 + $0xf8] sm:$0xff]  ;;  %v7457_v38 = vld [vmem:[%s10630_s1 + $0x108] sm:$0xff] }
 0x7f2   :  { %v7453_v34 = vld [vmem:[%s10630_s1 + $0xf8] sm:$0xff] }
 0x7f4   :  { %5108 = vmatmul.mubr.f32.vlgmr.msra.gmra.mrb[192].mxu0 %v7394_v39  ;;  %5429 = vmatmul.mubr.f32.vlgmr.msra.gmra.mrb[192].mxu1 %v7395_v40  ;;  %v7458_v39 = vld [vmem:[%s10629_s0 + $0x100] sm:$0xff] }
 0x7f5   :  { %5113 = vmatprep.mubr.f32.mxu0 %v7396_v41  ;;  %5434 = vmatprep.mubr.f32.mxu1 %v7397_v42  ;;  %v7459_v40 = vld [vmem:[%s10630_s1 + $0x100] sm:$0xff]  ;;  %v7460_v41 = vld [vmem:[%s10629_s0 + $0x118] sm:$0xff] }
 0x7f6   :  { %v7461_v42 = vld [vmem:[%s10630_s1 + $0x118] sm:$0xff] }
 0x7f8   :  { %5114 = vmatmul.mubr.f32.gmra.mrb[194].mxu0 %v7398_v43  ;;  %5435 = vmatmul.mubr.f32.gmra.mrb[194].mxu1 %v7399_v44  ;;  %v7462_v43 = vld [vmem:[%s10629_s0 + $0x110] sm:$0xff] }
 0x7f9   :  { %5119 = vmatprep.mubr.f32.mxu0 %v7400_v45  ;;  %5440 = vmatprep.mubr.f32.mxu1 %v7401_v46  ;;  %v7463_v44 = vld [vmem:[%s10630_s1 + $0x110] sm:$0xff]  ;;  %v7464_v45 = vld [vmem:[%s10629_s0 + $0x128] sm:$0xff] }
 0x7fa   :  { %v7465_v46 = vld [vmem:[%s10630_s1 + $0x128] sm:$0xff] }
 0x7fc   :  { %5120 = vmatmul.mubr.f32.gmra.mrb[196].mxu0 %v7402_v47  ;;  %5441 = vmatmul.mubr.f32.gmra.mrb[196].mxu1 %v7403_v48  ;;  %v7466_v47 = vld [vmem:[%s10629_s0 + $0x120] sm:$0xff] }
 0x7fd   :  { %5125 = vmatprep.mubr.f32.mxu0 %v7404_v49  ;;  %5446 = vmatprep.mubr.f32.mxu1 %v7405_v50  ;;  %v7467_v48 = vld [vmem:[%s10630_s1 + $0x120] sm:$0xff]  ;;  %v7468_v49 = vld [vmem:[%s10629_s0 + $0x138] sm:$0xff] }
 0x7fe   :  { %v7469_v50 = vld [vmem:[%s10630_s1 + $0x138] sm:$0xff] }
 0x800   :  { %5126 = vmatmul.mubr.f32.gmra.mrb[198].mxu0 %v7406_v51  ;;  %5447 = vmatmul.mubr.f32.gmra.mrb[198].mxu1 %v7407_v52  ;;  %v7470_v51 = vld [vmem:[%s10629_s0 + $0x130] sm:$0xff] }
 0x801   :  { %5131 = vmatprep.mubr.f32.mxu0 %v7408_v53  ;;  %5452 = vmatprep.mubr.f32.mxu1 %v7409_v54  ;;  %v7471_v52 = vld [vmem:[%s10630_s1 + $0x130] sm:$0xff]  ;;  %v7472_v53 = vld [vmem:[%s10629_s0 + $0x148] sm:$0xff] }
 0x802   :  { %v7473_v54 = vld [vmem:[%s10630_s1 + $0x148] sm:$0xff] }
 0x804   :  { %5132 = vmatmul.mubr.f32.gmra.mrb[200].mxu0 %v7410_v55  ;;  %5453 = vmatmul.mubr.f32.gmra.mrb[200].mxu1 %v7411_v56  ;;  %v7474_v55 = vld [vmem:[%s10629_s0 + $0x140] sm:$0xff] }
 0x805   :  { %5137 = vmatprep.mubr.f32.mxu0 %v7412_v57  ;;  %5458 = vmatprep.mubr.f32.mxu1 %v7413_v58  ;;  %v7475_v56 = vld [vmem:[%s10630_s1 + $0x140] sm:$0xff]  ;;  %v7476_v57 = vld [vmem:[%s10629_s0 + $0x158] sm:$0xff] }
 0x806   :  { %v7477_v58 = vld [vmem:[%s10630_s1 + $0x158] sm:$0xff] }
 0x808   :  { %5138 = vmatmul.mubr.f32.gmra.mrb[202].mxu0 %v7414_v59  ;;  %5459 = vmatmul.mubr.f32.gmra.mrb[202].mxu1 %v7415_v60  ;;  %v7478_v59 = vld [vmem:[%s10629_s0 + $0x150] sm:$0xff] }
 0x809   :  { %5143 = vmatprep.mubr.f32.mxu0 %v7416_v61  ;;  %5464 = vmatprep.mubr.f32.mxu1 %v7417_v62  ;;  %v7479_v60 = vld [vmem:[%s10630_s1 + $0x150] sm:$0xff]  ;;  %v7480_v61 = vld [vmem:[%s10629_s0 + $0x168] sm:$0xff] }
 0x80a   :  { %v7481_v62 = vld [vmem:[%s10630_s1 + $0x168] sm:$0xff] }
 0x80c   :  { %5144 = vmatmul.mubr.f32.gmra.mrb[204].mxu0 %v7418_v63  ;;  %5465 = vmatmul.mubr.f32.gmra.mrb[204].mxu1 %v7419_v0  ;;  %v7482_v63 = vld [vmem:[%s10629_s0 + $0x160] sm:$0xff] }
 0x80d   :  { %5149 = vmatprep.mubr.f32.mxu0 %v7420_v1  ;;  %5470 = vmatprep.mubr.f32.mxu1 %v7421_v2  ;;  %v7483_v0 = vld [vmem:[%s10630_s1 + $0x160] sm:$0xff]  ;;  %v7484_v1 = vld [vmem:[%s10629_s0 + $0x178] sm:$0xff] }
 0x80e   :  { %v7485_v2 = vld [vmem:[%s10630_s1 + $0x178] sm:$0xff] }
 0x810   :  { %5150 = vmatmul.mubr.f32.gmra.mrb[206].mxu0 %v7422_v3  ;;  %5471 = vmatmul.mubr.f32.gmra.mrb[206].mxu1 %v7423_v4  ;;  %v7486_v3 = vld [vmem:[%s10629_s0 + $0x170] sm:$0xff] }
 0x811   :  { %5155 = vmatprep.mubr.f32.mxu0 %v7424_v5  ;;  %5476 = vmatprep.mubr.f32.mxu1 %v7425_v6  ;;  %v7487_v4 = vld [vmem:[%s10630_s1 + $0x170] sm:$0xff]  ;;  %v7488_v5 = vld [vmem:[%s10629_s0 + $0x188] sm:$0xff] }
 0x812   :  { %v7489_v6 = vld [vmem:[%s10630_s1 + $0x188] sm:$0xff] }
 0x814   :  { %5156 = vmatmul.mubr.f32.gmra.mrb[208].mxu0 %v7426_v7  ;;  %5477 = vmatmul.mubr.f32.gmra.mrb[208].mxu1 %v7427_v8  ;;  %v7490_v7 = vld [vmem:[%s10629_s0 + $0x180] sm:$0xff] }
 0x815   :  { %5161 = vmatprep.mubr.f32.mxu0 %v7428_v9  ;;  %5482 = vmatprep.mubr.f32.mxu1 %v7429_v10  ;;  %v7491_v8 = vld [vmem:[%s10630_s1 + $0x180] sm:$0xff]  ;;  %v7492_v9 = vld [vmem:[%s10629_s0 + $0x198] sm:$0xff] }
 0x816   :  { %v7493_v10 = vld [vmem:[%s10630_s1 + $0x198] sm:$0xff] }
 0x818   :  { %5162 = vmatmul.mubr.f32.gmra.mrb[210].mxu0 %v7430_v11  ;;  %5483 = vmatmul.mubr.f32.gmra.mrb[210].mxu1 %v7431_v12  ;;  %v7494_v11 = vld [vmem:[%s10629_s0 + $0x190] sm:$0xff] }
 0x819   :  { %5167 = vmatprep.mubr.f32.mxu0 %v7432_v13  ;;  %5488 = vmatprep.mubr.f32.mxu1 %v7433_v14  ;;  %v7495_v12 = vld [vmem:[%s10630_s1 + $0x190] sm:$0xff]  ;;  %v7496_v13 = vld [vmem:[%s10629_s0 + $0x1a8] sm:$0xff] }
 0x81a   :  { %v7497_v14 = vld [vmem:[%s10630_s1 + $0x1a8] sm:$0xff] }
 0x81c   :  { %5168 = vmatmul.mubr.f32.gmra.mrb[212].mxu0 %v7434_v15  ;;  %5489 = vmatmul.mubr.f32.gmra.mrb[212].mxu1 %v7435_v16  ;;  %v7498_v15 = vld [vmem:[%s10629_s0 + $0x1a0] sm:$0xff] }
 0x81d   :  { %5173 = vmatprep.mubr.f32.mxu0 %v7436_v17  ;;  %5494 = vmatprep.mubr.f32.mxu1 %v7437_v18  ;;  %v7499_v16 = vld [vmem:[%s10630_s1 + $0x1a0] sm:$0xff]  ;;  %v7500_v17 = vld [vmem:[%s10629_s0 + $0x1b8] sm:$0xff] }
 0x81e   :  { %v7501_v18 = vld [vmem:[%s10630_s1 + $0x1b8] sm:$0xff] }
 0x820   :  { %5174 = vmatmul.mubr.f32.gmra.mrb[214].mxu0 %v7438_v19  ;;  %5495 = vmatmul.mubr.f32.gmra.mrb[214].mxu1 %v7439_v20  ;;  %v7502_v19 = vld [vmem:[%s10629_s0 + $0x1b0] sm:$0xff] }
 0x821   :  { %5179 = vmatprep.mubr.f32.mxu0 %v7440_v21  ;;  %5500 = vmatprep.mubr.f32.mxu1 %v7441_v22  ;;  %v7503_v20 = vld [vmem:[%s10630_s1 + $0x1b0] sm:$0xff]  ;;  %v7504_v21 = vld [vmem:[%s10629_s0 + $0x1c8] sm:$0xff] }
 0x822   :  { %v7505_v22 = vld [vmem:[%s10630_s1 + $0x1c8] sm:$0xff] }
 0x824   :  { %5180 = vmatmul.mubr.f32.gmra.mrb[216].mxu0 %v7442_v23  ;;  %5501 = vmatmul.mubr.f32.gmra.mrb[216].mxu1 %v7443_v24  ;;  %v7506_v23 = vld [vmem:[%s10629_s0 + $0x1c0] sm:$0xff] }
 0x825   :  { %5185 = vmatprep.mubr.f32.mxu0 %v7444_v25  ;;  %5506 = vmatprep.mubr.f32.mxu1 %v7445_v26  ;;  %v7507_v24 = vld [vmem:[%s10630_s1 + $0x1c0] sm:$0xff]  ;;  %v7508_v25 = vld [vmem:[%s10629_s0 + $0x1d8] sm:$0xff] }
 0x826   :  { %v7509_v26 = vld [vmem:[%s10630_s1 + $0x1d8] sm:$0xff] }
 0x828   :  { %5186 = vmatmul.mubr.f32.gmra.mrb[218].mxu0 %v7446_v27  ;;  %5507 = vmatmul.mubr.f32.gmra.mrb[218].mxu1 %v7447_v28  ;;  %v7510_v27 = vld [vmem:[%s10629_s0 + $0x1d0] sm:$0xff] }
 0x829   :  { %5191 = vmatprep.mubr.f32.mxu0 %v7448_v29  ;;  %5512 = vmatprep.mubr.f32.mxu1 %v7449_v30  ;;  %v7511_v28 = vld [vmem:[%s10630_s1 + $0x1d0] sm:$0xff]  ;;  %v7512_v29 = vld [vmem:[%s10629_s0 + $0x1e8] sm:$0xff] }
 0x82a   :  { %v7513_v30 = vld [vmem:[%s10630_s1 + $0x1e8] sm:$0xff] }
 0x82c   :  { %5192 = vmatmul.mubr.f32.gmra.mrb[220].mxu0 %v7450_v31  ;;  %5513 = vmatmul.mubr.f32.gmra.mrb[220].mxu1 %v7451_v32  ;;  %v7514_v31 = vld [vmem:[%s10629_s0 + $0x1e0] sm:$0xff] }
 0x82d   :  { %5197 = vmatprep.mubr.f32.mxu0 %v7452_v33  ;;  %5518 = vmatprep.mubr.f32.mxu1 %v7453_v34  ;;  %v7515_v32 = vld [vmem:[%s10630_s1 + $0x1e0] sm:$0xff]  ;;  %v7516_v33 = vld [vmem:[%s10629_s0 + $0x1f8] sm:$0xff] }
 0x82e   :  { %v7517_v34 = vld [vmem:[%s10630_s1 + $0x1f8] sm:$0xff] }
 0x830   :  { %5198 = vmatmul.mubr.f32.gmra.mrb[222].mxu0 %v7454_v35  ;;  %5519 = vmatmul.mubr.f32.gmra.mrb[222].mxu1 %v7455_v36  ;;  %v7518_v35 = vld [vmem:[%s10629_s0 + $0x1f0] sm:$0xff] }
 0x831   :  { %5203 = vmatprep.mubr.f32.mxu0 %v7456_v37  ;;  %5524 = vmatprep.mubr.f32.mxu1 %v7457_v38  ;;  %v7519_v36 = vld [vmem:[%s10630_s1 + $0x1f0] sm:$0xff] }
 0x834   :  { %5204 = vmatmul.mubr.f32.gmra.mrb[224].mxu0 %v7458_v39  ;;  %5525 = vmatmul.mubr.f32.gmra.mrb[224].mxu1 %v7459_v40 }
 0x835   :  { %5209 = vmatprep.mubr.f32.mxu0 %v7460_v41  ;;  %5530 = vmatprep.mubr.f32.mxu1 %v7461_v42 }
 0x838   :  { %5210 = vmatmul.mubr.f32.gmra.mrb[226].mxu0 %v7462_v43  ;;  %5531 = vmatmul.mubr.f32.gmra.mrb[226].mxu1 %v7463_v44 }
 0x839   :  { %5215 = vmatprep.mubr.f32.mxu0 %v7464_v45  ;;  %5536 = vmatprep.mubr.f32.mxu1 %v7465_v46 }
 0x83c   :  { %5216 = vmatmul.mubr.f32.gmra.mrb[228].mxu0 %v7466_v47  ;;  %5537 = vmatmul.mubr.f32.gmra.mrb[228].mxu1 %v7467_v48 }
 0x83d   :  { %5221 = vmatprep.mubr.f32.mxu0 %v7468_v49  ;;  %5542 = vmatprep.mubr.f32.mxu1 %v7469_v50 }
 0x840   :  { %5222 = vmatmul.mubr.f32.gmra.mrb[230].mxu0 %v7470_v51  ;;  %5543 = vmatmul.mubr.f32.gmra.mrb[230].mxu1 %v7471_v52 }
 0x841   :  { %5227 = vmatprep.mubr.f32.mxu0 %v7472_v53  ;;  %5548 = vmatprep.mubr.f32.mxu1 %v7473_v54 }
 0x844   :  { %5228 = vmatmul.mubr.f32.gmra.mrb[232].mxu0 %v7474_v55  ;;  %5549 = vmatmul.mubr.f32.gmra.mrb[232].mxu1 %v7475_v56 }
 0x845   :  { %5233 = vmatprep.mubr.f32.mxu0 %v7476_v57  ;;  %5554 = vmatprep.mubr.f32.mxu1 %v7477_v58 }
 0x848   :  { %5234 = vmatmul.mubr.f32.gmra.mrb[234].mxu0 %v7478_v59  ;;  %5555 = vmatmul.mubr.f32.gmra.mrb[234].mxu1 %v7479_v60  ;;  %v5814_v59 = vld [vmem:[%s10634_s3 + $0x8] sm:$0xff] }
 0x849   :  { %5239 = vmatprep.mubr.f32.mxu0 %v7480_v61  ;;  %5560 = vmatprep.mubr.f32.mxu1 %v7481_v62 }
 0x84c   :  { %5240 = vmatmul.mubr.f32.gmra.mrb[236].mxu0 %v7482_v63  ;;  %5561 = vmatmul.mubr.f32.gmra.mrb[236].mxu1 %v7483_v0 }
 0x84d   :  { %5245 = vmatprep.mubr.f32.mxu0 %v7484_v1  ;;  %5566 = vmatprep.mubr.f32.mxu1 %v7485_v2 }
 0x850   :  { %5246 = vmatmul.mubr.f32.gmra.mrb[238].mxu0 %v7486_v3  ;;  %5567 = vmatmul.mubr.f32.gmra.mrb[238].mxu1 %v7487_v4 }
 0x851   :  { %5251 = vmatprep.mubr.f32.mxu0 %v7488_v5  ;;  %5572 = vmatprep.mubr.f32.mxu1 %v7489_v6 }
 0x854   :  { %5252 = vmatmul.mubr.f32.gmra.mrb[240].mxu0 %v7490_v7  ;;  %5573 = vmatmul.mubr.f32.gmra.mrb[240].mxu1 %v7491_v8 }
 0x855   :  { %5257 = vmatprep.mubr.f32.mxu0 %v7492_v9  ;;  %5578 = vmatprep.mubr.f32.mxu1 %v7493_v10 }
 0x858   :  { %5258 = vmatmul.mubr.f32.gmra.mrb[242].mxu0 %v7494_v11  ;;  %5579 = vmatmul.mubr.f32.gmra.mrb[242].mxu1 %v7495_v12 }
 0x859   :  { %5263 = vmatprep.mubr.f32.mxu0 %v7496_v13  ;;  %5584 = vmatprep.mubr.f32.mxu1 %v7497_v14 }
 0x85c   :  { %5264 = vmatmul.mubr.f32.gmra.mrb[244].mxu0 %v7498_v15  ;;  %5585 = vmatmul.mubr.f32.gmra.mrb[244].mxu1 %v7499_v16 }
 0x85d   :  { %5269 = vmatprep.mubr.f32.mxu0 %v7500_v17  ;;  %5590 = vmatprep.mubr.f32.mxu1 %v7501_v18 }
 0x860   :  { %5270 = vmatmul.mubr.f32.gmra.mrb[246].mxu0 %v7502_v19  ;;  %5591 = vmatmul.mubr.f32.gmra.mrb[246].mxu1 %v7503_v20 }
 0x861   :  { %5275 = vmatprep.mubr.f32.mxu0 %v7504_v21  ;;  %5596 = vmatprep.mubr.f32.mxu1 %v7505_v22 }
 0x864   :  { %5276 = vmatmul.mubr.f32.gmra.mrb[248].mxu0 %v7506_v23  ;;  %5597 = vmatmul.mubr.f32.gmra.mrb[248].mxu1 %v7507_v24 }
 0x865   :  { %5281 = vmatprep.mubr.f32.mxu0 %v7508_v25  ;;  %5602 = vmatprep.mubr.f32.mxu1 %v7509_v26 }
 0x868   :  { %5282 = vmatmul.mubr.f32.gmra.mrb[250].mxu0 %v7510_v27  ;;  %5603 = vmatmul.mubr.f32.gmra.mrb[250].mxu1 %v7511_v28 }
 0x869   :  { %5287 = vmatprep.mubr.f32.mxu0 %v7512_v29  ;;  %5608 = vmatprep.mubr.f32.mxu1 %v7513_v30 }
 0x86c   :  { %5288 = vmatmul.mubr.f32.gmra.mrb[252].mxu0 %v7514_v31  ;;  %5609 = vmatmul.mubr.f32.gmra.mrb[252].mxu1 %v7515_v32 }
 0x86d   :  { %5293 = vmatprep.mubr.f32.mxu0 %v7516_v33  ;;  %5614 = vmatprep.mubr.f32.mxu1 %v7517_v34 }
 0x870   :  { %5294 = vmatmul.mubr.f32.gmra.mrb[254].mxu0 %v7518_v35  ;;  %5615 = vmatmul.mubr.f32.gmra.mrb[254].mxu1 %v7519_v36 }
 0x871   :  { %5885 = vmatprep.mubr.f32.mxu0 %v5814_v59 }
 0x8c7   :  { %v5109_v37 = vpop.f32.mrb[192].mxu0  ;;  %v5430_v38 = vpop.f32.mrb[192].mxu1 }
 0x8c8   :  { %v5300_v39 = vmax.f32 %v5109_v37, 0.0  ;;  %v5621_v40 = vmax.f32 %v5430_v38, 0.0  ;;  %v5111_v41 = vpop.f32.mrb[193].mxu0  ;;  %v5432_v42 = vpop.f32.mrb[193].mxu1 }
 0x8c9   :  { %v5301_v43 = vmax.f32 %v5111_v41, 0.0  ;;  %v5622_v44 = vmax.f32 %v5432_v42, 0.0 }
 0x8ca   :  { %v5685_v45 = vadd.f32 %v5621_v40, %v5300_v39 }
 0x8cb   :  { %v5686_v46 = vadd.f32 %v5622_v44, %v5301_v43  ;;  %v5115_v47 = vpop.f32.mrb[194].mxu0  ;;  %v5436_v48 = vpop.f32.mrb[194].mxu1 }
 0x8cc   :  { %v5302_v49 = vmax.f32 %v5115_v47, 0.0  ;;  %v5623_v50 = vmax.f32 %v5436_v48, 0.0  ;;  %v5117_v51 = vpop.f32.mrb[195].mxu0  ;;  %v5438_v52 = vpop.f32.mrb[195].mxu1  ;;  %v5749_v60 = vmul.f32 0.5, %v5685_v45  ;;  %v5927_v47 = vld [vmem:[%s10635_s8 + $0x88] sm:$0xff] }
 0x8cd   :  { %v5303_v53 = vmax.f32 %v5117_v51, 0.0  ;;  %v5624_v54 = vmax.f32 %v5438_v52, 0.0  ;;  %v5750_v2 = vmul.f32 0.5, %v5686_v46  ;;  %v5926_v46 = vld [vmem:[%s10635_s8 + $0x80] sm:$0xff] }
 0x8ce   :  { %v5687_v55 = vadd.f32 %v5623_v50, %v5302_v49  ;;  %v5910_v48 = vld [vmem:[%s10635_s8] sm:$0xff] }
 0x8cf   :  { %v5688_v56 = vadd.f32 %v5624_v54, %v5303_v53  ;;  %v5121_v57 = vpop.f32.mrb[196].mxu0  ;;  %v5442_v58 = vpop.f32.mrb[196].mxu1  ;;  %v7103_v53 = vpack.c.bf16 %v5927_v47, %v5926_v46  ;;  %v5911_v54 = vld [vmem:[%s10635_s8 + $0x8] sm:$0xff] }
 0x8d0   :  { %v5751_v61 = vmul.f32 0.5, %v5687_v55  ;;  %v5304_v62 = vmax.f32 %v5121_v57, 0.0  ;;  %v5625_v63 = vmax.f32 %v5442_v58, 0.0  ;;  %v5123_v0 = vpop.f32.mrb[197].mxu0  ;;  %v5444_v1 = vpop.f32.mrb[197].mxu1  ;;  %v5928_v55 = vld [vmem:[%s10635_s8 + $0x90] sm:$0xff] }
 0x8d1   :  { %v5752_v3 = vmul.f32 0.5, %v5688_v56  ;;  %v5305_v4 = vmax.f32 %v5123_v0, 0.0  ;;  %v5626_v5 = vmax.f32 %v5444_v1, 0.0  ;;  %v5929_v56 = vld [vmem:[%s10635_s8 + $0x98] sm:$0xff]  ;;  %7104 = vmatprep.subr.bf16.mxu1 %v7103_v53  ;;  %v5918_v53 = vld [vmem:[%s10635_s8 + $0x40] sm:$0xff] }
 0x8d2   :  { %v7041_v6 = vpack.c.bf16 %v5751_v61, %v5749_v60  ;;  %v5689_v7 = vadd.f32 %v5625_v63, %v5304_v62  ;;  %v7105_v62 = vpack.c.bf16 %v5911_v54, %v5910_v48  ;;  %v5912_v63 = vld [vmem:[%s10635_s8 + $0x10] sm:$0xff]  ;;  %v5919_v54 = vld [vmem:[%s10635_s8 + $0x48] sm:$0xff] }
 0x8d3   :  { %v5690_v8 = vadd.f32 %v5626_v5, %v5305_v4  ;;  %v5127_v9 = vpop.f32.mrb[198].mxu0  ;;  %v5448_v10 = vpop.f32.mrb[198].mxu1  ;;  %v7039_v11 = vpack.c.bf16 %v5752_v3, %v5750_v2  ;;  %v7107_v3 = vpack.c.bf16 %v5929_v56, %v5928_v55  ;;  %v5913_v4 = vld [vmem:[%s10635_s8 + $0x18] sm:$0xff]  ;;  %v5930_v5 = vld [vmem:[%s10635_s8 + $0xa0] sm:$0xff] }
 0x8d4   :  { %v5306_v12 = vmax.f32 %v5127_v9, 0.0  ;;  %v5627_v13 = vmax.f32 %v5448_v10, 0.0  ;;  %v5129_v14 = vpop.f32.mrb[199].mxu0  ;;  %v5450_v15 = vpop.f32.mrb[199].mxu1  ;;  %v5753_v22 = vmul.f32 0.5, %v5689_v7  ;;  %7106 = vmatpush3.bf16.msra.mxu1 %v7105_v62  ;;  %v7109_v9 = vpack.c.bf16 %v5913_v4, %v5912_v63 }
 0x8d5   :  { %v5307_v16 = vmax.f32 %v5129_v14, 0.0  ;;  %v5628_v17 = vmax.f32 %v5450_v15, 0.0  ;;  %7040 = vmatprep.subr.bf16.mxu0 %v7039_v11  ;;  %v5754_v28 = vmul.f32 0.5, %v5690_v8  ;;  %7108 = vmatprep.subr.bf16.mxu1 %v7107_v3  ;;  %v5914_v15 = vld [vmem:[%s10635_s8 + $0x20] sm:$0xff] }
 0x8d6   :  { %v5691_v18 = vadd.f32 %v5627_v13, %v5306_v12  ;;  %7042 = vmatpush1.bf16.msra.mxu0 %v7041_v6  ;;  %v5931_v6 = vld [vmem:[%s10635_s8 + $0xa8] sm:$0xff] }
 0x8d7   :  { %v5692_v19 = vadd.f32 %v5628_v17, %v5307_v16  ;;  %v5133_v20 = vpop.f32.mrb[200].mxu0  ;;  %v5454_v21 = vpop.f32.mrb[200].mxu1  ;;  %v7111_v14 = vpack.c.bf16 %v5931_v6, %v5930_v5  ;;  %v5915_v16 = vld [vmem:[%s10635_s8 + $0x28] sm:$0xff]  ;;  %v5921_v6 = vld [vmem:[%s10635_s8 + $0x58] sm:$0xff] }
 0x8d8   :  { %v5755_v23 = vmul.f32 0.5, %v5691_v18  ;;  %v5308_v24 = vmax.f32 %v5133_v20, 0.0  ;;  %v5629_v25 = vmax.f32 %v5454_v21, 0.0  ;;  %v5135_v26 = vpop.f32.mrb[201].mxu0  ;;  %v5456_v27 = vpop.f32.mrb[201].mxu1  ;;  %v5932_v21 = vld [vmem:[%s10635_s8 + $0xb0] sm:$0xff]  ;;  %7110 = vmatpush3.bf16.msra.mxu1 %v7109_v9 }
 0x8d9   :  { %v5756_v29 = vmul.f32 0.5, %v5692_v19  ;;  %v5309_v30 = vmax.f32 %v5135_v26, 0.0  ;;  %v5630_v31 = vmax.f32 %v5456_v27, 0.0  ;;  %v7113_v26 = vpack.c.bf16 %v5915_v16, %v5914_v15  ;;  %7112 = vmatprep.subr.bf16.mxu1 %v7111_v14 }
 0x8da   :  { %v7045_v32 = vpack.c.bf16 %v5755_v23, %v5753_v22  ;;  %v5693_v33 = vadd.f32 %v5629_v25, %v5308_v24  ;;  %v5933_v22 = vld [vmem:[%s10635_s8 + $0xb8] sm:$0xff] }
 0x8db   :  { %v5694_v34 = vadd.f32 %v5630_v31, %v5309_v30  ;;  %v5139_v35 = vpop.f32.mrb[202].mxu0  ;;  %v5460_v36 = vpop.f32.mrb[202].mxu1  ;;  %v7043_v37 = vpack.c.bf16 %v5756_v29, %v5754_v28  ;;  %v7115_v31 = vpack.c.bf16 %v5933_v22, %v5932_v21 }
 0x8dc   :  { %v5310_v38 = vmax.f32 %v5139_v35, 0.0  ;;  %v5631_v39 = vmax.f32 %v5460_v36, 0.0  ;;  %v5141_v40 = vpop.f32.mrb[203].mxu0  ;;  %v5462_v41 = vpop.f32.mrb[203].mxu1  ;;  %v5757_v44 = vmul.f32 0.5, %v5693_v33  ;;  %v5917_v33 = vld [vmem:[%s10635_s8 + $0x38] sm:$0xff]  ;;  %7114 = vmatpush3.bf16.msra.mxu1 %v7113_v26 }
 0x8dd   :  { %v5311_v42 = vmax.f32 %v5141_v40, 0.0  ;;  %v5632_v43 = vmax.f32 %v5462_v41, 0.0  ;;  %7044 = vmatprep.subr.bf16.mxu0 %v7043_v37  ;;  %v5758_v49 = vmul.f32 0.5, %v5694_v34  ;;  %v5934_v34 = vld [vmem:[%s10635_s8 + $0xc0] sm:$0xff]  ;;  %v5935_v40 = vld [vmem:[%s10635_s8 + $0xc8] sm:$0xff]  ;;  %7116 = vmatprep.subr.bf16.mxu1 %v7115_v31 }
 0x8de   :  { %v5695_v45 = vadd.f32 %v5631_v39, %v5310_v38  ;;  %7046 = vmatpush1.bf16.msra.mxu0 %v7045_v32  ;;  %v5916_v32 = vld [vmem:[%s10635_s8 + $0x30] sm:$0xff] }
 0x8df   :  { %v5696_v50 = vadd.f32 %v5632_v43, %v5311_v42  ;;  %v5145_v51 = vpop.f32.mrb[204].mxu0  ;;  %v5466_v52 = vpop.f32.mrb[204].mxu1  ;;  %v7117_v47 = vpack.c.bf16 %v5917_v33, %v5916_v32  ;;  %v5940_v33 = vld [vmem:[%s10635_s8 + $0xf0] sm:$0xff] }
 0x8e0   :  { %v5759_v57 = vmul.f32 0.5, %v5695_v45  ;;  %v5312_v58 = vmax.f32 %v5145_v51, 0.0  ;;  %v5633_v59 = vmax.f32 %v5466_v52, 0.0  ;;  %v5147_v60 = vpop.f32.mrb[205].mxu0  ;;  %v5468_v61 = vpop.f32.mrb[205].mxu1  ;;  %v7119_v52 = vpack.c.bf16 %v5935_v40, %v5934_v34  ;;  %v5941_v34 = vld [vmem:[%s10635_s8 + $0xf8] sm:$0xff] }
 0x8e1   :  { %v5760_v0 = vmul.f32 0.5, %v5696_v50  ;;  %v5313_v1 = vmax.f32 %v5147_v60, 0.0  ;;  %v5634_v2 = vmax.f32 %v5468_v61, 0.0  ;;  %v5937_v60 = vld [vmem:[%s10635_s8 + $0xd8] sm:$0xff]  ;;  %7118 = vmatpush3.bf16.msra.mxu1 %v7117_v47 }
 0x8e2   :  { %v7049_v7 = vpack.c.bf16 %v5759_v57, %v5757_v44  ;;  %v5697_v8 = vadd.f32 %v5633_v59, %v5312_v58  ;;  %v5936_v59 = vld [vmem:[%s10635_s8 + $0xd0] sm:$0xff]  ;;  %7120 = vmatprep.subr.bf16.mxu1 %v7119_v52 }
 0x8e3   :  { %v5698_v10 = vadd.f32 %v5634_v2, %v5313_v1  ;;  %v5151_v11 = vpop.f32.mrb[206].mxu0  ;;  %v5472_v12 = vpop.f32.mrb[206].mxu1  ;;  %v7047_v13 = vpack.c.bf16 %v5760_v0, %v5758_v49  ;;  %v7121_v0 = vpack.c.bf16 %v5919_v54, %v5918_v53  ;;  %v5920_v1 = vld [vmem:[%s10635_s8 + $0x50] sm:$0xff]  ;;  %v7123_v5 = vpack.c.bf16 %v5937_v60, %v5936_v59 }
 0x8e4   :  { %v5314_v17 = vmax.f32 %v5151_v11, 0.0  ;;  %v5635_v18 = vmax.f32 %v5472_v12, 0.0  ;;  %v5153_v19 = vpop.f32.mrb[207].mxu0  ;;  %v5474_v20 = vpop.f32.mrb[207].mxu1  ;;  %v5761_v27 = vmul.f32 0.5, %v5697_v8  ;;  %v5939_v8 = vld [vmem:[%s10635_s8 + $0xe8] sm:$0xff]  ;;  %v7125_v21 = vpack.c.bf16 %v5921_v6, %v5920_v1 }
 0x8e5   :  { %v5315_v23 = vmax.f32 %v5153_v19, 0.0  ;;  %v5636_v24 = vmax.f32 %v5474_v20, 0.0  ;;  %7048 = vmatprep.subr.bf16.mxu0 %v7047_v13  ;;  %v5762_v41 = vmul.f32 0.5, %v5698_v10  ;;  %7122 = vmatpush3.bf16.msra.mxu1 %v7121_v0 }
 0x8e6   :  { %v5699_v25 = vadd.f32 %v5635_v18, %v5314_v17  ;;  %7050 = vmatpush1.bf16.msra.mxu0 %v7049_v7  ;;  %v5938_v7 = vld [vmem:[%s10635_s8 + $0xe0] sm:$0xff]  ;;  %7124 = vmatprep.subr.bf16.mxu1 %v7123_v5 }
 0x8e7   :  { %v5700_v28 = vadd.f32 %v5636_v24, %v5315_v23  ;;  %v5157_v29 = vpop.f32.mrb[208].mxu0  ;;  %v5478_v30 = vpop.f32.mrb[208].mxu1  ;;  %v7127_v26 = vpack.c.bf16 %v5939_v8, %v5938_v7 }
 0x8e8   :  { %v5763_v35 = vmul.f32 0.5, %v5699_v25  ;;  %v5316_v36 = vmax.f32 %v5157_v29, 0.0  ;;  %v5637_v37 = vmax.f32 %v5478_v30, 0.0  ;;  %v5159_v38 = vpop.f32.mrb[209].mxu0  ;;  %v5480_v39 = vpop.f32.mrb[209].mxu1 }
 0x8e9   :  { %v5764_v42 = vmul.f32 0.5, %v5700_v28  ;;  %v5317_v43 = vmax.f32 %v5159_v38, 0.0  ;;  %v5638_v44 = vmax.f32 %v5480_v39, 0.0  ;;  %v5923_v28 = vld [vmem:[%s10635_s8 + $0x68] sm:$0xff]  ;;  %7126 = vmatpush3.bf16.msra.mxu1 %v7125_v21 }
 0x8ea   :  { %v7053_v45 = vpack.c.bf16 %v5763_v35, %v5761_v27  ;;  %v5701_v46 = vadd.f32 %v5637_v37, %v5316_v36  ;;  %v5922_v27 = vld [vmem:[%s10635_s8 + $0x60] sm:$0xff]  ;;  %7128 = vmatprep.subr.bf16.mxu1 %v7127_v26 }
 0x8eb   :  { %v5702_v48 = vadd.f32 %v5638_v44, %v5317_v43  ;;  %v5163_v49 = vpop.f32.mrb[210].mxu0  ;;  %v5484_v50 = vpop.f32.mrb[210].mxu1  ;;  %v7051_v51 = vpack.c.bf16 %v5764_v42, %v5762_v41  ;;  %v7129_v38 = vpack.c.bf16 %v5923_v28, %v5922_v27  ;;  %v7131_v42 = vpack.c.bf16 %v5941_v34, %v5940_v33  ;;  %v5924_v43 = vld [vmem:[%s10635_s8 + $0x70] sm:$0xff]  ;;  %v5925_v44 = vld [vmem:[%s10635_s8 + $0x78] sm:$0xff] }
 0x8ec   :  { %v5318_v55 = vmax.f32 %v5163_v49, 0.0  ;;  %v5639_v56 = vmax.f32 %v5484_v50, 0.0  ;;  %v5165_v57 = vpop.f32.mrb[211].mxu0  ;;  %v5486_v58 = vpop.f32.mrb[211].mxu1  ;;  %v5765_v9 = vmul.f32 0.5, %v5701_v46 }
 0x8ed   :  { %v5319_v61 = vmax.f32 %v5165_v57, 0.0  ;;  %v5640_v62 = vmax.f32 %v5486_v58, 0.0  ;;  %7052 = vmatprep.subr.bf16.mxu0 %v7051_v51  ;;  %v5766_v15 = vmul.f32 0.5, %v5702_v48  ;;  %7130 = vmatpush3.bf16.msra.mxu1 %v7129_v38  ;;  %v7133_v57 = vpack.c.bf16 %v5925_v44, %v5924_v43 }
 0x8ee   :  { %v5703_v63 = vadd.f32 %v5639_v56, %v5318_v55  ;;  %7054 = vmatpush1.bf16.msra.mxu0 %v7053_v45  ;;  %7132 = vmatprep.subr.bf16.mxu1 %v7131_v42 }
 0x8ef   :  { %v5704_v2 = vadd.f32 %v5640_v62, %v5319_v61  ;;  %v5169_v3 = vpop.f32.mrb[212].mxu0  ;;  %v5490_v4 = vpop.f32.mrb[212].mxu1 }
 0x8f0   :  { %v5767_v10 = vmul.f32 0.5, %v5703_v63  ;;  %v5320_v11 = vmax.f32 %v5169_v3, 0.0  ;;  %v5641_v12 = vmax.f32 %v5490_v4, 0.0  ;;  %v5171_v13 = vpop.f32.mrb[213].mxu0  ;;  %v5492_v14 = vpop.f32.mrb[213].mxu1 }
 0x8f1   :  { %v5768_v16 = vmul.f32 0.5, %v5704_v2  ;;  %v5321_v17 = vmax.f32 %v5171_v13, 0.0  ;;  %v5642_v18 = vmax.f32 %v5492_v14, 0.0  ;;  %7134 = vmatpush3.bf16.msra.mxu1 %v7133_v57 }
 0x8f2   :  { %v7057_v19 = vpack.c.bf16 %v5767_v10, %v5765_v9  ;;  %v5705_v20 = vadd.f32 %v5641_v12, %v5320_v11 }
 0x8f3   :  { %v5706_v22 = vadd.f32 %v5642_v18, %v5321_v17  ;;  %v5175_v23 = vpop.f32.mrb[214].mxu0  ;;  %v5496_v24 = vpop.f32.mrb[214].mxu1  ;;  %v7055_v25 = vpack.c.bf16 %v5768_v16, %v5766_v15 }
 0x8f4   :  { %v5322_v29 = vmax.f32 %v5175_v23, 0.0  ;;  %v5643_v30 = vmax.f32 %v5496_v24, 0.0  ;;  %v5177_v31 = vpop.f32.mrb[215].mxu0  ;;  %v5498_v32 = vpop.f32.mrb[215].mxu1  ;;  %v5769_v45 = vmul.f32 0.5, %v5705_v20 }
 0x8f5   :  { %v5323_v35 = vmax.f32 %v5177_v31, 0.0  ;;  %v5644_v36 = vmax.f32 %v5498_v32, 0.0  ;;  %7056 = vmatprep.subr.bf16.mxu0 %v7055_v25  ;;  %v5770_v51 = vmul.f32 0.5, %v5706_v22 }
 0x8f6   :  { %v5707_v37 = vadd.f32 %v5643_v30, %v5322_v29  ;;  %7058 = vmatpush1.bf16.msra.mxu0 %v7057_v19 }
 0x8f7   :  { %v5708_v39 = vadd.f32 %v5644_v36, %v5323_v35  ;;  %v5181_v40 = vpop.f32.mrb[216].mxu0  ;;  %v5502_v41 = vpop.f32.mrb[216].mxu1 }
 0x8f8   :  { %v5771_v46 = vmul.f32 0.5, %v5707_v37  ;;  %v5324_v47 = vmax.f32 %v5181_v40, 0.0  ;;  %v5645_v48 = vmax.f32 %v5502_v41, 0.0  ;;  %v5183_v49 = vpop.f32.mrb[217].mxu0  ;;  %v5504_v50 = vpop.f32.mrb[217].mxu1 }
 0x8f9   :  { %v5772_v52 = vmul.f32 0.5, %v5708_v39  ;;  %v5325_v53 = vmax.f32 %v5183_v49, 0.0  ;;  %v5646_v54 = vmax.f32 %v5504_v50, 0.0 }
 0x8fa   :  { %v7061_v55 = vpack.c.bf16 %v5771_v46, %v5769_v45  ;;  %v5709_v56 = vadd.f32 %v5645_v48, %v5324_v47 }
 0x8fb   :  { %v5710_v58 = vadd.f32 %v5646_v54, %v5325_v53  ;;  %v5187_v59 = vpop.f32.mrb[218].mxu0  ;;  %v5508_v60 = vpop.f32.mrb[218].mxu1  ;;  %v7059_v61 = vpack.c.bf16 %v5772_v52, %v5770_v51 }
 0x8fc   :  { %v5326_v62 = vmax.f32 %v5187_v59, 0.0  ;;  %v5647_v63 = vmax.f32 %v5508_v60, 0.0  ;;  %v5189_v0 = vpop.f32.mrb[219].mxu0  ;;  %v5510_v1 = vpop.f32.mrb[219].mxu1  ;;  %v5773_v8 = vmul.f32 0.5, %v5709_v56 }
 0x8fd   :  { %v5327_v2 = vmax.f32 %v5189_v0, 0.0  ;;  %v5648_v3 = vmax.f32 %v5510_v1, 0.0  ;;  %7060 = vmatprep.subr.bf16.mxu0 %v7059_v61  ;;  %v5774_v14 = vmul.f32 0.5, %v5710_v58 }
 0x8fe   :  { %v5711_v4 = vadd.f32 %v5647_v63, %v5326_v62  ;;  %7062 = vmatpush1.bf16.msra.mxu0 %v7061_v55 }
 0x8ff   :  { %v5712_v5 = vadd.f32 %v5648_v3, %v5327_v2  ;;  %v5193_v6 = vpop.f32.mrb[220].mxu0  ;;  %v5514_v7 = vpop.f32.mrb[220].mxu1 }
 0x900   :  { %v5775_v9 = vmul.f32 0.5, %v5711_v4  ;;  %v5328_v10 = vmax.f32 %v5193_v6, 0.0  ;;  %v5649_v11 = vmax.f32 %v5514_v7, 0.0  ;;  %v5195_v12 = vpop.f32.mrb[221].mxu0  ;;  %v5516_v13 = vpop.f32.mrb[221].mxu1 }
 0x901   :  { %v5776_v15 = vmul.f32 0.5, %v5712_v5  ;;  %v5329_v16 = vmax.f32 %v5195_v12, 0.0  ;;  %v5650_v17 = vmax.f32 %v5516_v13, 0.0 }
 0x902   :  { %v7065_v18 = vpack.c.bf16 %v5775_v9, %v5773_v8  ;;  %v5713_v19 = vadd.f32 %v5649_v11, %v5328_v10 }
 0x903   :  { %v5714_v20 = vadd.f32 %v5650_v17, %v5329_v16  ;;  %v5199_v21 = vpop.f32.mrb[222].mxu0  ;;  %v5520_v22 = vpop.f32.mrb[222].mxu1  ;;  %v7063_v23 = vpack.c.bf16 %v5776_v15, %v5774_v14 }
 0x904   :  { %v5330_v24 = vmax.f32 %v5199_v21, 0.0  ;;  %v5651_v25 = vmax.f32 %v5520_v22, 0.0  ;;  %v5201_v26 = vpop.f32.mrb[223].mxu0  ;;  %v5522_v27 = vpop.f32.mrb[223].mxu1  ;;  %v5777_v34 = vmul.f32 0.5, %v5713_v19 }
 0x905   :  { %v5331_v28 = vmax.f32 %v5201_v26, 0.0  ;;  %v5652_v29 = vmax.f32 %v5522_v27, 0.0  ;;  %7064 = vmatprep.subr.bf16.mxu0 %v7063_v23  ;;  %v5778_v40 = vmul.f32 0.5, %v5714_v20 }
 0x906   :  { %v5715_v30 = vadd.f32 %v5651_v25, %v5330_v24  ;;  %7066 = vmatpush1.bf16.msra.mxu0 %v7065_v18 }
 0x907   :  { %v5716_v31 = vadd.f32 %v5652_v29, %v5331_v28  ;;  %v5205_v32 = vpop.f32.mrb[224].mxu0  ;;  %v5526_v33 = vpop.f32.mrb[224].mxu1 }
 0x908   :  { %v5779_v35 = vmul.f32 0.5, %v5715_v30  ;;  %v5332_v36 = vmax.f32 %v5205_v32, 0.0  ;;  %v5653_v37 = vmax.f32 %v5526_v33, 0.0  ;;  %v5207_v38 = vpop.f32.mrb[225].mxu0  ;;  %v5528_v39 = vpop.f32.mrb[225].mxu1 }
 0x909   :  { %v5780_v41 = vmul.f32 0.5, %v5716_v31  ;;  %v5333_v42 = vmax.f32 %v5207_v38, 0.0  ;;  %v5654_v43 = vmax.f32 %v5528_v39, 0.0 }
 0x90a   :  { %v7069_v44 = vpack.c.bf16 %v5779_v35, %v5777_v34  ;;  %v5717_v45 = vadd.f32 %v5653_v37, %v5332_v36 }
 0x90b   :  { %v5718_v46 = vadd.f32 %v5654_v43, %v5333_v42  ;;  %v5211_v47 = vpop.f32.mrb[226].mxu0  ;;  %v5532_v48 = vpop.f32.mrb[226].mxu1  ;;  %v7067_v49 = vpack.c.bf16 %v5780_v41, %v5778_v40 }
 0x90c   :  { %v5334_v50 = vmax.f32 %v5211_v47, 0.0  ;;  %v5655_v51 = vmax.f32 %v5532_v48, 0.0  ;;  %v5213_v52 = vpop.f32.mrb[227].mxu0  ;;  %v5534_v53 = vpop.f32.mrb[227].mxu1  ;;  %v5781_v60 = vmul.f32 0.5, %v5717_v45 }
 0x90d   :  { %v5335_v54 = vmax.f32 %v5213_v52, 0.0  ;;  %v5656_v55 = vmax.f32 %v5534_v53, 0.0  ;;  %7068 = vmatprep.subr.bf16.mxu0 %v7067_v49  ;;  %v5782_v2 = vmul.f32 0.5, %v5718_v46 }
 0x90e   :  { %v5719_v56 = vadd.f32 %v5655_v51, %v5334_v50  ;;  %7070 = vmatpush1.bf16.msra.mxu0 %v7069_v44 }
 0x90f   :  { %v5720_v57 = vadd.f32 %v5656_v55, %v5335_v54  ;;  %v5217_v58 = vpop.f32.mrb[228].mxu0  ;;  %v5538_v59 = vpop.f32.mrb[228].mxu1 }
 0x910   :  { %v5783_v61 = vmul.f32 0.5, %v5719_v56  ;;  %v5336_v62 = vmax.f32 %v5217_v58, 0.0  ;;  %v5657_v63 = vmax.f32 %v5538_v59, 0.0  ;;  %v5219_v0 = vpop.f32.mrb[229].mxu0  ;;  %v5540_v1 = vpop.f32.mrb[229].mxu1 }
 0x911   :  { %v5784_v3 = vmul.f32 0.5, %v5720_v57  ;;  %v5337_v4 = vmax.f32 %v5219_v0, 0.0  ;;  %v5658_v5 = vmax.f32 %v5540_v1, 0.0 }
 0x912   :  { %v7073_v6 = vpack.c.bf16 %v5783_v61, %v5781_v60  ;;  %v5721_v7 = vadd.f32 %v5657_v63, %v5336_v62 }
 0x913   :  { %v5722_v8 = vadd.f32 %v5658_v5, %v5337_v4  ;;  %v5223_v9 = vpop.f32.mrb[230].mxu0  ;;  %v5544_v10 = vpop.f32.mrb[230].mxu1  ;;  %v7071_v11 = vpack.c.bf16 %v5784_v3, %v5782_v2 }
 0x914   :  { %v5338_v12 = vmax.f32 %v5223_v9, 0.0  ;;  %v5659_v13 = vmax.f32 %v5544_v10, 0.0  ;;  %v5225_v14 = vpop.f32.mrb[231].mxu0  ;;  %v5546_v15 = vpop.f32.mrb[231].mxu1  ;;  %v5785_v22 = vmul.f32 0.5, %v5721_v7 }
 0x915   :  { %v5339_v16 = vmax.f32 %v5225_v14, 0.0  ;;  %v5660_v17 = vmax.f32 %v5546_v15, 0.0  ;;  %7072 = vmatprep.subr.bf16.mxu0 %v7071_v11  ;;  %v5786_v28 = vmul.f32 0.5, %v5722_v8 }
 0x916   :  { %v5723_v18 = vadd.f32 %v5659_v13, %v5338_v12  ;;  %7074 = vmatpush1.bf16.msra.mxu0 %v7073_v6 }
 0x917   :  { %v5724_v19 = vadd.f32 %v5660_v17, %v5339_v16  ;;  %v5229_v20 = vpop.f32.mrb[232].mxu0  ;;  %v5550_v21 = vpop.f32.mrb[232].mxu1 }
 0x918   :  { %v5787_v23 = vmul.f32 0.5, %v5723_v18  ;;  %v5340_v24 = vmax.f32 %v5229_v20, 0.0  ;;  %v5661_v25 = vmax.f32 %v5550_v21, 0.0  ;;  %v5231_v26 = vpop.f32.mrb[233].mxu0  ;;  %v5552_v27 = vpop.f32.mrb[233].mxu1 }
 0x919   :  { %v5788_v29 = vmul.f32 0.5, %v5724_v19  ;;  %v5341_v30 = vmax.f32 %v5231_v26, 0.0  ;;  %v5662_v31 = vmax.f32 %v5552_v27, 0.0 }
 0x91a   :  { %v7077_v32 = vpack.c.bf16 %v5787_v23, %v5785_v22  ;;  %v5725_v33 = vadd.f32 %v5661_v25, %v5340_v24 }
 0x91b   :  { %v5726_v34 = vadd.f32 %v5662_v31, %v5341_v30  ;;  %v5235_v35 = vpop.f32.mrb[234].mxu0  ;;  %v5556_v36 = vpop.f32.mrb[234].mxu1  ;;  %v7075_v37 = vpack.c.bf16 %v5788_v29, %v5786_v28 }
 0x91c   :  { %v5342_v38 = vmax.f32 %v5235_v35, 0.0  ;;  %v5663_v39 = vmax.f32 %v5556_v36, 0.0  ;;  %v5237_v40 = vpop.f32.mrb[235].mxu0  ;;  %v5558_v41 = vpop.f32.mrb[235].mxu1  ;;  %v5789_v48 = vmul.f32 0.5, %v5725_v33 }
 0x91d   :  { %v5343_v42 = vmax.f32 %v5237_v40, 0.0  ;;  %v5664_v43 = vmax.f32 %v5558_v41, 0.0  ;;  %7076 = vmatprep.subr.bf16.mxu0 %v7075_v37  ;;  %v5790_v54 = vmul.f32 0.5, %v5726_v34 }
 0x91e   :  { %v5727_v44 = vadd.f32 %v5663_v39, %v5342_v38  ;;  %7078 = vmatpush1.bf16.msra.mxu0 %v7077_v32 }
 0x91f   :  { %v5728_v45 = vadd.f32 %v5664_v43, %v5343_v42  ;;  %v5241_v46 = vpop.f32.mrb[236].mxu0  ;;  %v5562_v47 = vpop.f32.mrb[236].mxu1 }
 0x920   :  { %v5791_v49 = vmul.f32 0.5, %v5727_v44  ;;  %v5344_v50 = vmax.f32 %v5241_v46, 0.0  ;;  %v5665_v51 = vmax.f32 %v5562_v47, 0.0  ;;  %v5243_v52 = vpop.f32.mrb[237].mxu0  ;;  %v5564_v53 = vpop.f32.mrb[237].mxu1 }
 0x921   :  { %v5792_v55 = vmul.f32 0.5, %v5728_v45  ;;  %v5345_v56 = vmax.f32 %v5243_v52, 0.0  ;;  %v5666_v57 = vmax.f32 %v5564_v53, 0.0 }
 0x922   :  { %v7081_v58 = vpack.c.bf16 %v5791_v49, %v5789_v48  ;;  %v5729_v59 = vadd.f32 %v5665_v51, %v5344_v50 }
 0x923   :  { %v5730_v60 = vadd.f32 %v5666_v57, %v5345_v56  ;;  %v5247_v61 = vpop.f32.mrb[238].mxu0  ;;  %v5568_v62 = vpop.f32.mrb[238].mxu1  ;;  %v7079_v63 = vpack.c.bf16 %v5792_v55, %v5790_v54 }
 0x924   :  { %v5346_v0 = vmax.f32 %v5247_v61, 0.0  ;;  %v5667_v1 = vmax.f32 %v5568_v62, 0.0  ;;  %v5249_v2 = vpop.f32.mrb[239].mxu0  ;;  %v5570_v3 = vpop.f32.mrb[239].mxu1  ;;  %v5793_v10 = vmul.f32 0.5, %v5729_v59 }
 0x925   :  { %v5347_v4 = vmax.f32 %v5249_v2, 0.0  ;;  %v5668_v5 = vmax.f32 %v5570_v3, 0.0  ;;  %7080 = vmatprep.subr.bf16.mxu0 %v7079_v63  ;;  %v5794_v16 = vmul.f32 0.5, %v5730_v60 }
 0x926   :  { %v5731_v6 = vadd.f32 %v5667_v1, %v5346_v0  ;;  %7082 = vmatpush1.bf16.msra.mxu0 %v7081_v58 }
 0x927   :  { %v5732_v7 = vadd.f32 %v5668_v5, %v5347_v4  ;;  %v5253_v8 = vpop.f32.mrb[240].mxu0  ;;  %v5574_v9 = vpop.f32.mrb[240].mxu1 }
 0x928   :  { %v5795_v11 = vmul.f32 0.5, %v5731_v6  ;;  %v5348_v12 = vmax.f32 %v5253_v8, 0.0  ;;  %v5669_v13 = vmax.f32 %v5574_v9, 0.0  ;;  %v5255_v14 = vpop.f32.mrb[241].mxu0  ;;  %v5576_v15 = vpop.f32.mrb[241].mxu1 }
 0x929   :  { %v5796_v17 = vmul.f32 0.5, %v5732_v7  ;;  %v5349_v18 = vmax.f32 %v5255_v14, 0.0  ;;  %v5670_v19 = vmax.f32 %v5576_v15, 0.0 }
 0x92a   :  { %v7085_v20 = vpack.c.bf16 %v5795_v11, %v5793_v10  ;;  %v5733_v21 = vadd.f32 %v5669_v13, %v5348_v12 }
 0x92b   :  { %v5734_v22 = vadd.f32 %v5670_v19, %v5349_v18  ;;  %v5259_v23 = vpop.f32.mrb[242].mxu0  ;;  %v5580_v24 = vpop.f32.mrb[242].mxu1  ;;  %v7083_v25 = vpack.c.bf16 %v5796_v17, %v5794_v16 }
 0x92c   :  { %v5350_v26 = vmax.f32 %v5259_v23, 0.0  ;;  %v5671_v27 = vmax.f32 %v5580_v24, 0.0  ;;  %v5261_v28 = vpop.f32.mrb[243].mxu0  ;;  %v5582_v29 = vpop.f32.mrb[243].mxu1  ;;  %v5797_v36 = vmul.f32 0.5, %v5733_v21 }
 0x92d   :  { %v5351_v30 = vmax.f32 %v5261_v28, 0.0  ;;  %v5672_v31 = vmax.f32 %v5582_v29, 0.0  ;;  %7084 = vmatprep.subr.bf16.mxu0 %v7083_v25  ;;  %v5798_v42 = vmul.f32 0.5, %v5734_v22 }
 0x92e   :  { %v5735_v32 = vadd.f32 %v5671_v27, %v5350_v26  ;;  %7086 = vmatpush1.bf16.msra.mxu0 %v7085_v20 }
 0x92f   :  { %v5736_v33 = vadd.f32 %v5672_v31, %v5351_v30  ;;  %v5265_v34 = vpop.f32.mrb[244].mxu0  ;;  %v5586_v35 = vpop.f32.mrb[244].mxu1 }
 0x930   :  { %v5799_v37 = vmul.f32 0.5, %v5735_v32  ;;  %v5352_v38 = vmax.f32 %v5265_v34, 0.0  ;;  %v5673_v39 = vmax.f32 %v5586_v35, 0.0  ;;  %v5267_v40 = vpop.f32.mrb[245].mxu0  ;;  %v5588_v41 = vpop.f32.mrb[245].mxu1 }
 0x931   :  { %v5800_v43 = vmul.f32 0.5, %v5736_v33  ;;  %v5353_v44 = vmax.f32 %v5267_v40, 0.0  ;;  %v5674_v45 = vmax.f32 %v5588_v41, 0.0 }
 0x932   :  { %v7089_v46 = vpack.c.bf16 %v5799_v37, %v5797_v36  ;;  %v5737_v47 = vadd.f32 %v5673_v39, %v5352_v38 }
 0x933   :  { %v5738_v48 = vadd.f32 %v5674_v45, %v5353_v44  ;;  %v5271_v49 = vpop.f32.mrb[246].mxu0  ;;  %v5592_v50 = vpop.f32.mrb[246].mxu1  ;;  %v7087_v51 = vpack.c.bf16 %v5800_v43, %v5798_v42 }
 0x934   :  { %v5354_v52 = vmax.f32 %v5271_v49, 0.0  ;;  %v5675_v53 = vmax.f32 %v5592_v50, 0.0  ;;  %v5273_v54 = vpop.f32.mrb[247].mxu0  ;;  %v5594_v55 = vpop.f32.mrb[247].mxu1  ;;  %v5801_v62 = vmul.f32 0.5, %v5737_v47 }
 0x935   :  { %v5355_v56 = vmax.f32 %v5273_v54, 0.0  ;;  %v5676_v57 = vmax.f32 %v5594_v55, 0.0  ;;  %7088 = vmatprep.subr.bf16.mxu0 %v7087_v51  ;;  %v5802_v4 = vmul.f32 0.5, %v5738_v48  ;;  %v5813_v54 = vld [vmem:[%s10634_s3] sm:$0xff]  ;;  %v5816_v55 = vld [vmem:[%s10634_s3 + $0x18] sm:$0xff] }
 0x936   :  { %v5739_v58 = vadd.f32 %v5675_v53, %v5354_v52  ;;  %7090 = vmatpush1.bf16.msra.mxu0 %v7089_v46 }
 0x937   :  { %v5740_v59 = vadd.f32 %v5676_v57, %v5355_v56  ;;  %v5277_v60 = vpop.f32.mrb[248].mxu0  ;;  %v5598_v61 = vpop.f32.mrb[248].mxu1  ;;  %v5815_v56 = vld [vmem:[%s10634_s3 + $0x10] sm:$0xff]  ;;  %v5818_v57 = vld [vmem:[%s10634_s3 + $0x28] sm:$0xff] }
 0x938   :  { %v5803_v63 = vmul.f32 0.5, %v5739_v58  ;;  %v5356_v0 = vmax.f32 %v5277_v60, 0.0  ;;  %v5677_v1 = vmax.f32 %v5598_v61, 0.0  ;;  %v5279_v2 = vpop.f32.mrb[249].mxu0  ;;  %v5600_v3 = vpop.f32.mrb[249].mxu1  ;;  %v5817_v58 = vld [vmem:[%s10634_s3 + $0x20] sm:$0xff] }
 0x939   :  { %v5804_v5 = vmul.f32 0.5, %v5740_v59  ;;  %v5357_v6 = vmax.f32 %v5279_v2, 0.0  ;;  %v5678_v7 = vmax.f32 %v5600_v3, 0.0  ;;  %v5820_v59 = vld [vmem:[%s10634_s3 + $0x38] sm:$0xff]  ;;  %v5819_v60 = vld [vmem:[%s10634_s3 + $0x30] sm:$0xff] }
 0x93a   :  { %v7093_v8 = vpack.c.bf16 %v5803_v63, %v5801_v62  ;;  %v5741_v9 = vadd.f32 %v5677_v1, %v5356_v0 }
 0x93b   :  { %v5742_v10 = vadd.f32 %v5678_v7, %v5357_v6  ;;  %v5283_v11 = vpop.f32.mrb[250].mxu0  ;;  %v5604_v12 = vpop.f32.mrb[250].mxu1  ;;  %v7091_v13 = vpack.c.bf16 %v5804_v5, %v5802_v4 }
 0x93c   :  { %v5358_v14 = vmax.f32 %v5283_v11, 0.0  ;;  %v5679_v15 = vmax.f32 %v5604_v12, 0.0  ;;  %v5285_v16 = vpop.f32.mrb[251].mxu0  ;;  %v5606_v17 = vpop.f32.mrb[251].mxu1  ;;  %v5805_v24 = vmul.f32 0.5, %v5741_v9 }
 0x93d   :  { %v5359_v18 = vmax.f32 %v5285_v16, 0.0  ;;  %v5680_v19 = vmax.f32 %v5606_v17, 0.0  ;;  %7092 = vmatprep.subr.bf16.mxu0 %v7091_v13  ;;  %v5806_v30 = vmul.f32 0.5, %v5742_v10 }
 0x93e   :  { %v5743_v20 = vadd.f32 %v5679_v15, %v5358_v14  ;;  %7094 = vmatpush1.bf16.msra.mxu0 %v7093_v8 }
 0x93f   :  { %v5744_v21 = vadd.f32 %v5680_v19, %v5359_v18  ;;  %v5289_v22 = vpop.f32.mrb[252].mxu0  ;;  %v5610_v23 = vpop.f32.mrb[252].mxu1 }
 0x940   :  { %v5807_v25 = vmul.f32 0.5, %v5743_v20  ;;  %v5360_v26 = vmax.f32 %v5289_v22, 0.0  ;;  %v5681_v27 = vmax.f32 %v5610_v23, 0.0  ;;  %v5291_v28 = vpop.f32.mrb[253].mxu0  ;;  %v5612_v29 = vpop.f32.mrb[253].mxu1 }
 0x941   :  { %v5808_v31 = vmul.f32 0.5, %v5744_v21  ;;  %v5361_v32 = vmax.f32 %v5291_v28, 0.0  ;;  %v5682_v33 = vmax.f32 %v5612_v29, 0.0 }
 0x942   :  { %v7097_v34 = vpack.c.bf16 %v5807_v25, %v5805_v24  ;;  %v5745_v35 = vadd.f32 %v5681_v27, %v5360_v26 }
 0x943   :  { %v5746_v36 = vadd.f32 %v5682_v33, %v5361_v32  ;;  %v5295_v37 = vpop.f32.mrb[254].mxu0  ;;  %v5616_v38 = vpop.f32.mrb[254].mxu1  ;;  %v7095_v39 = vpack.c.bf16 %v5808_v31, %v5806_v30 }
 0x944   :  { %v5362_v40 = vmax.f32 %v5295_v37, 0.0  ;;  %v5683_v41 = vmax.f32 %v5616_v38, 0.0  ;;  %v5297_v42 = vpop.f32.mrb[255].mxu0  ;;  %v5618_v43 = vpop.f32.mrb[255].mxu1  ;;  %v5809_v48 = vmul.f32 0.5, %v5745_v35 }
 0x945   :  { %v5363_v44 = vmax.f32 %v5297_v42, 0.0  ;;  %v5684_v45 = vmax.f32 %v5618_v43, 0.0  ;;  %7096 = vmatprep.subr.bf16.mxu0 %v7095_v39  ;;  %v5810_v50 = vmul.f32 0.5, %v5746_v36 }
 0x946   :  { %v5747_v46 = vadd.f32 %v5683_v41, %v5362_v40  ;;  %7098 = vmatpush1.bf16.msra.mxu0 %v7097_v34 }
 0x947   :  { %v5748_v47 = vadd.f32 %v5684_v45, %v5363_v44 }
 0x948   :  { %v5811_v49 = vmul.f32 0.5, %v5747_v46 }
 0x949   :  { %v5812_v51 = vmul.f32 0.5, %v5748_v47 }
 0x94a   :  { %v7101_v52 = vpack.c.bf16 %v5811_v49, %v5809_v48 }
 0x94b   :  { %v7099_v53 = vpack.c.bf16 %v5812_v51, %v5810_v50 }
 0x94d   :  { %7100 = vmatprep.subr.bf16.mxu0 %v7099_v53 }
 0x94e   :  { %7102 = vmatpush1.bf16.msra.mxu0 %v7101_v52 }
 0x951   :  { %5886 = vmatmul.mubr.f32.vlgmr.msra.gmra.mrb[0].mxu0 %v5813_v54 }
 0x952   :  { %5891 = vmatprep.mubr.f32.mxu0 %v5816_v55 }
 0x955   :  { %5892 = vmatmul.mubr.f32.gmra.mrb[2].mxu0 %v5815_v56 }
 0x956   :  { %5897 = vmatprep.mubr.f32.mxu0 %v5818_v57 }
 0x959   :  { %5898 = vmatmul.mubr.f32.gmra.mrb[4].mxu0 %v5817_v58 }
 0x95a   :  { %5903 = vmatprep.mubr.f32.mxu0 %v5820_v59 }
 0x95d   :  { %5904 = vmatmul.mubr.f32.gmra.mrb[6].mxu0 %v5819_v60 }
 0xa24   :  { %v5887_v61 = vpop.f32.mrb[0].mxu0 }
 0xa25   :  { %v5889_v62 = vpop.f32.mrb[1].mxu0 }
 0xa26   :  { %6006 = vmatprep.mubr.f32.mxu1 %v5889_v62 }
 0xa27   :  { %6007 = vmatmul.mubr.f32.vlgmr.msra.gmra.mrb[0].mxu1 %v5887_v61 }
 0xa28   :  { %v5893_v63 = vpop.f32.mrb[2].mxu0 }
 0xa29   :  { %v5895_v0 = vpop.f32.mrb[3].mxu0 }
 0xa2a   :  { %6011 = vmatprep.mubr.f32.mxu1 %v5895_v0 }
 0xa2b   :  { %6012 = vmatmul.mubr.f32.gmra.mrb[2].mxu1 %v5893_v63 }
 0xa2c   :  { %v5899_v1 = vpop.f32.mrb[4].mxu0 }
 0xa2d   :  { %v5901_v2 = vpop.f32.mrb[5].mxu0 }
 0xa2e   :  { %6016 = vmatprep.mubr.f32.mxu1 %v5901_v2 }
 0xa2f   :  { %6017 = vmatmul.mubr.f32.gmra.mrb[4].mxu1 %v5899_v1 }
 0xa30   :  { %v5905_v3 = vpop.f32.mrb[6].mxu0 }
 0xa31   :  { %v5907_v4 = vpop.f32.mrb[7].mxu0 }
 0xa32   :  { %6021 = vmatprep.mubr.f32.mxu1 %v5907_v4 }
 0xa33   :  { %6022 = vmatmul.mubr.f32.gmra.mrb[6].mxu1 %v5905_v3 }
 0xafa   :  { %v6131_v5 = vpop.f32.mrb[0].mxu1 }
 0xafb   :  { %v6132_v6 = vpop.f32.mrb[1].mxu1 }
 0xafc   :  { %v6133_v7 = vadd.f32 %v6132_v6, %v6131_v5 }
 0xafe   :  { %6027 = vst [vmem:[%s10636_s9] sm:$0xff] %v6133_v7  ;;  %v6134_v8 = vpop.f32.mrb[2].mxu1 }
 0xaff   :  { %v6135_v9 = vpop.f32.mrb[3].mxu1 }
 0xb00   :  { %v6136_v10 = vadd.f32 %v6135_v9, %v6134_v8 }
 0xb02   :  { %6028 = vst [vmem:[%s10636_s9 + $0x8] sm:$0xff] %v6136_v10  ;;  %v6137_v11 = vpop.f32.mrb[4].mxu1 }
 0xb03   :  { %v6138_v12 = vpop.f32.mrb[5].mxu1 }
 0xb04   :  { %v6139_v13 = vadd.f32 %v6138_v12, %v6137_v11 }
 0xb06   :  { %6029 = vst [vmem:[%s10636_s9 + $0x10] sm:$0xff] %v6139_v13  ;;  %v6140_v14 = vpop.f32.mrb[6].mxu1 }
 0xb07   :  { %v6141_v15 = vpop.f32.mrb[7].mxu1 }
 0xb08   :  { %v6142_v16 = vadd.f32 %v6141_v15, %v6140_v14 }
 0xb0a   :  { %6030 = vst [vmem:[%s10636_s9 + $0x18] sm:$0xff] %v6142_v16 }

</bundles_post_ra>
